<compile_context>
chip_gen: v7x
topology: tpu7x:2x2x1
jax: 0.10.0
libtpu: 0.0.40
codegen_flags: <defaults>
</compile_context>

<pallas_src>
import functools

import jax
import jax.numpy as jnp
from jax.experimental import pallas as pl
from jax.experimental.pallas import tpu as pltpu

# Fixed channel layout of the fused kernels (module-defined).
C_B0, C_B1A, C_B2A = 192, 96, 16
C_B1, C_B2, C_B3 = 208, 48, 64
SLAB = 128                 # b1a | b2a | 16 zero channels  (lane-aligned)
PW_OUT = SLAB + C_B0       # 320 fused pointwise matmul width
SEP_OUT = C_B1 + C_B2      # 256 fused separable conv width (lane-dense)


# ----------------------------------------------------------------------------
# Kernel 1: fused 1x1x1 convs (branch0 + branch1a + branch2a), BN folded.
#   weight (Cin, 320): cols [0:96]=b1a, [96:112]=b2a, [112:128]=0, [128:320]=b0
#   outputs: slab (M,128) f32 (feeds fused spatial conv), b0 (M,192) f32.
# ----------------------------------------------------------------------------
def _pointwise_kernel(x_ref, w_ref, shift_ref, slab_ref, b0_ref):
    acc = jnp.dot(x_ref[...], w_ref[...], preferred_element_type=jnp.float32)
    y = jnp.maximum(acc + shift_ref[...], 0.0)
    slab_ref[...] = y[:, 0:SLAB]
    b0_ref[...] = y[:, SLAB:PW_OUT]


def fused_pointwise(x2d_bf16, w_bf16, shift, tm=512):
    M, cin = x2d_bf16.shape
    tm = min(tm, M)
    grid = pl.cdiv(M, tm)
    slab, b0 = pl.pallas_call(
        _pointwise_kernel,
        out_shape=(jax.ShapeDtypeStruct((M, SLAB), jnp.float32),
                   jax.ShapeDtypeStruct((M, C_B0), jnp.float32)),
        grid_spec=pltpu.PrefetchScalarGridSpec(
            num_scalar_prefetch=0,
            grid=(grid,),
            in_specs=[
                pl.BlockSpec((tm, cin), lambda i: (i, 0)),
                pl.BlockSpec((cin, PW_OUT), lambda i: (0, 0)),
                pl.BlockSpec((1, PW_OUT), lambda i: (0, 0)),
            ],
            out_specs=[
                pl.BlockSpec((tm, SLAB), lambda i: (i, 0)),
                pl.BlockSpec((tm, C_B0), lambda i: (i, 0)),
            ],
        ),
        compiler_params=pltpu.CompilerParams(dimension_semantics=("parallel",)),
    )(x2d_bf16, w_bf16, shift)
    return slab, b0


# ----------------------------------------------------------------------------
# Kernel 2: fused (branch1|branch2) spatial (1,3,3) conv, block-diag 128->256.
# Frames are row-major flattened with padding so every tap (dh, dw) is ONE
# (F*Lp, Cin) x (Cin, 256) matmul per grid step (no per-frame loop).
# ----------------------------------------------------------------------------
def _spatial_kernel(x_ref, w_ref, shift_ref, o_ref, *, P):
    Lout = o_ref.shape[1]
    shift = shift_ref[...]
    acc = None
    for dh in range(3):
        for dw in range(3):
            off = dh * P + dw
            part = jnp.dot(x_ref[0, off:off + Lout, :].astype(jnp.bfloat16),
                           w_ref[dh, dw],
                           preferred_element_type=jnp.float32)
            acc = part if acc is None else acc + part
    o_ref[0] = jnp.maximum(acc + shift, 0.0).astype(o_ref.dtype)


def fused_spatial(slab, N, T, H, W, w_bf16, shift, frames_per_block=4):
    # slab: (N*T*H*W, 128) f32 -> (N*T, H, W, 256) bf16
    NT = N * T
    C = slab.shape[-1]
    Cout = w_bf16.shape[-1]
    P = W + 2
    Hp = H + 3                    # 1 top pad, 2 bottom pads (keeps taps in-frame)
    Lp = Hp * P
    F = 1
    for cand in (frames_per_block, 4, 2, 1):
        if cand >= 1 and NT % cand == 0:
            F = cand
            break
    nchunks = NT // F
    tail = 2 * P + 2              # halo rows so garbage output rows read in-bounds

    frames = slab.reshape(NT, H, W, C)
    xp = jnp.pad(frames, ((0, 0), (1, 2), (1, 1), (0, 0)))      # (NT,H+3,W+2,C)
    xc = xp.reshape(nchunks, F * Lp, C)
    xc = jnp.pad(xc, ((0, 0), (0, tail), (0, 0)))
    Lin = F * Lp + tail
    Lout = F * Lp

    kern = functools.partial(_spatial_kernel, P=P)
    out = pl.pallas_call(
        kern,
        out_shape=jax.ShapeDtypeStruct((nchunks, Lout, Cout), jnp.bfloat16),
        grid_spec=pltpu.PrefetchScalarGridSpec(
            num_scalar_prefetch=0,
            grid=(nchunks,),
            in_specs=[
                pl.BlockSpec((1, Lin, C), lambda i: (i, 0, 0)),
                pl.BlockSpec((3, 3, C, Cout), lambda i: (0, 0, 0, 0)),
                pl.BlockSpec((1, Cout), lambda i: (0, 0)),
            ],
            out_specs=pl.BlockSpec((1, Lout, Cout), lambda i: (i, 0, 0)),
        ),
        compiler_params=pltpu.CompilerParams(dimension_semantics=("parallel",)),
    )(xc, w_bf16, shift)
    # Strip the padded rows / columns (garbage) once.
    return out.reshape(NT, Hp, P, Cout)[:, :H, :W, :]


# ----------------------------------------------------------------------------
# Kernel 3: fused (branch1|branch2) temporal (3,1,1) conv, block-diag 256->256.
# (T+2, S, C) flattened to ((T+2)*S, C); each tap is one matmul of T*S rows.
# ----------------------------------------------------------------------------
def _temporal_kernel(x_ref, w_ref, shift_ref, o_ref, *, S):
    Lq = o_ref.shape[1]
    shift = shift_ref[...]
    acc = None
    for dt in range(3):
        part = jnp.dot(x_ref[0, dt * S:dt * S + Lq, :], w_ref[dt],
                       preferred_element_type=jnp.float32)
        acc = part if acc is None else acc + part
    o_ref[0] = jnp.maximum(acc + shift, 0.0)


def fused_temporal(x, w_bf16, shift):
    # x: (N, T, S, C) bf16 -> (N, T*S, C) f32  (final branch1|branch2 output)
    N, T, S, C = x.shape
    Lp, Lq = (T + 2) * S, T * S
    xp = jnp.pad(x, ((0, 0), (1, 1), (0, 0), (0, 0)))
    xf = xp.reshape(N, Lp, C)
    kern = functools.partial(_temporal_kernel, S=S)
    return pl.pallas_call(
        kern,
        out_shape=jax.ShapeDtypeStruct((N, Lq, C), jnp.float32),
        grid_spec=pltpu.PrefetchScalarGridSpec(
            num_scalar_prefetch=0,
            grid=(N,),
            in_specs=[
                pl.BlockSpec((1, Lp, C), lambda i: (i, 0, 0)),
                pl.BlockSpec((3, C, C), lambda i: (0, 0, 0)),
                pl.BlockSpec((1, C), lambda i: (0, 0)),
            ],
            out_specs=pl.BlockSpec((1, Lq, C), lambda i: (i, 0, 0)),
        ),
        compiler_params=pltpu.CompilerParams(dimension_semantics=("parallel",)),
    )(xf, w_bf16, shift)


# ----------------------------------------------------------------------------
# Kernel 4: MaxPool3d(3, stride 1, pad 1) FUSED with branch3 1x1x1 conv+BN+ReLU.
# The padded volume is flattened to ((T+3)*(H+2)*(W+2), Cin) so the 27 pool
# taps are shifted row-slices of one 2-D slab; the pooled tile is matmul'd to
# 64 channels without ever leaving VMEM.  Garbage rows (which may hold -inf /
# NaN) are stripped by the wrapper; every valid window contains a real voxel,
# so valid rows are finite.
# ----------------------------------------------------------------------------
def _pool_conv_kernel(x_ref, w_ref, shift_ref, o_ref, *, P2, Pf):
    Lout = o_ref.shape[1]
    pooled = None
    for dt in range(3):
        for dh in range(3):
            for dw in range(3):
                off = dt * Pf + dh * P2 + dw
                v = x_ref[0, off:off + Lout, :]
                pooled = v if pooled is None else jnp.maximum(pooled, v)
    acc = jnp.dot(pooled.astype(jnp.bfloat16), w_ref[...],
                  preferred_element_type=jnp.float32)
    o_ref[0] = jnp.maximum(acc + shift_ref[...], 0.0)


def fused_maxpool_pointwise(x, w_bf16, shift):
    # x: (N, T, H, W, Cin) f32 -> (N, T, H, W, 64) f32
    N, T, H, W, C = x.shape
    Cout = w_bf16.shape[-1]
    P2 = W + 2
    Pf = (H + 2) * P2
    # T padded (1, 2): the extra trailing -inf frame doubles as the flat-offset
    # tail halo (only garbage rows read it).
    xp = jnp.pad(x, ((0, 0), (1, 2), (1, 1), (1, 1), (0, 0)),
                 constant_values=-jnp.inf)
    L3 = (T + 3) * Pf
    xf = xp.reshape(N, L3, C)
    Lout = T * Pf
    kern = functools.partial(_pool_conv_kernel, P2=P2, Pf=Pf)
    out = pl.pallas_call(
        kern,
        out_shape=jax.ShapeDtypeStruct((N, Lout, Cout), jnp.float32),
        grid_spec=pltpu.PrefetchScalarGridSpec(
            num_scalar_prefetch=0,
            grid=(N,),
            in_specs=[
                pl.BlockSpec((1, L3, C), lambda i: (i, 0, 0)),
                pl.BlockSpec((C, Cout), lambda i: (0, 0)),
                pl.BlockSpec((1, Cout), lambda i: (0, 0)),
            ],
            out_specs=pl.BlockSpec((1, Lout, Cout), lambda i: (i, 0, 0)),
        ),
        compiler_params=pltpu.CompilerParams(dimension_semantics=("parallel",)),
    )(xf, w_bf16, shift)
    return out.reshape(N, T, H + 2, P2, Cout)[:, :, :H, :W, :]


# ----------------------------------------------------------------------------
# Parameter init (deterministic, synthetic) with eval-mode BN -> scale/shift
# ----------------------------------------------------------------------------
def _fold_bn(key, cout, eps=1e-3):
    k1, k2, k3, k4 = jax.random.split(key, 4)
    gamma = 1.0 + 0.1 * jax.random.normal(k1, (cout,), jnp.float32)
    beta = 0.1 * jax.random.normal(k2, (cout,), jnp.float32)
    mean = 0.1 * jax.random.normal(k3, (cout,), jnp.float32)
    var = 0.9 + 0.2 * jax.random.uniform(k4, (cout,), jnp.float32)
    scale = gamma / jnp.sqrt(var + eps)
    shift = beta - mean * scale
    return scale.reshape(1, cout), shift.reshape(1, cout)


def init_params(key, cin):
    ks = jax.random.split(key, 16)
    p = {}

    def w2(k, ci, co):   # pointwise conv weight
        return 0.1 * jax.random.normal(k, (ci, co), jnp.float32)

    def ws(k, ci, co):   # (1,3,3) spatial conv weight
        return 0.1 * jax.random.normal(k, (3, 3, ci, co), jnp.float32)

    def wt(k, co):       # (3,1,1) temporal conv weight
        return 0.1 * jax.random.normal(k, (3, co, co), jnp.float32)

    p["b0_w"] = w2(ks[0], cin, C_B0)
    p["b0_scale"], p["b0_shift"] = _fold_bn(ks[1], C_B0)
    p["b1a_w"] = w2(ks[2], cin, C_B1A)
    p["b1a_scale"], p["b1a_shift"] = _fold_bn(ks[3], C_B1A)
    p["b1s_w"] = ws(ks[4], C_B1A, C_B1)
    p["b1s_scale"], p["b1s_shift"] = _fold_bn(ks[5], C_B1)
    p["b1t_w"] = wt(ks[6], C_B1)
    p["b1t_scale"], p["b1t_shift"] = _fold_bn(ks[7], C_B1)
    p["b2a_w"] = w2(ks[8], cin, C_B2A)
    p["b2a_scale"], p["b2a_shift"] = _fold_bn(ks[9], C_B2A)
    p["b2s_w"] = ws(ks[10], C_B2A, C_B2)
    p["b2s_scale"], p["b2s_shift"] = _fold_bn(ks[11], C_B2)
    p["b2t_w"] = wt(ks[12], C_B2)
    p["b2t_scale"], p["b2t_shift"] = _fold_bn(ks[13], C_B2)
    p["b3_w"] = w2(ks[14], cin, C_B3)
    p["b3_scale"], p["b3_shift"] = _fold_bn(ks[15], C_B3)
    return p


def _prepare_fused_weights(p, cin):
    """Fold BN scale into weights, build fused / block-diagonal bf16 weights."""
    f32 = jnp.float32

    # fused pointwise: [b1a | b2a | zeros(16) | b0] -> 320 output columns
    wpw = jnp.zeros((cin, PW_OUT), f32)
    wpw = wpw.at[:, 0:C_B1A].set(p["b1a_w"] * p["b1a_scale"])
    wpw = wpw.at[:, C_B1A:C_B1A + C_B2A].set(p["b2a_w"] * p["b2a_scale"])
    wpw = wpw.at[:, SLAB:PW_OUT].set(p["b0_w"] * p["b0_scale"])
    spw = jnp.zeros((1, PW_OUT), f32)
    spw = spw.at[:, 0:C_B1A].set(p["b1a_shift"])
    spw = spw.at[:, C_B1A:C_B1A + C_B2A].set(p["b2a_shift"])
    spw = spw.at[:, SLAB:PW_OUT].set(p["b0_shift"])

    # block-diagonal spatial (1,3,3) conv: 128 -> 256
    ws = jnp.zeros((3, 3, SLAB, SEP_OUT), f32)
    ws = ws.at[:, :, 0:C_B1A, 0:C_B1].set(p["b1s_w"] * p["b1s_scale"])
    ws = ws.at[:, :, C_B1A:C_B1A + C_B2A, C_B1:SEP_OUT].set(
        p["b2s_w"] * p["b2s_scale"])
    ss = jnp.concatenate([p["b1s_shift"], p["b2s_shift"]], axis=1)

    # block-diagonal temporal (3,1,1) conv: 256 -> 256
    wt = jnp.zeros((3, SEP_OUT, SEP_OUT), f32)
    wt = wt.at[:, 0:C_B1, 0:C_B1].set(p["b1t_w"] * p["b1t_scale"])
    wt = wt.at[:, C_B1:SEP_OUT, C_B1:SEP_OUT].set(p["b2t_w"] * p["b2t_scale"])
    st = jnp.concatenate([p["b1t_shift"], p["b2t_shift"]], axis=1)

    # branch3 pointwise
    w3 = p["b3_w"] * p["b3_scale"]

    bf = jnp.bfloat16
    return dict(wpw=wpw.astype(bf), spw=spw,
                ws=ws.astype(bf), ss=ss,
                wt=wt.astype(bf), st=st,
                w3=w3.astype(bf), s3=p["b3_shift"])


# ----------------------------------------------------------------------------
# Mixed_5b forward
# ----------------------------------------------------------------------------
def mixed_5b_forward(x_ncthw, params):
    # x_ncthw: (N, C, T, H, W) float32 (PyTorch NCDHW convention)
    N, cin, T, H, W = x_ncthw.shape
    fused = _prepare_fused_weights(params, cin)

    x = jnp.transpose(x_ncthw, (0, 2, 3, 4, 1))            # (N,T,H,W,Cin) f32
    M = N * T * H * W
    x2d = x.reshape(M, cin).astype(jnp.bfloat16)

    # branch0 + branch1a + branch2a: one fused matmul
    slab, b0 = fused_pointwise(x2d, fused["wpw"], fused["spw"])

    # branch1 + branch2: fused separable conv (block-diagonal weights)
    sp = fused_spatial(slab, N, T, H, W, fused["ws"], fused["ss"])
    b12 = fused_temporal(sp.reshape(N, T, H * W, SEP_OUT),
                         fused["wt"], fused["st"])
    b12 = b12.reshape(M, SEP_OUT)                          # [b1(208) | b2(48)]

    # branch3: maxpool fused with pointwise conv
    b3 = fused_maxpool_pointwise(x, fused["w3"], fused["s3"])
    b3 = b3.reshape(M, C_B3)

    out = jnp.concatenate([b0, b12, b3], axis=-1)          # (M, 512)
    out = out.reshape(N, T, H, W, C_B0 + SEP_OUT + C_B3)
    return jnp.transpose(out, (0, 4, 1, 2, 3))             # NCDHW


if __name__ == "__main__":
    key = jax.random.PRNGKey(0)
    kx, kp = jax.random.split(key)
    N, Cin, T, H, W = 2, 4, 4, 8, 8
    x = jax.random.normal(kx, (N, Cin, T, H, W), jnp.float32)
    params = init_params(kp, Cin)

    out = jax.jit(mixed_5b_forward)(x, params)
    out = jax.block_until_ready(out)
    assert out.shape == (N, C_B0 + C_B1 + C_B2 + C_B3, T, H, W), out.shape
    assert bool(jnp.all(jnp.isfinite(out)))
    print("KERNEL_OK")
</pallas_src>

<mosaic_0001>
module attributes {stable_mosaic.version = 11 : i64} {
  func.func @_pointwise_kernel(%arg0: i32, %arg1: memref<512x4xbf16, #tpu.memory_space<vmem>>, %arg2: memref<4x320xbf16, #tpu.memory_space<vmem>>, %arg3: memref<1x320xf32, #tpu.memory_space<vmem>>, %arg4: memref<512x128xf32, #tpu.memory_space<vmem>>, %arg5: memref<512x192xf32, #tpu.memory_space<vmem>>) attributes {dimension_semantics = [#tpu.dimension_semantics<parallel>], iteration_bounds = array<i64: 1>, scalar_prefetch = 0 : i64, scratch_operands = 0 : i64, tpu.core_type = #tpu.core_type<tc>, window_params = [{transform_indices = @transform_0, window_bounds = array<i64: 512, 4>}, {pipeline_mode = #tpu.pipeline_mode<synchronous>, transform_indices = @transform_1, window_bounds = array<i64: 4, 320>}, {pipeline_mode = #tpu.pipeline_mode<synchronous>, transform_indices = @transform_2, window_bounds = array<i64: 1, 320>}, {transform_indices = @transform_3, window_bounds = array<i64: 512, 128>}, {transform_indices = @transform_4, window_bounds = array<i64: 512, 192>}]} {
    %c0 = arith.constant 0 : index
    %c0_0 = arith.constant 0 : index
    %0 = vector.load %arg1[%c0, %c0_0] : memref<512x4xbf16, #tpu.memory_space<vmem>>, vector<512x4xbf16>
    %c0_1 = arith.constant 0 : index
    %c0_2 = arith.constant 0 : index
    %1 = vector.load %arg2[%c0_1, %c0_2] : memref<4x320xbf16, #tpu.memory_space<vmem>>, vector<4x320xbf16>
    %cst = arith.constant dense<0.000000e+00> : vector<512x320xf32>
    %2 = tpu.matmul %0, %1, %cst {dimension_numbers = #tpu.dot_dimension_numbers<[1], [0], [0], [1], [0, 0, 1, 1], [], []>} : vector<512x4xbf16>, vector<4x320xbf16>, vector<512x320xf32> -> vector<512x320xf32>
    %c0_3 = arith.constant 0 : index
    %c0_4 = arith.constant 0 : index
    %3 = vector.load %arg3[%c0_3, %c0_4] : memref<1x320xf32, #tpu.memory_space<vmem>>, vector<1x320xf32>
    %4 = vector.broadcast %3 : vector<1x320xf32> to vector<512x320xf32>
    %5 = arith.addf %2, %4 : vector<512x320xf32>
    %cst_5 = arith.constant 0.000000e+00 : f32
    %6 = vector.broadcast %cst_5 : f32 to vector<512x320xf32>
    %7 = arith.maximumf %5, %6 : vector<512x320xf32>
    %8 = vector.extract_strided_slice %7 {offsets = [0, 0], sizes = [512, 128], strides = [1, 1]} : vector<512x320xf32> to vector<512x128xf32>
    %c0_6 = arith.constant 0 : index
    %c0_7 = arith.constant 0 : index
    %9 = vector.load %arg4[%c0_6, %c0_7] : memref<512x128xf32, #tpu.memory_space<vmem>>, vector<512x128xf32>
    tpu.vector_store %arg4[%c0_6, %c0_7], %8 {strides = array<i32>} : memref<512x128xf32, #tpu.memory_space<vmem>>, vector<512x128xf32>,
    %10 = vector.extract_strided_slice %7 {offsets = [0, 128], sizes = [512, 192], strides = [1, 1]} : vector<512x320xf32> to vector<512x192xf32>
    %c0_8 = arith.constant 0 : index
    %c0_9 = arith.constant 0 : index
    %11 = vector.load %arg5[%c0_8, %c0_9] : memref<512x192xf32, #tpu.memory_space<vmem>>, vector<512x192xf32>
    tpu.vector_store %arg5[%c0_8, %c0_9], %10 {strides = array<i32>} : memref<512x192xf32, #tpu.memory_space<vmem>>, vector<512x192xf32>,
    return
  }
  func.func @transform_0(%arg0: i32) -> (i32, i32) {
    %c0_i32 = arith.constant 0 : i32
    %c0_i32_0 = arith.constant 0 : i32
    return %arg0, %c0_i32 : i32, i32
  }
  func.func @transform_1(%arg0: i32) -> (i32, i32) {
    %c0_i32 = arith.constant 0 : i32
    %c0_i32_0 = arith.constant 0 : i32
    %c0_i32_1 = arith.constant 0 : i32
    return %c0_i32, %c0_i32_0 : i32, i32
  }
  func.func @transform_2(%arg0: i32) -> (i32, i32) {
    %c0_i32 = arith.constant 0 : i32
    %c0_i32_0 = arith.constant 0 : i32
    %c0_i32_1 = arith.constant 0 : i32
    return %c0_i32, %c0_i32_0 : i32, i32
  }
  func.func @transform_3(%arg0: i32) -> (i32, i32) {
    %c0_i32 = arith.constant 0 : i32
    %c0_i32_0 = arith.constant 0 : i32
    return %arg0, %c0_i32 : i32, i32
  }
  func.func @transform_4(%arg0: i32) -> (i32, i32) {
    %c0_i32 = arith.constant 0 : i32
    %c0_i32_0 = arith.constant 0 : i32
    return %arg0, %c0_i32 : i32, i32
  }
}

module attributes {stable_mosaic.version = 11 : i64} {
  func.func @_spatial_kernel(%arg0: i32, %arg1: memref<1x462x128xf32, #tpu.memory_space<vmem>>, %arg2: memref<3x3x128x256xbf16, #tpu.memory_space<vmem>>, %arg3: memref<1x256xf32, #tpu.memory_space<vmem>>, %arg4: memref<1x440x256xbf16, #tpu.memory_space<vmem>>) attributes {dimension_semantics = [#tpu.dimension_semantics<parallel>], iteration_bounds = array<i64: 2>, scalar_prefetch = 0 : i64, scratch_operands = 0 : i64, tpu.core_type = #tpu.core_type<tc>, window_params = [{transform_indices = @transform_0, window_bounds = array<i64: 1, 462, 128>}, {pipeline_mode = #tpu.pipeline_mode<synchronous>, transform_indices = @transform_1, window_bounds = array<i64: 3, 3, 128, 256>}, {pipeline_mode = #tpu.pipeline_mode<synchronous>, transform_indices = @transform_2, window_bounds = array<i64: 1, 256>}, {transform_indices = @transform_3, window_bounds = array<i64: 1, 440, 256>}]} {
    %c0 = arith.constant 0 : index
    %c0_0 = arith.constant 0 : index
    %0 = vector.load %arg3[%c0, %c0_0] : memref<1x256xf32, #tpu.memory_space<vmem>>, vector<1x256xf32>
    %c0_1 = arith.constant 0 : index
    %c0_2 = arith.constant 0 : index
    %c0_3 = arith.constant 0 : index
    %1 = vector.load %arg1[%c0_1, %c0_2, %c0_3] : memref<1x462x128xf32, #tpu.memory_space<vmem>>, vector<1x440x128xf32>
    %2 = vector.shape_cast %1 : vector<1x440x128xf32> to vector<440x128xf32>
    %3 = arith.truncf %2 : vector<440x128xf32> to vector<440x128xbf16>
    %c0_4 = arith.constant 0 : index
    %c0_5 = arith.constant 0 : index
    %c0_6 = arith.constant 0 : index
    %c0_7 = arith.constant 0 : index
    %4 = vector.load %arg2[%c0_4, %c0_5, %c0_6, %c0_7] : memref<3x3x128x256xbf16, #tpu.memory_space<vmem>>, vector<1x1x128x256xbf16>
    %5 = vector.shape_cast %4 : vector<1x1x128x256xbf16> to vector<128x256xbf16>
    %cst = arith.constant dense<0.000000e+00> : vector<440x256xf32>
    %6 = tpu.matmul %3, %5, %cst {dimension_numbers = #tpu.dot_dimension_numbers<[1], [0], [0], [1], [0, 0, 1, 1], [], []>} : vector<440x128xbf16>, vector<128x256xbf16>, vector<440x256xf32> -> vector<440x256xf32>
    %c0_8 = arith.constant 0 : index
    %c1 = arith.constant 1 : index
    %c0_9 = arith.constant 0 : index
    %7 = vector.load %arg1[%c0_8, %c1, %c0_9] : memref<1x462x128xf32, #tpu.memory_space<vmem>>, vector<1x440x128xf32>
    %8 = vector.shape_cast %7 : vector<1x440x128xf32> to vector<440x128xf32>
    %9 = arith.truncf %8 : vector<440x128xf32> to vector<440x128xbf16>
    %c0_10 = arith.constant 0 : index
    %c1_11 = arith.constant 1 : index
    %c0_12 = arith.constant 0 : index
    %c0_13 = arith.constant 0 : index
    %10 = vector.load %arg2[%c0_10, %c1_11, %c0_12, %c0_13] : memref<3x3x128x256xbf16, #tpu.memory_space<vmem>>, vector<1x1x128x256xbf16>
    %11 = vector.shape_cast %10 : vector<1x1x128x256xbf16> to vector<128x256xbf16>
    %cst_14 = arith.constant dense<0.000000e+00> : vector<440x256xf32>
    %12 = tpu.matmul %9, %11, %cst_14 {dimension_numbers = #tpu.dot_dimension_numbers<[1], [0], [0], [1], [0, 0, 1, 1], [], []>} : vector<440x128xbf16>, vector<128x256xbf16>, vector<440x256xf32> -> vector<440x256xf32>
    %13 = arith.addf %6, %12 : vector<440x256xf32>
    %c0_15 = arith.constant 0 : index
    %c2 = arith.constant 2 : index
    %c0_16 = arith.constant 0 : index
    %14 = vector.load %arg1[%c0_15, %c2, %c0_16] : memref<1x462x128xf32, #tpu.memory_space<vmem>>, vector<1x440x128xf32>
    %15 = vector.shape_cast %14 : vector<1x440x128xf32> to vector<440x128xf32>
    %16 = arith.truncf %15 : vector<440x128xf32> to vector<440x128xbf16>
    %c0_17 = arith.constant 0 : index
    %c2_18 = arith.constant 2 : index
    %c0_19 = arith.constant 0 : index
    %c0_20 = arith.constant 0 : index
    %17 = vector.load %arg2[%c0_17, %c2_18, %c0_19, %c0_20] : memref<3x3x128x256xbf16, #tpu.memory_space<vmem>>, vector<1x1x128x256xbf16>
    %18 = vector.shape_cast %17 : vector<1x1x128x256xbf16> to vector<128x256xbf16>
    %cst_21 = arith.constant dense<0.000000e+00> : vector<440x256xf32>
    %19 = tpu.matmul %16, %18, %cst_21 {dimension_numbers = #tpu.dot_dimension_numbers<[1], [0], [0], [1], [0, 0, 1, 1], [], []>} : vector<440x128xbf16>, vector<128x256xbf16>, vector<440x256xf32> -> vector<440x256xf32>
    %20 = arith.addf %13, %19 : vector<440x256xf32>
    %c0_22 = arith.constant 0 : index
    %c10 = arith.constant 10 : index
    %c0_23 = arith.constant 0 : index
    %21 = vector.load %arg1[%c0_22, %c10, %c0_23] : memref<1x462x128xf32, #tpu.memory_space<vmem>>, vector<1x440x128xf32>
    %22 = vector.shape_cast %21 : vector<1x440x128xf32> to vector<440x128xf32>
    %23 = arith.truncf %22 : vector<440x128xf32> to vector<440x128xbf16>
    %c1_24 = arith.constant 1 : index
    %c0_25 = arith.constant 0 : index
    %c0_26 = arith.constant 0 : index
    %c0_27 = arith.constant 0 : index
    %24 = vector.load %arg2[%c1_24, %c0_25, %c0_26, %c0_27] : memref<3x3x128x256xbf16, #tpu.memory_space<vmem>>, vector<1x1x128x256xbf16>
    %25 = vector.shape_cast %24 : vector<1x1x128x256xbf16> to vector<128x256xbf16>
    %cst_28 = arith.constant dense<0.000000e+00> : vector<440x256xf32>
    %26 = tpu.matmul %23, %25, %cst_28 {dimension_numbers = #tpu.dot_dimension_numbers<[1], [0], [0], [1], [0, 0, 1, 1], [], []>} : vector<440x128xbf16>, vector<128x256xbf16>, vector<440x256xf32> -> vector<440x256xf32>
    %27 = arith.addf %20, %26 : vector<440x256xf32>
    %c0_29 = arith.constant 0 : index
    %c11 = arith.constant 11 : index
    %c0_30 = arith.constant 0 : index
    %28 = vector.load %arg1[%c0_29, %c11, %c0_30] : memref<1x462x128xf32, #tpu.memory_space<vmem>>, vector<1x440x128xf32>
    %29 = vector.shape_cast %28 : vector<1x440x128xf32> to vector<440x128xf32>
    %30 = arith.truncf %29 : vector<440x128xf32> to vector<440x128xbf16>
    %c1_31 = arith.constant 1 : index
    %c1_32 = arith.constant 1 : index
    %c0_33 = arith.constant 0 : index
    %c0_34 = arith.constant 0 : index
    %31 = vector.load %arg2[%c1_31, %c1_32, %c0_33, %c0_34] : memref<3x3x128x256xbf16, #tpu.memory_space<vmem>>, vector<1x1x128x256xbf16>
    %32 = vector.shape_cast %31 : vector<1x1x128x256xbf16> to vector<128x256xbf16>
    %cst_35 = arith.constant dense<0.000000e+00> : vector<440x256xf32>
    %33 = tpu.matmul %30, %32, %cst_35 {dimension_numbers = #tpu.dot_dimension_numbers<[1], [0], [0], [1], [0, 0, 1, 1], [], []>} : vector<440x128xbf16>, vector<128x256xbf16>, vector<440x256xf32> -> vector<440x256xf32>
    %34 = arith.addf %27, %33 : vector<440x256xf32>
    %c0_36 = arith.constant 0 : index
    %c12 = arith.constant 12 : index
    %c0_37 = arith.constant 0 : index
    %35 = vector.load %arg1[%c0_36, %c12, %c0_37] : memref<1x462x128xf32, #tpu.memory_space<vmem>>, vector<1x440x128xf32>
    %36 = vector.shape_cast %35 : vector<1x440x128xf32> to vector<440x128xf32>
    %37 = arith.truncf %36 : vector<440x128xf32> to vector<440x128xbf16>
    %c1_38 = arith.constant 1 : index
    %c2_39 = arith.constant 2 : index
    %c0_40 = arith.constant 0 : index
    %c0_41 = arith.constant 0 : index
    %38 = vector.load %arg2[%c1_38, %c2_39, %c0_40, %c0_41] : memref<3x3x128x256xbf16, #tpu.memory_space<vmem>>, vector<1x1x128x256xbf16>
    %39 = vector.shape_cast %38 : vector<1x1x128x256xbf16> to vector<128x256xbf16>
    %cst_42 = arith.constant dense<0.000000e+00> : vector<440x256xf32>
    %40 = tpu.matmul %37, %39, %cst_42 {dimension_numbers = #tpu.dot_dimension_numbers<[1], [0], [0], [1], [0, 0, 1, 1], [], []>} : vector<440x128xbf16>, vector<128x256xbf16>, vector<440x256xf32> -> vector<440x256xf32>
    %41 = arith.addf %34, %40 : vector<440x256xf32>
    %c0_43 = arith.constant 0 : index
    %c20 = arith.constant 20 : index
    %c0_44 = arith.constant 0 : index
    %42 = vector.load %arg1[%c0_43, %c20, %c0_44] : memref<1x462x128xf32, #tpu.memory_space<vmem>>, vector<1x440x128xf32>
    %43 = vector.shape_cast %42 : vector<1x440x128xf32> to vector<440x128xf32>
    %44 = arith.truncf %43 : vector<440x128xf32> to vector<440x128xbf16>
    %c2_45 = arith.constant 2 : index
    %c0_46 = arith.constant 0 : index
    %c0_47 = arith.constant 0 : index
    %c0_48 = arith.constant 0 : index
    %45 = vector.load %arg2[%c2_45, %c0_46, %c0_47, %c0_48] : memref<3x3x128x256xbf16, #tpu.memory_space<vmem>>, vector<1x1x128x256xbf16>
    %46 = vector.shape_cast %45 : vector<1x1x128x256xbf16> to vector<128x256xbf16>
    %cst_49 = arith.constant dense<0.000000e+00> : vector<440x256xf32>
    %47 = tpu.matmul %44, %46, %cst_49 {dimension_numbers = #tpu.dot_dimension_numbers<[1], [0], [0], [1], [0, 0, 1, 1], [], []>} : vector<440x128xbf16>, vector<128x256xbf16>, vector<440x256xf32> -> vector<440x256xf32>
    %48 = arith.addf %41, %47 : vector<440x256xf32>
    %c0_50 = arith.constant 0 : index
    %c21 = arith.constant 21 : index
    %c0_51 = arith.constant 0 : index
    %49 = vector.load %arg1[%c0_50, %c21, %c0_51] : memref<1x462x128xf32, #tpu.memory_space<vmem>>, vector<1x440x128xf32>
    %50 = vector.shape_cast %49 : vector<1x440x128xf32> to vector<440x128xf32>
    %51 = arith.truncf %50 : vector<440x128xf32> to vector<440x128xbf16>
    %c2_52 = arith.constant 2 : index
    %c1_53 = arith.constant 1 : index
    %c0_54 = arith.constant 0 : index
    %c0_55 = arith.constant 0 : index
    %52 = vector.load %arg2[%c2_52, %c1_53, %c0_54, %c0_55] : memref<3x3x128x256xbf16, #tpu.memory_space<vmem>>, vector<1x1x128x256xbf16>
    %53 = vector.shape_cast %52 : vector<1x1x128x256xbf16> to vector<128x256xbf16>
    %cst_56 = arith.constant dense<0.000000e+00> : vector<440x256xf32>
    %54 = tpu.matmul %51, %53, %cst_56 {dimension_numbers = #tpu.dot_dimension_numbers<[1], [0], [0], [1], [0, 0, 1, 1], [], []>} : vector<440x128xbf16>, vector<128x256xbf16>, vector<440x256xf32> -> vector<440x256xf32>
    %55 = arith.addf %48, %54 : vector<440x256xf32>
    %c0_57 = arith.constant 0 : index
    %c22 = arith.constant 22 : index
    %c0_58 = arith.constant 0 : index
    %56 = vector.load %arg1[%c0_57, %c22, %c0_58] : memref<1x462x128xf32, #tpu.memory_space<vmem>>, vector<1x440x128xf32>
    %57 = vector.shape_cast %56 : vector<1x440x128xf32> to vector<440x128xf32>
    %58 = arith.truncf %57 : vector<440x128xf32> to vector<440x128xbf16>
    %c2_59 = arith.constant 2 : index
    %c2_60 = arith.constant 2 : index
    %c0_61 = arith.constant 0 : index
    %c0_62 = arith.constant 0 : index
    %59 = vector.load %arg2[%c2_59, %c2_60, %c0_61, %c0_62] : memref<3x3x128x256xbf16, #tpu.memory_space<vmem>>, vector<1x1x128x256xbf16>
    %60 = vector.shape_cast %59 : vector<1x1x128x256xbf16> to vector<128x256xbf16>
    %cst_63 = arith.constant dense<0.000000e+00> : vector<440x256xf32>
    %61 = tpu.matmul %58, %60, %cst_63 {dimension_numbers = #tpu.dot_dimension_numbers<[1], [0], [0], [1], [0, 0, 1, 1], [], []>} : vector<440x128xbf16>, vector<128x256xbf16>, vector<440x256xf32> -> vector<440x256xf32>
    %62 = arith.addf %55, %61 : vector<440x256xf32>
    %63 = vector.broadcast %0 : vector<1x256xf32> to vector<440x256xf32>
    %64 = arith.addf %62, %63 : vector<440x256xf32>
    %cst_64 = arith.constant 0.000000e+00 : f32
    %65 = vector.broadcast %cst_64 : f32 to vector<440x256xf32>
    %66 = arith.maximumf %64, %65 : vector<440x256xf32>
    %67 = arith.truncf %66 : vector<440x256xf32> to vector<440x256xbf16>
    %c0_65 = arith.constant 0 : index
    %c0_66 = arith.constant 0 : index
    %c0_67 = arith.constant 0 : index
    %68 = vector.load %arg4[%c0_65, %c0_66, %c0_67] : memref<1x440x256xbf16, #tpu.memory_space<vmem>>, vector<1x440x256xbf16>
    %69 = vector.shape_cast %68 : vector<1x440x256xbf16> to vector<440x256xbf16>
    %70 = vector.shape_cast %67 : vector<440x256xbf16> to vector<1x440x256xbf16>
    tpu.vector_store %arg4[%c0_65, %c0_66, %c0_67], %70 {strides = array<i32>} : memref<1x440x256xbf16, #tpu.memory_space<vmem>>, vector<1x440x256xbf16>,
    return
  }
  func.func @transform_0(%arg0: i32) -> (i32, i32, i32) {
    %c0_i32 = arith.constant 0 : i32
    %c0_i32_0 = arith.constant 0 : i32
    %c0_i32_1 = arith.constant 0 : i32
    return %arg0, %c0_i32, %c0_i32_0 : i32, i32, i32
  }
  func.func @transform_1(%arg0: i32) -> (i32, i32, i32, i32) {
    %c0_i32 = arith.constant 0 : i32
    %c0_i32_0 = arith.constant 0 : i32
    %c0_i32_1 = arith.constant 0 : i32
    %c0_i32_2 = arith.constant 0 : i32
    %c0_i32_3 = arith.constant 0 : i32
    return %c0_i32, %c0_i32_0, %c0_i32_1, %c0_i32_2 : i32, i32, i32, i32
  }
  func.func @transform_2(%arg0: i32) -> (i32, i32) {
    %c0_i32 = arith.constant 0 : i32
    %c0_i32_0 = arith.constant 0 : i32
    %c0_i32_1 = arith.constant 0 : i32
    return %c0_i32, %c0_i32_0 : i32, i32
  }
  func.func @transform_3(%arg0: i32) -> (i32, i32, i32) {
    %c0_i32 = arith.constant 0 : i32
    %c0_i32_0 = arith.constant 0 : i32
    %c0_i32_1 = arith.constant 0 : i32
    return %arg0, %c0_i32, %c0_i32_0 : i32, i32, i32
  }
}

module attributes {stable_mosaic.version = 11 : i64} {
  func.func @_temporal_kernel(%arg0: i32, %arg1: memref<1x384x256xbf16, #tpu.memory_space<vmem>>, %arg2: memref<3x256x256xbf16, #tpu.memory_space<vmem>>, %arg3: memref<1x256xf32, #tpu.memory_space<vmem>>, %arg4: memref<1x256x256xf32, #tpu.memory_space<vmem>>) attributes {dimension_semantics = [#tpu.dimension_semantics<parallel>], iteration_bounds = array<i64: 2>, scalar_prefetch = 0 : i64, scratch_operands = 0 : i64, tpu.core_type = #tpu.core_type<tc>, window_params = [{transform_indices = @transform_0, window_bounds = array<i64: 1, 384, 256>}, {pipeline_mode = #tpu.pipeline_mode<synchronous>, transform_indices = @transform_1, window_bounds = array<i64: 3, 256, 256>}, {pipeline_mode = #tpu.pipeline_mode<synchronous>, transform_indices = @transform_2, window_bounds = array<i64: 1, 256>}, {transform_indices = @transform_3, window_bounds = array<i64: 1, 256, 256>}]} {
    %c0 = arith.constant 0 : index
    %c0_0 = arith.constant 0 : index
    %0 = vector.load %arg3[%c0, %c0_0] : memref<1x256xf32, #tpu.memory_space<vmem>>, vector<1x256xf32>
    %c0_1 = arith.constant 0 : index
    %c0_2 = arith.constant 0 : index
    %c0_3 = arith.constant 0 : index
    %1 = vector.load %arg1[%c0_1, %c0_2, %c0_3] : memref<1x384x256xbf16, #tpu.memory_space<vmem>>, vector<1x256x256xbf16>
    %2 = vector.shape_cast %1 : vector<1x256x256xbf16> to vector<256x256xbf16>
    %c0_4 = arith.constant 0 : index
    %c0_5 = arith.constant 0 : index
    %c0_6 = arith.constant 0 : index
    %3 = vector.load %arg2[%c0_4, %c0_5, %c0_6] : memref<3x256x256xbf16, #tpu.memory_space<vmem>>, vector<1x256x256xbf16>
    %4 = vector.shape_cast %3 : vector<1x256x256xbf16> to vector<256x256xbf16>
    %cst = arith.constant dense<0.000000e+00> : vector<256x256xf32>
    %5 = tpu.matmul %2, %4, %cst {dimension_numbers = #tpu.dot_dimension_numbers<[1], [0], [0], [1], [0, 0, 1, 1], [], []>} : vector<256x256xbf16>, vector<256x256xbf16>, vector<256x256xf32> -> vector<256x256xf32>
    %c0_7 = arith.constant 0 : index
    %c64 = arith.constant 64 : index
    %c0_8 = arith.constant 0 : index
    %6 = vector.load %arg1[%c0_7, %c64, %c0_8] : memref<1x384x256xbf16, #tpu.memory_space<vmem>>, vector<1x256x256xbf16>
    %7 = vector.shape_cast %6 : vector<1x256x256xbf16> to vector<256x256xbf16>
    %c1 = arith.constant 1 : index
    %c0_9 = arith.constant 0 : index
    %c0_10 = arith.constant 0 : index
    %8 = vector.load %arg2[%c1, %c0_9, %c0_10] : memref<3x256x256xbf16, #tpu.memory_space<vmem>>, vector<1x256x256xbf16>
    %9 = vector.shape_cast %8 : vector<1x256x256xbf16> to vector<256x256xbf16>
    %cst_11 = arith.constant dense<0.000000e+00> : vector<256x256xf32>
    %10 = tpu.matmul %7, %9, %cst_11 {dimension_numbers = #tpu.dot_dimension_numbers<[1], [0], [0], [1], [0, 0, 1, 1], [], []>} : vector<256x256xbf16>, vector<256x256xbf16>, vector<256x256xf32> -> vector<256x256xf32>
    %11 = arith.addf %5, %10 : vector<256x256xf32>
    %c0_12 = arith.constant 0 : index
    %c128 = arith.constant 128 : index
    %c0_13 = arith.constant 0 : index
    %12 = vector.load %arg1[%c0_12, %c128, %c0_13] : memref<1x384x256xbf16, #tpu.memory_space<vmem>>, vector<1x256x256xbf16>
    %13 = vector.shape_cast %12 : vector<1x256x256xbf16> to vector<256x256xbf16>
    %c2 = arith.constant 2 : index
    %c0_14 = arith.constant 0 : index
    %c0_15 = arith.constant 0 : index
    %14 = vector.load %arg2[%c2, %c0_14, %c0_15] : memref<3x256x256xbf16, #tpu.memory_space<vmem>>, vector<1x256x256xbf16>
    %15 = vector.shape_cast %14 : vector<1x256x256xbf16> to vector<256x256xbf16>
    %cst_16 = arith.constant dense<0.000000e+00> : vector<256x256xf32>
    %16 = tpu.matmul %13, %15, %cst_16 {dimension_numbers = #tpu.dot_dimension_numbers<[1], [0], [0], [1], [0, 0, 1, 1], [], []>} : vector<256x256xbf16>, vector<256x256xbf16>, vector<256x256xf32> -> vector<256x256xf32>
    %17 = arith.addf %11, %16 : vector<256x256xf32>
    %18 = vector.broadcast %0 : vector<1x256xf32> to vector<256x256xf32>
    %19 = arith.addf %17, %18 : vector<256x256xf32>
    %cst_17 = arith.constant 0.000000e+00 : f32
    %20 = vector.broadcast %cst_17 : f32 to vector<256x256xf32>
    %21 = arith.maximumf %19, %20 : vector<256x256xf32>
    %c0_18 = arith.constant 0 : index
    %c0_19 = arith.constant 0 : index
    %c0_20 = arith.constant 0 : index
    %22 = vector.load %arg4[%c0_18, %c0_19, %c0_20] : memref<1x256x256xf32, #tpu.memory_space<vmem>>, vector<1x256x256xf32>
    %23 = vector.shape_cast %22 : vector<1x256x256xf32> to vector<256x256xf32>
    %24 = vector.shape_cast %21 : vector<256x256xf32> to vector<1x256x256xf32>
    tpu.vector_store %arg4[%c0_18, %c0_19, %c0_20], %24 {strides = array<i32>} : memref<1x256x256xf32, #tpu.memory_space<vmem>>, vector<1x256x256xf32>,
    return
  }
  func.func @transform_0(%arg0: i32) -> (i32, i32, i32) {
    %c0_i32 = arith.constant 0 : i32
    %c0_i32_0 = arith.constant 0 : i32
    %c0_i32_1 = arith.constant 0 : i32
    return %arg0, %c0_i32, %c0_i32_0 : i32, i32, i32
  }
  func.func @transform_1(%arg0: i32) -> (i32, i32, i32) {
    %c0_i32 = arith.constant 0 : i32
    %c0_i32_0 = arith.constant 0 : i32
    %c0_i32_1 = arith.constant 0 : i32
    %c0_i32_2 = arith.constant 0 : i32
    return %c0_i32, %c0_i32_0, %c0_i32_1 : i32, i32, i32
  }
  func.func @transform_2(%arg0: i32) -> (i32, i32) {
    %c0_i32 = arith.constant 0 : i32
    %c0_i32_0 = arith.constant 0 : i32
    %c0_i32_1 = arith.constant 0 : i32
    return %c0_i32, %c0_i32_0 : i32, i32
  }
  func.func @transform_3(%arg0: i32) -> (i32, i32, i32) {
    %c0_i32 = arith.constant 0 : i32
    %c0_i32_0 = arith.constant 0 : i32
    %c0_i32_1 = arith.constant 0 : i32
    return %arg0, %c0_i32, %c0_i32_0 : i32, i32, i32
  }
}

module attributes {stable_mosaic.version = 11 : i64} {
  func.func @_pool_conv_kernel(%arg0: i32, %arg1: memref<1x700x4xf32, #tpu.memory_space<vmem>>, %arg2: memref<4x64xbf16, #tpu.memory_space<vmem>>, %arg3: memref<1x64xf32, #tpu.memory_space<vmem>>, %arg4: memref<1x400x64xf32, #tpu.memory_space<vmem>>) attributes {dimension_semantics = [#tpu.dimension_semantics<parallel>], iteration_bounds = array<i64: 2>, scalar_prefetch = 0 : i64, scratch_operands = 0 : i64, tpu.core_type = #tpu.core_type<tc>, window_params = [{transform_indices = @transform_0, window_bounds = array<i64: 1, 700, 4>}, {pipeline_mode = #tpu.pipeline_mode<synchronous>, transform_indices = @transform_1, window_bounds = array<i64: 4, 64>}, {pipeline_mode = #tpu.pipeline_mode<synchronous>, transform_indices = @transform_2, window_bounds = array<i64: 1, 64>}, {transform_indices = @transform_3, window_bounds = array<i64: 1, 400, 64>}]} {
    %c0 = arith.constant 0 : index
    %c0_0 = arith.constant 0 : index
    %c0_1 = arith.constant 0 : index
    %0 = vector.load %arg1[%c0, %c0_0, %c0_1] : memref<1x700x4xf32, #tpu.memory_space<vmem>>, vector<1x400x4xf32>
    %1 = vector.shape_cast %0 : vector<1x400x4xf32> to vector<400x4xf32>
    %c0_2 = arith.constant 0 : index
    %c1 = arith.constant 1 : index
    %c0_3 = arith.constant 0 : index
    %2 = vector.load %arg1[%c0_2, %c1, %c0_3] : memref<1x700x4xf32, #tpu.memory_space<vmem>>, vector<1x400x4xf32>
    %3 = vector.shape_cast %2 : vector<1x400x4xf32> to vector<400x4xf32>
    %4 = arith.maximumf %1, %3 : vector<400x4xf32>
    %c0_4 = arith.constant 0 : index
    %c2 = arith.constant 2 : index
    %c0_5 = arith.constant 0 : index
    %5 = vector.load %arg1[%c0_4, %c2, %c0_5] : memref<1x700x4xf32, #tpu.memory_space<vmem>>, vector<1x400x4xf32>
    %6 = vector.shape_cast %5 : vector<1x400x4xf32> to vector<400x4xf32>
    %7 = arith.maximumf %4, %6 : vector<400x4xf32>
    %c0_6 = arith.constant 0 : index
    %c10 = arith.constant 10 : index
    %c0_7 = arith.constant 0 : index
    %8 = vector.load %arg1[%c0_6, %c10, %c0_7] : memref<1x700x4xf32, #tpu.memory_space<vmem>>, vector<1x400x4xf32>
    %9 = vector.shape_cast %8 : vector<1x400x4xf32> to vector<400x4xf32>
    %10 = arith.maximumf %7, %9 : vector<400x4xf32>
    %c0_8 = arith.constant 0 : index
    %c11 = arith.constant 11 : index
    %c0_9 = arith.constant 0 : index
    %11 = vector.load %arg1[%c0_8, %c11, %c0_9] : memref<1x700x4xf32, #tpu.memory_space<vmem>>, vector<1x400x4xf32>
    %12 = vector.shape_cast %11 : vector<1x400x4xf32> to vector<400x4xf32>
    %13 = arith.maximumf %10, %12 : vector<400x4xf32>
    %c0_10 = arith.constant 0 : index
    %c12 = arith.constant 12 : index
    %c0_11 = arith.constant 0 : index
    %14 = vector.load %arg1[%c0_10, %c12, %c0_11] : memref<1x700x4xf32, #tpu.memory_space<vmem>>, vector<1x400x4xf32>
    %15 = vector.shape_cast %14 : vector<1x400x4xf32> to vector<400x4xf32>
    %16 = arith.maximumf %13, %15 : vector<400x4xf32>
    %c0_12 = arith.constant 0 : index
    %c20 = arith.constant 20 : index
    %c0_13 = arith.constant 0 : index
    %17 = vector.load %arg1[%c0_12, %c20, %c0_13] : memref<1x700x4xf32, #tpu.memory_space<vmem>>, vector<1x400x4xf32>
    %18 = vector.shape_cast %17 : vector<1x400x4xf32> to vector<400x4xf32>
    %19 = arith.maximumf %16, %18 : vector<400x4xf32>
    %c0_14 = arith.constant 0 : index
    %c21 = arith.constant 21 : index
    %c0_15 = arith.constant 0 : index
    %20 = vector.load %arg1[%c0_14, %c21, %c0_15] : memref<1x700x4xf32, #tpu.memory_space<vmem>>, vector<1x400x4xf32>
    %21 = vector.shape_cast %20 : vector<1x400x4xf32> to vector<400x4xf32>
    %22 = arith.maximumf %19, %21 : vector<400x4xf32>
    %c0_16 = arith.constant 0 : index
    %c22 = arith.constant 22 : index
    %c0_17 = arith.constant 0 : index
    %23 = vector.load %arg1[%c0_16, %c22, %c0_17] : memref<1x700x4xf32, #tpu.memory_space<vmem>>, vector<1x400x4xf32>
    %24 = vector.shape_cast %23 : vector<1x400x4xf32> to vector<400x4xf32>
    %25 = arith.maximumf %22, %24 : vector<400x4xf32>
    %c0_18 = arith.constant 0 : index
    %c100 = arith.constant 100 : index
    %c0_19 = arith.constant 0 : index
    %26 = vector.load %arg1[%c0_18, %c100, %c0_19] : memref<1x700x4xf32, #tpu.memory_space<vmem>>, vector<1x400x4xf32>
    %27 = vector.shape_cast %26 : vector<1x400x4xf32> to vector<400x4xf32>
    %28 = arith.maximumf %25, %27 : vector<400x4xf32>
    %c0_20 = arith.constant 0 : index
    %c101 = arith.constant 101 : index
    %c0_21 = arith.constant 0 : index
    %29 = vector.load %arg1[%c0_20, %c101, %c0_21] : memref<1x700x4xf32, #tpu.memory_space<vmem>>, vector<1x400x4xf32>
    %30 = vector.shape_cast %29 : vector<1x400x4xf32> to vector<400x4xf32>
    %31 = arith.maximumf %28, %30 : vector<400x4xf32>
    %c0_22 = arith.constant 0 : index
    %c102 = arith.constant 102 : index
    %c0_23 = arith.constant 0 : index
    %32 = vector.load %arg1[%c0_22, %c102, %c0_23] : memref<1x700x4xf32, #tpu.memory_space<vmem>>, vector<1x400x4xf32>
    %33 = vector.shape_cast %32 : vector<1x400x4xf32> to vector<400x4xf32>
    %34 = arith.maximumf %31, %33 : vector<400x4xf32>
    %c0_24 = arith.constant 0 : index
    %c110 = arith.constant 110 : index
    %c0_25 = arith.constant 0 : index
    %35 = vector.load %arg1[%c0_24, %c110, %c0_25] : memref<1x700x4xf32, #tpu.memory_space<vmem>>, vector<1x400x4xf32>
    %36 = vector.shape_cast %35 : vector<1x400x4xf32> to vector<400x4xf32>
    %37 = arith.maximumf %34, %36 : vector<400x4xf32>
    %c0_26 = arith.constant 0 : index
    %c111 = arith.constant 111 : index
    %c0_27 = arith.constant 0 : index
    %38 = vector.load %arg1[%c0_26, %c111, %c0_27] : memref<1x700x4xf32, #tpu.memory_space<vmem>>, vector<1x400x4xf32>
    %39 = vector.shape_cast %38 : vector<1x400x4xf32> to vector<400x4xf32>
    %40 = arith.maximumf %37, %39 : vector<400x4xf32>
    %c0_28 = arith.constant 0 : index
    %c112 = arith.constant 112 : index
    %c0_29 = arith.constant 0 : index
    %41 = vector.load %arg1[%c0_28, %c112, %c0_29] : memref<1x700x4xf32, #tpu.memory_space<vmem>>, vector<1x400x4xf32>
    %42 = vector.shape_cast %41 : vector<1x400x4xf32> to vector<400x4xf32>
    %43 = arith.maximumf %40, %42 : vector<400x4xf32>
    %c0_30 = arith.constant 0 : index
    %c120 = arith.constant 120 : index
    %c0_31 = arith.constant 0 : index
    %44 = vector.load %arg1[%c0_30, %c120, %c0_31] : memref<1x700x4xf32, #tpu.memory_space<vmem>>, vector<1x400x4xf32>
    %45 = vector.shape_cast %44 : vector<1x400x4xf32> to vector<400x4xf32>
    %46 = arith.maximumf %43, %45 : vector<400x4xf32>
    %c0_32 = arith.constant 0 : index
    %c121 = arith.constant 121 : index
    %c0_33 = arith.constant 0 : index
    %47 = vector.load %arg1[%c0_32, %c121, %c0_33] : memref<1x700x4xf32, #tpu.memory_space<vmem>>, vector<1x400x4xf32>
    %48 = vector.shape_cast %47 : vector<1x400x4xf32> to vector<400x4xf32>
    %49 = arith.maximumf %46, %48 : vector<400x4xf32>
    %c0_34 = arith.constant 0 : index
    %c122 = arith.constant 122 : index
    %c0_35 = arith.constant 0 : index
    %50 = vector.load %arg1[%c0_34, %c122, %c0_35] : memref<1x700x4xf32, #tpu.memory_space<vmem>>, vector<1x400x4xf32>
    %51 = vector.shape_cast %50 : vector<1x400x4xf32> to vector<400x4xf32>
    %52 = arith.maximumf %49, %51 : vector<400x4xf32>
    %c0_36 = arith.constant 0 : index
    %c200 = arith.constant 200 : index
    %c0_37 = arith.constant 0 : index
    %53 = vector.load %arg1[%c0_36, %c200, %c0_37] : memref<1x700x4xf32, #tpu.memory_space<vmem>>, vector<1x400x4xf32>
    %54 = vector.shape_cast %53 : vector<1x400x4xf32> to vector<400x4xf32>
    %55 = arith.maximumf %52, %54 : vector<400x4xf32>
    %c0_38 = arith.constant 0 : index
    %c201 = arith.constant 201 : index
    %c0_39 = arith.constant 0 : index
    %56 = vector.load %arg1[%c0_38, %c201, %c0_39] : memref<1x700x4xf32, #tpu.memory_space<vmem>>, vector<1x400x4xf32>
    %57 = vector.shape_cast %56 : vector<1x400x4xf32> to vector<400x4xf32>
    %58 = arith.maximumf %55, %57 : vector<400x4xf32>
    %c0_40 = arith.constant 0 : index
    %c202 = arith.constant 202 : index
    %c0_41 = arith.constant 0 : index
    %59 = vector.load %arg1[%c0_40, %c202, %c0_41] : memref<1x700x4xf32, #tpu.memory_space<vmem>>, vector<1x400x4xf32>
    %60 = vector.shape_cast %59 : vector<1x400x4xf32> to vector<400x4xf32>
    %61 = arith.maximumf %58, %60 : vector<400x4xf32>
    %c0_42 = arith.constant 0 : index
    %c210 = arith.constant 210 : index
    %c0_43 = arith.constant 0 : index
    %62 = vector.load %arg1[%c0_42, %c210, %c0_43] : memref<1x700x4xf32, #tpu.memory_space<vmem>>, vector<1x400x4xf32>
    %63 = vector.shape_cast %62 : vector<1x400x4xf32> to vector<400x4xf32>
    %64 = arith.maximumf %61, %63 : vector<400x4xf32>
    %c0_44 = arith.constant 0 : index
    %c211 = arith.constant 211 : index
    %c0_45 = arith.constant 0 : index
    %65 = vector.load %arg1[%c0_44, %c211, %c0_45] : memref<1x700x4xf32, #tpu.memory_space<vmem>>, vector<1x400x4xf32>
    %66 = vector.shape_cast %65 : vector<1x400x4xf32> to vector<400x4xf32>
    %67 = arith.maximumf %64, %66 : vector<400x4xf32>
    %c0_46 = arith.constant 0 : index
    %c212 = arith.constant 212 : index
    %c0_47 = arith.constant 0 : index
    %68 = vector.load %arg1[%c0_46, %c212, %c0_47] : memref<1x700x4xf32, #tpu.memory_space<vmem>>, vector<1x400x4xf32>
    %69 = vector.shape_cast %68 : vector<1x400x4xf32> to vector<400x4xf32>
    %70 = arith.maximumf %67, %69 : vector<400x4xf32>
    %c0_48 = arith.constant 0 : index
    %c220 = arith.constant 220 : index
    %c0_49 = arith.constant 0 : index
    %71 = vector.load %arg1[%c0_48, %c220, %c0_49] : memref<1x700x4xf32, #tpu.memory_space<vmem>>, vector<1x400x4xf32>
    %72 = vector.shape_cast %71 : vector<1x400x4xf32> to vector<400x4xf32>
    %73 = arith.maximumf %70, %72 : vector<400x4xf32>
    %c0_50 = arith.constant 0 : index
    %c221 = arith.constant 221 : index
    %c0_51 = arith.constant 0 : index
    %74 = vector.load %arg1[%c0_50, %c221, %c0_51] : memref<1x700x4xf32, #tpu.memory_space<vmem>>, vector<1x400x4xf32>
    %75 = vector.shape_cast %74 : vector<1x400x4xf32> to vector<400x4xf32>
    %76 = arith.maximumf %73, %75 : vector<400x4xf32>
    %c0_52 = arith.constant 0 : index
    %c222 = arith.constant 222 : index
    %c0_53 = arith.constant 0 : index
    %77 = vector.load %arg1[%c0_52, %c222, %c0_53] : memref<1x700x4xf32, #tpu.memory_space<vmem>>, vector<1x400x4xf32>
    %78 = vector.shape_cast %77 : vector<1x400x4xf32> to vector<400x4xf32>
    %79 = arith.maximumf %76, %78 : vector<400x4xf32>
    %80 = arith.truncf %79 : vector<400x4xf32> to vector<400x4xbf16>
    %c0_54 = arith.constant 0 : index
    %c0_55 = arith.constant 0 : index
    %81 = vector.load %arg2[%c0_54, %c0_55] : memref<4x64xbf16, #tpu.memory_space<vmem>>, vector<4x64xbf16>
    %cst = arith.constant dense<0.000000e+00> : vector<400x64xf32>
    %82 = tpu.matmul %80, %81, %cst {dimension_numbers = #tpu.dot_dimension_numbers<[1], [0], [0], [1], [0, 0, 1, 1], [], []>} : vector<400x4xbf16>, vector<4x64xbf16>, vector<400x64xf32> -> vector<400x64xf32>
    %c0_56 = arith.constant 0 : index
    %c0_57 = arith.constant 0 : index
    %83 = vector.load %arg3[%c0_56, %c0_57] : memref<1x64xf32, #tpu.memory_space<vmem>>, vector<1x64xf32>
    %84 = vector.broadcast %83 : vector<1x64xf32> to vector<400x64xf32>
    %85 = arith.addf %82, %84 : vector<400x64xf32>
    %cst_58 = arith.constant 0.000000e+00 : f32
    %86 = vector.broadcast %cst_58 : f32 to vector<400x64xf32>
    %87 = arith.maximumf %85, %86 : vector<400x64xf32>
    %c0_59 = arith.constant 0 : index
    %c0_60 = arith.constant 0 : index
    %c0_61 = arith.constant 0 : index
    %88 = vector.load %arg4[%c0_59, %c0_60, %c0_61] : memref<1x400x64xf32, #tpu.memory_space<vmem>>, vector<1x400x64xf32>
    %89 = vector.shape_cast %88 : vector<1x400x64xf32> to vector<400x64xf32>
    %90 = vector.shape_cast %87 : vector<400x64xf32> to vector<1x400x64xf32>
    tpu.vector_store %arg4[%c0_59, %c0_60, %c0_61], %90 {strides = array<i32>} : memref<1x400x64xf32, #tpu.memory_space<vmem>>, vector<1x400x64xf32>,
    return
  }
  func.func @transform_0(%arg0: i32) -> (i32, i32, i32) {
    %c0_i32 = arith.constant 0 : i32
    %c0_i32_0 = arith.constant 0 : i32
    %c0_i32_1 = arith.constant 0 : i32
    return %arg0, %c0_i32, %c0_i32_0 : i32, i32, i32
  }
  func.func @transform_1(%arg0: i32) -> (i32, i32) {
    %c0_i32 = arith.constant 0 : i32
    %c0_i32_0 = arith.constant 0 : i32
    %c0_i32_1 = arith.constant 0 : i32
    return %c0_i32, %c0_i32_0 : i32, i32
  }
  func.func @transform_2(%arg0: i32) -> (i32, i32) {
    %c0_i32 = arith.constant 0 : i32
    %c0_i32_0 = arith.constant 0 : i32
    %c0_i32_1 = arith.constant 0 : i32
    return %c0_i32, %c0_i32_0 : i32, i32
  }
  func.func @transform_3(%arg0: i32) -> (i32, i32, i32) {
    %c0_i32 = arith.constant 0 : i32
    %c0_i32_0 = arith.constant 0 : i32
    %c0_i32_1 = arith.constant 0 : i32
    return %arg0, %c0_i32, %c0_i32_0 : i32, i32, i32
  }
}

</mosaic_0001>

<bundles_post_ra>
// kernel: mixed_5b_forward.4
= control target key start
LH: loop header
LB: loop body
LE: loop exit
PB: predicated region body
PF: predicated region fallthrough
CT: control target
= control target key end

     0   :  { %v84_v0 = vlaneseq  ;;  %v1652_v1 = vmov 1983009808   ;;  %v1653_v3 = vmov 0   ;;  %vm373_vm0 = vcmask 1041408   ;;  %s2758_s0 = inlined_call_operand.vmem [shape: bf16[512,4], index: 0, kind: input, shape index: {}]   ;;  %s2759_s1 = inlined_call_operand.vmem [shape: bf16[4,320], index: 1, kind: input, shape index: {}]   ;;  %s2760_s2 = inlined_call_operand.vmem [shape: f32[1,320], index: 2, kind: input, shape index: {}]   ;;  %s2761_s3 = inlined_call_operand.vmem [shape: f32[512,128], index: 3, kind: output, shape index: {0}]   ;;  %s2762_s4 = inlined_call_operand.vmem [shape: f32[512,192], index: 4, kind: output, shape index: {1}]  }
   0x1   :  { %v262_v2 = vunpack.c.l.s4 %v1652_v1  ;;  %415 = vmatprep.mubr.bf16.mxu0 %v1653_v3  ;;  %655 = vmatprep.mubr.bf16.mxu1 %v1653_v3  ;;  %v81_v6 = vld [vmem:[%s2759_s1] sm:$0x3f]  ;;  %vm276_vm1 = vcmask 31744   ;;  %v1622_v16 = vld [vmem:[%s2758_s0 + $0x8] sm:$0xff]   ;;  %v1624_v18 = vld [vmem:[%s2758_s0 + $0x10] sm:$0xff]   ;;  %vm1282_vm2 = vcmask 523264  }
   0x2   :  { %v1681_v4 = vshrl.u32 %v84_v0, 7  ;;  %v260_v7 = vcombine.high %v81_v6, %v81_v6  ;;  %v1620_v12 = vld [vmem:[%s2758_s0] sm:$0xff]   ;;  %v1706_v17 = vld [vmem:[%s2758_s0 + $0xc8] sm:$0xff]   ;;  %v1719_v19 = vld [vmem:[%s2758_s0 + $0xd0] sm:$0xff]  }
   0x3   :  { %v263_v5 = vunpack.c.0.s8 %v262_v2  ;;  %v1693_v14 = vld [vmem:[%s2758_s0 + $0xc0] sm:$0xff]   ;;  %v1626_v20 = vld [vmem:[%s2758_s0 + $0x18] sm:$0xff]   ;;  %v1630_v24 = vld [vmem:[%s2758_s0 + $0x28] sm:$0xff]  }
   0x4   :  { %v1732_v21 = vld [vmem:[%s2758_s0 + $0xd8] sm:$0xff]   ;;  %v1628_v22 = vld [vmem:[%s2758_s0 + $0x20] sm:$0xff]   ;;  %v1758_v25 = vld [vmem:[%s2758_s0 + $0xe8] sm:$0xff]   ;;  %v86_v46 = vsub.s32 0, %v1681_v4  ;;  %v90_v48 = vsub.s32 1, %v1681_v4 }
   0x5   :  { %v266_v8 = vsub.s32 %v263_v5, %v1681_v4  ;;  %v1745_v23 = vld [vmem:[%s2758_s0 + $0xe0] sm:$0xff]   ;;  %v1632_v26 = vld [vmem:[%s2758_s0 + $0x30] sm:$0xff]   ;;  %v1634_v28 = vld [vmem:[%s2758_s0 + $0x38] sm:$0xff]  }
   0x6   :  { %v1771_v27 = vld [vmem:[%s2758_s0 + $0xf0] sm:$0xff]   ;;  %v1784_v29 = vld [vmem:[%s2758_s0 + $0xf8] sm:$0xff]   ;;  %v1636_v30 = vld [vmem:[%s2758_s0 + $0x40] sm:$0xff]  }
   0x7   :  { %v267_v9 = vrot.slane %v81_v6, %v266_v8  ;;  %v274_v13 = vrot.slane %v260_v7, %v266_v8  ;;  %v1637_v31 = vld [vmem:[%s2758_s0 + $0x48] sm:$0xff]   ;;  %v1638_v32 = vld [vmem:[%s2758_s0 + $0x50] sm:$0xff]   ;;  %v1639_v33 = vld [vmem:[%s2758_s0 + $0x58] sm:$0xff]  }
   0x8   :  { %v1640_v34 = vld [vmem:[%s2758_s0 + $0x60] sm:$0xff]   ;;  %v1641_v35 = vld [vmem:[%s2758_s0 + $0x68] sm:$0xff]   ;;  %v1642_v36 = vld [vmem:[%s2758_s0 + $0x70] sm:$0xff]  }
   0x9   :  { %v275_v10 = vcombine.high %v267_v9, %v267_v9  ;;  %v375_v11 = vsel %vm373_vm0, %v267_v9, 0  ;;  %v381_v15 = vsel %vm373_vm0, %v274_v13, 0  ;;  %v1643_v37 = vld [vmem:[%s2758_s0 + $0x78] sm:$0xff]   ;;  %v1644_v38 = vld [vmem:[%s2758_s0 + $0x80] sm:$0xff]   ;;  %v1645_v39 = vld [vmem:[%s2758_s0 + $0x88] sm:$0xff]  }
   0xa   :  { %v1646_v40 = vld [vmem:[%s2758_s0 + $0x90] sm:$0xff]   ;;  %v1647_v41 = vld [vmem:[%s2758_s0 + $0x98] sm:$0xff]   ;;  %v1648_v42 = vld [vmem:[%s2758_s0 + $0xa0] sm:$0xff]  }
   0xb   :  { %1450 = vmatprep.subr.msk.bf16.mxu0 %vm373_vm0, %v275_v10  ;;  %1614 = vmatprep.subr.msk.bf16.mxu1 %vm373_vm0, %v275_v10  ;;  %v1649_v43 = vld [vmem:[%s2758_s0 + $0xa8] sm:$0xff]   ;;  %v1650_v44 = vld [vmem:[%s2758_s0 + $0xb0] sm:$0xff]   ;;  %v1651_v45 = vld [vmem:[%s2758_s0 + $0xb8] sm:$0xff]  }
   0xc   :  { %384 = vmatpush1.bf16.msra.mxu0 %v375_v11  ;;  %1615 = vmatpush1.bf16.msra.mxu1 %v375_v11  ;;  %v1913_v47 = vld [vmem:[%s2760_s2] sm:$0x7] }
   0xd   :  { %1616 = vmatprep.subr.msk.bf16.mxu1 %vm373_vm0, %v274_v13  ;;  %v1917_v49 = vrot.slane %v1913_v47, %v86_v46  ;;  %v1920_v50 = vrot.slane %v1913_v47, %v90_v48 }
   0xf   :  { %1451 = vmatmul.mubr.msk.bf16.vlgmr.msra.gmra.mrb[0].mxu0 %vm276_vm1, %v1620_v12  ;;  %1475 = vmatmul.mubr.msk.bf16.vlgmr.msra.gmra.mrb[0].mxu1 %vm276_vm1, %v1693_v14 }
  0x10   :  { %1549 = vmatpush3.bf16.msra.mxu1 %v381_v15  ;;  %425 = vmatprep.mubr.bf16.mxu0 %v1653_v3 }
  0x11   :  { %665 = vmatprep.mubr.bf16.mxu1 %v1653_v3 }
  0x17   :  { %1452 = vmatmul.mubr.msk.bf16.gmra.mrb[4].mxu0 %vm276_vm1, %v1622_v16  ;;  %1476 = vmatmul.mubr.msk.bf16.gmra.mrb[4].mxu1 %vm276_vm1, %v1706_v17 }
  0x18   :  { %435 = vmatprep.mubr.bf16.mxu0 %v1653_v3  ;;  %675 = vmatprep.mubr.bf16.mxu1 %v1653_v3 }
  0x1f   :  { %1453 = vmatmul.mubr.msk.bf16.gmra.mrb[8].mxu0 %vm276_vm1, %v1624_v18  ;;  %1477 = vmatmul.mubr.msk.bf16.gmra.mrb[8].mxu1 %vm276_vm1, %v1719_v19 }
  0x20   :  { %445 = vmatprep.mubr.bf16.mxu0 %v1653_v3  ;;  %685 = vmatprep.mubr.bf16.mxu1 %v1653_v3 }
  0x27   :  { %1454 = vmatmul.mubr.msk.bf16.gmra.mrb[12].mxu0 %vm276_vm1, %v1626_v20  ;;  %1478 = vmatmul.mubr.msk.bf16.gmra.mrb[12].mxu1 %vm276_vm1, %v1732_v21 }
  0x28   :  { %455 = vmatprep.mubr.bf16.mxu0 %v1653_v3  ;;  %695 = vmatprep.mubr.bf16.mxu1 %v1653_v3 }
  0x2f   :  { %1455 = vmatmul.mubr.msk.bf16.gmra.mrb[16].mxu0 %vm276_vm1, %v1628_v22  ;;  %1479 = vmatmul.mubr.msk.bf16.gmra.mrb[16].mxu1 %vm276_vm1, %v1745_v23 }
  0x30   :  { %465 = vmatprep.mubr.bf16.mxu0 %v1653_v3  ;;  %705 = vmatprep.mubr.bf16.mxu1 %v1653_v3 }
  0x37   :  { %1456 = vmatmul.mubr.msk.bf16.gmra.mrb[20].mxu0 %vm276_vm1, %v1630_v24  ;;  %1480 = vmatmul.mubr.msk.bf16.gmra.mrb[20].mxu1 %vm276_vm1, %v1758_v25 }
  0x38   :  { %475 = vmatprep.mubr.bf16.mxu0 %v1653_v3  ;;  %715 = vmatprep.mubr.bf16.mxu1 %v1653_v3 }
  0x3f   :  { %1457 = vmatmul.mubr.msk.bf16.gmra.mrb[24].mxu0 %vm276_vm1, %v1632_v26  ;;  %1481 = vmatmul.mubr.msk.bf16.gmra.mrb[24].mxu1 %vm276_vm1, %v1771_v27 }
  0x40   :  { %485 = vmatprep.mubr.bf16.mxu0 %v1653_v3  ;;  %725 = vmatprep.mubr.bf16.mxu1 %v1653_v3 }
  0x47   :  { %1458 = vmatmul.mubr.msk.bf16.gmra.mrb[28].mxu0 %vm276_vm1, %v1634_v28  ;;  %1482 = vmatmul.mubr.msk.bf16.gmra.mrb[28].mxu1 %vm276_vm1, %v1784_v29 }
  0x48   :  { %495 = vmatprep.mubr.bf16.mxu0 %v1653_v3  ;;  %1550 = vmatprep.mubr.msk.bf16.mxu1 %vm276_vm1, %v1620_v12 }
  0x4f   :  { %1459 = vmatmul.mubr.msk.bf16.gmra.mrb[32].mxu0 %vm276_vm1, %v1636_v30  ;;  %1551 = vmatmul.mubr.msk.bf16.vlgmr.msra.gmra.mrb[32].mxu1 %vm276_vm1, %v1622_v16 }
  0x50   :  { %505 = vmatprep.mubr.bf16.mxu0 %v1653_v3  ;;  %1554 = vmatprep.mubr.msk.bf16.mxu1 %vm276_vm1, %v1624_v18 }
  0x57   :  { %1460 = vmatmul.mubr.msk.bf16.gmra.mrb[36].mxu0 %vm276_vm1, %v1637_v31  ;;  %1555 = vmatmul.mubr.msk.bf16.gmra.mrb[36].mxu1 %vm276_vm1, %v1626_v20 }
  0x58   :  { %515 = vmatprep.mubr.bf16.mxu0 %v1653_v3  ;;  %1558 = vmatprep.mubr.msk.bf16.mxu1 %vm276_vm1, %v1628_v22 }
  0x5f   :  { %1461 = vmatmul.mubr.msk.bf16.gmra.mrb[40].mxu0 %vm276_vm1, %v1638_v32  ;;  %1559 = vmatmul.mubr.msk.bf16.gmra.mrb[40].mxu1 %vm276_vm1, %v1630_v24 }
  0x60   :  { %525 = vmatprep.mubr.bf16.mxu0 %v1653_v3  ;;  %1562 = vmatprep.mubr.msk.bf16.mxu1 %vm276_vm1, %v1632_v26 }
  0x67   :  { %1462 = vmatmul.mubr.msk.bf16.gmra.mrb[44].mxu0 %vm276_vm1, %v1639_v33  ;;  %1563 = vmatmul.mubr.msk.bf16.gmra.mrb[44].mxu1 %vm276_vm1, %v1634_v28 }
  0x68   :  { %535 = vmatprep.mubr.bf16.mxu0 %v1653_v3  ;;  %1566 = vmatprep.mubr.msk.bf16.mxu1 %vm276_vm1, %v1636_v30 }
  0x6f   :  { %1463 = vmatmul.mubr.msk.bf16.gmra.mrb[48].mxu0 %vm276_vm1, %v1640_v34  ;;  %1567 = vmatmul.mubr.msk.bf16.gmra.mrb[48].mxu1 %vm276_vm1, %v1637_v31 }
  0x70   :  { %545 = vmatprep.mubr.bf16.mxu0 %v1653_v3  ;;  %1570 = vmatprep.mubr.msk.bf16.mxu1 %vm276_vm1, %v1638_v32 }
  0x77   :  { %1464 = vmatmul.mubr.msk.bf16.gmra.mrb[52].mxu0 %vm276_vm1, %v1641_v35  ;;  %1571 = vmatmul.mubr.msk.bf16.gmra.mrb[52].mxu1 %vm276_vm1, %v1639_v33 }
  0x78   :  { %555 = vmatprep.mubr.bf16.mxu0 %v1653_v3  ;;  %1574 = vmatprep.mubr.msk.bf16.mxu1 %vm276_vm1, %v1640_v34 }
  0x7f   :  { %1465 = vmatmul.mubr.msk.bf16.gmra.mrb[56].mxu0 %vm276_vm1, %v1642_v36  ;;  %1575 = vmatmul.mubr.msk.bf16.gmra.mrb[56].mxu1 %vm276_vm1, %v1641_v35 }
  0x80   :  { %565 = vmatprep.mubr.bf16.mxu0 %v1653_v3  ;;  %1578 = vmatprep.mubr.msk.bf16.mxu1 %vm276_vm1, %v1642_v36 }
  0x87   :  { %1466 = vmatmul.mubr.msk.bf16.gmra.mrb[60].mxu0 %vm276_vm1, %v1643_v37  ;;  %1579 = vmatmul.mubr.msk.bf16.gmra.mrb[60].mxu1 %vm276_vm1, %v1643_v37 }
  0x88   :  { %575 = vmatprep.mubr.bf16.mxu0 %v1653_v3  ;;  %1582 = vmatprep.mubr.msk.bf16.mxu1 %vm276_vm1, %v1644_v38 }
  0x8f   :  { %1467 = vmatmul.mubr.msk.bf16.gmra.mrb[64].mxu0 %vm276_vm1, %v1644_v38  ;;  %1583 = vmatmul.mubr.msk.bf16.gmra.mrb[64].mxu1 %vm276_vm1, %v1645_v39 }
  0x90   :  { %585 = vmatprep.mubr.bf16.mxu0 %v1653_v3  ;;  %1586 = vmatprep.mubr.msk.bf16.mxu1 %vm276_vm1, %v1646_v40 }
  0x97   :  { %1468 = vmatmul.mubr.msk.bf16.gmra.mrb[68].mxu0 %vm276_vm1, %v1645_v39  ;;  %1587 = vmatmul.mubr.msk.bf16.gmra.mrb[68].mxu1 %vm276_vm1, %v1647_v41 }
  0x98   :  { %595 = vmatprep.mubr.bf16.mxu0 %v1653_v3  ;;  %1590 = vmatprep.mubr.msk.bf16.mxu1 %vm276_vm1, %v1648_v42 }
  0x9f   :  { %1469 = vmatmul.mubr.msk.bf16.gmra.mrb[72].mxu0 %vm276_vm1, %v1646_v40  ;;  %1591 = vmatmul.mubr.msk.bf16.gmra.mrb[72].mxu1 %vm276_vm1, %v1649_v43 }
  0xa0   :  { %605 = vmatprep.mubr.bf16.mxu0 %v1653_v3  ;;  %1594 = vmatprep.mubr.msk.bf16.mxu1 %vm276_vm1, %v1650_v44 }
  0xa7   :  { %1470 = vmatmul.mubr.msk.bf16.gmra.mrb[76].mxu0 %vm276_vm1, %v1647_v41  ;;  %1595 = vmatmul.mubr.msk.bf16.gmra.mrb[76].mxu1 %vm276_vm1, %v1651_v45 }
  0xa8   :  { %615 = vmatprep.mubr.bf16.mxu0 %v1653_v3  ;;  %1598 = vmatprep.mubr.msk.bf16.mxu1 %vm276_vm1, %v1693_v14 }
  0xaf   :  { %1471 = vmatmul.mubr.msk.bf16.gmra.mrb[80].mxu0 %vm276_vm1, %v1648_v42  ;;  %1599 = vmatmul.mubr.msk.bf16.gmra.mrb[80].mxu1 %vm276_vm1, %v1706_v17 }
  0xb0   :  { %625 = vmatprep.mubr.bf16.mxu0 %v1653_v3  ;;  %1602 = vmatprep.mubr.msk.bf16.mxu1 %vm276_vm1, %v1719_v19 }
  0xb7   :  { %1472 = vmatmul.mubr.msk.bf16.gmra.mrb[84].mxu0 %vm276_vm1, %v1649_v43  ;;  %1603 = vmatmul.mubr.msk.bf16.gmra.mrb[84].mxu1 %vm276_vm1, %v1732_v21 }
  0xb8   :  { %635 = vmatprep.mubr.bf16.mxu0 %v1653_v3  ;;  %1606 = vmatprep.mubr.msk.bf16.mxu1 %vm276_vm1, %v1745_v23 }
  0xbf   :  { %1473 = vmatmul.mubr.msk.bf16.gmra.mrb[88].mxu0 %vm276_vm1, %v1650_v44  ;;  %1607 = vmatmul.mubr.msk.bf16.gmra.mrb[88].mxu1 %vm276_vm1, %v1758_v25 }
  0xc0   :  { %645 = vmatprep.mubr.bf16.mxu0 %v1653_v3  ;;  %1610 = vmatprep.mubr.msk.bf16.mxu1 %vm276_vm1, %v1771_v27 }
  0xc7   :  { %1474 = vmatmul.mubr.msk.bf16.gmra.mrb[92].mxu0 %vm276_vm1, %v1651_v45  ;;  %1611 = vmatmul.mubr.msk.bf16.gmra.mrb[92].mxu1 %vm276_vm1, %v1784_v29 }
  0xe2   :  { %v417_v51 = vpop.f32.mrb[0].mxu0  ;;  %v657_v52 = vpop.f32.mrb[0].mxu1 }
  0xe3   :  { %v418_v53 = vadd.f32 %v417_v51, %v1917_v49  ;;  %v658_v54 = vadd.f32 %v657_v52, %v1917_v49  ;;  %v419_v55 = vpop.f32.mrb[1].mxu0  ;;  %v659_v56 = vpop.f32.mrb[1].mxu1 }
  0xe4   :  { %v420_v57 = vadd.f32 %v419_v55, %v1920_v50  ;;  %v660_v58 = vadd.f32 %v659_v56, %v1920_v50  ;;  %v421_v59 = vpop.f32.mrb[2].mxu0  ;;  %v661_v60 = vpop.f32.mrb[2].mxu1 }
  0xe5   :  { %v1025_v61 = vmax.f32 %v418_v53, 0.0  ;;  %v1169_v62 = vmax.f32 %v658_v54, 0.0  ;;  %v422_v63 = vadd.f32 %v421_v59, %v1917_v49  ;;  %v662_v0 = vadd.f32 %v661_v60, %v1917_v49  ;;  %v423_v1 = vpop.f32.mrb[3].mxu0  ;;  %v663_v2 = vpop.f32.mrb[3].mxu1 }
  0xe6   :  { %v1026_v3 = vmax.f32 %v420_v57, 0.0  ;;  %v1170_v5 = vmax.f32 %v660_v58, 0.0  ;;  %v424_v6 = vadd.f32 %v423_v1, %v1920_v50  ;;  %v664_v7 = vadd.f32 %v663_v2, %v1920_v50 }
  0xe7   :  { %1217 = vst [vmem:[%s2761_s3] sm:$0xff] %v1025_v61  ;;  %1265 = vst [vmem:[%s2761_s3 + $0x180] sm:$0xff] %v1169_v62  ;;  %v1028_v8 = vmax.f32 %v422_v63, 0.0  ;;  %v1172_v9 = vmax.f32 %v662_v0, 0.0 }
  0xe8   :  { %1281 = vst [vmem:[%s2762_s4] sm:$0xff] %v1026_v3  ;;  %1378 = vst [vmem:[%s2762_s4 + $0x300] sm:$0xff] %v1170_v5  ;;  %v1029_v10 = vmax.f32 %v424_v6, 0.0  ;;  %v1173_v11 = vmax.f32 %v664_v7, 0.0 }
  0xe9   :  { %1218 = vst [vmem:[%s2761_s3 + $0x8] sm:$0xff] %v1028_v8  ;;  %1266 = vst [vmem:[%s2761_s3 + $0x188] sm:$0xff] %v1172_v9 }
  0xea   :  { %1284 = vst [vmem:[%s2762_s4 + $0x10] sm:$0xff] %v1029_v10  ;;  %1380 = vst [vmem:[%s2762_s4 + $0x310] sm:$0xff] %v1173_v11  ;;  %v427_v12 = vpop.f32.mrb[4].mxu0  ;;  %v667_v13 = vpop.f32.mrb[4].mxu1 }
  0xeb   :  { %v428_v14 = vadd.f32 %v427_v12, %v1917_v49  ;;  %v668_v15 = vadd.f32 %v667_v13, %v1917_v49  ;;  %v429_v16 = vpop.f32.mrb[5].mxu0  ;;  %v669_v17 = vpop.f32.mrb[5].mxu1 }
  0xec   :  { %v430_v18 = vadd.f32 %v429_v16, %v1920_v50  ;;  %v670_v19 = vadd.f32 %v669_v17, %v1920_v50  ;;  %v431_v20 = vpop.f32.mrb[6].mxu0  ;;  %v671_v21 = vpop.f32.mrb[6].mxu1 }
  0xed   :  { %v1031_v22 = vmax.f32 %v428_v14, 0.0  ;;  %v1175_v23 = vmax.f32 %v668_v15, 0.0  ;;  %v432_v24 = vadd.f32 %v431_v20, %v1917_v49  ;;  %v672_v25 = vadd.f32 %v671_v21, %v1917_v49  ;;  %v433_v26 = vpop.f32.mrb[7].mxu0  ;;  %v673_v27 = vpop.f32.mrb[7].mxu1 }
  0xee   :  { %v1032_v28 = vmax.f32 %v430_v18, 0.0  ;;  %v1176_v29 = vmax.f32 %v670_v19, 0.0  ;;  %v434_v30 = vadd.f32 %v433_v26, %v1920_v50  ;;  %v674_v31 = vadd.f32 %v673_v27, %v1920_v50 }
  0xef   :  { %1219 = vst [vmem:[%s2761_s3 + $0x10] sm:$0xff] %v1031_v22  ;;  %1267 = vst [vmem:[%s2761_s3 + $0x190] sm:$0xff] %v1175_v23  ;;  %v1034_v32 = vmax.f32 %v432_v24, 0.0  ;;  %v1178_v33 = vmax.f32 %v672_v25, 0.0 }
  0xf0   :  { %1286 = vst [vmem:[%s2762_s4 + $0x20] sm:$0xff] %v1032_v28  ;;  %1382 = vst [vmem:[%s2762_s4 + $0x320] sm:$0xff] %v1176_v29  ;;  %v1035_v34 = vmax.f32 %v434_v30, 0.0  ;;  %v1179_v35 = vmax.f32 %v674_v31, 0.0 }
  0xf1   :  { %1220 = vst [vmem:[%s2761_s3 + $0x18] sm:$0xff] %v1034_v32  ;;  %1268 = vst [vmem:[%s2761_s3 + $0x198] sm:$0xff] %v1178_v33 }
  0xf2   :  { %1288 = vst [vmem:[%s2762_s4 + $0x30] sm:$0xff] %v1035_v34  ;;  %1384 = vst [vmem:[%s2762_s4 + $0x330] sm:$0xff] %v1179_v35  ;;  %v437_v36 = vpop.f32.mrb[8].mxu0  ;;  %v677_v37 = vpop.f32.mrb[8].mxu1 }
  0xf3   :  { %v438_v38 = vadd.f32 %v437_v36, %v1917_v49  ;;  %v678_v39 = vadd.f32 %v677_v37, %v1917_v49  ;;  %v439_v40 = vpop.f32.mrb[9].mxu0  ;;  %v679_v41 = vpop.f32.mrb[9].mxu1 }
  0xf4   :  { %v440_v42 = vadd.f32 %v439_v40, %v1920_v50  ;;  %v680_v43 = vadd.f32 %v679_v41, %v1920_v50  ;;  %v441_v44 = vpop.f32.mrb[10].mxu0  ;;  %v681_v45 = vpop.f32.mrb[10].mxu1 }
  0xf5   :  { %v1037_v46 = vmax.f32 %v438_v38, 0.0  ;;  %v1181_v48 = vmax.f32 %v678_v39, 0.0  ;;  %v442_v51 = vadd.f32 %v441_v44, %v1917_v49  ;;  %v682_v52 = vadd.f32 %v681_v45, %v1917_v49  ;;  %v443_v53 = vpop.f32.mrb[11].mxu0  ;;  %v683_v54 = vpop.f32.mrb[11].mxu1 }
  0xf6   :  { %v1038_v55 = vmax.f32 %v440_v42, 0.0  ;;  %v1182_v56 = vmax.f32 %v680_v43, 0.0  ;;  %v444_v57 = vadd.f32 %v443_v53, %v1920_v50  ;;  %v684_v58 = vadd.f32 %v683_v54, %v1920_v50 }
  0xf7   :  { %1221 = vst [vmem:[%s2761_s3 + $0x20] sm:$0xff] %v1037_v46  ;;  %1269 = vst [vmem:[%s2761_s3 + $0x1a0] sm:$0xff] %v1181_v48  ;;  %v1040_v59 = vmax.f32 %v442_v51, 0.0  ;;  %v1184_v60 = vmax.f32 %v682_v52, 0.0 }
  0xf8   :  { %1290 = vst [vmem:[%s2762_s4 + $0x40] sm:$0xff] %v1038_v55  ;;  %1386 = vst [vmem:[%s2762_s4 + $0x340] sm:$0xff] %v1182_v56  ;;  %v1041_v61 = vmax.f32 %v444_v57, 0.0  ;;  %v1185_v62 = vmax.f32 %v684_v58, 0.0 }
  0xf9   :  { %1222 = vst [vmem:[%s2761_s3 + $0x28] sm:$0xff] %v1040_v59  ;;  %1270 = vst [vmem:[%s2761_s3 + $0x1a8] sm:$0xff] %v1184_v60 }
  0xfa   :  { %1292 = vst [vmem:[%s2762_s4 + $0x50] sm:$0xff] %v1041_v61  ;;  %1388 = vst [vmem:[%s2762_s4 + $0x350] sm:$0xff] %v1185_v62  ;;  %v447_v63 = vpop.f32.mrb[12].mxu0  ;;  %v687_v0 = vpop.f32.mrb[12].mxu1 }
  0xfb   :  { %v448_v1 = vadd.f32 %v447_v63, %v1917_v49  ;;  %v688_v2 = vadd.f32 %v687_v0, %v1917_v49  ;;  %v449_v3 = vpop.f32.mrb[13].mxu0  ;;  %v689_v5 = vpop.f32.mrb[13].mxu1 }
  0xfc   :  { %v450_v6 = vadd.f32 %v449_v3, %v1920_v50  ;;  %v690_v7 = vadd.f32 %v689_v5, %v1920_v50  ;;  %v451_v8 = vpop.f32.mrb[14].mxu0  ;;  %v691_v9 = vpop.f32.mrb[14].mxu1 }
  0xfd   :  { %v1043_v10 = vmax.f32 %v448_v1, 0.0  ;;  %v1187_v11 = vmax.f32 %v688_v2, 0.0  ;;  %v452_v12 = vadd.f32 %v451_v8, %v1917_v49  ;;  %v692_v13 = vadd.f32 %v691_v9, %v1917_v49  ;;  %v453_v14 = vpop.f32.mrb[15].mxu0  ;;  %v693_v15 = vpop.f32.mrb[15].mxu1 }
  0xfe   :  { %v1044_v16 = vmax.f32 %v450_v6, 0.0  ;;  %v1188_v17 = vmax.f32 %v690_v7, 0.0  ;;  %v454_v18 = vadd.f32 %v453_v14, %v1920_v50  ;;  %v694_v19 = vadd.f32 %v693_v15, %v1920_v50 }
  0xff   :  { %1223 = vst [vmem:[%s2761_s3 + $0x30] sm:$0xff] %v1043_v10  ;;  %1271 = vst [vmem:[%s2761_s3 + $0x1b0] sm:$0xff] %v1187_v11  ;;  %v1046_v20 = vmax.f32 %v452_v12, 0.0  ;;  %v1190_v21 = vmax.f32 %v692_v13, 0.0 }
 0x100   :  { %1294 = vst [vmem:[%s2762_s4 + $0x60] sm:$0xff] %v1044_v16  ;;  %1390 = vst [vmem:[%s2762_s4 + $0x360] sm:$0xff] %v1188_v17  ;;  %v1047_v22 = vmax.f32 %v454_v18, 0.0  ;;  %v1191_v23 = vmax.f32 %v694_v19, 0.0 }
 0x101   :  { %1224 = vst [vmem:[%s2761_s3 + $0x38] sm:$0xff] %v1046_v20  ;;  %1272 = vst [vmem:[%s2761_s3 + $0x1b8] sm:$0xff] %v1190_v21 }
 0x102   :  { %1296 = vst [vmem:[%s2762_s4 + $0x70] sm:$0xff] %v1047_v22  ;;  %1392 = vst [vmem:[%s2762_s4 + $0x370] sm:$0xff] %v1191_v23  ;;  %v457_v24 = vpop.f32.mrb[16].mxu0  ;;  %v697_v25 = vpop.f32.mrb[16].mxu1 }
 0x103   :  { %v458_v26 = vadd.f32 %v457_v24, %v1917_v49  ;;  %v698_v27 = vadd.f32 %v697_v25, %v1917_v49  ;;  %v459_v28 = vpop.f32.mrb[17].mxu0  ;;  %v699_v29 = vpop.f32.mrb[17].mxu1 }
 0x104   :  { %v460_v30 = vadd.f32 %v459_v28, %v1920_v50  ;;  %v700_v31 = vadd.f32 %v699_v29, %v1920_v50  ;;  %v461_v32 = vpop.f32.mrb[18].mxu0  ;;  %v701_v33 = vpop.f32.mrb[18].mxu1 }
 0x105   :  { %v1049_v34 = vmax.f32 %v458_v26, 0.0  ;;  %v1193_v35 = vmax.f32 %v698_v27, 0.0  ;;  %v462_v36 = vadd.f32 %v461_v32, %v1917_v49  ;;  %v702_v37 = vadd.f32 %v701_v33, %v1917_v49  ;;  %v463_v38 = vpop.f32.mrb[19].mxu0  ;;  %v703_v39 = vpop.f32.mrb[19].mxu1 }
 0x106   :  { %v1050_v40 = vmax.f32 %v460_v30, 0.0  ;;  %v1194_v41 = vmax.f32 %v700_v31, 0.0  ;;  %v464_v42 = vadd.f32 %v463_v38, %v1920_v50  ;;  %v704_v43 = vadd.f32 %v703_v39, %v1920_v50 }
 0x107   :  { %1225 = vst [vmem:[%s2761_s3 + $0x40] sm:$0xff] %v1049_v34  ;;  %1273 = vst [vmem:[%s2761_s3 + $0x1c0] sm:$0xff] %v1193_v35  ;;  %v1052_v44 = vmax.f32 %v462_v36, 0.0  ;;  %v1196_v45 = vmax.f32 %v702_v37, 0.0 }
 0x108   :  { %1298 = vst [vmem:[%s2762_s4 + $0x80] sm:$0xff] %v1050_v40  ;;  %1394 = vst [vmem:[%s2762_s4 + $0x380] sm:$0xff] %v1194_v41  ;;  %v1053_v46 = vmax.f32 %v464_v42, 0.0  ;;  %v1197_v48 = vmax.f32 %v704_v43, 0.0  ;;  %v94_v42 = vsub.s32 2, %v1681_v4 }
 0x109   :  { %1226 = vst [vmem:[%s2761_s3 + $0x48] sm:$0xff] %v1052_v44  ;;  %1274 = vst [vmem:[%s2761_s3 + $0x1c8] sm:$0xff] %v1196_v45 }
 0x10a   :  { %1300 = vst [vmem:[%s2762_s4 + $0x90] sm:$0xff] %v1053_v46  ;;  %1396 = vst [vmem:[%s2762_s4 + $0x390] sm:$0xff] %v1197_v48  ;;  %v467_v51 = vpop.f32.mrb[20].mxu0  ;;  %v707_v52 = vpop.f32.mrb[20].mxu1 }
 0x10b   :  { %v468_v53 = vadd.f32 %v467_v51, %v1917_v49  ;;  %v708_v54 = vadd.f32 %v707_v52, %v1917_v49  ;;  %v469_v55 = vpop.f32.mrb[21].mxu0  ;;  %v709_v56 = vpop.f32.mrb[21].mxu1 }
 0x10c   :  { %v470_v57 = vadd.f32 %v469_v55, %v1920_v50  ;;  %v710_v58 = vadd.f32 %v709_v56, %v1920_v50  ;;  %v471_v59 = vpop.f32.mrb[22].mxu0  ;;  %v711_v60 = vpop.f32.mrb[22].mxu1 }
 0x10d   :  { %v1055_v61 = vmax.f32 %v468_v53, 0.0  ;;  %v1199_v62 = vmax.f32 %v708_v54, 0.0  ;;  %v472_v63 = vadd.f32 %v471_v59, %v1917_v49  ;;  %v712_v0 = vadd.f32 %v711_v60, %v1917_v49  ;;  %v473_v1 = vpop.f32.mrb[23].mxu0  ;;  %v713_v2 = vpop.f32.mrb[23].mxu1 }
 0x10e   :  { %v1056_v3 = vmax.f32 %v470_v57, 0.0  ;;  %v1200_v5 = vmax.f32 %v710_v58, 0.0  ;;  %v474_v6 = vadd.f32 %v473_v1, %v1920_v50  ;;  %v714_v7 = vadd.f32 %v713_v2, %v1920_v50 }
 0x10f   :  { %1227 = vst [vmem:[%s2761_s3 + $0x50] sm:$0xff] %v1055_v61  ;;  %1275 = vst [vmem:[%s2761_s3 + $0x1d0] sm:$0xff] %v1199_v62  ;;  %v1058_v8 = vmax.f32 %v472_v63, 0.0  ;;  %v1202_v9 = vmax.f32 %v712_v0, 0.0  ;;  %v2162_v61 = vrot.slane %v1913_v47, %v94_v42 }
 0x110   :  { %1302 = vst [vmem:[%s2762_s4 + $0xa0] sm:$0xff] %v1056_v3  ;;  %1398 = vst [vmem:[%s2762_s4 + $0x3a0] sm:$0xff] %v1200_v5  ;;  %v1059_v10 = vmax.f32 %v474_v6, 0.0  ;;  %v1203_v11 = vmax.f32 %v714_v7, 0.0 }
 0x111   :  { %1228 = vst [vmem:[%s2761_s3 + $0x58] sm:$0xff] %v1058_v8  ;;  %1276 = vst [vmem:[%s2761_s3 + $0x1d8] sm:$0xff] %v1202_v9 }
 0x112   :  { %1304 = vst [vmem:[%s2762_s4 + $0xb0] sm:$0xff] %v1059_v10  ;;  %1400 = vst [vmem:[%s2762_s4 + $0x3b0] sm:$0xff] %v1203_v11  ;;  %v477_v12 = vpop.f32.mrb[24].mxu0  ;;  %v717_v13 = vpop.f32.mrb[24].mxu1 }
 0x113   :  { %v478_v14 = vadd.f32 %v477_v12, %v1917_v49  ;;  %v718_v15 = vadd.f32 %v717_v13, %v1917_v49  ;;  %v479_v16 = vpop.f32.mrb[25].mxu0  ;;  %v719_v17 = vpop.f32.mrb[25].mxu1 }
 0x114   :  { %v480_v18 = vadd.f32 %v479_v16, %v1920_v50  ;;  %v720_v19 = vadd.f32 %v719_v17, %v1920_v50  ;;  %v481_v20 = vpop.f32.mrb[26].mxu0  ;;  %v721_v21 = vpop.f32.mrb[26].mxu1 }
 0x115   :  { %v1061_v22 = vmax.f32 %v478_v14, 0.0  ;;  %v1205_v23 = vmax.f32 %v718_v15, 0.0  ;;  %v482_v24 = vadd.f32 %v481_v20, %v1917_v49  ;;  %v722_v25 = vadd.f32 %v721_v21, %v1917_v49  ;;  %v483_v26 = vpop.f32.mrb[27].mxu0  ;;  %v723_v27 = vpop.f32.mrb[27].mxu1 }
 0x116   :  { %v1062_v28 = vmax.f32 %v480_v18, 0.0  ;;  %v1206_v29 = vmax.f32 %v720_v19, 0.0  ;;  %v484_v30 = vadd.f32 %v483_v26, %v1920_v50  ;;  %v724_v31 = vadd.f32 %v723_v27, %v1920_v50 }
 0x117   :  { %1229 = vst [vmem:[%s2761_s3 + $0x60] sm:$0xff] %v1061_v22  ;;  %1277 = vst [vmem:[%s2761_s3 + $0x1e0] sm:$0xff] %v1205_v23  ;;  %v1064_v32 = vmax.f32 %v482_v24, 0.0  ;;  %v1208_v33 = vmax.f32 %v722_v25, 0.0 }
 0x118   :  { %1306 = vst [vmem:[%s2762_s4 + $0xc0] sm:$0xff] %v1062_v28  ;;  %1402 = vst [vmem:[%s2762_s4 + $0x3c0] sm:$0xff] %v1206_v29  ;;  %v1065_v34 = vmax.f32 %v484_v30, 0.0  ;;  %v1209_v35 = vmax.f32 %v724_v31, 0.0 }
 0x119   :  { %1230 = vst [vmem:[%s2761_s3 + $0x68] sm:$0xff] %v1064_v32  ;;  %1278 = vst [vmem:[%s2761_s3 + $0x1e8] sm:$0xff] %v1208_v33 }
 0x11a   :  { %1308 = vst [vmem:[%s2762_s4 + $0xd0] sm:$0xff] %v1065_v34  ;;  %1404 = vst [vmem:[%s2762_s4 + $0x3d0] sm:$0xff] %v1209_v35  ;;  %v487_v36 = vpop.f32.mrb[28].mxu0  ;;  %v727_v37 = vpop.f32.mrb[28].mxu1 }
 0x11b   :  { %v488_v38 = vadd.f32 %v487_v36, %v1917_v49  ;;  %v728_v39 = vadd.f32 %v727_v37, %v1917_v49  ;;  %v489_v40 = vpop.f32.mrb[29].mxu0  ;;  %v729_v41 = vpop.f32.mrb[29].mxu1 }
 0x11c   :  { %v490_v43 = vadd.f32 %v489_v40, %v1920_v50  ;;  %v730_v44 = vadd.f32 %v729_v41, %v1920_v50  ;;  %v491_v45 = vpop.f32.mrb[30].mxu0  ;;  %v731_v46 = vpop.f32.mrb[30].mxu1 }
 0x11d   :  { %v1067_v48 = vmax.f32 %v488_v38, 0.0  ;;  %v1211_v51 = vmax.f32 %v728_v39, 0.0  ;;  %v492_v52 = vadd.f32 %v491_v45, %v1917_v49  ;;  %v732_v53 = vadd.f32 %v731_v46, %v1917_v49  ;;  %v493_v54 = vpop.f32.mrb[31].mxu0  ;;  %v733_v55 = vpop.f32.mrb[31].mxu1 }
 0x11e   :  { %v1068_v56 = vmax.f32 %v490_v43, 0.0  ;;  %v1212_v57 = vmax.f32 %v730_v44, 0.0  ;;  %v494_v58 = vadd.f32 %v493_v54, %v1920_v50  ;;  %v734_v4 = vadd.f32 %v733_v55, %v1920_v50 }
 0x11f   :  { %1231 = vst [vmem:[%s2761_s3 + $0x70] sm:$0xff] %v1067_v48  ;;  %1279 = vst [vmem:[%s2761_s3 + $0x1f0] sm:$0xff] %v1211_v51  ;;  %v1070_v59 = vmax.f32 %v492_v52, 0.0  ;;  %v1214_v60 = vmax.f32 %v732_v53, 0.0 }
 0x120   :  { %1310 = vst [vmem:[%s2762_s4 + $0xe0] sm:$0xff] %v1068_v56  ;;  %1406 = vst [vmem:[%s2762_s4 + $0x3e0] sm:$0xff] %v1212_v57  ;;  %v1071_v62 = vmax.f32 %v494_v58, 0.0  ;;  %v1215_v63 = vmax.f32 %v734_v4, 0.0 }
 0x121   :  { %1232 = vst [vmem:[%s2761_s3 + $0x78] sm:$0xff] %v1070_v59  ;;  %1280 = vst [vmem:[%s2761_s3 + $0x1f8] sm:$0xff] %v1214_v60 }
 0x122   :  { %1312 = vst [vmem:[%s2762_s4 + $0xf0] sm:$0xff] %v1071_v62  ;;  %1408 = vst [vmem:[%s2762_s4 + $0x3f0] sm:$0xff] %v1215_v63  ;;  %v497_v47 = vpop.f32.mrb[32].mxu0  ;;  %v1552_v0 = vpop.f32.mrb[32].mxu1 }
 0x123   :  { %v498_v1 = vadd.f32 %v497_v47, %v1917_v49  ;;  %v779_v2 = vadd.f32 %v1552_v0, %v2162_v61  ;;  %v499_v3 = vpop.f32.mrb[33].mxu0  ;;  %v770_v5 = vpop.f32.mrb[33].mxu1 }
 0x124   :  { %v500_v6 = vadd.f32 %v499_v3, %v1920_v50  ;;  %v771_v7 = vadd.f32 %v770_v5, %v2162_v61  ;;  %v501_v8 = vpop.f32.mrb[34].mxu0  ;;  %v1553_v9 = vpop.f32.mrb[34].mxu1 }
 0x125   :  { %v1073_v10 = vmax.f32 %v498_v1, 0.0  ;;  %v1033_v11 = vmax.f32 %v779_v2, 0.0  ;;  %v502_v12 = vadd.f32 %v501_v8, %v1917_v49  ;;  %v782_v13 = vadd.f32 %v1553_v9, %v2162_v61  ;;  %v503_v14 = vpop.f32.mrb[35].mxu0  ;;  %v773_v15 = vpop.f32.mrb[35].mxu1 }
 0x126   :  { %v1074_v16 = vmax.f32 %v500_v6, 0.0  ;;  %v1027_v17 = vmax.f32 %v771_v7, 0.0  ;;  %v504_v18 = vadd.f32 %v503_v14, %v1920_v50  ;;  %v774_v19 = vadd.f32 %v773_v15, %v2162_v61 }
 0x127   :  { %1233 = vst [vmem:[%s2761_s3 + $0x80] sm:$0xff] %v1073_v10  ;;  %1287 = vst.msk [vmem:[%s2762_s4 + $0x28] sm:$0xff] %vm1282_vm2, %v1033_v11  ;;  %v1076_v20 = vmax.f32 %v502_v12, 0.0  ;;  %v1036_v21 = vmax.f32 %v782_v13, 0.0 }
 0x128   :  { %1314 = vst [vmem:[%s2762_s4 + $0x100] sm:$0xff] %v1074_v16  ;;  %1283 = vst.msk [vmem:[%s2762_s4 + $0x8] sm:$0xff] %vm1282_vm2, %v1027_v17  ;;  %v1077_v22 = vmax.f32 %v504_v18, 0.0  ;;  %v1030_v23 = vmax.f32 %v774_v19, 0.0 }
 0x129   :  { %1234 = vst [vmem:[%s2761_s3 + $0x88] sm:$0xff] %v1076_v20  ;;  %1289 = vst.msk [vmem:[%s2762_s4 + $0x38] sm:$0xff] %vm1282_vm2, %v1036_v21 }
 0x12a   :  { %1316 = vst [vmem:[%s2762_s4 + $0x110] sm:$0xff] %v1077_v22  ;;  %1285 = vst.msk [vmem:[%s2762_s4 + $0x18] sm:$0xff] %vm1282_vm2, %v1030_v23  ;;  %v507_v24 = vpop.f32.mrb[36].mxu0  ;;  %v1556_v25 = vpop.f32.mrb[36].mxu1 }
 0x12b   :  { %v508_v26 = vadd.f32 %v507_v24, %v1917_v49  ;;  %v795_v27 = vadd.f32 %v1556_v25, %v2162_v61  ;;  %v509_v28 = vpop.f32.mrb[37].mxu0  ;;  %v786_v29 = vpop.f32.mrb[37].mxu1 }
 0x12c   :  { %v510_v30 = vadd.f32 %v509_v28, %v1920_v50  ;;  %v787_v31 = vadd.f32 %v786_v29, %v2162_v61  ;;  %v511_v32 = vpop.f32.mrb[38].mxu0  ;;  %v1557_v33 = vpop.f32.mrb[38].mxu1 }
 0x12d   :  { %v1079_v34 = vmax.f32 %v508_v26, 0.0  ;;  %v1045_v35 = vmax.f32 %v795_v27, 0.0  ;;  %v512_v36 = vadd.f32 %v511_v32, %v1917_v49  ;;  %v798_v37 = vadd.f32 %v1557_v33, %v2162_v61  ;;  %v513_v38 = vpop.f32.mrb[39].mxu0  ;;  %v789_v39 = vpop.f32.mrb[39].mxu1 }
 0x12e   :  { %v1080_v40 = vmax.f32 %v510_v30, 0.0  ;;  %v1039_v41 = vmax.f32 %v787_v31, 0.0  ;;  %v514_v42 = vadd.f32 %v513_v38, %v1920_v50  ;;  %v790_v43 = vadd.f32 %v789_v39, %v2162_v61 }
 0x12f   :  { %1235 = vst [vmem:[%s2761_s3 + $0x90] sm:$0xff] %v1079_v34  ;;  %1295 = vst.msk [vmem:[%s2762_s4 + $0x68] sm:$0xff] %vm1282_vm2, %v1045_v35  ;;  %v1082_v44 = vmax.f32 %v512_v36, 0.0  ;;  %v1048_v45 = vmax.f32 %v798_v37, 0.0 }
 0x130   :  { %1318 = vst [vmem:[%s2762_s4 + $0x120] sm:$0xff] %v1080_v40  ;;  %1291 = vst.msk [vmem:[%s2762_s4 + $0x48] sm:$0xff] %vm1282_vm2, %v1039_v41  ;;  %v1083_v46 = vmax.f32 %v514_v42, 0.0  ;;  %v1042_v48 = vmax.f32 %v790_v43, 0.0 }
 0x131   :  { %1236 = vst [vmem:[%s2761_s3 + $0x98] sm:$0xff] %v1082_v44  ;;  %1297 = vst.msk [vmem:[%s2762_s4 + $0x78] sm:$0xff] %vm1282_vm2, %v1048_v45 }
 0x132   :  { %1320 = vst [vmem:[%s2762_s4 + $0x130] sm:$0xff] %v1083_v46  ;;  %1293 = vst.msk [vmem:[%s2762_s4 + $0x58] sm:$0xff] %vm1282_vm2, %v1042_v48  ;;  %v517_v51 = vpop.f32.mrb[40].mxu0  ;;  %v1560_v52 = vpop.f32.mrb[40].mxu1 }
 0x133   :  { %v518_v53 = vadd.f32 %v517_v51, %v1917_v49  ;;  %v811_v54 = vadd.f32 %v1560_v52, %v2162_v61  ;;  %v519_v55 = vpop.f32.mrb[41].mxu0  ;;  %v802_v56 = vpop.f32.mrb[41].mxu1 }
 0x134   :  { %v520_v57 = vadd.f32 %v519_v55, %v1920_v50  ;;  %v803_v58 = vadd.f32 %v802_v56, %v2162_v61  ;;  %v521_v4 = vpop.f32.mrb[42].mxu0  ;;  %v1561_v59 = vpop.f32.mrb[42].mxu1 }
 0x135   :  { %v1085_v60 = vmax.f32 %v518_v53, 0.0  ;;  %v1057_v62 = vmax.f32 %v811_v54, 0.0  ;;  %v522_v63 = vadd.f32 %v521_v4, %v1917_v49  ;;  %v814_v47 = vadd.f32 %v1561_v59, %v2162_v61  ;;  %v523_v0 = vpop.f32.mrb[43].mxu0  ;;  %v805_v1 = vpop.f32.mrb[43].mxu1 }
 0x136   :  { %v1086_v2 = vmax.f32 %v520_v57, 0.0  ;;  %v1051_v3 = vmax.f32 %v803_v58, 0.0  ;;  %v524_v5 = vadd.f32 %v523_v0, %v1920_v50  ;;  %v806_v6 = vadd.f32 %v805_v1, %v2162_v61 }
 0x137   :  { %1237 = vst [vmem:[%s2761_s3 + $0xa0] sm:$0xff] %v1085_v60  ;;  %1303 = vst.msk [vmem:[%s2762_s4 + $0xa8] sm:$0xff] %vm1282_vm2, %v1057_v62  ;;  %v1088_v7 = vmax.f32 %v522_v63, 0.0  ;;  %v1060_v8 = vmax.f32 %v814_v47, 0.0 }
 0x138   :  { %1322 = vst [vmem:[%s2762_s4 + $0x140] sm:$0xff] %v1086_v2  ;;  %1299 = vst.msk [vmem:[%s2762_s4 + $0x88] sm:$0xff] %vm1282_vm2, %v1051_v3  ;;  %v1089_v9 = vmax.f32 %v524_v5, 0.0  ;;  %v1054_v10 = vmax.f32 %v806_v6, 0.0 }
 0x139   :  { %1238 = vst [vmem:[%s2761_s3 + $0xa8] sm:$0xff] %v1088_v7  ;;  %1305 = vst.msk [vmem:[%s2762_s4 + $0xb8] sm:$0xff] %vm1282_vm2, %v1060_v8 }
 0x13a   :  { %1324 = vst [vmem:[%s2762_s4 + $0x150] sm:$0xff] %v1089_v9  ;;  %1301 = vst.msk [vmem:[%s2762_s4 + $0x98] sm:$0xff] %vm1282_vm2, %v1054_v10  ;;  %v527_v11 = vpop.f32.mrb[44].mxu0  ;;  %v1564_v12 = vpop.f32.mrb[44].mxu1 }
 0x13b   :  { %v528_v13 = vadd.f32 %v527_v11, %v1917_v49  ;;  %v827_v14 = vadd.f32 %v1564_v12, %v2162_v61  ;;  %v529_v15 = vpop.f32.mrb[45].mxu0  ;;  %v818_v16 = vpop.f32.mrb[45].mxu1 }
 0x13c   :  { %v530_v17 = vadd.f32 %v529_v15, %v1920_v50  ;;  %v819_v18 = vadd.f32 %v818_v16, %v2162_v61  ;;  %v531_v19 = vpop.f32.mrb[46].mxu0  ;;  %v1565_v20 = vpop.f32.mrb[46].mxu1 }
 0x13d   :  { %v1091_v21 = vmax.f32 %v528_v13, 0.0  ;;  %v1069_v22 = vmax.f32 %v827_v14, 0.0  ;;  %v532_v23 = vadd.f32 %v531_v19, %v1917_v49  ;;  %v830_v24 = vadd.f32 %v1565_v20, %v2162_v61  ;;  %v533_v25 = vpop.f32.mrb[47].mxu0  ;;  %v821_v26 = vpop.f32.mrb[47].mxu1 }
 0x13e   :  { %v1092_v27 = vmax.f32 %v530_v17, 0.0  ;;  %v1063_v28 = vmax.f32 %v819_v18, 0.0  ;;  %v534_v29 = vadd.f32 %v533_v25, %v1920_v50  ;;  %v822_v30 = vadd.f32 %v821_v26, %v2162_v61 }
 0x13f   :  { %1239 = vst [vmem:[%s2761_s3 + $0xb0] sm:$0xff] %v1091_v21  ;;  %1311 = vst.msk [vmem:[%s2762_s4 + $0xe8] sm:$0xff] %vm1282_vm2, %v1069_v22  ;;  %v1094_v31 = vmax.f32 %v532_v23, 0.0  ;;  %v1072_v32 = vmax.f32 %v830_v24, 0.0 }
 0x140   :  { %1326 = vst [vmem:[%s2762_s4 + $0x160] sm:$0xff] %v1092_v27  ;;  %1307 = vst.msk [vmem:[%s2762_s4 + $0xc8] sm:$0xff] %vm1282_vm2, %v1063_v28  ;;  %v1095_v33 = vmax.f32 %v534_v29, 0.0  ;;  %v1066_v34 = vmax.f32 %v822_v30, 0.0 }
 0x141   :  { %1240 = vst [vmem:[%s2761_s3 + $0xb8] sm:$0xff] %v1094_v31  ;;  %1313 = vst.msk [vmem:[%s2762_s4 + $0xf8] sm:$0xff] %vm1282_vm2, %v1072_v32 }
 0x142   :  { %1328 = vst [vmem:[%s2762_s4 + $0x170] sm:$0xff] %v1095_v33  ;;  %1309 = vst.msk [vmem:[%s2762_s4 + $0xd8] sm:$0xff] %vm1282_vm2, %v1066_v34  ;;  %v537_v35 = vpop.f32.mrb[48].mxu0  ;;  %v1568_v36 = vpop.f32.mrb[48].mxu1 }
 0x143   :  { %v538_v37 = vadd.f32 %v537_v35, %v1917_v49  ;;  %v843_v38 = vadd.f32 %v1568_v36, %v2162_v61  ;;  %v539_v39 = vpop.f32.mrb[49].mxu0  ;;  %v834_v40 = vpop.f32.mrb[49].mxu1 }
 0x144   :  { %v540_v41 = vadd.f32 %v539_v39, %v1920_v50  ;;  %v835_v42 = vadd.f32 %v834_v40, %v2162_v61  ;;  %v541_v43 = vpop.f32.mrb[50].mxu0  ;;  %v1569_v44 = vpop.f32.mrb[50].mxu1 }
 0x145   :  { %v1097_v45 = vmax.f32 %v538_v37, 0.0  ;;  %v1081_v46 = vmax.f32 %v843_v38, 0.0  ;;  %v542_v48 = vadd.f32 %v541_v43, %v1917_v49  ;;  %v846_v51 = vadd.f32 %v1569_v44, %v2162_v61  ;;  %v543_v52 = vpop.f32.mrb[51].mxu0  ;;  %v837_v53 = vpop.f32.mrb[51].mxu1 }
 0x146   :  { %v1098_v54 = vmax.f32 %v540_v41, 0.0  ;;  %v1075_v55 = vmax.f32 %v835_v42, 0.0  ;;  %v544_v56 = vadd.f32 %v543_v52, %v1920_v50  ;;  %v838_v57 = vadd.f32 %v837_v53, %v2162_v61 }
 0x147   :  { %1241 = vst [vmem:[%s2761_s3 + $0xc0] sm:$0xff] %v1097_v45  ;;  %1319 = vst.msk [vmem:[%s2762_s4 + $0x128] sm:$0xff] %vm1282_vm2, %v1081_v46  ;;  %v1100_v58 = vmax.f32 %v542_v48, 0.0  ;;  %v1084_v4 = vmax.f32 %v846_v51, 0.0 }
 0x148   :  { %1330 = vst [vmem:[%s2762_s4 + $0x180] sm:$0xff] %v1098_v54  ;;  %1315 = vst.msk [vmem:[%s2762_s4 + $0x108] sm:$0xff] %vm1282_vm2, %v1075_v55  ;;  %v1101_v59 = vmax.f32 %v544_v56, 0.0  ;;  %v1078_v60 = vmax.f32 %v838_v57, 0.0 }
 0x149   :  { %1242 = vst [vmem:[%s2761_s3 + $0xc8] sm:$0xff] %v1100_v58  ;;  %1321 = vst.msk [vmem:[%s2762_s4 + $0x138] sm:$0xff] %vm1282_vm2, %v1084_v4 }
 0x14a   :  { %1332 = vst [vmem:[%s2762_s4 + $0x190] sm:$0xff] %v1101_v59  ;;  %1317 = vst.msk [vmem:[%s2762_s4 + $0x118] sm:$0xff] %vm1282_vm2, %v1078_v60  ;;  %v547_v62 = vpop.f32.mrb[52].mxu0  ;;  %v1572_v63 = vpop.f32.mrb[52].mxu1 }
 0x14b   :  { %v548_v47 = vadd.f32 %v547_v62, %v1917_v49  ;;  %v859_v0 = vadd.f32 %v1572_v63, %v2162_v61  ;;  %v549_v1 = vpop.f32.mrb[53].mxu0  ;;  %v850_v2 = vpop.f32.mrb[53].mxu1 }
 0x14c   :  { %v550_v3 = vadd.f32 %v549_v1, %v1920_v50  ;;  %v851_v5 = vadd.f32 %v850_v2, %v2162_v61  ;;  %v551_v6 = vpop.f32.mrb[54].mxu0  ;;  %v1573_v7 = vpop.f32.mrb[54].mxu1 }
 0x14d   :  { %v1103_v8 = vmax.f32 %v548_v47, 0.0  ;;  %v1093_v9 = vmax.f32 %v859_v0, 0.0  ;;  %v552_v10 = vadd.f32 %v551_v6, %v1917_v49  ;;  %v862_v11 = vadd.f32 %v1573_v7, %v2162_v61  ;;  %v553_v12 = vpop.f32.mrb[55].mxu0  ;;  %v853_v13 = vpop.f32.mrb[55].mxu1 }
 0x14e   :  { %v1104_v14 = vmax.f32 %v550_v3, 0.0  ;;  %v1087_v15 = vmax.f32 %v851_v5, 0.0  ;;  %v554_v16 = vadd.f32 %v553_v12, %v1920_v50  ;;  %v854_v17 = vadd.f32 %v853_v13, %v2162_v61 }
 0x14f   :  { %1243 = vst [vmem:[%s2761_s3 + $0xd0] sm:$0xff] %v1103_v8  ;;  %1327 = vst.msk [vmem:[%s2762_s4 + $0x168] sm:$0xff] %vm1282_vm2, %v1093_v9  ;;  %v1106_v18 = vmax.f32 %v552_v10, 0.0  ;;  %v1096_v19 = vmax.f32 %v862_v11, 0.0 }
 0x150   :  { %1334 = vst [vmem:[%s2762_s4 + $0x1a0] sm:$0xff] %v1104_v14  ;;  %1323 = vst.msk [vmem:[%s2762_s4 + $0x148] sm:$0xff] %vm1282_vm2, %v1087_v15  ;;  %v1107_v20 = vmax.f32 %v554_v16, 0.0  ;;  %v1090_v21 = vmax.f32 %v854_v17, 0.0 }
 0x151   :  { %1244 = vst [vmem:[%s2761_s3 + $0xd8] sm:$0xff] %v1106_v18  ;;  %1329 = vst.msk [vmem:[%s2762_s4 + $0x178] sm:$0xff] %vm1282_vm2, %v1096_v19 }
 0x152   :  { %1336 = vst [vmem:[%s2762_s4 + $0x1b0] sm:$0xff] %v1107_v20  ;;  %1325 = vst.msk [vmem:[%s2762_s4 + $0x158] sm:$0xff] %vm1282_vm2, %v1090_v21  ;;  %v557_v22 = vpop.f32.mrb[56].mxu0  ;;  %v1576_v23 = vpop.f32.mrb[56].mxu1 }
 0x153   :  { %v558_v24 = vadd.f32 %v557_v22, %v1917_v49  ;;  %v875_v25 = vadd.f32 %v1576_v23, %v2162_v61  ;;  %v559_v26 = vpop.f32.mrb[57].mxu0  ;;  %v866_v27 = vpop.f32.mrb[57].mxu1 }
 0x154   :  { %v560_v28 = vadd.f32 %v559_v26, %v1920_v50  ;;  %v867_v29 = vadd.f32 %v866_v27, %v2162_v61  ;;  %v561_v30 = vpop.f32.mrb[58].mxu0  ;;  %v1577_v31 = vpop.f32.mrb[58].mxu1 }
 0x155   :  { %v1109_v32 = vmax.f32 %v558_v24, 0.0  ;;  %v1105_v33 = vmax.f32 %v875_v25, 0.0  ;;  %v562_v34 = vadd.f32 %v561_v30, %v1917_v49  ;;  %v878_v35 = vadd.f32 %v1577_v31, %v2162_v61  ;;  %v563_v36 = vpop.f32.mrb[59].mxu0  ;;  %v869_v37 = vpop.f32.mrb[59].mxu1 }
 0x156   :  { %v1110_v38 = vmax.f32 %v560_v28, 0.0  ;;  %v1099_v39 = vmax.f32 %v867_v29, 0.0  ;;  %v564_v40 = vadd.f32 %v563_v36, %v1920_v50  ;;  %v870_v41 = vadd.f32 %v869_v37, %v2162_v61 }
 0x157   :  { %1245 = vst [vmem:[%s2761_s3 + $0xe0] sm:$0xff] %v1109_v32  ;;  %1335 = vst.msk [vmem:[%s2762_s4 + $0x1a8] sm:$0xff] %vm1282_vm2, %v1105_v33  ;;  %v1112_v42 = vmax.f32 %v562_v34, 0.0  ;;  %v1108_v43 = vmax.f32 %v878_v35, 0.0 }
 0x158   :  { %1338 = vst [vmem:[%s2762_s4 + $0x1c0] sm:$0xff] %v1110_v38  ;;  %1331 = vst.msk [vmem:[%s2762_s4 + $0x188] sm:$0xff] %vm1282_vm2, %v1099_v39  ;;  %v1113_v44 = vmax.f32 %v564_v40, 0.0  ;;  %v1102_v45 = vmax.f32 %v870_v41, 0.0 }
 0x159   :  { %1246 = vst [vmem:[%s2761_s3 + $0xe8] sm:$0xff] %v1112_v42  ;;  %1337 = vst.msk [vmem:[%s2762_s4 + $0x1b8] sm:$0xff] %vm1282_vm2, %v1108_v43 }
 0x15a   :  { %1340 = vst [vmem:[%s2762_s4 + $0x1d0] sm:$0xff] %v1113_v44  ;;  %1333 = vst.msk [vmem:[%s2762_s4 + $0x198] sm:$0xff] %vm1282_vm2, %v1102_v45  ;;  %v567_v46 = vpop.f32.mrb[60].mxu0  ;;  %v1580_v48 = vpop.f32.mrb[60].mxu1 }
 0x15b   :  { %v568_v51 = vadd.f32 %v567_v46, %v1917_v49  ;;  %v891_v52 = vadd.f32 %v1580_v48, %v2162_v61  ;;  %v569_v53 = vpop.f32.mrb[61].mxu0  ;;  %v882_v54 = vpop.f32.mrb[61].mxu1 }
 0x15c   :  { %v570_v55 = vadd.f32 %v569_v53, %v1920_v50  ;;  %v883_v56 = vadd.f32 %v882_v54, %v2162_v61  ;;  %v571_v57 = vpop.f32.mrb[62].mxu0  ;;  %v1581_v58 = vpop.f32.mrb[62].mxu1 }
 0x15d   :  { %v1115_v4 = vmax.f32 %v568_v51, 0.0  ;;  %v1117_v59 = vmax.f32 %v891_v52, 0.0  ;;  %v572_v60 = vadd.f32 %v571_v57, %v1917_v49  ;;  %v894_v62 = vadd.f32 %v1581_v58, %v2162_v61  ;;  %v573_v63 = vpop.f32.mrb[63].mxu0  ;;  %v885_v47 = vpop.f32.mrb[63].mxu1 }
 0x15e   :  { %v1116_v0 = vmax.f32 %v570_v55, 0.0  ;;  %v1111_v1 = vmax.f32 %v883_v56, 0.0  ;;  %v574_v2 = vadd.f32 %v573_v63, %v1920_v50  ;;  %v886_v3 = vadd.f32 %v885_v47, %v2162_v61 }
 0x15f   :  { %1247 = vst [vmem:[%s2761_s3 + $0xf0] sm:$0xff] %v1115_v4  ;;  %1343 = vst.msk [vmem:[%s2762_s4 + $0x1e8] sm:$0xff] %vm1282_vm2, %v1117_v59  ;;  %v1118_v5 = vmax.f32 %v572_v60, 0.0  ;;  %v1120_v6 = vmax.f32 %v894_v62, 0.0 }
 0x160   :  { %1342 = vst [vmem:[%s2762_s4 + $0x1e0] sm:$0xff] %v1116_v0  ;;  %1339 = vst.msk [vmem:[%s2762_s4 + $0x1c8] sm:$0xff] %vm1282_vm2, %v1111_v1  ;;  %v1119_v7 = vmax.f32 %v574_v2, 0.0  ;;  %v1114_v8 = vmax.f32 %v886_v3, 0.0 }
 0x161   :  { %1248 = vst [vmem:[%s2761_s3 + $0xf8] sm:$0xff] %v1118_v5  ;;  %1345 = vst.msk [vmem:[%s2762_s4 + $0x1f8] sm:$0xff] %vm1282_vm2, %v1120_v6 }
 0x162   :  { %1344 = vst [vmem:[%s2762_s4 + $0x1f0] sm:$0xff] %v1119_v7  ;;  %1341 = vst.msk [vmem:[%s2762_s4 + $0x1d8] sm:$0xff] %vm1282_vm2, %v1114_v8  ;;  %v577_v9 = vpop.f32.mrb[64].mxu0  ;;  %v1584_v10 = vpop.f32.mrb[64].mxu1 }
 0x163   :  { %v578_v11 = vadd.f32 %v577_v9, %v1917_v49  ;;  %v907_v12 = vadd.f32 %v1584_v10, %v2162_v61  ;;  %v579_v13 = vpop.f32.mrb[65].mxu0  ;;  %v898_v14 = vpop.f32.mrb[65].mxu1 }
 0x164   :  { %v580_v15 = vadd.f32 %v579_v13, %v1920_v50  ;;  %v899_v16 = vadd.f32 %v898_v14, %v2162_v61  ;;  %v581_v17 = vpop.f32.mrb[66].mxu0  ;;  %v1585_v18 = vpop.f32.mrb[66].mxu1 }
 0x165   :  { %v1121_v19 = vmax.f32 %v578_v11, 0.0  ;;  %v1129_v20 = vmax.f32 %v907_v12, 0.0  ;;  %v582_v21 = vadd.f32 %v581_v17, %v1917_v49  ;;  %v910_v22 = vadd.f32 %v1585_v18, %v2162_v61  ;;  %v583_v23 = vpop.f32.mrb[67].mxu0  ;;  %v901_v24 = vpop.f32.mrb[67].mxu1 }
 0x166   :  { %v1122_v25 = vmax.f32 %v580_v15, 0.0  ;;  %v1123_v26 = vmax.f32 %v899_v16, 0.0  ;;  %v584_v27 = vadd.f32 %v583_v23, %v1920_v50  ;;  %v902_v28 = vadd.f32 %v901_v24, %v2162_v61 }
 0x167   :  { %1249 = vst [vmem:[%s2761_s3 + $0x100] sm:$0xff] %v1121_v19  ;;  %1351 = vst.msk [vmem:[%s2762_s4 + $0x228] sm:$0xff] %vm1282_vm2, %v1129_v20  ;;  %v1124_v29 = vmax.f32 %v582_v21, 0.0  ;;  %v1132_v30 = vmax.f32 %v910_v22, 0.0 }
 0x168   :  { %1346 = vst [vmem:[%s2762_s4 + $0x200] sm:$0xff] %v1122_v25  ;;  %1347 = vst.msk [vmem:[%s2762_s4 + $0x208] sm:$0xff] %vm1282_vm2, %v1123_v26  ;;  %v1125_v31 = vmax.f32 %v584_v27, 0.0  ;;  %v1126_v32 = vmax.f32 %v902_v28, 0.0 }
 0x169   :  { %1250 = vst [vmem:[%s2761_s3 + $0x108] sm:$0xff] %v1124_v29  ;;  %1353 = vst.msk [vmem:[%s2762_s4 + $0x238] sm:$0xff] %vm1282_vm2, %v1132_v30 }
 0x16a   :  { %1348 = vst [vmem:[%s2762_s4 + $0x210] sm:$0xff] %v1125_v31  ;;  %1349 = vst.msk [vmem:[%s2762_s4 + $0x218] sm:$0xff] %vm1282_vm2, %v1126_v32  ;;  %v587_v33 = vpop.f32.mrb[68].mxu0  ;;  %v1588_v34 = vpop.f32.mrb[68].mxu1 }
 0x16b   :  { %v588_v35 = vadd.f32 %v587_v33, %v1917_v49  ;;  %v923_v36 = vadd.f32 %v1588_v34, %v2162_v61  ;;  %v589_v37 = vpop.f32.mrb[69].mxu0  ;;  %v914_v38 = vpop.f32.mrb[69].mxu1 }
 0x16c   :  { %v590_v39 = vadd.f32 %v589_v37, %v1920_v50  ;;  %v915_v40 = vadd.f32 %v914_v38, %v2162_v61  ;;  %v591_v41 = vpop.f32.mrb[70].mxu0  ;;  %v1589_v42 = vpop.f32.mrb[70].mxu1 }
 0x16d   :  { %v1127_v43 = vmax.f32 %v588_v35, 0.0  ;;  %v1141_v44 = vmax.f32 %v923_v36, 0.0  ;;  %v592_v45 = vadd.f32 %v591_v41, %v1917_v49  ;;  %v926_v46 = vadd.f32 %v1589_v42, %v2162_v61  ;;  %v593_v48 = vpop.f32.mrb[71].mxu0  ;;  %v917_v51 = vpop.f32.mrb[71].mxu1 }
 0x16e   :  { %v1128_v52 = vmax.f32 %v590_v39, 0.0  ;;  %v1135_v53 = vmax.f32 %v915_v40, 0.0  ;;  %v594_v54 = vadd.f32 %v593_v48, %v1920_v50  ;;  %v918_v55 = vadd.f32 %v917_v51, %v2162_v61 }
 0x16f   :  { %1251 = vst [vmem:[%s2761_s3 + $0x110] sm:$0xff] %v1127_v43  ;;  %1359 = vst.msk [vmem:[%s2762_s4 + $0x268] sm:$0xff] %vm1282_vm2, %v1141_v44  ;;  %v1130_v56 = vmax.f32 %v592_v45, 0.0  ;;  %v1144_v57 = vmax.f32 %v926_v46, 0.0 }
 0x170   :  { %1350 = vst [vmem:[%s2762_s4 + $0x220] sm:$0xff] %v1128_v52  ;;  %1355 = vst.msk [vmem:[%s2762_s4 + $0x248] sm:$0xff] %vm1282_vm2, %v1135_v53  ;;  %v1131_v58 = vmax.f32 %v594_v54, 0.0  ;;  %v1138_v4 = vmax.f32 %v918_v55, 0.0 }
 0x171   :  { %1252 = vst [vmem:[%s2761_s3 + $0x118] sm:$0xff] %v1130_v56  ;;  %1361 = vst.msk [vmem:[%s2762_s4 + $0x278] sm:$0xff] %vm1282_vm2, %v1144_v57 }
 0x172   :  { %1352 = vst [vmem:[%s2762_s4 + $0x230] sm:$0xff] %v1131_v58  ;;  %1357 = vst.msk [vmem:[%s2762_s4 + $0x258] sm:$0xff] %vm1282_vm2, %v1138_v4  ;;  %v597_v59 = vpop.f32.mrb[72].mxu0  ;;  %v1592_v60 = vpop.f32.mrb[72].mxu1 }
 0x173   :  { %v598_v62 = vadd.f32 %v597_v59, %v1917_v49  ;;  %v939_v63 = vadd.f32 %v1592_v60, %v2162_v61  ;;  %v599_v47 = vpop.f32.mrb[73].mxu0  ;;  %v930_v0 = vpop.f32.mrb[73].mxu1 }
 0x174   :  { %v600_v1 = vadd.f32 %v599_v47, %v1920_v50  ;;  %v931_v2 = vadd.f32 %v930_v0, %v2162_v61  ;;  %v601_v3 = vpop.f32.mrb[74].mxu0  ;;  %v1593_v5 = vpop.f32.mrb[74].mxu1 }
 0x175   :  { %v1133_v6 = vmax.f32 %v598_v62, 0.0  ;;  %v1153_v7 = vmax.f32 %v939_v63, 0.0  ;;  %v602_v8 = vadd.f32 %v601_v3, %v1917_v49  ;;  %v942_v9 = vadd.f32 %v1593_v5, %v2162_v61  ;;  %v603_v10 = vpop.f32.mrb[75].mxu0  ;;  %v933_v11 = vpop.f32.mrb[75].mxu1 }
 0x176   :  { %v1134_v12 = vmax.f32 %v600_v1, 0.0  ;;  %v1147_v13 = vmax.f32 %v931_v2, 0.0  ;;  %v604_v14 = vadd.f32 %v603_v10, %v1920_v50  ;;  %v934_v15 = vadd.f32 %v933_v11, %v2162_v61 }
 0x177   :  { %1253 = vst [vmem:[%s2761_s3 + $0x120] sm:$0xff] %v1133_v6  ;;  %1367 = vst.msk [vmem:[%s2762_s4 + $0x2a8] sm:$0xff] %vm1282_vm2, %v1153_v7  ;;  %v1136_v16 = vmax.f32 %v602_v8, 0.0  ;;  %v1156_v17 = vmax.f32 %v942_v9, 0.0 }
 0x178   :  { %1354 = vst [vmem:[%s2762_s4 + $0x240] sm:$0xff] %v1134_v12  ;;  %1363 = vst.msk [vmem:[%s2762_s4 + $0x288] sm:$0xff] %vm1282_vm2, %v1147_v13  ;;  %v1137_v18 = vmax.f32 %v604_v14, 0.0  ;;  %v1150_v19 = vmax.f32 %v934_v15, 0.0 }
 0x179   :  { %1254 = vst [vmem:[%s2761_s3 + $0x128] sm:$0xff] %v1136_v16  ;;  %1369 = vst.msk [vmem:[%s2762_s4 + $0x2b8] sm:$0xff] %vm1282_vm2, %v1156_v17 }
 0x17a   :  { %1356 = vst [vmem:[%s2762_s4 + $0x250] sm:$0xff] %v1137_v18  ;;  %1365 = vst.msk [vmem:[%s2762_s4 + $0x298] sm:$0xff] %vm1282_vm2, %v1150_v19  ;;  %v607_v20 = vpop.f32.mrb[76].mxu0  ;;  %v1596_v21 = vpop.f32.mrb[76].mxu1 }
 0x17b   :  { %v608_v22 = vadd.f32 %v607_v20, %v1917_v49  ;;  %v955_v23 = vadd.f32 %v1596_v21, %v2162_v61  ;;  %v609_v24 = vpop.f32.mrb[77].mxu0  ;;  %v946_v25 = vpop.f32.mrb[77].mxu1 }
 0x17c   :  { %v610_v26 = vadd.f32 %v609_v24, %v1920_v50  ;;  %v947_v27 = vadd.f32 %v946_v25, %v2162_v61  ;;  %v611_v28 = vpop.f32.mrb[78].mxu0  ;;  %v1597_v29 = vpop.f32.mrb[78].mxu1 }
 0x17d   :  { %v1139_v30 = vmax.f32 %v608_v22, 0.0  ;;  %v1165_v31 = vmax.f32 %v955_v23, 0.0  ;;  %v612_v32 = vadd.f32 %v611_v28, %v1917_v49  ;;  %v958_v33 = vadd.f32 %v1597_v29, %v2162_v61  ;;  %v613_v34 = vpop.f32.mrb[79].mxu0  ;;  %v949_v35 = vpop.f32.mrb[79].mxu1 }
 0x17e   :  { %v1140_v36 = vmax.f32 %v610_v26, 0.0  ;;  %v1159_v37 = vmax.f32 %v947_v27, 0.0  ;;  %v614_v38 = vadd.f32 %v613_v34, %v1920_v50  ;;  %v950_v39 = vadd.f32 %v949_v35, %v2162_v61 }
 0x17f   :  { %1255 = vst [vmem:[%s2761_s3 + $0x130] sm:$0xff] %v1139_v30  ;;  %1375 = vst.msk [vmem:[%s2762_s4 + $0x2e8] sm:$0xff] %vm1282_vm2, %v1165_v31  ;;  %v1142_v40 = vmax.f32 %v612_v32, 0.0  ;;  %v1168_v41 = vmax.f32 %v958_v33, 0.0 }
 0x180   :  { %1358 = vst [vmem:[%s2762_s4 + $0x260] sm:$0xff] %v1140_v36  ;;  %1371 = vst.msk [vmem:[%s2762_s4 + $0x2c8] sm:$0xff] %vm1282_vm2, %v1159_v37  ;;  %v1143_v42 = vmax.f32 %v614_v38, 0.0  ;;  %v1162_v43 = vmax.f32 %v950_v39, 0.0 }
 0x181   :  { %1256 = vst [vmem:[%s2761_s3 + $0x138] sm:$0xff] %v1142_v40  ;;  %1377 = vst.msk [vmem:[%s2762_s4 + $0x2f8] sm:$0xff] %vm1282_vm2, %v1168_v41 }
 0x182   :  { %1360 = vst [vmem:[%s2762_s4 + $0x270] sm:$0xff] %v1143_v42  ;;  %1373 = vst.msk [vmem:[%s2762_s4 + $0x2d8] sm:$0xff] %vm1282_vm2, %v1162_v43  ;;  %v617_v44 = vpop.f32.mrb[80].mxu0  ;;  %v1600_v45 = vpop.f32.mrb[80].mxu1 }
 0x183   :  { %v618_v46 = vadd.f32 %v617_v44, %v1917_v49  ;;  %v971_v48 = vadd.f32 %v1600_v45, %v2162_v61  ;;  %v619_v51 = vpop.f32.mrb[81].mxu0  ;;  %v962_v52 = vpop.f32.mrb[81].mxu1 }
 0x184   :  { %v620_v53 = vadd.f32 %v619_v51, %v1920_v50  ;;  %v963_v54 = vadd.f32 %v962_v52, %v2162_v61  ;;  %v621_v55 = vpop.f32.mrb[82].mxu0  ;;  %v1601_v56 = vpop.f32.mrb[82].mxu1 }
 0x185   :  { %v1145_v57 = vmax.f32 %v618_v46, 0.0  ;;  %v1177_v58 = vmax.f32 %v971_v48, 0.0  ;;  %v622_v4 = vadd.f32 %v621_v55, %v1917_v49  ;;  %v974_v59 = vadd.f32 %v1601_v56, %v2162_v61  ;;  %v623_v60 = vpop.f32.mrb[83].mxu0  ;;  %v965_v62 = vpop.f32.mrb[83].mxu1 }
 0x186   :  { %v1146_v63 = vmax.f32 %v620_v53, 0.0  ;;  %v1171_v47 = vmax.f32 %v963_v54, 0.0  ;;  %v624_v0 = vadd.f32 %v623_v60, %v1920_v50  ;;  %v966_v1 = vadd.f32 %v965_v62, %v2162_v61 }
 0x187   :  { %1257 = vst [vmem:[%s2761_s3 + $0x140] sm:$0xff] %v1145_v57  ;;  %1383 = vst.msk [vmem:[%s2762_s4 + $0x328] sm:$0xff] %vm1282_vm2, %v1177_v58  ;;  %v1148_v2 = vmax.f32 %v622_v4, 0.0  ;;  %v1180_v3 = vmax.f32 %v974_v59, 0.0 }
 0x188   :  { %1362 = vst [vmem:[%s2762_s4 + $0x280] sm:$0xff] %v1146_v63  ;;  %1379 = vst.msk [vmem:[%s2762_s4 + $0x308] sm:$0xff] %vm1282_vm2, %v1171_v47  ;;  %v1149_v5 = vmax.f32 %v624_v0, 0.0  ;;  %v1174_v6 = vmax.f32 %v966_v1, 0.0 }
 0x189   :  { %1258 = vst [vmem:[%s2761_s3 + $0x148] sm:$0xff] %v1148_v2  ;;  %1385 = vst.msk [vmem:[%s2762_s4 + $0x338] sm:$0xff] %vm1282_vm2, %v1180_v3 }
 0x18a   :  { %1364 = vst [vmem:[%s2762_s4 + $0x290] sm:$0xff] %v1149_v5  ;;  %1381 = vst.msk [vmem:[%s2762_s4 + $0x318] sm:$0xff] %vm1282_vm2, %v1174_v6  ;;  %v627_v7 = vpop.f32.mrb[84].mxu0  ;;  %v1604_v8 = vpop.f32.mrb[84].mxu1 }
 0x18b   :  { %v628_v9 = vadd.f32 %v627_v7, %v1917_v49  ;;  %v987_v10 = vadd.f32 %v1604_v8, %v2162_v61  ;;  %v629_v11 = vpop.f32.mrb[85].mxu0  ;;  %v978_v12 = vpop.f32.mrb[85].mxu1 }
 0x18c   :  { %v630_v13 = vadd.f32 %v629_v11, %v1920_v50  ;;  %v979_v14 = vadd.f32 %v978_v12, %v2162_v61  ;;  %v631_v15 = vpop.f32.mrb[86].mxu0  ;;  %v1605_v16 = vpop.f32.mrb[86].mxu1 }
 0x18d   :  { %v1151_v17 = vmax.f32 %v628_v9, 0.0  ;;  %v1189_v18 = vmax.f32 %v987_v10, 0.0  ;;  %v632_v19 = vadd.f32 %v631_v15, %v1917_v49  ;;  %v990_v20 = vadd.f32 %v1605_v16, %v2162_v61  ;;  %v633_v21 = vpop.f32.mrb[87].mxu0  ;;  %v981_v22 = vpop.f32.mrb[87].mxu1 }
 0x18e   :  { %v1152_v23 = vmax.f32 %v630_v13, 0.0  ;;  %v1183_v24 = vmax.f32 %v979_v14, 0.0  ;;  %v634_v25 = vadd.f32 %v633_v21, %v1920_v50  ;;  %v982_v26 = vadd.f32 %v981_v22, %v2162_v61 }
 0x18f   :  { %1259 = vst [vmem:[%s2761_s3 + $0x150] sm:$0xff] %v1151_v17  ;;  %1391 = vst.msk [vmem:[%s2762_s4 + $0x368] sm:$0xff] %vm1282_vm2, %v1189_v18  ;;  %v1154_v27 = vmax.f32 %v632_v19, 0.0  ;;  %v1192_v28 = vmax.f32 %v990_v20, 0.0 }
 0x190   :  { %1366 = vst [vmem:[%s2762_s4 + $0x2a0] sm:$0xff] %v1152_v23  ;;  %1387 = vst.msk [vmem:[%s2762_s4 + $0x348] sm:$0xff] %vm1282_vm2, %v1183_v24  ;;  %v1155_v29 = vmax.f32 %v634_v25, 0.0  ;;  %v1186_v30 = vmax.f32 %v982_v26, 0.0 }
 0x191   :  { %1260 = vst [vmem:[%s2761_s3 + $0x158] sm:$0xff] %v1154_v27  ;;  %1393 = vst.msk [vmem:[%s2762_s4 + $0x378] sm:$0xff] %vm1282_vm2, %v1192_v28 }
 0x192   :  { %1368 = vst [vmem:[%s2762_s4 + $0x2b0] sm:$0xff] %v1155_v29  ;;  %1389 = vst.msk [vmem:[%s2762_s4 + $0x358] sm:$0xff] %vm1282_vm2, %v1186_v30  ;;  %v637_v31 = vpop.f32.mrb[88].mxu0  ;;  %v1608_v32 = vpop.f32.mrb[88].mxu1 }
 0x193   :  { %v638_v33 = vadd.f32 %v637_v31, %v1917_v49  ;;  %v1003_v34 = vadd.f32 %v1608_v32, %v2162_v61  ;;  %v639_v35 = vpop.f32.mrb[89].mxu0  ;;  %v994_v36 = vpop.f32.mrb[89].mxu1 }
 0x194   :  { %v640_v37 = vadd.f32 %v639_v35, %v1920_v50  ;;  %v995_v38 = vadd.f32 %v994_v36, %v2162_v61  ;;  %v641_v39 = vpop.f32.mrb[90].mxu0  ;;  %v1609_v40 = vpop.f32.mrb[90].mxu1 }
 0x195   :  { %v1157_v41 = vmax.f32 %v638_v33, 0.0  ;;  %v1201_v42 = vmax.f32 %v1003_v34, 0.0  ;;  %v642_v43 = vadd.f32 %v641_v39, %v1917_v49  ;;  %v1006_v44 = vadd.f32 %v1609_v40, %v2162_v61  ;;  %v643_v45 = vpop.f32.mrb[91].mxu0  ;;  %v997_v46 = vpop.f32.mrb[91].mxu1 }
 0x196   :  { %v1158_v48 = vmax.f32 %v640_v37, 0.0  ;;  %v1195_v51 = vmax.f32 %v995_v38, 0.0  ;;  %v644_v52 = vadd.f32 %v643_v45, %v1920_v50  ;;  %v998_v53 = vadd.f32 %v997_v46, %v2162_v61 }
 0x197   :  { %1261 = vst [vmem:[%s2761_s3 + $0x160] sm:$0xff] %v1157_v41  ;;  %1399 = vst.msk [vmem:[%s2762_s4 + $0x3a8] sm:$0xff] %vm1282_vm2, %v1201_v42  ;;  %v1160_v54 = vmax.f32 %v642_v43, 0.0  ;;  %v1204_v55 = vmax.f32 %v1006_v44, 0.0 }
 0x198   :  { %1370 = vst [vmem:[%s2762_s4 + $0x2c0] sm:$0xff] %v1158_v48  ;;  %1395 = vst.msk [vmem:[%s2762_s4 + $0x388] sm:$0xff] %vm1282_vm2, %v1195_v51  ;;  %v1161_v56 = vmax.f32 %v644_v52, 0.0  ;;  %v1198_v57 = vmax.f32 %v998_v53, 0.0 }
 0x199   :  { %1262 = vst [vmem:[%s2761_s3 + $0x168] sm:$0xff] %v1160_v54  ;;  %1401 = vst.msk [vmem:[%s2762_s4 + $0x3b8] sm:$0xff] %vm1282_vm2, %v1204_v55 }
 0x19a   :  { %1372 = vst [vmem:[%s2762_s4 + $0x2d0] sm:$0xff] %v1161_v56  ;;  %1397 = vst.msk [vmem:[%s2762_s4 + $0x398] sm:$0xff] %vm1282_vm2, %v1198_v57  ;;  %v647_v58 = vpop.f32.mrb[92].mxu0  ;;  %v1612_v4 = vpop.f32.mrb[92].mxu1 }
 0x19b   :  { %v648_v59 = vadd.f32 %v647_v58, %v1917_v49  ;;  %v1019_v60 = vadd.f32 %v1612_v4, %v2162_v61  ;;  %v649_v62 = vpop.f32.mrb[93].mxu0  ;;  %v1010_v63 = vpop.f32.mrb[93].mxu1 }
 0x19c   :  { %v650_v47 = vadd.f32 %v649_v62, %v1920_v50  ;;  %v1011_v0 = vadd.f32 %v1010_v63, %v2162_v61  ;;  %v651_v1 = vpop.f32.mrb[94].mxu0  ;;  %v1613_v2 = vpop.f32.mrb[94].mxu1 }
 0x19d   :  { %v1163_v3 = vmax.f32 %v648_v59, 0.0  ;;  %v1213_v5 = vmax.f32 %v1019_v60, 0.0  ;;  %v652_v6 = vadd.f32 %v651_v1, %v1917_v49  ;;  %v1022_v7 = vadd.f32 %v1613_v2, %v2162_v61  ;;  %v653_v8 = vpop.f32.mrb[95].mxu0  ;;  %v1013_v9 = vpop.f32.mrb[95].mxu1 }
 0x19e   :  { %v1164_v10 = vmax.f32 %v650_v47, 0.0  ;;  %v1207_v11 = vmax.f32 %v1011_v0, 0.0  ;;  %v654_v12 = vadd.f32 %v653_v8, %v1920_v50  ;;  %v1014_v13 = vadd.f32 %v1013_v9, %v2162_v61 }
 0x19f   :  { %1263 = vst [vmem:[%s2761_s3 + $0x170] sm:$0xff] %v1163_v3  ;;  %1407 = vst.msk [vmem:[%s2762_s4 + $0x3e8] sm:$0xff] %vm1282_vm2, %v1213_v5  ;;  %v1166_v49 = vmax.f32 %v652_v6, 0.0  ;;  %v1216_v14 = vmax.f32 %v1022_v7, 0.0 }
 0x1a0   :  { %1374 = vst [vmem:[%s2762_s4 + $0x2e0] sm:$0xff] %v1164_v10  ;;  %1403 = vst.msk [vmem:[%s2762_s4 + $0x3c8] sm:$0xff] %vm1282_vm2, %v1207_v11  ;;  %v1167_v50 = vmax.f32 %v654_v12, 0.0  ;;  %v1210_v61 = vmax.f32 %v1014_v13, 0.0 }
 0x1a1   :  { %1264 = vst [vmem:[%s2761_s3 + $0x178] sm:$0xff] %v1166_v49  ;;  %1409 = vst.msk [vmem:[%s2762_s4 + $0x3f8] sm:$0xff] %vm1282_vm2, %v1216_v14 }
 0x1a2   :  { %1376 = vst [vmem:[%s2762_s4 + $0x2f0] sm:$0xff] %v1167_v50  ;;  %1405 = vst.msk [vmem:[%s2762_s4 + $0x3d8] sm:$0xff] %vm1282_vm2, %v1210_v61 }

// kernel: mixed_5b_forward.6
= control target key start
LH: loop header
LB: loop body
LE: loop exit
PB: predicated region body
PF: predicated region fallthrough
CT: control target
= control target key end

     0   :  { %s2739_s12 = smov 0   ;;  %s3554_s0 = inlined_call_operand.vmem [shape: bf16[2,384,256], index: 0, kind: input, shape index: {}]   ;;  %s3555_s1 = inlined_call_operand.vmem [shape: bf16[3,256,256], index: 1, kind: input, shape index: {}]   ;;  %s3556_s2 = inlined_call_operand.vmem [shape: f32[1,256], index: 2, kind: input, shape index: {}]   ;;  %s3557_s3 = inlined_call_operand.vmem [shape: f32[2,256,256], index: 3, kind: output, shape index: {}]  }
   0x1 LB: > { %s2083_s13 = sadd.s32 4294967295, %s2717_s12   ;;  %p2087_p0 = scmp.ge.s32.totalorder %s2717_s12, 1  ;;  %s2717_s12 = sphi %s2739_s12, %s13_s12  }
   0x2   : > { %p137_p1 = scmp.lt.s32.totalorder %s2717_s12, 3 }
   0x4   : > { %p138_p2 = pnand %p2087_p0, %p137_p1 }
   0x5   : > { %v2495_v0 = vld [vmem:[%s3555_s1 + $0x104] ss:$8 sps:$4 sm:$0xff] (!%p138_p2)   ;;  %v2499_v2 = vld [vmem:[%s3555_s1 + $0x100] ss:$8 sps:$4 sm:$0xff] (!%p138_p2)   ;;  %v2501_v4 = vld [vmem:[%s3555_s1 + $0x114] ss:$8 sps:$4 sm:$0xff] (!%p138_p2)  }
   0x6   : > { %141 = sbr.rel (%p138_p2) target bundleno = 477 (0x1dd), region = 32  ;;  %v2753_v1 = vld [vmem:[%s3555_s1 + $0x4] ss:$8 sps:$4 sm:$0xff] (!%p138_p2)   ;;  %597 = vmatprep.subr.bf16.mxu1 (!%p138_p2), %v2495_v0  ;;  %v2761_v3 = vld [vmem:[%s3555_s1] ss:$8 sps:$4 sm:$0xff] (!%p138_p2)   ;;  %p161_p3 = scmp.lt.s32.totalorder (!%p138_p2), %s2083_s13, 1 }
   0x7   : > { %990 = vmatprep.subr.bf16.mxu0 (!%p138_p2), %v2753_v1  ;;  %598 = vmatpush1.bf16.msra.mxu1 (!%p138_p2), %v2499_v2  ;;  %v2771_v5 = vld [vmem:[%s3555_s1 + $0x14] ss:$8 sps:$4 sm:$0xff] (!%p138_p2)   ;;  %v2505_v6 = vld [vmem:[%s3555_s1 + $0x110] ss:$8 sps:$4 sm:$0xff] (!%p138_p2)   ;;  %v2507_v8 = vld [vmem:[%s3555_s1 + $0x124] ss:$8 sps:$4 sm:$0xff] (!%p138_p2)  }
   0x8   : > { %991 = vmatpush1.bf16.msra.mxu0 (!%p138_p2), %v2761_v3  ;;  %599 = vmatprep.subr.bf16.mxu1 (!%p138_p2), %v2501_v4  ;;  %v2779_v7 = vld [vmem:[%s3555_s1 + $0x10] ss:$8 sps:$4 sm:$0xff] (!%p138_p2)   ;;  %v2788_v9 = vld [vmem:[%s3555_s1 + $0x24] ss:$8 sps:$4 sm:$0xff] (!%p138_p2)   ;;  %v2511_v10 = vld [vmem:[%s3555_s1 + $0x120] ss:$8 sps:$4 sm:$0xff] (!%p138_p2)  }
   0x9   : > { %992 = vmatprep.subr.bf16.mxu0 (!%p138_p2), %v2771_v5  ;;  %v2796_v11 = vld [vmem:[%s3555_s1 + $0x20] ss:$8 sps:$4 sm:$0xff] (!%p138_p2)   ;;  %v2513_v12 = vld [vmem:[%s3555_s1 + $0x134] ss:$8 sps:$4 sm:$0xff] (!%p138_p2)   ;;  %v2517_v14 = vld [vmem:[%s3555_s1 + $0x130] ss:$8 sps:$4 sm:$0xff] (!%p138_p2)  }
   0xa   : > { %v2806_v13 = vld [vmem:[%s3555_s1 + $0x34] ss:$8 sps:$4 sm:$0xff] (!%p138_p2)   ;;  %v2815_v15 = vld [vmem:[%s3555_s1 + $0x30] ss:$8 sps:$4 sm:$0xff] (!%p138_p2)   ;;  %v2519_v16 = vld [vmem:[%s3555_s1 + $0x144] ss:$8 sps:$4 sm:$0xff] (!%p138_p2)  }
   0xb   : > { %600 = vmatpush1.bf16.msra.mxu1 (!%p138_p2), %v2505_v6  ;;  %v2824_v17 = vld [vmem:[%s3555_s1 + $0x44] ss:$8 sps:$4 sm:$0xff] (!%p138_p2)   ;;  %v2523_v18 = vld [vmem:[%s3555_s1 + $0x140] ss:$8 sps:$4 sm:$0xff] (!%p138_p2)   ;;  %v2525_v20 = vld [vmem:[%s3555_s1 + $0x154] ss:$8 sps:$4 sm:$0xff] (!%p138_p2)  }
   0xc   : > { %993 = vmatpush1.bf16.msra.mxu0 (!%p138_p2), %v2779_v7  ;;  %601 = vmatprep.subr.bf16.mxu1 (!%p138_p2), %v2507_v8  ;;  %v2832_v19 = vld [vmem:[%s3555_s1 + $0x40] ss:$8 sps:$4 sm:$0xff] (!%p138_p2)   ;;  %v2842_v21 = vld [vmem:[%s3555_s1 + $0x54] ss:$8 sps:$4 sm:$0xff] (!%p138_p2)   ;;  %v2529_v22 = vld [vmem:[%s3555_s1 + $0x150] ss:$8 sps:$4 sm:$0xff] (!%p138_p2)  }
   0xd   : > { %994 = vmatprep.subr.bf16.mxu0 %v2788_v9  ;;  %v2851_v23 = vld [vmem:[%s3555_s1 + $0x50] ss:$8 sps:$4 sm:$0xff]   ;;  %v2531_v24 = vld [vmem:[%s3555_s1 + $0x164] ss:$8 sps:$4 sm:$0xff]   ;;  %v2535_v26 = vld [vmem:[%s3555_s1 + $0x160] ss:$8 sps:$4 sm:$0xff]  }
   0xe   : > { %v2860_v25 = vld [vmem:[%s3555_s1 + $0x64] ss:$8 sps:$4 sm:$0xff]   ;;  %v2868_v27 = vld [vmem:[%s3555_s1 + $0x60] ss:$8 sps:$4 sm:$0xff]   ;;  %v2537_v28 = vld [vmem:[%s3555_s1 + $0x174] ss:$8 sps:$4 sm:$0xff]  }
   0xf   : > { %602 = vmatpush1.bf16.msra.mxu1 %v2511_v10  ;;  %v2878_v29 = vld [vmem:[%s3555_s1 + $0x74] ss:$8 sps:$4 sm:$0xff]   ;;  %v2541_v30 = vld [vmem:[%s3555_s1 + $0x170] ss:$8 sps:$4 sm:$0xff]   ;;  %v2543_v32 = vld [vmem:[%s3555_s1 + $0x184] ss:$8 sps:$4 sm:$0xff]  }
  0x10   : > { %995 = vmatpush1.bf16.msra.mxu0 %v2796_v11  ;;  %603 = vmatprep.subr.bf16.mxu1 %v2513_v12  ;;  %v2887_v31 = vld [vmem:[%s3555_s1 + $0x70] ss:$8 sps:$4 sm:$0xff]   ;;  %v2898_v33 = vld [vmem:[%s3555_s1 + $0x84] ss:$8 sps:$4 sm:$0xff]   ;;  %v2547_v34 = vld [vmem:[%s3555_s1 + $0x180] ss:$8 sps:$4 sm:$0xff]  }
  0x11   : > { %996 = vmatprep.subr.bf16.mxu0 %v2806_v13  ;;  %v2906_v35 = vld [vmem:[%s3555_s1 + $0x80] ss:$8 sps:$4 sm:$0xff]   ;;  %v2549_v36 = vld [vmem:[%s3555_s1 + $0x194] ss:$8 sps:$4 sm:$0xff]   ;;  %s3559_s13 = smov (!%p161_p3, %s2083_s13), 1 }
  0x12   : > { %v2920_v37 = vld [vmem:[%s3555_s1 + $0x94] ss:$8 sps:$4 sm:$0xff]   ;;  %v2553_v38 = vld [vmem:[%s3555_s1 + $0x190] ss:$8 sps:$4 sm:$0xff]   ;;  %v2555_v40 = vld [vmem:[%s3555_s1 + $0x1a4] ss:$8 sps:$4 sm:$0xff]  }
  0x13   : > { %604 = vmatpush1.bf16.msra.mxu1 %v2517_v14  ;;  %v2929_v39 = vld [vmem:[%s3555_s1 + $0x90] ss:$8 sps:$4 sm:$0xff]   ;;  %s2486_s21 = smul.u32 384, %s3559_s13  ;;  %v2939_v41 = vld [vmem:[%s3555_s1 + $0xa4] ss:$8 sps:$4 sm:$0xff]   ;;  %s2325_s15 = sshll.u32 %s3559_s13, 9 }
  0x14   : > { %997 = vmatpush1.bf16.msra.mxu0 %v2815_v15  ;;  %605 = vmatprep.subr.bf16.mxu1 %v2519_v16  ;;  %v2559_v42 = vld [vmem:[%s3555_s1 + $0x1a0] ss:$8 sps:$4 sm:$0xff]   ;;  %v2561_v44 = vld [vmem:[%s3555_s1 + $0x1b4] ss:$8 sps:$4 sm:$0xff]   ;;  %v2565_v46 = vld [vmem:[%s3555_s1 + $0x1b0] ss:$8 sps:$4 sm:$0xff]   ;;  %s3397_s18 = scalar_lea.vmem %s3557_s3, %s2325_s15 }
  0x15   : > { %998 = vmatprep.subr.bf16.mxu0 %v2824_v17  ;;  %v2947_v43 = vld [vmem:[%s3555_s1 + $0xa0] ss:$8 sps:$4 sm:$0xff]   ;;  %s2956_s5 = scalar_lea.vmem %s3554_s0, %s2486_s21  ;;  %v2962_v45 = vld [vmem:[%s3555_s1 + $0xb4] ss:$8 sps:$4 sm:$0xff]   ;;  %v2970_v47 = vld [vmem:[%s3555_s1 + $0xb0] ss:$8 sps:$4 sm:$0xff]  }
  0x16   : > { %v2567_v48 = vld [vmem:[%s3555_s1 + $0x1c4] ss:$8 sps:$4 sm:$0xff]   ;;  %v2571_v52 = vld [vmem:[%s3555_s1 + $0x1c0] ss:$8 sps:$4 sm:$0xff]   ;;  %v2573_v54 = vld [vmem:[%s3555_s1 + $0x1d4] ss:$8 sps:$4 sm:$0xff]  }
  0x17   : > { %606 = vmatpush1.bf16.msra.mxu1 %v2523_v18  ;;  %v2976_v49 = vld [vmem:[%s2956_s5 + $0x44] ss:$8 sps:$4 sm:$0xff]   ;;  %v2993_v53 = vld [vmem:[%s3555_s1 + $0xc0] ss:$8 sps:$4 sm:$0xff]   ;;  %v3003_v55 = vld [vmem:[%s3555_s1 + $0xd4] ss:$8 sps:$4 sm:$0xff]  }
  0x18   : > { %999 = vmatpush1.bf16.msra.mxu0 %v2832_v19  ;;  %607 = vmatprep.subr.bf16.mxu1 %v2525_v20  ;;  %v2982_v50 = vld [vmem:[%s3555_s1 + $0xc4] ss:$8 sps:$4 sm:$0xff]   ;;  %v2577_v56 = vld [vmem:[%s3555_s1 + $0x1d0] ss:$8 sps:$4 sm:$0xff]   ;;  %v2583_v60 = vld [vmem:[%s3555_s1 + $0x1e0] ss:$8 sps:$4 sm:$0xff]  }
  0x19   : > { %1000 = vmatprep.subr.bf16.mxu0 %v2842_v21  ;;  %v2596_v51 = vld [vmem:[%s2956_s5 + $0x4] ss:$8 sps:$4 sm:$0xff]   ;;  %629 = vmatprep.mubr.bf16.mxu1 %v2976_v49  ;;  %v3011_v57 = vld [vmem:[%s3555_s1 + $0xd0] ss:$8 sps:$4 sm:$0xff]   ;;  %v3029_v61 = vld [vmem:[%s3555_s1 + $0xe0] ss:$8 sps:$4 sm:$0xff]  }
  0x1a   : > { %1022 = vmatprep.mubr.bf16.mxu0 %v2596_v51  ;;  %v2579_v58 = vld [vmem:[%s3555_s1 + $0x1e4] ss:$8 sps:$4 sm:$0xff]   ;;  %v2585_v62 = vld [vmem:[%s3555_s1 + $0x1f4] ss:$8 sps:$4 sm:$0xff]   ;;  %v2589_v0 = vld [vmem:[%s3555_s1 + $0x1f0] ss:$8 sps:$4 sm:$0xff]  }
  0x1b   : > { %608 = vmatpush1.bf16.msra.mxu1 %v2529_v22  ;;  %v3021_v59 = vld [vmem:[%s3555_s1 + $0xe4] ss:$8 sps:$4 sm:$0xff]   ;;  %v3039_v63 = vld [vmem:[%s3555_s1 + $0xf4] ss:$8 sps:$4 sm:$0xff]   ;;  %v3048_v2 = vld [vmem:[%s3555_s1 + $0xf0] ss:$8 sps:$4 sm:$0xff]  }
  0x1c   : > { %1001 = vmatpush1.bf16.msra.mxu0 %v2851_v23  ;;  %609 = vmatprep.subr.bf16.mxu1 %v2531_v24  ;;  %v2599_v4 = vld [vmem:[%s3555_s1 + $0x204] ss:$8 sps:$4 sm:$0xff]   ;;  %v3055_v6 = vld [vmem:[%s2956_s5 + $0x40] ss:$8 sps:$4 sm:$0xff]   ;;  %v2602_v12 = vld [vmem:[%s3555_s1 + $0x214] ss:$8 sps:$4 sm:$0xff]  }
  0x1d   : > { %1002 = vmatprep.subr.bf16.mxu0 %v2860_v25  ;;  %v2594_v8 = vld [vmem:[%s2956_s5] ss:$8 sps:$4 sm:$0xff]   ;;  %v3067_v14 = vld [vmem:[%s2956_s5 + $0x54] ss:$8 sps:$4 sm:$0xff]   ;;  %v2600_v18 = vld [vmem:[%s3555_s1 + $0x210] ss:$8 sps:$4 sm:$0xff]  }
  0x1e   : > { %v2597_v10 = vld [vmem:[%s3555_s1 + $0x200] ss:$8 sps:$4 sm:$0xff]   ;;  %v2605_v16 = vld [vmem:[%s2956_s5 + $0x14] ss:$8 sps:$4 sm:$0xff]   ;;  %v3080_v20 = vld [vmem:[%s2956_s5 + $0x50] ss:$8 sps:$4 sm:$0xff]  }
  0x1f   : > { %610 = vmatpush1.bf16.msra.mxu1 %v2535_v26  ;;  %v2608_v22 = vld [vmem:[%s2956_s5 + $0x10] ss:$8 sps:$4 sm:$0xff]   ;;  %v2614_v24 = vld [vmem:[%s3555_s1 + $0x234] ss:$8 sps:$4 sm:$0xff]   ;;  %v3092_v26 = vld [vmem:[%s2956_s5 + $0x64] ss:$8 sps:$4 sm:$0xff]  }
  0x20   : > { %1003 = vmatpush1.bf16.msra.mxu0 %v2868_v27  ;;  %611 = vmatprep.subr.bf16.mxu1 %v2537_v28  ;;  %v2617_v28 = vld [vmem:[%s2956_s5 + $0x24] ss:$8 sps:$4 sm:$0xff]   ;;  %v3163_v51 = vld [vmem:[%s2956_s5 + $0x94] ss:$8 sps:$4 sm:$0xff]  }
  0x21   : > { %1004 = vmatprep.subr.bf16.mxu0 %v2878_v29 }
  0x23   : > { %612 = vmatpush1.bf16.msra.mxu1 %v2541_v30  ;;  %v3105_v30 = vld [vmem:[%s2956_s5 + $0x60] ss:$8 sps:$4 sm:$0xff]  }
  0x24   : > { %1005 = vmatpush1.bf16.msra.mxu0 %v2887_v31  ;;  %613 = vmatprep.subr.bf16.mxu1 %v2543_v32  ;;  %v2621_v32 = vld [vmem:[%s3555_s1 + $0x240] ss:$8 sps:$4 sm:$0xff]  }
  0x25   : > { %1006 = vmatprep.subr.bf16.mxu0 %v2898_v33 }
  0x27   : > { %614 = vmatpush1.bf16.msra.mxu1 %v2547_v34  ;;  %v2626_v34 = vld [vmem:[%s3555_s1 + $0x254] ss:$8 sps:$4 sm:$0xff]  }
  0x28   : > { %1007 = vmatpush1.bf16.msra.mxu0 %v2906_v35  ;;  %615 = vmatprep.subr.bf16.mxu1 %v2549_v36  ;;  %v3117_v36 = vld [vmem:[%s2956_s5 + $0x74] ss:$8 sps:$4 sm:$0xff]  }
  0x29   : > { %1008 = vmatprep.subr.bf16.mxu0 %v2920_v37 }
  0x2b   : > { %616 = vmatpush1.bf16.msra.mxu1 %v2553_v38  ;;  %v2629_v38 = vld [vmem:[%s2956_s5 + $0x34] ss:$8 sps:$4 sm:$0xff]  }
  0x2c   : > { %1009 = vmatpush1.bf16.msra.mxu0 %v2929_v39  ;;  %617 = vmatprep.subr.bf16.mxu1 %v2555_v40  ;;  %v3130_v40 = vld [vmem:[%s2956_s5 + $0x70] ss:$8 sps:$4 sm:$0xff]  }
  0x2d   : > { %1010 = vmatprep.subr.bf16.mxu0 %v2939_v41 }
  0x2f   : > { %618 = vmatpush1.bf16.msra.mxu1 %v2559_v42  ;;  %v2633_v42 = vld [vmem:[%s3555_s1 + $0x260] ss:$8 sps:$4 sm:$0xff]  }
  0x30   : > { %1011 = vmatpush1.bf16.msra.mxu0 %v2947_v43  ;;  %619 = vmatprep.subr.bf16.mxu1 %v2561_v44  ;;  %v3139_v44 = vld [vmem:[%s2956_s5 + $0x84] ss:$8 sps:$4 sm:$0xff]  }
  0x31   : > { %1012 = vmatprep.subr.bf16.mxu0 %v2962_v45 }
  0x33   : > { %620 = vmatpush1.bf16.msra.mxu1 %v2565_v46  ;;  %v2638_v46 = vld [vmem:[%s3555_s1 + $0x274] ss:$8 sps:$4 sm:$0xff]  }
  0x34   : > { %1013 = vmatpush1.bf16.msra.mxu0 %v2970_v47  ;;  %621 = vmatprep.subr.bf16.mxu1 %v2567_v48  ;;  %v2642_v48 = vld [vmem:[%s3555_s1 + $0x280] ss:$8 sps:$4 sm:$0xff]  }
  0x35   : > { %1014 = vmatprep.subr.bf16.mxu0 %v2982_v50 }
  0x37   : > { %622 = vmatpush1.bf16.msra.mxu1 %v2571_v52  ;;  %v2651_v52 = vld [vmem:[%s3555_s1 + $0x2a0] ss:$8 sps:$4 sm:$0xff]  }
  0x38   : > { %1015 = vmatpush1.bf16.msra.mxu0 %v2993_v53  ;;  %623 = vmatprep.subr.bf16.mxu1 %v2573_v54  ;;  %v3188_v54 = vld [vmem:[%s2956_s5 + $0xa4] ss:$8 sps:$4 sm:$0xff]  }
  0x39   : > { %1016 = vmatprep.subr.bf16.mxu0 %v3003_v55 }
  0x3b   : > { %624 = vmatpush1.bf16.msra.mxu1 %v2577_v56  ;;  %v3206_v56 = vld [vmem:[%s2956_s5 + $0xa0] ss:$8 sps:$4 sm:$0xff]  }
  0x3c   : > { %1017 = vmatpush1.bf16.msra.mxu0 %v3011_v57  ;;  %625 = vmatprep.subr.bf16.mxu1 %v2579_v58  ;;  %v2660_v58 = vld [vmem:[%s3555_s1 + $0x2c0] ss:$8 sps:$4 sm:$0xff]  }
  0x3d   : > { %1018 = vmatprep.subr.bf16.mxu0 %v3021_v59 }
  0x3f   : > { %626 = vmatpush1.bf16.msra.mxu1 %v2583_v60  ;;  %v3213_v60 = vld [vmem:[%s2956_s5 + $0xb4] ss:$8 sps:$4 sm:$0xff]  }
  0x40   : > { %1019 = vmatpush1.bf16.msra.mxu0 %v3029_v61  ;;  %627 = vmatprep.subr.bf16.mxu1 %v2585_v62  ;;  %v2665_v62 = vld [vmem:[%s3555_s1 + $0x2d4] ss:$8 sps:$4 sm:$0xff]  }
  0x41   : > { %1020 = vmatprep.subr.bf16.mxu0 %v3039_v63 }
  0x43   : > { %628 = vmatpush1.bf16.msra.mxu1 %v2589_v0  ;;  %v2669_v0 = vld [vmem:[%s3555_s1 + $0x2e0] ss:$8 sps:$4 sm:$0xff]  }
  0x44   : > { %1021 = vmatpush1.bf16.msra.mxu0 %v3048_v2  ;;  %2326 = vmatprep.subr.bf16.mxu1 %v2753_v1  ;;  %v2611_v1 = vld [vmem:[%s3555_s1 + $0x224] ss:$8 sps:$4 sm:$0xff]  }
  0x45   : > { %1568 = vmatprep.subr.bf16.mxu0 %v2599_v4  ;;  %v3238_v4 = vld [vmem:[%s2956_s5 + $0xc4] ss:$8 sps:$4 sm:$0xff]  }
  0x46   : > { %630 = vmatmul.mubr.bf16.vlgmr.msra.gmra.mrb[0].mxu1 %v3055_v6 }
  0x47   : > { %1023 = vmatmul.mubr.bf16.vlgmr.msra.gmra.mrb[0].mxu0 %v2594_v8  ;;  %2342 = vmatpush1.bf16.msra.mxu1 %v2761_v3  ;;  %v2609_v3 = vld [vmem:[%s3555_s1 + $0x220] ss:$8 sps:$4 sm:$0xff]   ;;  %v2693_v8 = vld [vmem:[%s2956_s5 + $0x124] ss:$8 sps:$4 sm:$0xff]  }
  0x48   : > { %1569 = vmatpush1.bf16.msra.mxu0 %v2597_v10  ;;  %639 = vmatprep.mubr.bf16.mxu1 %v3067_v14  ;;  %v2695_v10 = vld [vmem:[%s2956_s5 + $0x120] ss:$8 sps:$4 sm:$0xff]  }
  0x49   : > { %1570 = vmatprep.subr.bf16.mxu0 %v2602_v12  ;;  %1032 = vmatprep.mubr.bf16.mxu0 %v2605_v16  ;;  %v2696_v12 = vld [vmem:[%s2956_s5 + $0x134] ss:$8 sps:$4 sm:$0xff]   ;;  %v2699_v16 = vld [vmem:[%s2956_s5 + $0x144] ss:$8 sps:$4 sm:$0xff]  }
  0x4a   : > { %2327 = vmatprep.subr.bf16.mxu1 %v2771_v5  ;;  %v2612_v5 = vld [vmem:[%s3555_s1 + $0x230] ss:$8 sps:$4 sm:$0xff]  }
  0x4b   : > { %2343 = vmatpush1.bf16.msra.mxu1 %v2779_v7  ;;  %v2623_v7 = vld [vmem:[%s3555_s1 + $0x244] ss:$8 sps:$4 sm:$0xff]  }
  0x4c   : > { %1571 = vmatpush1.bf16.msra.mxu0 %v2600_v18  ;;  %2328 = vmatprep.subr.bf16.mxu1 %v2788_v9  ;;  %v2620_v9 = vld [vmem:[%s2956_s5 + $0x20] ss:$8 sps:$4 sm:$0xff]  }
  0x4d   : > { %1572 = vmatprep.subr.bf16.mxu0 %v2611_v1  ;;  %v2701_v18 = vld [vmem:[%s2956_s5 + $0x140] ss:$8 sps:$4 sm:$0xff]   ;;  %v2702_v1 = vld [vmem:[%s2956_s5 + $0x154] ss:$8 sps:$4 sm:$0xff]  }
  0x4e   : > { %640 = vmatmul.mubr.bf16.gmra.mrb[4].mxu1 %v3080_v20 }
  0x4f   : > { %1033 = vmatmul.mubr.bf16.gmra.mrb[4].mxu0 %v2608_v22  ;;  %649 = vmatprep.mubr.bf16.mxu1 %v3092_v26  ;;  %v2705_v22 = vld [vmem:[%s2956_s5 + $0x164] ss:$8 sps:$4 sm:$0xff]  }
  0x50   : > { %1573 = vmatpush1.bf16.msra.mxu0 %v2609_v3  ;;  %1042 = vmatprep.mubr.bf16.mxu0 %v2617_v28  ;;  %v2707_v3 = vld [vmem:[%s2956_s5 + $0x160] ss:$8 sps:$4 sm:$0xff]  }
  0x51   : > { %1574 = vmatprep.subr.bf16.mxu0 %v2614_v24  ;;  %2344 = vmatpush1.bf16.msra.mxu1 %v2796_v11  ;;  %v2624_v11 = vld [vmem:[%s3555_s1 + $0x250] ss:$8 sps:$4 sm:$0xff]   ;;  %v2708_v24 = vld [vmem:[%s2956_s5 + $0x174] ss:$8 sps:$4 sm:$0xff]  }
  0x52   : > { %2329 = vmatprep.subr.bf16.mxu1 %v2806_v13  ;;  %v2635_v13 = vld [vmem:[%s3555_s1 + $0x264] ss:$8 sps:$4 sm:$0xff]  }
  0x54   : > { %1575 = vmatpush1.bf16.msra.mxu0 %v2612_v5 }
  0x55   : > { %1576 = vmatprep.subr.bf16.mxu0 %v2623_v7  ;;  %2345 = vmatpush1.bf16.msra.mxu1 %v2815_v15  ;;  %v2632_v15 = vld [vmem:[%s2956_s5 + $0x30] ss:$8 sps:$4 sm:$0xff]  }
  0x56   : > { %650 = vmatmul.mubr.bf16.gmra.mrb[8].mxu1 %v3105_v30  ;;  %2330 = vmatprep.subr.bf16.mxu1 %v2824_v17  ;;  %v2636_v17 = vld [vmem:[%s3555_s1 + $0x270] ss:$8 sps:$4 sm:$0xff]  }
  0x57   : > { %1043 = vmatmul.mubr.bf16.gmra.mrb[8].mxu0 %v2620_v9  ;;  %659 = vmatprep.mubr.bf16.mxu1 %v3117_v36 }
  0x58   : > { %1577 = vmatpush1.bf16.msra.mxu0 %v2621_v32  ;;  %1052 = vmatprep.mubr.bf16.mxu0 %v2629_v38 }
  0x59   : > { %1578 = vmatprep.subr.bf16.mxu0 %v2626_v34  ;;  %2346 = vmatpush1.bf16.msra.mxu1 %v2832_v19  ;;  %v2644_v19 = vld [vmem:[%s3555_s1 + $0x284] ss:$8 sps:$4 sm:$0xff]  }
  0x5a   : > { %2331 = vmatprep.subr.bf16.mxu1 %v2842_v21  ;;  %v3156_v21 = vld [vmem:[%s2956_s5 + $0x80] ss:$8 sps:$4 sm:$0xff]  }
  0x5c   : > { %1579 = vmatpush1.bf16.msra.mxu0 %v2624_v11 }
  0x5d   : > { %1580 = vmatprep.subr.bf16.mxu0 %v2635_v13  ;;  %2347 = vmatpush1.bf16.msra.mxu1 %v2851_v23  ;;  %v2645_v23 = vld [vmem:[%s3555_s1 + $0x290] ss:$8 sps:$4 sm:$0xff]  }
  0x5e   : > { %660 = vmatmul.mubr.bf16.gmra.mrb[12].mxu1 %v3130_v40  ;;  %2332 = vmatprep.subr.bf16.mxu1 %v2860_v25  ;;  %v2653_v25 = vld [vmem:[%s3555_s1 + $0x2a4] ss:$8 sps:$4 sm:$0xff]  }
  0x5f   : > { %1053 = vmatmul.mubr.bf16.gmra.mrb[12].mxu0 %v2632_v15  ;;  %669 = vmatprep.mubr.bf16.mxu1 %v3139_v44 }
  0x60   : > { %1581 = vmatpush1.bf16.msra.mxu0 %v2633_v42  ;;  %1062 = vmatprep.mubr.bf16.mxu0 %v2976_v49  ;;  %v2647_v49 = vld [vmem:[%s3555_s1 + $0x294] ss:$8 sps:$4 sm:$0xff]  }
  0x61   : > { %1582 = vmatprep.subr.bf16.mxu0 %v2638_v46  ;;  %2348 = vmatpush1.bf16.msra.mxu1 %v2868_v27  ;;  %v3181_v27 = vld [vmem:[%s2956_s5 + $0x90] ss:$8 sps:$4 sm:$0xff]  }
  0x62   : > { %2333 = vmatprep.subr.bf16.mxu1 %v2878_v29  ;;  %v2656_v29 = vld [vmem:[%s3555_s1 + $0x2b4] ss:$8 sps:$4 sm:$0xff]  }
  0x64   : > { %1583 = vmatpush1.bf16.msra.mxu0 %v2636_v17 }
  0x65   : > { %1584 = vmatprep.subr.bf16.mxu0 %v2644_v19  ;;  %2349 = vmatpush1.bf16.msra.mxu1 %v2887_v31  ;;  %v2654_v31 = vld [vmem:[%s3555_s1 + $0x2b0] ss:$8 sps:$4 sm:$0xff]  }
  0x66   : > { %670 = vmatmul.mubr.bf16.gmra.mrb[16].mxu1 %v3156_v21  ;;  %2334 = vmatprep.subr.bf16.mxu1 %v2898_v33  ;;  %v2662_v33 = vld [vmem:[%s3555_s1 + $0x2c4] ss:$8 sps:$4 sm:$0xff]  }
  0x67   : > { %1063 = vmatmul.mubr.bf16.gmra.mrb[16].mxu0 %v3055_v6  ;;  %679 = vmatprep.mubr.bf16.mxu1 %v3163_v51  ;;  %v3257_v6 = vld [vmem:[%s2956_s5 + $0xd4] ss:$8 sps:$4 sm:$0xff]  }
  0x68   : > { %1585 = vmatpush1.bf16.msra.mxu0 %v2642_v48  ;;  %1072 = vmatprep.mubr.bf16.mxu0 %v3067_v14  ;;  %v2698_v14 = vld [vmem:[%s2956_s5 + $0x130] ss:$8 sps:$4 sm:$0xff]  }
  0x69   : > { %1586 = vmatprep.subr.bf16.mxu0 %v2647_v49  ;;  %2350 = vmatpush1.bf16.msra.mxu1 %v2906_v35  ;;  %v2663_v35 = vld [vmem:[%s3555_s1 + $0x2d0] ss:$8 sps:$4 sm:$0xff]  }
  0x6a   : > { %2335 = vmatprep.subr.bf16.mxu1 %v2920_v37  ;;  %v2671_v37 = vld [vmem:[%s3555_s1 + $0x2e4] ss:$8 sps:$4 sm:$0xff]  }
  0x6c   : > { %1587 = vmatpush1.bf16.msra.mxu0 %v2645_v23 }
  0x6d   : > { %1588 = vmatprep.subr.bf16.mxu0 %v2653_v25  ;;  %2351 = vmatpush1.bf16.msra.mxu1 %v2929_v39  ;;  %v3231_v39 = vld [vmem:[%s2956_s5 + $0xb0] ss:$8 sps:$4 sm:$0xff]  }
  0x6e   : > { %680 = vmatmul.mubr.bf16.gmra.mrb[20].mxu1 %v3181_v27  ;;  %2336 = vmatprep.subr.bf16.mxu1 %v2939_v41  ;;  %v2674_v41 = vld [vmem:[%s3555_s1 + $0x2f4] ss:$8 sps:$4 sm:$0xff]  }
  0x6f   : > { %1073 = vmatmul.mubr.bf16.gmra.mrb[20].mxu0 %v3080_v20  ;;  %689 = vmatprep.mubr.bf16.mxu1 %v3188_v54  ;;  %v2704_v20 = vld [vmem:[%s2956_s5 + $0x150] ss:$8 sps:$4 sm:$0xff]  }
  0x70   : > { %1589 = vmatpush1.bf16.msra.mxu0 %v2651_v52  ;;  %1082 = vmatprep.mubr.bf16.mxu0 %v3092_v26  ;;  %v2710_v26 = vld [vmem:[%s2956_s5 + $0x170] ss:$8 sps:$4 sm:$0xff]  }
  0x71   : > { %1590 = vmatprep.subr.bf16.mxu0 %v2656_v29  ;;  %2352 = vmatpush1.bf16.msra.mxu1 %v2947_v43  ;;  %v2672_v43 = vld [vmem:[%s3555_s1 + $0x2f0] ss:$8 sps:$4 sm:$0xff]  }
  0x72   : > { %2337 = vmatprep.subr.bf16.mxu1 %v2962_v45  ;;  %v3253_v45 = vld [vmem:[%s2956_s5 + $0xc0] ss:$8 sps:$4 sm:$0xff]  }
  0x74   : > { %1591 = vmatpush1.bf16.msra.mxu0 %v2654_v31  ;;  %v1826_v31 = vlaneseq }
  0x75   : > { %1592 = vmatprep.subr.bf16.mxu0 %v2662_v33  ;;  %2353 = vmatpush1.bf16.msra.mxu1 %v2970_v47  ;;  %v3267_v47 = vld [vmem:[%s2956_s5 + $0xd0] ss:$8 sps:$4 sm:$0xff]  }
  0x76   : > { %690 = vmatmul.mubr.bf16.gmra.mrb[24].mxu1 %v3206_v56  ;;  %2338 = vmatprep.subr.bf16.mxu1 %v2982_v50  ;;  %v3271_v50 = vld [vmem:[%s2956_s5 + $0xe4] ss:$8 sps:$4 sm:$0xff]   ;;  %v1827_v33 = vshrl.u32 %v1826_v31, 7 }
  0x77   : > { %1083 = vmatmul.mubr.bf16.gmra.mrb[24].mxu0 %v3105_v30  ;;  %699 = vmatprep.mubr.bf16.mxu1 %v3213_v60 }
  0x78   : > { %1593 = vmatpush1.bf16.msra.mxu0 %v2660_v58  ;;  %1092 = vmatprep.mubr.bf16.mxu0 %v3117_v36 }
  0x79   : > { %1594 = vmatprep.subr.bf16.mxu0 %v2665_v62  ;;  %2354 = vmatpush1.bf16.msra.mxu1 %v2993_v53  ;;  %v3281_v53 = vld [vmem:[%s2956_s5 + $0xe0] ss:$8 sps:$4 sm:$0xff]  }
  0x7a   : > { %2339 = vmatprep.subr.bf16.mxu1 %v3003_v55  ;;  %v3284_v55 = vld [vmem:[%s2956_s5 + $0xf4] ss:$8 sps:$4 sm:$0xff]  }
  0x7c   : > { %1595 = vmatpush1.bf16.msra.mxu0 %v2663_v35  ;;  %v1828_v35 = vsub.s32 0, %v1827_v33 }
  0x7d   : > { %1596 = vmatprep.subr.bf16.mxu0 %v2671_v37  ;;  %2355 = vmatpush1.bf16.msra.mxu1 %v3011_v57  ;;  %v3291_v57 = vld [vmem:[%s2956_s5 + $0xf0] ss:$8 sps:$4 sm:$0xff]   ;;  %v171_v37 = vld [vmem:[%s3556_s2] sm:$0x3] }
  0x7e   : > { %700 = vmatmul.mubr.bf16.gmra.mrb[28].mxu1 %v3231_v39  ;;  %2340 = vmatprep.subr.bf16.mxu1 %v3021_v59  ;;  %v2687_v59 = vld [vmem:[%s2956_s5 + $0x104] ss:$8 sps:$4 sm:$0xff]  }
  0x7f   : > { %1093 = vmatmul.mubr.bf16.gmra.mrb[28].mxu0 %v3130_v40  ;;  %709 = vmatprep.mubr.bf16.mxu1 %v3238_v4 }
  0x80   : > { %1597 = vmatpush1.bf16.msra.mxu0 %v2669_v0  ;;  %1600 = vmatprep.mubr.bf16.mxu0 %v3139_v44  ;;  %v3388_v0 = vrot.slane %v171_v37, %v1828_v35 }
  0x81   : > { %1598 = vmatprep.subr.bf16.mxu0 %v2674_v41  ;;  %2356 = vmatpush1.bf16.msra.mxu1 %v3029_v61  ;;  %v2689_v61 = vld [vmem:[%s2956_s5 + $0x100] ss:$8 sps:$4 sm:$0xff]  }
  0x82   : > { %2341 = vmatprep.subr.bf16.mxu1 %v3039_v63  ;;  %v2690_v63 = vld [vmem:[%s2956_s5 + $0x114] ss:$8 sps:$4 sm:$0xff]  }
  0x84   : > { %1599 = vmatpush1.bf16.msra.mxu0 %v2672_v43 }
  0x85   : > { %2357 = vmatpush1.bf16.msra.mxu1 %v3048_v2  ;;  %v2692_v2 = vld [vmem:[%s2956_s5 + $0x110] ss:$8 sps:$4 sm:$0xff]  }
  0x86   : > { %710 = vmatmul.mubr.bf16.gmra.mrb[32].mxu1 %v3253_v45 }
  0x87   : > { %1601 = vmatmul.mubr.bf16.vlgmr.msra.gmra.mrb[0].mxu0 %v3156_v21  ;;  %719 = vmatprep.mubr.bf16.mxu1 %v3257_v6 }
  0x88   : > { %1610 = vmatprep.mubr.bf16.mxu0 %v3163_v51 }
  0x8e   : > { %720 = vmatmul.mubr.bf16.gmra.mrb[36].mxu1 %v3267_v47 }
  0x8f   : > { %1611 = vmatmul.mubr.bf16.gmra.mrb[4].mxu0 %v3181_v27  ;;  %729 = vmatprep.mubr.bf16.mxu1 %v3271_v50 }
  0x90   : > { %1620 = vmatprep.mubr.bf16.mxu0 %v3188_v54 }
  0x96   : > { %730 = vmatmul.mubr.bf16.gmra.mrb[40].mxu1 %v3281_v53 }
  0x97   : > { %1621 = vmatmul.mubr.bf16.gmra.mrb[8].mxu0 %v3206_v56  ;;  %739 = vmatprep.mubr.bf16.mxu1 %v3284_v55 }
  0x98   : > { %1630 = vmatprep.mubr.bf16.mxu0 %v3213_v60 }
  0x9e   : > { %740 = vmatmul.mubr.bf16.gmra.mrb[44].mxu1 %v3291_v57 }
  0x9f   : > { %1631 = vmatmul.mubr.bf16.gmra.mrb[12].mxu0 %v3231_v39  ;;  %749 = vmatprep.mubr.bf16.mxu1 %v2687_v59 }
  0xa0   : > { %1640 = vmatprep.mubr.bf16.mxu0 %v3238_v4 }
  0xa6   : > { %750 = vmatmul.mubr.bf16.gmra.mrb[48].mxu1 %v2689_v61 }
  0xa7   : > { %1641 = vmatmul.mubr.bf16.gmra.mrb[16].mxu0 %v3253_v45  ;;  %759 = vmatprep.mubr.bf16.mxu1 %v2690_v63 }
  0xa8   : > { %1650 = vmatprep.mubr.bf16.mxu0 %v3257_v6 }
  0xae   : > { %760 = vmatmul.mubr.bf16.gmra.mrb[52].mxu1 %v2692_v2 }
  0xaf   : > { %1651 = vmatmul.mubr.bf16.gmra.mrb[20].mxu0 %v3267_v47  ;;  %769 = vmatprep.mubr.bf16.mxu1 %v2693_v8 }
  0xb0   : > { %1660 = vmatprep.mubr.bf16.mxu0 %v3271_v50 }
  0xb6   : > { %770 = vmatmul.mubr.bf16.gmra.mrb[56].mxu1 %v2695_v10 }
  0xb7   : > { %1661 = vmatmul.mubr.bf16.gmra.mrb[24].mxu0 %v3281_v53  ;;  %779 = vmatprep.mubr.bf16.mxu1 %v2696_v12 }
  0xb8   : > { %1670 = vmatprep.mubr.bf16.mxu0 %v3284_v55 }
  0xbe   : > { %780 = vmatmul.mubr.bf16.gmra.mrb[60].mxu1 %v2698_v14 }
  0xbf   : > { %1671 = vmatmul.mubr.bf16.gmra.mrb[28].mxu0 %v3291_v57  ;;  %1102 = vmatprep.mubr.bf16.mxu1 %v3139_v44 }
  0xc0   : > { %1680 = vmatprep.mubr.bf16.mxu0 %v2687_v59 }
  0xc6   : > { %1103 = vmatmul.mubr.bf16.vlgmr.msra.gmra.mrb[32].mxu1 %v3156_v21 }
  0xc7   : > { %1681 = vmatmul.mubr.bf16.gmra.mrb[32].mxu0 %v2689_v61  ;;  %1112 = vmatprep.mubr.bf16.mxu1 %v3163_v51 }
  0xc8   : > { %1690 = vmatprep.mubr.bf16.mxu0 %v2690_v63 }
  0xce   : > { %1113 = vmatmul.mubr.bf16.gmra.mrb[36].mxu1 %v3181_v27 }
  0xcf   : > { %1691 = vmatmul.mubr.bf16.gmra.mrb[36].mxu0 %v2692_v2  ;;  %1122 = vmatprep.mubr.bf16.mxu1 %v3188_v54 }
  0xd0   : > { %1700 = vmatprep.mubr.bf16.mxu0 %v2693_v8 }
  0xd6   : > { %1123 = vmatmul.mubr.bf16.gmra.mrb[40].mxu1 %v3206_v56 }
  0xd7   : > { %1701 = vmatmul.mubr.bf16.gmra.mrb[40].mxu0 %v2695_v10  ;;  %1132 = vmatprep.mubr.bf16.mxu1 %v3213_v60 }
  0xd8   : > { %1710 = vmatprep.mubr.bf16.mxu0 %v2696_v12 }
  0xde   : > { %1133 = vmatmul.mubr.bf16.gmra.mrb[44].mxu1 %v3231_v39  ;;  %v1832_v39 = vsub.s32 1, %v1827_v33 }
  0xdf   : > { %1711 = vmatmul.mubr.bf16.gmra.mrb[44].mxu0 %v2698_v14  ;;  %1142 = vmatprep.mubr.bf16.mxu1 %v3238_v4 }
  0xe0   : > { %1720 = vmatprep.mubr.bf16.mxu0 %v2699_v16  ;;  %v3390_v41 = vrot.slane %v171_v37, %v1832_v39 }
  0xe6   : > { %1143 = vmatmul.mubr.bf16.gmra.mrb[48].mxu1 %v3253_v45 }
  0xe7   : > { %1721 = vmatmul.mubr.bf16.gmra.mrb[48].mxu0 %v2701_v18  ;;  %1152 = vmatprep.mubr.bf16.mxu1 %v3257_v6 }
  0xe8   : > { %1730 = vmatprep.mubr.bf16.mxu0 %v2702_v1 }
  0xee   : > { %1153 = vmatmul.mubr.bf16.gmra.mrb[52].mxu1 %v3267_v47 }
  0xef   : > { %1731 = vmatmul.mubr.bf16.gmra.mrb[52].mxu0 %v2704_v20  ;;  %1162 = vmatprep.mubr.bf16.mxu1 %v3271_v50 }
  0xf0   : > { %1740 = vmatprep.mubr.bf16.mxu0 %v2705_v22 }
  0xf6   : > { %1163 = vmatmul.mubr.bf16.gmra.mrb[56].mxu1 %v3281_v53 }
  0xf7   : > { %1741 = vmatmul.mubr.bf16.gmra.mrb[56].mxu0 %v2707_v3  ;;  %1172 = vmatprep.mubr.bf16.mxu1 %v3284_v55 }
  0xf8   : > { %1750 = vmatprep.mubr.bf16.mxu0 %v2708_v24 }
  0xfe   : > { %1173 = vmatmul.mubr.bf16.gmra.mrb[60].mxu1 %v3291_v57 }
  0xff   : > { %1751 = vmatmul.mubr.bf16.gmra.mrb[60].mxu0 %v2710_v26 }
 0x119   : > { %v631_v28 = vpop.f32.mrb[0].mxu1 }
 0x11a   : > { %v633_v5 = vpop.f32.mrb[1].mxu1 }
 0x11b   : > { %v635_v7 = vpop.f32.mrb[2].mxu1 }
 0x11c   : > { %v637_v30 = vpop.f32.mrb[3].mxu1 }
 0x121   : > { %v641_v9 = vpop.f32.mrb[4].mxu1 }
 0x122   : > { %v643_v32 = vpop.f32.mrb[5].mxu1 }
 0x123   : > { %v645_v34 = vpop.f32.mrb[6].mxu1 }
 0x124   : > { %v3335_v36 = vpop.f32.mrb[7].mxu1 }
 0x129   : > { %v3337_v38 = vpop.f32.mrb[8].mxu1 }
 0x12a   : > { %v3339_v11 = vpop.f32.mrb[9].mxu1 }
 0x12b   : > { %v3341_v13 = vpop.f32.mrb[10].mxu1 }
 0x12c   : > { %v3343_v40 = vpop.f32.mrb[11].mxu1 }
 0x131   : > { %v3345_v15 = vpop.f32.mrb[12].mxu1 }
 0x132   : > { %v3347_v42 = vpop.f32.mrb[13].mxu1 }
 0x133   : > { %v3349_v44 = vpop.f32.mrb[14].mxu1 }
 0x134   : > { %v3351_v46 = vpop.f32.mrb[15].mxu1 }
 0x139   : > { %v3353_v17 = vpop.f32.mrb[16].mxu1 }
 0x13a   : > { %v3355_v19 = vpop.f32.mrb[17].mxu1 }
 0x13b   : > { %v3357_v21 = vpop.f32.mrb[18].mxu1 }
 0x13c   : > { %v3359_v48 = vpop.f32.mrb[19].mxu1 }
 0x141   : > { %v3361_v51 = vpop.f32.mrb[20].mxu1 }
 0x142   : > { %v3363_v49 = vpop.f32.mrb[21].mxu1 }
 0x143   : > { %v3365_v23 = vpop.f32.mrb[22].mxu1 }
 0x144   : > { %v3367_v25 = vpop.f32.mrb[23].mxu1 }
 0x149   : > { %v3369_v27 = vpop.f32.mrb[24].mxu1 }
 0x14a   : > { %v3371_v52 = vpop.f32.mrb[25].mxu1 }
 0x14b   : > { %v3373_v54 = vpop.f32.mrb[26].mxu1 }
 0x14c   : > { %v3375_v29 = vpop.f32.mrb[27].mxu1 }
 0x151   : > { %v3377_v56 = vpop.f32.mrb[28].mxu1 }
 0x152   : > { %v3379_v58 = vpop.f32.mrb[29].mxu1 }
 0x153   : > { %v3381_v60 = vpop.f32.mrb[30].mxu1 }
 0x154   : > { %v3383_v62 = vpop.f32.mrb[31].mxu1 }
 0x15a   : > { %v1602_v4 = vpop.f32.mrb[0].mxu0 }
 0x15b   : > { %v2358_v43 = vadd.f32 %v1602_v4, %v631_v28  ;;  %v1604_v45 = vpop.f32.mrb[1].mxu0 }
 0x15c   : > { %v2359_v6 = vadd.f32 %v1604_v45, %v633_v5  ;;  %v1606_v47 = vpop.f32.mrb[2].mxu0 }
 0x15d   : > { %v1836_v50 = vadd.f32 %v2358_v43, %v3388_v0  ;;  %v2360_v53 = vadd.f32 %v1606_v47, %v635_v7  ;;  %v1608_v55 = vpop.f32.mrb[3].mxu0 }
 0x15e   : > { %v1837_v57 = vadd.f32 %v2359_v6, %v3390_v41  ;;  %v2361_v59 = vadd.f32 %v1608_v55, %v637_v30 }
 0x15f   : > { %v1900_v61 = vmax.f32 %v1836_v50, 0.0  ;;  %v1838_v63 = vadd.f32 %v2360_v53, %v3388_v0 }
 0x160   : > { %v1901_v2 = vmax.f32 %v1837_v57, 0.0  ;;  %v1839_v8 = vadd.f32 %v2361_v59, %v3390_v41 }
 0x161   : > { %1964 = vst [vmem:[%s3397_s18] sm:$0xff] %v1900_v61  ;;  %v1902_v10 = vmax.f32 %v1838_v63, 0.0 }
 0x162   : > { %1965 = vst [vmem:[%s3397_s18 + $0x8] sm:$0xff] %v1901_v2  ;;  %v1903_v12 = vmax.f32 %v1839_v8, 0.0  ;;  %v1612_v14 = vpop.f32.mrb[4].mxu0 }
 0x163   : > { %1966 = vst [vmem:[%s3397_s18 + $0x10] sm:$0xff] %v1902_v10  ;;  %v2362_v16 = vadd.f32 %v1612_v14, %v641_v9  ;;  %v1614_v18 = vpop.f32.mrb[5].mxu0 }
 0x164   : > { %1967 = vst [vmem:[%s3397_s18 + $0x18] sm:$0xff] %v1903_v12  ;;  %v2363_v1 = vadd.f32 %v1614_v18, %v643_v32  ;;  %v1616_v20 = vpop.f32.mrb[6].mxu0 }
 0x165   : > { %v1840_v22 = vadd.f32 %v2362_v16, %v3388_v0  ;;  %v2364_v3 = vadd.f32 %v1616_v20, %v645_v34  ;;  %v1618_v24 = vpop.f32.mrb[7].mxu0 }
 0x166   : > { %v1841_v26 = vadd.f32 %v2363_v1, %v3390_v41  ;;  %v2365_v28 = vadd.f32 %v1618_v24, %v3335_v36 }
 0x167   : > { %v1904_v5 = vmax.f32 %v1840_v22, 0.0  ;;  %v1842_v7 = vadd.f32 %v2364_v3, %v3388_v0 }
 0x168   : > { %v1905_v30 = vmax.f32 %v1841_v26, 0.0  ;;  %v1843_v9 = vadd.f32 %v2365_v28, %v3390_v41 }
 0x169   : > { %1968 = vst [vmem:[%s3397_s18 + $0x20] sm:$0xff] %v1904_v5  ;;  %v1906_v31 = vmax.f32 %v1842_v7, 0.0 }
 0x16a   : > { %1969 = vst [vmem:[%s3397_s18 + $0x28] sm:$0xff] %v1905_v30  ;;  %v1907_v32 = vmax.f32 %v1843_v9, 0.0  ;;  %v1622_v33 = vpop.f32.mrb[8].mxu0 }
 0x16b   : > { %1970 = vst [vmem:[%s3397_s18 + $0x30] sm:$0xff] %v1906_v31  ;;  %v2366_v34 = vadd.f32 %v1622_v33, %v3337_v38  ;;  %v1624_v35 = vpop.f32.mrb[9].mxu0 }
 0x16c   : > { %1971 = vst [vmem:[%s3397_s18 + $0x38] sm:$0xff] %v1907_v32  ;;  %v2367_v36 = vadd.f32 %v1624_v35, %v3339_v11  ;;  %v1626_v37 = vpop.f32.mrb[10].mxu0 }
 0x16d   : > { %v1844_v39 = vadd.f32 %v2366_v34, %v3388_v0  ;;  %v2368_v4 = vadd.f32 %v1626_v37, %v3341_v13  ;;  %v1628_v43 = vpop.f32.mrb[11].mxu0 }
 0x16e   : > { %v1845_v45 = vadd.f32 %v2367_v36, %v3390_v41  ;;  %v2369_v6 = vadd.f32 %v1628_v43, %v3343_v40 }
 0x16f   : > { %v1908_v47 = vmax.f32 %v1844_v39, 0.0  ;;  %v1846_v38 = vadd.f32 %v2368_v4, %v3388_v0 }
 0x170   : > { %v1909_v50 = vmax.f32 %v1845_v45, 0.0  ;;  %v1847_v53 = vadd.f32 %v2369_v6, %v3390_v41 }
 0x171   : > { %1972 = vst [vmem:[%s3397_s18 + $0x40] sm:$0xff] %v1908_v47  ;;  %v1910_v11 = vmax.f32 %v1846_v38, 0.0 }
 0x172   : > { %1973 = vst [vmem:[%s3397_s18 + $0x48] sm:$0xff] %v1909_v50  ;;  %v1911_v55 = vmax.f32 %v1847_v53, 0.0  ;;  %v1632_v57 = vpop.f32.mrb[12].mxu0 }
 0x173   : > { %1974 = vst [vmem:[%s3397_s18 + $0x50] sm:$0xff] %v1910_v11  ;;  %v2370_v13 = vadd.f32 %v1632_v57, %v3345_v15  ;;  %v1634_v59 = vpop.f32.mrb[13].mxu0 }
 0x174   : > { %1975 = vst [vmem:[%s3397_s18 + $0x58] sm:$0xff] %v1911_v55  ;;  %v2371_v40 = vadd.f32 %v1634_v59, %v3347_v42  ;;  %v1636_v61 = vpop.f32.mrb[14].mxu0 }
 0x175   : > { %v1848_v63 = vadd.f32 %v2370_v13, %v3388_v0  ;;  %v2372_v2 = vadd.f32 %v1636_v61, %v3349_v44  ;;  %v1638_v8 = vpop.f32.mrb[15].mxu0 }
 0x176   : > { %v1849_v10 = vadd.f32 %v2371_v40, %v3390_v41  ;;  %v2373_v12 = vadd.f32 %v1638_v8, %v3351_v46 }
 0x177   : > { %v1912_v14 = vmax.f32 %v1848_v63, 0.0  ;;  %v1850_v15 = vadd.f32 %v2372_v2, %v3388_v0 }
 0x178   : > { %v1913_v16 = vmax.f32 %v1849_v10, 0.0  ;;  %v1851_v18 = vadd.f32 %v2373_v12, %v3390_v41 }
 0x179   : > { %1976 = vst [vmem:[%s3397_s18 + $0x60] sm:$0xff] %v1912_v14  ;;  %v1914_v42 = vmax.f32 %v1850_v15, 0.0 }
 0x17a   : > { %1977 = vst [vmem:[%s3397_s18 + $0x68] sm:$0xff] %v1913_v16  ;;  %v1915_v1 = vmax.f32 %v1851_v18, 0.0  ;;  %v1642_v20 = vpop.f32.mrb[16].mxu0 }
 0x17b   : > { %1978 = vst [vmem:[%s3397_s18 + $0x70] sm:$0xff] %v1914_v42  ;;  %v2374_v44 = vadd.f32 %v1642_v20, %v3353_v17  ;;  %v1644_v22 = vpop.f32.mrb[17].mxu0 }
 0x17c   : > { %1979 = vst [vmem:[%s3397_s18 + $0x78] sm:$0xff] %v1915_v1  ;;  %v2375_v46 = vadd.f32 %v1644_v22, %v3355_v19  ;;  %v1646_v3 = vpop.f32.mrb[18].mxu0 }
 0x17d   : > { %v1852_v24 = vadd.f32 %v2374_v44, %v3388_v0  ;;  %v2376_v26 = vadd.f32 %v1646_v3, %v3357_v21  ;;  %v1648_v28 = vpop.f32.mrb[19].mxu0 }
 0x17e   : > { %v1853_v5 = vadd.f32 %v2375_v46, %v3390_v41  ;;  %v2377_v7 = vadd.f32 %v1648_v28, %v3359_v48 }
 0x17f   : > { %v1916_v30 = vmax.f32 %v1852_v24, 0.0  ;;  %v1854_v17 = vadd.f32 %v2376_v26, %v3388_v0 }
 0x180   : > { %v1917_v9 = vmax.f32 %v1853_v5, 0.0  ;;  %v1855_v31 = vadd.f32 %v2377_v7, %v3390_v41 }
 0x181   : > { %1980 = vst [vmem:[%s3397_s18 + $0x80] sm:$0xff] %v1916_v30  ;;  %v1918_v19 = vmax.f32 %v1854_v17, 0.0 }
 0x182   : > { %1981 = vst [vmem:[%s3397_s18 + $0x88] sm:$0xff] %v1917_v9  ;;  %v1919_v32 = vmax.f32 %v1855_v31, 0.0  ;;  %v1652_v33 = vpop.f32.mrb[20].mxu0 }
 0x183   : > { %1982 = vst [vmem:[%s3397_s18 + $0x90] sm:$0xff] %v1918_v19  ;;  %v2378_v21 = vadd.f32 %v1652_v33, %v3361_v51  ;;  %v1654_v34 = vpop.f32.mrb[21].mxu0 }
 0x184   : > { %1983 = vst [vmem:[%s3397_s18 + $0x98] sm:$0xff] %v1919_v32  ;;  %v2379_v48 = vadd.f32 %v1654_v34, %v3363_v49  ;;  %v1656_v35 = vpop.f32.mrb[22].mxu0 }
 0x185   : > { %v1856_v36 = vadd.f32 %v2378_v21, %v3388_v0  ;;  %v2380_v37 = vadd.f32 %v1656_v35, %v3365_v23  ;;  %v1658_v39 = vpop.f32.mrb[23].mxu0 }
 0x186   : > { %v1857_v4 = vadd.f32 %v2379_v48, %v3390_v41  ;;  %v2381_v43 = vadd.f32 %v1658_v39, %v3367_v25 }
 0x187   : > { %v1920_v45 = vmax.f32 %v1856_v36, 0.0  ;;  %v1858_v51 = vadd.f32 %v2380_v37, %v3388_v0 }
 0x188   : > { %v1921_v6 = vmax.f32 %v1857_v4, 0.0  ;;  %v1859_v47 = vadd.f32 %v2381_v43, %v3390_v41 }
 0x189   : > { %1984 = vst [vmem:[%s3397_s18 + $0xa0] sm:$0xff] %v1920_v45  ;;  %v1922_v49 = vmax.f32 %v1858_v51, 0.0 }
 0x18a   : > { %1985 = vst [vmem:[%s3397_s18 + $0xa8] sm:$0xff] %v1921_v6  ;;  %v1923_v38 = vmax.f32 %v1859_v47, 0.0  ;;  %v1662_v50 = vpop.f32.mrb[24].mxu0 }
 0x18b   : > { %1986 = vst [vmem:[%s3397_s18 + $0xb0] sm:$0xff] %v1922_v49  ;;  %v2382_v23 = vadd.f32 %v1662_v50, %v3369_v27  ;;  %v1664_v53 = vpop.f32.mrb[25].mxu0 }
 0x18c   : > { %1987 = vst [vmem:[%s3397_s18 + $0xb8] sm:$0xff] %v1923_v38  ;;  %v2383_v25 = vadd.f32 %v1664_v53, %v3371_v52  ;;  %v1666_v11 = vpop.f32.mrb[26].mxu0 }
 0x18d   : > { %v1860_v55 = vadd.f32 %v2382_v23, %v3388_v0  ;;  %v2384_v57 = vadd.f32 %v1666_v11, %v3373_v54  ;;  %v1668_v13 = vpop.f32.mrb[27].mxu0 }
 0x18e   : > { %v1861_v59 = vadd.f32 %v2383_v25, %v3390_v41  ;;  %v2385_v40 = vadd.f32 %v1668_v13, %v3375_v29 }
 0x18f   : > { %v1924_v61 = vmax.f32 %v1860_v55, 0.0  ;;  %v1862_v27 = vadd.f32 %v2384_v57, %v3388_v0 }
 0x190   : > { %v1925_v63 = vmax.f32 %v1861_v59, 0.0  ;;  %v1863_v2 = vadd.f32 %v2385_v40, %v3390_v41 }
 0x191   : > { %1988 = vst [vmem:[%s3397_s18 + $0xc0] sm:$0xff] %v1924_v61  ;;  %v1926_v52 = vmax.f32 %v1862_v27, 0.0 }
 0x192   : > { %1989 = vst [vmem:[%s3397_s18 + $0xc8] sm:$0xff] %v1925_v63  ;;  %v1927_v8 = vmax.f32 %v1863_v2, 0.0  ;;  %v1672_v10 = vpop.f32.mrb[28].mxu0 }
 0x193   : > { %1990 = vst [vmem:[%s3397_s18 + $0xd0] sm:$0xff] %v1926_v52  ;;  %v2386_v54 = vadd.f32 %v1672_v10, %v3377_v56  ;;  %v1674_v12 = vpop.f32.mrb[29].mxu0 }
 0x194   : > { %1991 = vst [vmem:[%s3397_s18 + $0xd8] sm:$0xff] %v1927_v8  ;;  %v2387_v29 = vadd.f32 %v1674_v12, %v3379_v58  ;;  %v1676_v14 = vpop.f32.mrb[30].mxu0 }
 0x195   : > { %v1864_v15 = vadd.f32 %v2386_v54, %v3388_v0  ;;  %v2388_v16 = vadd.f32 %v1676_v14, %v3381_v60  ;;  %v1678_v18 = vpop.f32.mrb[31].mxu0 }
 0x196   : > { %v1865_v42 = vadd.f32 %v2387_v29, %v3390_v41  ;;  %v2389_v1 = vadd.f32 %v1678_v18, %v3383_v62 }
 0x197   : > { %v1928_v20 = vmax.f32 %v1864_v15, 0.0  ;;  %v1866_v56 = vadd.f32 %v2388_v16, %v3388_v0 }
 0x198   : > { %v1929_v44 = vmax.f32 %v1865_v42, 0.0  ;;  %v1867_v22 = vadd.f32 %v2389_v1, %v3390_v41 }
 0x199   : > { %1992 = vst [vmem:[%s3397_s18 + $0xe0] sm:$0xff] %v1928_v20  ;;  %v1930_v58 = vmax.f32 %v1866_v56, 0.0  ;;  %v1104_v3 = vpop.f32.mrb[32].mxu1 }
 0x19a   : > { %1993 = vst [vmem:[%s3397_s18 + $0xe8] sm:$0xff] %v1929_v44  ;;  %v1931_v46 = vmax.f32 %v1867_v22, 0.0  ;;  %v1682_v24 = vpop.f32.mrb[32].mxu0  ;;  %v1106_v26 = vpop.f32.mrb[33].mxu1 }
 0x19b   : > { %1994 = vst [vmem:[%s3397_s18 + $0xf0] sm:$0xff] %v1930_v58  ;;  %v2390_v60 = vadd.f32 %v1682_v24, %v1104_v3  ;;  %v1684_v28 = vpop.f32.mrb[33].mxu0  ;;  %v1108_v5 = vpop.f32.mrb[34].mxu1 }
 0x19c   : > { %1995 = vst [vmem:[%s3397_s18 + $0xf8] sm:$0xff] %v1931_v46  ;;  %v2391_v62 = vadd.f32 %v1684_v28, %v1106_v26  ;;  %v1686_v7 = vpop.f32.mrb[34].mxu0  ;;  %v1110_v9 = vpop.f32.mrb[35].mxu1 }
 0x19d   : > { %v1868_v30 = vadd.f32 %v2390_v60, %v3388_v0  ;;  %v2392_v17 = vadd.f32 %v1686_v7, %v1108_v5  ;;  %v1688_v31 = vpop.f32.mrb[35].mxu0 }
 0x19e   : > { %v1869_v19 = vadd.f32 %v2391_v62, %v3390_v41  ;;  %v2393_v32 = vadd.f32 %v1688_v31, %v1110_v9 }
 0x19f   : > { %v1932_v33 = vmax.f32 %v1868_v30, 0.0  ;;  %v1870_v21 = vadd.f32 %v2392_v17, %v3388_v0 }
 0x1a0   : > { %v1933_v34 = vmax.f32 %v1869_v19, 0.0  ;;  %v1871_v48 = vadd.f32 %v2393_v32, %v3390_v41 }
 0x1a1   : > { %1996 = vst [vmem:[%s3397_s18 + $0x100] sm:$0xff] %v1932_v33  ;;  %v1934_v35 = vmax.f32 %v1870_v21, 0.0  ;;  %v1114_v37 = vpop.f32.mrb[36].mxu1 }
 0x1a2   : > { %1997 = vst [vmem:[%s3397_s18 + $0x108] sm:$0xff] %v1933_v34  ;;  %v1935_v36 = vmax.f32 %v1871_v48, 0.0  ;;  %v1692_v39 = vpop.f32.mrb[36].mxu0  ;;  %v1116_v43 = vpop.f32.mrb[37].mxu1 }
 0x1a3   : > { %1998 = vst [vmem:[%s3397_s18 + $0x110] sm:$0xff] %v1934_v35  ;;  %v2394_v4 = vadd.f32 %v1692_v39, %v1114_v37  ;;  %v1694_v45 = vpop.f32.mrb[37].mxu0  ;;  %v1118_v6 = vpop.f32.mrb[38].mxu1 }
 0x1a4   : > { %1999 = vst [vmem:[%s3397_s18 + $0x118] sm:$0xff] %v1935_v36  ;;  %v2395_v51 = vadd.f32 %v1694_v45, %v1116_v43  ;;  %v1696_v47 = vpop.f32.mrb[38].mxu0  ;;  %v1120_v50 = vpop.f32.mrb[39].mxu1 }
 0x1a5   : > { %v1872_v49 = vadd.f32 %v2394_v4, %v3388_v0  ;;  %v2396_v38 = vadd.f32 %v1696_v47, %v1118_v6  ;;  %v1698_v23 = vpop.f32.mrb[39].mxu0 }
 0x1a6   : > { %v1873_v53 = vadd.f32 %v2395_v51, %v3390_v41  ;;  %v2397_v25 = vadd.f32 %v1698_v23, %v1120_v50 }
 0x1a7   : > { %v1936_v11 = vmax.f32 %v1872_v49, 0.0  ;;  %v1874_v55 = vadd.f32 %v2396_v38, %v3388_v0 }
 0x1a8   : > { %v1937_v57 = vmax.f32 %v1873_v53, 0.0  ;;  %v1875_v13 = vadd.f32 %v2397_v25, %v3390_v41 }
 0x1a9   : > { %2000 = vst [vmem:[%s3397_s18 + $0x120] sm:$0xff] %v1936_v11  ;;  %v1938_v59 = vmax.f32 %v1874_v55, 0.0  ;;  %v1124_v61 = vpop.f32.mrb[40].mxu1 }
 0x1aa   : > { %2001 = vst [vmem:[%s3397_s18 + $0x128] sm:$0xff] %v1937_v57  ;;  %v1939_v40 = vmax.f32 %v1875_v13, 0.0  ;;  %v1702_v27 = vpop.f32.mrb[40].mxu0  ;;  %v1126_v2 = vpop.f32.mrb[41].mxu1 }
 0x1ab   : > { %2002 = vst [vmem:[%s3397_s18 + $0x130] sm:$0xff] %v1938_v59  ;;  %v2398_v63 = vadd.f32 %v1702_v27, %v1124_v61  ;;  %v1704_v52 = vpop.f32.mrb[41].mxu0  ;;  %v1128_v10 = vpop.f32.mrb[42].mxu1 }
 0x1ac   : > { %2003 = vst [vmem:[%s3397_s18 + $0x138] sm:$0xff] %v1939_v40  ;;  %v2399_v8 = vadd.f32 %v1704_v52, %v1126_v2  ;;  %v1706_v54 = vpop.f32.mrb[42].mxu0  ;;  %v1130_v14 = vpop.f32.mrb[43].mxu1 }
 0x1ad   : > { %v1876_v12 = vadd.f32 %v2398_v63, %v3388_v0  ;;  %v2400_v29 = vadd.f32 %v1706_v54, %v1128_v10  ;;  %v1708_v15 = vpop.f32.mrb[43].mxu0 }
 0x1ae   : > { %v1877_v16 = vadd.f32 %v2399_v8, %v3390_v41  ;;  %v2401_v18 = vadd.f32 %v1708_v15, %v1130_v14 }
 0x1af   : > { %v1940_v42 = vmax.f32 %v1876_v12, 0.0  ;;  %v1878_v1 = vadd.f32 %v2400_v29, %v3388_v0 }
 0x1b0   : > { %v1941_v20 = vmax.f32 %v1877_v16, 0.0  ;;  %v1879_v56 = vadd.f32 %v2401_v18, %v3390_v41 }
 0x1b1   : > { %2004 = vst [vmem:[%s3397_s18 + $0x140] sm:$0xff] %v1940_v42  ;;  %v1942_v44 = vmax.f32 %v1878_v1, 0.0  ;;  %v1134_v58 = vpop.f32.mrb[44].mxu1 }
 0x1b2   : > { %2005 = vst [vmem:[%s3397_s18 + $0x148] sm:$0xff] %v1941_v20  ;;  %v1943_v22 = vmax.f32 %v1879_v56, 0.0  ;;  %v1712_v46 = vpop.f32.mrb[44].mxu0  ;;  %v1136_v24 = vpop.f32.mrb[45].mxu1 }
 0x1b3   : > { %2006 = vst [vmem:[%s3397_s18 + $0x150] sm:$0xff] %v1942_v44  ;;  %v2402_v3 = vadd.f32 %v1712_v46, %v1134_v58  ;;  %v1714_v60 = vpop.f32.mrb[45].mxu0  ;;  %v1138_v28 = vpop.f32.mrb[46].mxu1 }
 0x1b4   : > { %2007 = vst [vmem:[%s3397_s18 + $0x158] sm:$0xff] %v1943_v22  ;;  %v2403_v26 = vadd.f32 %v1714_v60, %v1136_v24  ;;  %v1716_v62 = vpop.f32.mrb[46].mxu0  ;;  %v1140_v30 = vpop.f32.mrb[47].mxu1 }
 0x1b5   : > { %v1880_v5 = vadd.f32 %v2402_v3, %v3388_v0  ;;  %v2404_v7 = vadd.f32 %v1716_v62, %v1138_v28  ;;  %v1718_v17 = vpop.f32.mrb[47].mxu0 }
 0x1b6   : > { %v1881_v9 = vadd.f32 %v2403_v26, %v3390_v41  ;;  %v2405_v31 = vadd.f32 %v1718_v17, %v1140_v30 }
 0x1b7   : > { %v1944_v19 = vmax.f32 %v1880_v5, 0.0  ;;  %v1882_v32 = vadd.f32 %v2404_v7, %v3388_v0 }
 0x1b8   : > { %v1945_v33 = vmax.f32 %v1881_v9, 0.0  ;;  %v1883_v21 = vadd.f32 %v2405_v31, %v3390_v41 }
 0x1b9   : > { %2008 = vst [vmem:[%s3397_s18 + $0x160] sm:$0xff] %v1944_v19  ;;  %v1946_v34 = vmax.f32 %v1882_v32, 0.0  ;;  %v1144_v35 = vpop.f32.mrb[48].mxu1 }
 0x1ba   : > { %2009 = vst [vmem:[%s3397_s18 + $0x168] sm:$0xff] %v1945_v33  ;;  %v1947_v48 = vmax.f32 %v1883_v21, 0.0  ;;  %v1722_v36 = vpop.f32.mrb[48].mxu0  ;;  %v1146_v39 = vpop.f32.mrb[49].mxu1 }
 0x1bb   : > { %2010 = vst [vmem:[%s3397_s18 + $0x170] sm:$0xff] %v1946_v34  ;;  %v2406_v37 = vadd.f32 %v1722_v36, %v1144_v35  ;;  %v1724_v4 = vpop.f32.mrb[49].mxu0  ;;  %v1148_v45 = vpop.f32.mrb[50].mxu1 }
 0x1bc   : > { %2011 = vst [vmem:[%s3397_s18 + $0x178] sm:$0xff] %v1947_v48  ;;  %v2407_v43 = vadd.f32 %v1724_v4, %v1146_v39  ;;  %v1726_v51 = vpop.f32.mrb[50].mxu0  ;;  %v1150_v49 = vpop.f32.mrb[51].mxu1 }
 0x1bd   : > { %v1884_v6 = vadd.f32 %v2406_v37, %v3388_v0  ;;  %v2408_v47 = vadd.f32 %v1726_v51, %v1148_v45  ;;  %v1728_v38 = vpop.f32.mrb[51].mxu0 }
 0x1be   : > { %v1885_v50 = vadd.f32 %v2407_v43, %v3390_v41  ;;  %v2409_v23 = vadd.f32 %v1728_v38, %v1150_v49 }
 0x1bf   : > { %v1948_v53 = vmax.f32 %v1884_v6, 0.0  ;;  %v1886_v25 = vadd.f32 %v2408_v47, %v3388_v0 }
 0x1c0   : > { %v1949_v11 = vmax.f32 %v1885_v50, 0.0  ;;  %v1887_v55 = vadd.f32 %v2409_v23, %v3390_v41 }
 0x1c1   : > { %2012 = vst [vmem:[%s3397_s18 + $0x180] sm:$0xff] %v1948_v53  ;;  %v1950_v57 = vmax.f32 %v1886_v25, 0.0  ;;  %v1154_v59 = vpop.f32.mrb[52].mxu1 }
 0x1c2   : > { %2013 = vst [vmem:[%s3397_s18 + $0x188] sm:$0xff] %v1949_v11  ;;  %v1951_v13 = vmax.f32 %v1887_v55, 0.0  ;;  %v1732_v40 = vpop.f32.mrb[52].mxu0  ;;  %v1156_v27 = vpop.f32.mrb[53].mxu1 }
 0x1c3   : > { %2014 = vst [vmem:[%s3397_s18 + $0x190] sm:$0xff] %v1950_v57  ;;  %v2410_v61 = vadd.f32 %v1732_v40, %v1154_v59  ;;  %v1734_v63 = vpop.f32.mrb[53].mxu0  ;;  %v1158_v52 = vpop.f32.mrb[54].mxu1 }
 0x1c4   : > { %2015 = vst [vmem:[%s3397_s18 + $0x198] sm:$0xff] %v1951_v13  ;;  %v2411_v2 = vadd.f32 %v1734_v63, %v1156_v27  ;;  %v1736_v8 = vpop.f32.mrb[54].mxu0  ;;  %v1160_v12 = vpop.f32.mrb[55].mxu1 }
 0x1c5   : > { %v1888_v10 = vadd.f32 %v2410_v61, %v3388_v0  ;;  %v2412_v54 = vadd.f32 %v1736_v8, %v1158_v52  ;;  %v1738_v29 = vpop.f32.mrb[55].mxu0 }
 0x1c6   : > { %v1889_v14 = vadd.f32 %v2411_v2, %v3390_v41  ;;  %v2413_v15 = vadd.f32 %v1738_v29, %v1160_v12 }
 0x1c7   : > { %v1952_v16 = vmax.f32 %v1888_v10, 0.0  ;;  %v1890_v18 = vadd.f32 %v2412_v54, %v3388_v0 }
 0x1c8   : > { %v1953_v42 = vmax.f32 %v1889_v14, 0.0  ;;  %v1891_v1 = vadd.f32 %v2413_v15, %v3390_v41 }
 0x1c9   : > { %2016 = vst [vmem:[%s3397_s18 + $0x1a0] sm:$0xff] %v1952_v16  ;;  %v1954_v20 = vmax.f32 %v1890_v18, 0.0  ;;  %v1164_v44 = vpop.f32.mrb[56].mxu1 }
 0x1ca   : > { %2017 = vst [vmem:[%s3397_s18 + $0x1a8] sm:$0xff] %v1953_v42  ;;  %v1955_v56 = vmax.f32 %v1891_v1, 0.0  ;;  %v1742_v22 = vpop.f32.mrb[56].mxu0  ;;  %v1166_v46 = vpop.f32.mrb[57].mxu1 }
 0x1cb   : > { %2018 = vst [vmem:[%s3397_s18 + $0x1b0] sm:$0xff] %v1954_v20  ;;  %v2414_v58 = vadd.f32 %v1742_v22, %v1164_v44  ;;  %v1744_v3 = vpop.f32.mrb[57].mxu0  ;;  %v1168_v60 = vpop.f32.mrb[58].mxu1 }
 0x1cc   : > { %2019 = vst [vmem:[%s3397_s18 + $0x1b8] sm:$0xff] %v1955_v56  ;;  %v2415_v24 = vadd.f32 %v1744_v3, %v1166_v46  ;;  %v1746_v26 = vpop.f32.mrb[58].mxu0  ;;  %v1170_v5 = vpop.f32.mrb[59].mxu1 }
 0x1cd   : > { %v1892_v28 = vadd.f32 %v2414_v58, %v3388_v0  ;;  %v2416_v62 = vadd.f32 %v1746_v26, %v1168_v60  ;;  %v1748_v7 = vpop.f32.mrb[59].mxu0 }
 0x1ce   : > { %v1893_v30 = vadd.f32 %v2415_v24, %v3390_v41  ;;  %v2417_v17 = vadd.f32 %v1748_v7, %v1170_v5 }
 0x1cf   : > { %v1956_v9 = vmax.f32 %v1892_v28, 0.0  ;;  %v1894_v31 = vadd.f32 %v2416_v62, %v3388_v0 }
 0x1d0   : > { %v1957_v19 = vmax.f32 %v1893_v30, 0.0  ;;  %v1895_v32 = vadd.f32 %v2417_v17, %v3390_v41 }
 0x1d1   : > { %2020 = vst [vmem:[%s3397_s18 + $0x1c0] sm:$0xff] %v1956_v9  ;;  %v1958_v33 = vmax.f32 %v1894_v31, 0.0  ;;  %v1174_v34 = vpop.f32.mrb[60].mxu1 }
 0x1d2   : > { %2021 = vst [vmem:[%s3397_s18 + $0x1c8] sm:$0xff] %v1957_v19  ;;  %v1959_v21 = vmax.f32 %v1895_v32, 0.0  ;;  %v1752_v48 = vpop.f32.mrb[60].mxu0  ;;  %v1176_v36 = vpop.f32.mrb[61].mxu1 }
 0x1d3   : > { %2022 = vst [vmem:[%s3397_s18 + $0x1d0] sm:$0xff] %v1958_v33  ;;  %v2418_v35 = vadd.f32 %v1752_v48, %v1174_v34  ;;  %v1754_v37 = vpop.f32.mrb[61].mxu0  ;;  %v1178_v4 = vpop.f32.mrb[62].mxu1 }
 0x1d4   : > { %2023 = vst [vmem:[%s3397_s18 + $0x1d8] sm:$0xff] %v1959_v21  ;;  %v2419_v39 = vadd.f32 %v1754_v37, %v1176_v36  ;;  %v1756_v43 = vpop.f32.mrb[62].mxu0  ;;  %v1180_v6 = vpop.f32.mrb[63].mxu1 }
 0x1d5   : > { %v1896_v45 = vadd.f32 %v2418_v35, %v3388_v0  ;;  %v2420_v51 = vadd.f32 %v1756_v43, %v1178_v4  ;;  %v1758_v47 = vpop.f32.mrb[63].mxu0 }
 0x1d6   : > { %v1897_v49 = vadd.f32 %v2419_v39, %v3390_v41  ;;  %v2421_v38 = vadd.f32 %v1758_v47, %v1180_v6 }
 0x1d7   : > { %v1960_v50 = vmax.f32 %v1896_v45, 0.0  ;;  %v1898_v23 = vadd.f32 %v2420_v51, %v3388_v0 }
 0x1d8   : > { %v1961_v53 = vmax.f32 %v1897_v49, 0.0  ;;  %v1899_v25 = vadd.f32 %v2421_v38, %v3390_v41 }
 0x1d9   : > { %2024 = vst [vmem:[%s3397_s18 + $0x1e0] sm:$0xff] %v1960_v50  ;;  %v1962_v11 = vmax.f32 %v1898_v23, 0.0 }
 0x1da   : > { %2025 = vst [vmem:[%s3397_s18 + $0x1e8] sm:$0xff] %v1961_v53  ;;  %v1963_v55 = vmax.f32 %v1899_v25, 0.0 }
 0x1db   : > { %2026 = vst [vmem:[%s3397_s18 + $0x1f0] sm:$0xff] %v1962_v11 }
 0x1dc   : > { %2027 = vst [vmem:[%s3397_s18 + $0x1f8] sm:$0xff] %v1963_v55 }
 0x1dd PF: > { %s13_s12 = sadd.s32 1, %s2717_s12  }
 0x1de   : > { %p10_p4 = scmp.ge.s32.totalorder %s13_s12, 4  }
 0x1e0   :  { %12 = sbr.rel (!%p10_p4) target bundleno = 1 (0x1), region = 64 }

// kernel: mixed_5b_forward.5
= control target key start
LH: loop header
LB: loop body
LE: loop exit
PB: predicated region body
PF: predicated region fallthrough
CT: control target
= control target key end

     0   :  { %s7577_s12 = smov 0   ;;  %s9541_s0 = inlined_call_operand.vmem [shape: f32[2,462,128], index: 0, kind: input, shape index: {}]   ;;  %s9542_s1 = inlined_call_operand.vmem [shape: bf16[3,3,128,256], index: 1, kind: input, shape index: {}]   ;;  %s9543_s2 = inlined_call_operand.vmem [shape: f32[1,256], index: 2, kind: input, shape index: {}]   ;;  %s9544_s3 = inlined_call_operand.vmem [shape: bf16[2,440,256], index: 3, kind: output, shape index: {}]  }
   0x1 LB: > { %s6034_s13 = sadd.s32 4294967295, %s7554_s12   ;;  %p6038_p0 = scmp.ge.s32.totalorder %s7554_s12, 1  ;;  %s7554_s12 = sphi %s7577_s12, %s13_s12  }
   0x2   : > { %p137_p1 = scmp.lt.s32.totalorder %s7554_s12, 3 }
   0x4   : > { %p138_p2 = pnand %p6038_p0, %p137_p1 }
   0x6   : > { %141 = sbr.rel (%p138_p2) target bundleno = 1277 (0x4fd), region = 32 }
   0xd   : > { %v7316_v0 = vld [vmem:[%s9542_s1 + $0x84] ss:$8 sps:$4 sm:$0xff]   ;;  %v9545_v2 = vmov 0   ;;  %v7320_v3 = vld [vmem:[%s9542_s1 + $0x80] ss:$8 sps:$4 sm:$0xff]   ;;  %p161_p3 = scmp.lt.s32.totalorder %s6034_s13, 1 }
   0xe   : > { %v7318_v1 = vld [vmem:[%s9542_s1 + $0x204] ss:$8 sps:$4 sm:$0xff]   ;;  %484 = vmatprep.mubr.bf16.mxu1 %v9545_v2  ;;  %2568 = vmatprep.mubr.bf16.mxu0 %v9545_v2  ;;  %v7321_v4 = vld [vmem:[%s9542_s1 + $0x200] ss:$8 sps:$4 sm:$0xff]   ;;  %v7322_v5 = vld [vmem:[%s9542_s1 + $0x94] ss:$8 sps:$4 sm:$0xff]  }
   0xf   : > { %452 = vmatprep.subr.bf16.mxu1 %v7316_v0  ;;  %2536 = vmatprep.subr.bf16.mxu0 %v7318_v1  ;;  %v7324_v6 = vld [vmem:[%s9542_s1 + $0x214] ss:$8 sps:$4 sm:$0xff]   ;;  %v7326_v7 = vld [vmem:[%s9542_s1 + $0x90] ss:$8 sps:$4 sm:$0xff]   ;;  %v7328_v9 = vld [vmem:[%s9542_s1 + $0xa4] ss:$8 sps:$4 sm:$0xff]  }
  0x10   : > { %453 = vmatpush1.bf16.msra.mxu1 %v7320_v3  ;;  %2537 = vmatpush1.bf16.msra.mxu0 %v7321_v4  ;;  %v7327_v8 = vld [vmem:[%s9542_s1 + $0x210] ss:$8 sps:$4 sm:$0xff]   ;;  %v7330_v10 = vld [vmem:[%s9542_s1 + $0x224] ss:$8 sps:$4 sm:$0xff]   ;;  %v7332_v11 = vld [vmem:[%s9542_s1 + $0xa0] ss:$8 sps:$4 sm:$0xff]  }
  0x11   : > { %454 = vmatprep.subr.bf16.mxu1 %v7322_v5  ;;  %2538 = vmatprep.subr.bf16.mxu0 %v7324_v6  ;;  %v7333_v12 = vld [vmem:[%s9542_s1 + $0x220] ss:$8 sps:$4 sm:$0xff]   ;;  %v7334_v13 = vld [vmem:[%s9542_s1 + $0xb4] ss:$8 sps:$4 sm:$0xff]   ;;  %v7338_v15 = vld [vmem:[%s9542_s1 + $0xb0] ss:$8 sps:$4 sm:$0xff]  }
  0x12   : > { %v7336_v14 = vld [vmem:[%s9542_s1 + $0x234] ss:$8 sps:$4 sm:$0xff]   ;;  %v7339_v16 = vld [vmem:[%s9542_s1 + $0x230] ss:$8 sps:$4 sm:$0xff]   ;;  %v7340_v17 = vld [vmem:[%s9542_s1 + $0xc4] ss:$8 sps:$4 sm:$0xff]  }
  0x13   : > { %v7342_v18 = vld [vmem:[%s9542_s1 + $0x244] ss:$8 sps:$4 sm:$0xff]   ;;  %v7344_v19 = vld [vmem:[%s9542_s1 + $0xc0] ss:$8 sps:$4 sm:$0xff]   ;;  %v7346_v21 = vld [vmem:[%s9542_s1 + $0xd4] ss:$8 sps:$4 sm:$0xff]  }
  0x14   : > { %455 = vmatpush1.bf16.msra.mxu1 %v7326_v7  ;;  %2539 = vmatpush1.bf16.msra.mxu0 %v7327_v8  ;;  %v7345_v20 = vld [vmem:[%s9542_s1 + $0x240] ss:$8 sps:$4 sm:$0xff]   ;;  %s9593_s13 = smov (!%p161_p3, %s6034_s13), 1  ;;  %v7348_v22 = vld [vmem:[%s9542_s1 + $0x254] ss:$8 sps:$4 sm:$0xff]  }
  0x15   : > { %456 = vmatprep.subr.bf16.mxu1 %v7328_v9  ;;  %2540 = vmatprep.subr.bf16.mxu0 %v7330_v10  ;;  %v7350_v23 = vld [vmem:[%s9542_s1 + $0xd0] ss:$8 sps:$4 sm:$0xff]   ;;  %s7305_s10 = smul.u32 464, %s9593_s13  ;;  %v7352_v25 = vld [vmem:[%s9542_s1 + $0xe4] ss:$8 sps:$4 sm:$0xff]  }
  0x16   : > { %v7351_v24 = vld [vmem:[%s9542_s1 + $0x250] ss:$8 sps:$4 sm:$0xff]   ;;  %v7354_v26 = vld [vmem:[%s9542_s1 + $0x264] ss:$8 sps:$4 sm:$0xff]   ;;  %v7356_v27 = vld [vmem:[%s9542_s1 + $0xe0] ss:$8 sps:$4 sm:$0xff]  }
  0x17   : > { %v7357_v28 = vld [vmem:[%s9542_s1 + $0x260] ss:$8 sps:$4 sm:$0xff]   ;;  %v7358_v29 = vld [vmem:[%s9542_s1 + $0xf4] ss:$8 sps:$4 sm:$0xff]   ;;  %s7684_s25 = scalar_lea.vmem %s9541_s0, %s7305_s10  ;;  %v7362_v31 = vld [vmem:[%s9542_s1 + $0xf0] ss:$8 sps:$4 sm:$0xff]  }
  0x18   : > { %457 = vmatpush1.bf16.msra.mxu1 %v7332_v11  ;;  %2541 = vmatpush1.bf16.msra.mxu0 %v7333_v12  ;;  %v7360_v30 = vld [vmem:[%s9542_s1 + $0x274] ss:$8 sps:$4 sm:$0xff]   ;;  %v7363_v32 = vld [vmem:[%s9542_s1 + $0x270] ss:$8 sps:$4 sm:$0xff]   ;;  %v272_v33 = vld [vmem:[%s7684_s25 + $0x1] sm:$0xff]  ;;  %s7306_s26 = smul.u32 440, %s9593_s13 }
  0x19   : > { %458 = vmatprep.subr.bf16.mxu1 %v7334_v13  ;;  %2542 = vmatprep.subr.bf16.mxu0 %v7336_v14  ;;  %v273_v34 = vld [vmem:[%s7684_s25 + $0x9] sm:$0xff]  ;;  %v2357_v36 = vld [vmem:[%s7684_s25 + $0x13] sm:$0xff]  ;;  %v2358_v47 = vld [vmem:[%s7684_s25 + $0x1b] sm:$0xff] }
  0x1a   : > { %v2356_v35 = vld [vmem:[%s7684_s25 + $0xb] sm:$0xff]  ;;  %v327_v39 = vpack.c.bf16 %v273_v34, %v272_v33  ;;  %v7372_v43 = vld [vmem:[%s9542_s1 + $0x294] ss:$8 sps:$4 sm:$0xff]   ;;  %v2359_v48 = vld [vmem:[%s7684_s25 + $0x23] sm:$0xff]  ;;  %s9309_s28 = scalar_lea.vmem %s9544_s3, %s7306_s26 }
  0x1b   : > { %v7366_v37 = vld [vmem:[%s9542_s1 + $0x4] ss:$8 sps:$4 sm:$0xff]   ;;  %v2411_v40 = vpack.c.bf16 %v2357_v36, %v2356_v35  ;;  %v7364_v41 = vld [vmem:[%s9542_s1] ss:$8 sps:$4 sm:$0xff]   ;;  %v7375_v44 = vld [vmem:[%s9542_s1 + $0x14] ss:$8 sps:$4 sm:$0xff]   ;;  %v2412_v53 = vpack.c.bf16 %v2359_v48, %v2358_v47 }
  0x1c   : > { %459 = vmatpush1.bf16.msra.mxu1 %v7338_v15  ;;  %2543 = vmatpush1.bf16.msra.mxu0 %v7339_v16  ;;  %v7369_v38 = vld [vmem:[%s9542_s1 + $0x284] ss:$8 sps:$4 sm:$0xff]   ;;  %v7367_v42 = vld [vmem:[%s9542_s1 + $0x280] ss:$8 sps:$4 sm:$0xff]   ;;  %v274_v45 = vld [vmem:[%s7684_s25 + $0x11] sm:$0xff] }
  0x1d   : > { %460 = vmatprep.subr.bf16.mxu1 %v7340_v17  ;;  %2544 = vmatprep.subr.bf16.mxu0 %v7342_v18  ;;  %v275_v46 = vld [vmem:[%s7684_s25 + $0x19] sm:$0xff]  ;;  %v7378_v51 = vld [vmem:[%s9542_s1 + $0x2a4] ss:$8 sps:$4 sm:$0xff]   ;;  %v278_v7 = vld [vmem:[%s7684_s25 + $0x31] sm:$0xff] }
  0x1e   : > { %v7373_v49 = vld [vmem:[%s9542_s1 + $0x10] ss:$8 sps:$4 sm:$0xff]   ;;  %v328_v52 = vpack.c.bf16 %v275_v46, %v274_v45  ;;  %v7384_v54 = vld [vmem:[%s9542_s1 + $0x24] ss:$8 sps:$4 sm:$0xff]   ;;  %v7376_v55 = vld [vmem:[%s9542_s1 + $0x2a0] ss:$8 sps:$4 sm:$0xff]  }
  0x1f   : > { %v7370_v50 = vld [vmem:[%s9542_s1 + $0x290] ss:$8 sps:$4 sm:$0xff]   ;;  %v7382_v56 = vld [vmem:[%s9542_s1 + $0x20] ss:$8 sps:$4 sm:$0xff]   ;;  %v7381_v57 = vld [vmem:[%s9542_s1 + $0x2b4] ss:$8 sps:$4 sm:$0xff]  }
  0x20   : > { %461 = vmatpush1.bf16.msra.mxu1 %v7344_v19  ;;  %2545 = vmatpush1.bf16.msra.mxu0 %v7345_v20  ;;  %v276_v58 = vld [vmem:[%s7684_s25 + $0x21] sm:$0xff]  ;;  %v277_v59 = vld [vmem:[%s7684_s25 + $0x29] sm:$0xff]  ;;  %v2361_v61 = vld [vmem:[%s7684_s25 + $0x33] sm:$0xff] }
  0x21   : > { %462 = vmatprep.subr.bf16.mxu1 %v7346_v21  ;;  %2546 = vmatprep.subr.bf16.mxu0 %v7348_v22  ;;  %v2360_v60 = vld [vmem:[%s7684_s25 + $0x2b] sm:$0xff]  ;;  %v329_v0 = vpack.c.bf16 %v277_v59, %v276_v58  ;;  %v7393_v4 = vld [vmem:[%s9542_s1 + $0x34] ss:$8 sps:$4 sm:$0xff]   ;;  %v2363_v10 = vld [vmem:[%s7684_s25 + $0x43] sm:$0xff] }
  0x22   : > { %v7379_v62 = vld [vmem:[%s9542_s1 + $0x2b0] ss:$8 sps:$4 sm:$0xff]   ;;  %v7387_v63 = vld [vmem:[%s9542_s1 + $0x2c4] ss:$8 sps:$4 sm:$0xff]   ;;  %v2413_v1 = vpack.c.bf16 %v2361_v61, %v2360_v60  ;;  %v7385_v3 = vld [vmem:[%s9542_s1 + $0x2c0] ss:$8 sps:$4 sm:$0xff]  }
  0x23   : > { %v7390_v5 = vld [vmem:[%s9542_s1 + $0x2d4] ss:$8 sps:$4 sm:$0xff]   ;;  %v7391_v6 = vld [vmem:[%s9542_s1 + $0x30] ss:$8 sps:$4 sm:$0xff]   ;;  %v7396_v12 = vld [vmem:[%s9542_s1 + $0x2e4] ss:$8 sps:$4 sm:$0xff]  }
  0x24   : > { %463 = vmatpush1.bf16.msra.mxu1 %v7350_v23  ;;  %2547 = vmatpush1.bf16.msra.mxu0 %v7351_v24  ;;  %v279_v8 = vld [vmem:[%s7684_s25 + $0x39] sm:$0xff]  ;;  %v7402_v16 = vld [vmem:[%s9542_s1 + $0x44] ss:$8 sps:$4 sm:$0xff]  }
  0x25   : > { %464 = vmatprep.subr.bf16.mxu1 %v7352_v25  ;;  %2548 = vmatprep.subr.bf16.mxu0 %v7354_v26  ;;  %v2362_v9 = vld [vmem:[%s7684_s25 + $0x3b] sm:$0xff]  ;;  %v330_v13 = vpack.c.bf16 %v279_v8, %v278_v7  ;;  %v281_v20 = vld [vmem:[%s7684_s25 + $0x49] sm:$0xff]  ;;  %v2365_v22 = vld [vmem:[%s7684_s25 + $0x53] sm:$0xff] }
  0x26   : > { %v7388_v11 = vld [vmem:[%s9542_s1 + $0x2d0] ss:$8 sps:$4 sm:$0xff]   ;;  %v2414_v14 = vpack.c.bf16 %v2363_v10, %v2362_v9  ;;  %v7394_v15 = vld [vmem:[%s9542_s1 + $0x2e0] ss:$8 sps:$4 sm:$0xff]   ;;  %v7399_v17 = vld [vmem:[%s9542_s1 + $0x2f4] ss:$8 sps:$4 sm:$0xff]  }
  0x27   : > { %v7400_v18 = vld [vmem:[%s9542_s1 + $0x40] ss:$8 sps:$4 sm:$0xff]   ;;  %v7397_v23 = vld [vmem:[%s9542_s1 + $0x2f0] ss:$8 sps:$4 sm:$0xff]   ;;  %v7405_v24 = vld [vmem:[%s9542_s1 + $0x304] ss:$8 sps:$4 sm:$0xff]  }
  0x28   : > { %465 = vmatpush1.bf16.msra.mxu1 %v7356_v27  ;;  %2549 = vmatpush1.bf16.msra.mxu0 %v7357_v28  ;;  %v280_v19 = vld [vmem:[%s7684_s25 + $0x41] sm:$0xff]  ;;  %v2364_v21 = vld [vmem:[%s7684_s25 + $0x4b] sm:$0xff]  ;;  %v7408_v27 = vld [vmem:[%s9542_s1 + $0x54] ss:$8 sps:$4 sm:$0xff]  }
  0x29   : > { %466 = vmatprep.subr.bf16.mxu1 %v7358_v29  ;;  %2550 = vmatprep.subr.bf16.mxu0 %v7360_v30  ;;  %v331_v25 = vpack.c.bf16 %v281_v20, %v280_v19  ;;  %v2415_v26 = vpack.c.bf16 %v2365_v22, %v2364_v21  ;;  %v7406_v28 = vld [vmem:[%s9542_s1 + $0x50] ss:$8 sps:$4 sm:$0xff]   ;;  %v284_v35 = vld [vmem:[%s7684_s25 + $0x61] sm:$0xff]  ;;  %v7420_v58 = vld [vmem:[%s9542_s1 + $0x74] ss:$8 sps:$4 sm:$0xff]  }
  0x2a   : > { %v282_v29 = vld [vmem:[%s7684_s25 + $0x51] sm:$0xff]  ;;  %v283_v30 = vld [vmem:[%s7684_s25 + $0x59] sm:$0xff]  ;;  %v285_v36 = vld [vmem:[%s7684_s25 + $0x69] sm:$0xff] }
  0x2b   : > { %v332_v33 = vpack.c.bf16 %v283_v30, %v282_v29  ;;  %v2370_v45 = vld [vmem:[%s7684_s25 + $0x7b] sm:$0xff]  ;;  %v2371_v46 = vld [vmem:[%s7684_s25 + $0x83] sm:$0xff] }
  0x2c   : > { %467 = vmatpush1.bf16.msra.mxu1 %v7362_v31  ;;  %2551 = vmatpush1.bf16.msra.mxu0 %v7363_v32  ;;  %v2366_v31 = vld [vmem:[%s7684_s25 + $0x5b] sm:$0xff]  ;;  %v2367_v32 = vld [vmem:[%s7684_s25 + $0x63] sm:$0xff]  ;;  %v2418_v48 = vpack.c.bf16 %v2371_v46, %v2370_v45  ;;  %v7923_v45 = vld [vmem:[%s7684_s25 + $0x2c] sm:$0xff] }
  0x2d   : > { %843 = vmatprep.subr.bf16.mxu1 %v7366_v37  ;;  %3137 = vmatprep.subr.bf16.mxu0 %v7369_v38  ;;  %v2416_v34 = vpack.c.bf16 %v2367_v32, %v2366_v31  ;;  %v7412_v37 = vld [vmem:[%s9542_s1 + $0x60] ss:$8 sps:$4 sm:$0xff]   ;;  %v7414_v38 = vld [vmem:[%s9542_s1 + $0x64] ss:$8 sps:$4 sm:$0xff]   ;;  %v7411_v32 = vld [vmem:[%s9542_s1 + $0x314] ss:$8 sps:$4 sm:$0xff]  }
  0x2e   : > { %v2374_v59 = vld [vmem:[%s7684_s25 + $0x9b] sm:$0xff]  ;;  %v2375_v60 = vld [vmem:[%s7684_s25 + $0xa3] sm:$0xff] }
  0x2f   : > { %485 = vmatmul.mubr.bf16.vlgmr.msra.gmra.mrb[0].mxu1 %v327_v39  ;;  %2569 = vmatmul.mubr.bf16.vlgmr.msra.gmra.mrb[0].mxu0 %v2411_v40  ;;  %v2368_v39 = vld [vmem:[%s7684_s25 + $0x6b] sm:$0xff]  ;;  %v2369_v40 = vld [vmem:[%s7684_s25 + $0x73] sm:$0xff]  ;;  %v2378_v8 = vld [vmem:[%s7684_s25 + $0xbb] sm:$0xff] }
  0x30   : > { %844 = vmatpush1.bf16.msra.mxu1 %v7364_v41  ;;  %494 = vmatprep.mubr.bf16.mxu1 %v9545_v2  ;;  %v333_v41 = vpack.c.bf16 %v285_v36, %v284_v35  ;;  %v295_v7 = vld [vmem:[%s7684_s25 + $0xb9] sm:$0xff]  ;;  %v2379_v9 = vld [vmem:[%s7684_s25 + $0xc3] sm:$0xff] }
  0x31   : > { %2578 = vmatprep.mubr.bf16.mxu0 %v9545_v2  ;;  %3138 = vmatpush1.bf16.msra.mxu0 %v7367_v42  ;;  %v2417_v42 = vpack.c.bf16 %v2369_v40, %v2368_v39  ;;  %v7426_v19 = vld [vmem:[%s9542_s1 + $0x104] ss:$8 sps:$4 sm:$0xff]   ;;  %v299_v20 = vld [vmem:[%s7684_s25 + $0xd9] sm:$0xff] }
  0x32   : > { %3139 = vmatprep.subr.bf16.mxu0 %v7372_v43  ;;  %845 = vmatprep.subr.bf16.mxu1 %v7375_v44  ;;  %v286_v43 = vld [vmem:[%s7684_s25 + $0x71] sm:$0xff]  ;;  %v287_v44 = vld [vmem:[%s7684_s25 + $0x79] sm:$0xff]  ;;  %v2383_v22 = vld [vmem:[%s7684_s25 + $0xe3] sm:$0xff] }
  0x33   : > { %v334_v47 = vpack.c.bf16 %v287_v44, %v286_v43  ;;  %v2382_v21 = vld [vmem:[%s7684_s25 + $0xdb] sm:$0xff]  ;;  %v7902_v36 = vld [vmem:[%s7684_s25 + $0x24] sm:$0xff] }
  0x34   : > { %846 = vmatpush1.bf16.msra.mxu1 %v7373_v49  ;;  %v288_v49 = vld [vmem:[%s7684_s25 + $0x81] sm:$0xff]  ;;  %v305_v44 = vld [vmem:[%s7684_s25 + $0x109] sm:$0xff]  ;;  %v7926_v46 = vld [vmem:[%s7684_s25 + $0x34] sm:$0xff] }
  0x35   : > { %3140 = vmatpush1.bf16.msra.mxu0 %v7370_v50  ;;  %847 = vmatprep.subr.bf16.mxu1 %v7384_v54  ;;  %v289_v50 = vld [vmem:[%s7684_s25 + $0x89] sm:$0xff]  ;;  %v7899_v35 = vld [vmem:[%s7684_s25 + $0x1c] sm:$0xff] }
  0x36   : > { %3141 = vmatprep.subr.bf16.mxu0 %v7378_v51  ;;  %v2372_v51 = vld [vmem:[%s7684_s25 + $0x8b] sm:$0xff]  ;;  %v3013_v40 = vpack.c.bf16 %v7902_v36, %v7899_v35  ;;  %v304_v43 = vld [vmem:[%s7684_s25 + $0x101] sm:$0xff] }
  0x37   : > { %495 = vmatmul.mubr.bf16.gmra.mrb[4].mxu1 %v328_v52  ;;  %2579 = vmatmul.mubr.bf16.gmra.mrb[4].mxu0 %v2412_v53  ;;  %v2373_v52 = vld [vmem:[%s7684_s25 + $0x93] sm:$0xff]  ;;  %v335_v53 = vpack.c.bf16 %v289_v50, %v288_v49  ;;  %v7403_v31 = vld [vmem:[%s9542_s1 + $0x300] ss:$8 sps:$4 sm:$0xff]   ;;  %v343_v49 = vpack.c.bf16 %v305_v44, %v304_v43  ;;  %v3014_v50 = vpack.c.bf16 %v7926_v46, %v7923_v45 }
  0x38   : > { %504 = vmatprep.mubr.bf16.mxu1 %v9545_v2  ;;  %2588 = vmatprep.mubr.bf16.mxu0 %v9545_v2  ;;  %v2419_v54 = vpack.c.bf16 %v2373_v52, %v2372_v51  ;;  %v7427_v51 = vld [vmem:[%s9542_s1 + $0x340] ss:$8 sps:$4 sm:$0xff]   ;;  %v306_v52 = vld [vmem:[%s7684_s25 + $0x111] sm:$0xff] }
  0x39   : > { %3142 = vmatpush1.bf16.msra.mxu0 %v7376_v55  ;;  %848 = vmatpush1.bf16.msra.mxu1 %v7382_v56  ;;  %v290_v55 = vld [vmem:[%s7684_s25 + $0x91] sm:$0xff]  ;;  %v291_v56 = vld [vmem:[%s7684_s25 + $0x99] sm:$0xff] }
  0x3a   : > { %3143 = vmatprep.subr.bf16.mxu0 %v7381_v57  ;;  %849 = vmatprep.subr.bf16.mxu1 %v7393_v4  ;;  %v7418_v57 = vld [vmem:[%s9542_s1 + $0x70] ss:$8 sps:$4 sm:$0xff]   ;;  %v336_v61 = vpack.c.bf16 %v291_v56, %v290_v55  ;;  %v7947_v55 = vld [vmem:[%s7684_s25 + $0x3c] sm:$0xff]  ;;  %v7950_v56 = vld [vmem:[%s7684_s25 + $0x44] sm:$0xff] }
  0x3b   : > { %v8049_v43 = vld [vmem:[%s7684_s25 + $0xb4] sm:$0xff] }
  0x3d   : > { %3144 = vmatpush1.bf16.msra.mxu0 %v7379_v62  ;;  %850 = vmatpush1.bf16.msra.mxu1 %v7391_v6  ;;  %v2420_v62 = vpack.c.bf16 %v2375_v60, %v2374_v59  ;;  %v294_v6 = vld [vmem:[%s7684_s25 + $0xb1] sm:$0xff]  ;;  %v3015_v59 = vpack.c.bf16 %v7950_v56, %v7947_v55  ;;  %v308_v60 = vld [vmem:[%s7684_s25 + $0x121] sm:$0xff] }
  0x3e   : > { %3145 = vmatprep.subr.bf16.mxu0 %v7387_v63  ;;  %851 = vmatprep.subr.bf16.mxu1 %v7402_v16  ;;  %v292_v63 = vld [vmem:[%s7684_s25 + $0xa1] sm:$0xff]  ;;  %v338_v10 = vpack.c.bf16 %v295_v7, %v294_v6 }
  0x3f   : > { %505 = vmatmul.mubr.bf16.gmra.mrb[8].mxu1 %v329_v0  ;;  %2589 = vmatmul.mubr.bf16.gmra.mrb[8].mxu0 %v2413_v1  ;;  %v293_v0 = vld [vmem:[%s7684_s25 + $0xa9] sm:$0xff] }
  0x40   : > { %514 = vmatprep.mubr.bf16.mxu1 %v9545_v2  ;;  %2598 = vmatprep.mubr.bf16.mxu0 %v9545_v2  ;;  %v2376_v1 = vld [vmem:[%s7684_s25 + $0xab] sm:$0xff]  ;;  %v337_v4 = vpack.c.bf16 %v293_v0, %v292_v63  ;;  %v7965_v63 = vld [vmem:[%s7684_s25 + $0x54] sm:$0xff] }
  0x41   : > { %3146 = vmatpush1.bf16.msra.mxu0 %v7385_v3  ;;  %852 = vmatpush1.bf16.msra.mxu1 %v7400_v18  ;;  %v2377_v3 = vld [vmem:[%s7684_s25 + $0xb3] sm:$0xff]  ;;  %v7977_v6 = vld [vmem:[%s7684_s25 + $0x64] sm:$0xff] }
  0x42   : > { %3147 = vmatprep.subr.bf16.mxu0 %v7390_v5  ;;  %853 = vmatprep.subr.bf16.mxu1 %v7408_v27  ;;  %v2421_v5 = vpack.c.bf16 %v2377_v3, %v2376_v1  ;;  %v298_v18 = vld [vmem:[%s7684_s25 + $0xd1] sm:$0xff] }
  0x43   : > { %v2957_v27 = vld [vmem:[%s7684_s25 + $0xc] sm:$0xff] }
  0x44   : > { %v310_v3 = vld [vmem:[%s7684_s25 + $0x131] sm:$0xff] }
  0x45   : > { %3148 = vmatpush1.bf16.msra.mxu0 %v7388_v11  ;;  %854 = vmatpush1.bf16.msra.mxu1 %v7406_v28  ;;  %v2422_v11 = vpack.c.bf16 %v2379_v9, %v2378_v8  ;;  %v7885_v28 = vld [vmem:[%s7684_s25 + $0x14] sm:$0xff]  ;;  %v312_v9 = vld [vmem:[%s7684_s25 + $0x141] sm:$0xff] }
  0x46   : > { %3149 = vmatprep.subr.bf16.mxu0 %v7396_v12  ;;  %855 = vmatprep.subr.bf16.mxu1 %v7414_v38  ;;  %v296_v12 = vld [vmem:[%s7684_s25 + $0xc1] sm:$0xff]  ;;  %v3012_v30 = vpack.c.bf16 %v7885_v28, %v2957_v27 }
  0x47   : > { %515 = vmatmul.mubr.bf16.gmra.mrb[12].mxu1 %v330_v13  ;;  %2599 = vmatmul.mubr.bf16.gmra.mrb[12].mxu0 %v2414_v14  ;;  %v297_v13 = vld [vmem:[%s7684_s25 + $0xc9] sm:$0xff] }
  0x48   : > { %524 = vmatprep.mubr.bf16.mxu1 %v9545_v2  ;;  %2608 = vmatprep.mubr.bf16.mxu0 %v9545_v2  ;;  %v2380_v14 = vld [vmem:[%s7684_s25 + $0xcb] sm:$0xff]  ;;  %v339_v16 = vpack.c.bf16 %v297_v13, %v296_v12  ;;  %v7989_v12 = vld [vmem:[%s7684_s25 + $0x74] sm:$0xff] }
  0x49   : > { %3150 = vmatpush1.bf16.msra.mxu0 %v7394_v15  ;;  %856 = vmatpush1.bf16.msra.mxu1 %v7412_v37  ;;  %v2381_v15 = vld [vmem:[%s7684_s25 + $0xd3] sm:$0xff]  ;;  %v7417_v38 = vld [vmem:[%s9542_s1 + $0x324] ss:$8 sps:$4 sm:$0xff]  }
  0x4a   : > { %3151 = vmatprep.subr.bf16.mxu0 %v7399_v17  ;;  %857 = vmatprep.subr.bf16.mxu1 %v7420_v58  ;;  %v2423_v17 = vpack.c.bf16 %v2381_v15, %v2380_v14  ;;  %v7409_v37 = vld [vmem:[%s9542_s1 + $0x310] ss:$8 sps:$4 sm:$0xff]  }
  0x4b   : > { %v314_v15 = vld [vmem:[%s7684_s25 + $0x151] sm:$0xff] }
  0x4d   : > { %3152 = vmatpush1.bf16.msra.mxu0 %v7397_v23  ;;  %858 = vmatpush1.bf16.msra.mxu1 %v7418_v57  ;;  %v340_v23 = vpack.c.bf16 %v299_v20, %v298_v18  ;;  %v7433_v57 = vld [vmem:[%s9542_s1 + $0x350] ss:$8 sps:$4 sm:$0xff]   ;;  %v8007_v20 = vld [vmem:[%s7684_s25 + $0x84] sm:$0xff] }
  0x4e   : > { %3738 = vmatprep.subr.bf16.mxu0 %v7405_v24  ;;  %1334 = vmatprep.subr.bf16.mxu1 %v7426_v19  ;;  %v2424_v24 = vpack.c.bf16 %v2383_v22, %v2382_v21  ;;  %v315_v18 = vld [vmem:[%s7684_s25 + $0x159] sm:$0xff] }
  0x4f   : > { %525 = vmatmul.mubr.bf16.gmra.mrb[16].mxu1 %v331_v25  ;;  %2609 = vmatmul.mubr.bf16.gmra.mrb[16].mxu0 %v2415_v26  ;;  %v300_v25 = vld [vmem:[%s7684_s25 + $0xe1] sm:$0xff]  ;;  %v301_v26 = vld [vmem:[%s7684_s25 + $0xe9] sm:$0xff]  ;;  %v348_v21 = vpack.c.bf16 %v315_v18, %v314_v15  ;;  %v7432_v18 = vld [vmem:[%s9542_s1 + $0x114] ss:$8 sps:$4 sm:$0xff]  }
  0x50   : > { %534 = vmatprep.mubr.bf16.mxu1 %v9545_v2  ;;  %2618 = vmatprep.mubr.bf16.mxu0 %v9545_v2  ;;  %v341_v29 = vpack.c.bf16 %v301_v26, %v300_v25  ;;  %v8004_v19 = vld [vmem:[%s7684_s25 + $0x7c] sm:$0xff]  ;;  %v8016_v25 = vld [vmem:[%s7684_s25 + $0x8c] sm:$0xff]  ;;  %v8019_v26 = vld [vmem:[%s7684_s25 + $0x94] sm:$0xff] }
  0x51   : > { %v3019_v22 = vpack.c.bf16 %v8007_v20, %v8004_v19 }
  0x57   : > { %535 = vmatmul.mubr.bf16.gmra.mrb[20].mxu1 %v332_v33  ;;  %2619 = vmatmul.mubr.bf16.gmra.mrb[20].mxu0 %v2416_v34  ;;  %v302_v33 = vld [vmem:[%s7684_s25 + $0xf1] sm:$0xff]  ;;  %v303_v34 = vld [vmem:[%s7684_s25 + $0xf9] sm:$0xff] }
  0x58   : > { %544 = vmatprep.mubr.bf16.mxu1 %v9545_v2  ;;  %2628 = vmatprep.mubr.bf16.mxu0 %v9545_v2  ;;  %v342_v39 = vpack.c.bf16 %v303_v34, %v302_v33  ;;  %v8031_v33 = vld [vmem:[%s7684_s25 + $0xa4] sm:$0xff] }
  0x5f   : > { %545 = vmatmul.mubr.bf16.gmra.mrb[24].mxu1 %v333_v41  ;;  %2629 = vmatmul.mubr.bf16.gmra.mrb[24].mxu0 %v2417_v42  ;;  %v7415_v41 = vld [vmem:[%s9542_s1 + $0x320] ss:$8 sps:$4 sm:$0xff]   ;;  %v7423_v42 = vld [vmem:[%s9542_s1 + $0x334] ss:$8 sps:$4 sm:$0xff]  }
  0x60   : > { %554 = vmatprep.mubr.bf16.mxu1 %v9545_v2  ;;  %2638 = vmatprep.mubr.bf16.mxu0 %v9545_v2 }
  0x67   : > { %555 = vmatmul.mubr.bf16.gmra.mrb[28].mxu1 %v334_v47  ;;  %2639 = vmatmul.mubr.bf16.gmra.mrb[28].mxu0 %v2418_v48  ;;  %v7421_v47 = vld [vmem:[%s9542_s1 + $0x330] ss:$8 sps:$4 sm:$0xff]   ;;  %v7429_v48 = vld [vmem:[%s9542_s1 + $0x344] ss:$8 sps:$4 sm:$0xff]  }
  0x68   : > { %564 = vmatprep.mubr.bf16.mxu1 %v9545_v2  ;;  %2648 = vmatprep.mubr.bf16.mxu0 %v9545_v2 }
  0x6f   : > { %565 = vmatmul.mubr.bf16.gmra.mrb[32].mxu1 %v335_v53  ;;  %2649 = vmatmul.mubr.bf16.gmra.mrb[32].mxu0 %v2419_v54  ;;  %v7435_v53 = vld [vmem:[%s9542_s1 + $0x354] ss:$8 sps:$4 sm:$0xff]  }
  0x70   : > { %574 = vmatprep.mubr.bf16.mxu1 %v9545_v2  ;;  %2658 = vmatprep.mubr.bf16.mxu0 %v9545_v2  ;;  %v307_v54 = vld [vmem:[%s7684_s25 + $0x119] sm:$0xff] }
  0x71   : > { %v344_v58 = vpack.c.bf16 %v307_v54, %v306_v52  ;;  %v324_v54 = vld [vmem:[%s7684_s25 + $0x1a1] sm:$0xff] }
  0x77   : > { %575 = vmatmul.mubr.bf16.gmra.mrb[36].mxu1 %v336_v61  ;;  %2659 = vmatmul.mubr.bf16.gmra.mrb[36].mxu0 %v2420_v62  ;;  %v309_v61 = vld [vmem:[%s7684_s25 + $0x129] sm:$0xff] }
  0x78   : > { %584 = vmatprep.mubr.bf16.mxu1 %v9545_v2  ;;  %2668 = vmatprep.mubr.bf16.mxu0 %v9545_v2  ;;  %v7962_v62 = vld [vmem:[%s7684_s25 + $0x4c] sm:$0xff]  ;;  %v345_v0 = vpack.c.bf16 %v309_v61, %v308_v60 }
  0x79   : > { %v3016_v1 = vpack.c.bf16 %v7965_v63, %v7962_v62 }
  0x7f   : > { %585 = vmatmul.mubr.bf16.gmra.mrb[40].mxu1 %v337_v4  ;;  %2669 = vmatmul.mubr.bf16.gmra.mrb[40].mxu0 %v2421_v5  ;;  %v311_v4 = vld [vmem:[%s7684_s25 + $0x139] sm:$0xff] }
  0x80   : > { %594 = vmatprep.mubr.bf16.mxu1 %v9545_v2  ;;  %2678 = vmatprep.mubr.bf16.mxu0 %v9545_v2  ;;  %v7974_v5 = vld [vmem:[%s7684_s25 + $0x5c] sm:$0xff]  ;;  %v346_v7 = vpack.c.bf16 %v311_v4, %v310_v3  ;;  %v8084_v3 = vld [vmem:[%s7684_s25 + $0xe4] sm:$0xff] }
  0x81   : > { %v3017_v8 = vpack.c.bf16 %v7977_v6, %v7974_v5 }
  0x87   : > { %595 = vmatmul.mubr.bf16.gmra.mrb[44].mxu1 %v338_v10  ;;  %2679 = vmatmul.mubr.bf16.gmra.mrb[44].mxu0 %v2422_v11  ;;  %v313_v10 = vld [vmem:[%s7684_s25 + $0x149] sm:$0xff] }
  0x88   : > { %604 = vmatprep.mubr.bf16.mxu1 %v9545_v2  ;;  %2688 = vmatprep.mubr.bf16.mxu0 %v9545_v2  ;;  %v7986_v11 = vld [vmem:[%s7684_s25 + $0x6c] sm:$0xff]  ;;  %v347_v13 = vpack.c.bf16 %v313_v10, %v312_v9 }
  0x89   : > { %v3018_v14 = vpack.c.bf16 %v7989_v12, %v7986_v11  ;;  %v7453_v9 = vld [vmem:[%s9542_s1 + $0x384] ss:$8 sps:$4 sm:$0xff]  }
  0x8a   : > { %v174_v10 = vld [vmem:[%s7684_s25 + $0x8] sm:$0xff] }
  0x8f   : > { %605 = vmatmul.mubr.bf16.gmra.mrb[48].mxu1 %v339_v16  ;;  %2689 = vmatmul.mubr.bf16.gmra.mrb[48].mxu0 %v2423_v17  ;;  %v7439_v16 = vld [vmem:[%s9542_s1 + $0x360] ss:$8 sps:$4 sm:$0xff]   ;;  %v7441_v17 = vld [vmem:[%s9542_s1 + $0x364] ss:$8 sps:$4 sm:$0xff]  }
  0x90   : > { %614 = vmatprep.mubr.bf16.mxu1 %v9545_v2  ;;  %2698 = vmatprep.mubr.bf16.mxu0 %v9545_v2 }
  0x97   : > { %615 = vmatmul.mubr.bf16.gmra.mrb[52].mxu1 %v340_v23  ;;  %2699 = vmatmul.mubr.bf16.gmra.mrb[52].mxu0 %v2424_v24  ;;  %v316_v23 = vld [vmem:[%s7684_s25 + $0x161] sm:$0xff]  ;;  %v317_v24 = vld [vmem:[%s7684_s25 + $0x169] sm:$0xff] }
  0x98   : > { %624 = vmatprep.mubr.bf16.mxu1 %v9545_v2  ;;  %3169 = vmatprep.mubr.bf16.mxu0 %v9545_v2  ;;  %v349_v27 = vpack.c.bf16 %v317_v24, %v316_v23  ;;  %v8113_v23 = vld [vmem:[%s7684_s25 + $0xfc] sm:$0xff]  ;;  %v8116_v24 = vld [vmem:[%s7684_s25 + $0x104] sm:$0xff] }
  0x9f   : > { %625 = vmatmul.mubr.bf16.gmra.mrb[56].mxu1 %v341_v29  ;;  %3170 = vmatmul.mubr.bf16.vlgmr.msra.gmra.mrb[0].mxu0 %v3012_v30  ;;  %v3020_v29 = vpack.c.bf16 %v8019_v26, %v8016_v25  ;;  %v318_v30 = vld [vmem:[%s7684_s25 + $0x171] sm:$0xff] }
  0xa0   : > { %634 = vmatprep.mubr.bf16.mxu1 %v9545_v2  ;;  %3179 = vmatprep.mubr.bf16.mxu0 %v9545_v2 }
  0xa1   : > { %3739 = vmatpush1.bf16.msra.mxu0 %v7403_v31  ;;  %v319_v31 = vld [vmem:[%s7684_s25 + $0x179] sm:$0xff] }
  0xa2   : > { %3740 = vmatprep.subr.bf16.mxu0 %v7411_v32  ;;  %v8028_v32 = vld [vmem:[%s7684_s25 + $0x9c] sm:$0xff]  ;;  %v350_v34 = vpack.c.bf16 %v319_v31, %v318_v30  ;;  %v3027_v31 = vpack.c.bf16 %v8116_v24, %v8113_v23 }
  0xa5   : > { %3741 = vmatpush1.bf16.msra.mxu0 %v7409_v37  ;;  %v3021_v37 = vpack.c.bf16 %v8031_v33, %v8028_v32 }
  0xa6   : > { %3742 = vmatprep.subr.bf16.mxu0 %v7417_v38  ;;  %v320_v38 = vld [vmem:[%s7684_s25 + $0x181] sm:$0xff] }
  0xa7   : > { %635 = vmatmul.mubr.bf16.gmra.mrb[60].mxu1 %v342_v39  ;;  %3180 = vmatmul.mubr.bf16.gmra.mrb[4].mxu0 %v3013_v40  ;;  %v7445_v39 = vld [vmem:[%s9542_s1 + $0x370] ss:$8 sps:$4 sm:$0xff]   ;;  %v7447_v40 = vld [vmem:[%s9542_s1 + $0x374] ss:$8 sps:$4 sm:$0xff]  }
  0xa8   : > { %644 = vmatprep.mubr.bf16.mxu1 %v9545_v2  ;;  %3189 = vmatprep.mubr.bf16.mxu0 %v9545_v2 }
  0xa9   : > { %3743 = vmatpush1.bf16.msra.mxu0 %v7415_v41  ;;  %v321_v41 = vld [vmem:[%s7684_s25 + $0x189] sm:$0xff] }
  0xaa   : > { %3744 = vmatprep.subr.bf16.mxu0 %v7423_v42  ;;  %v8046_v42 = vld [vmem:[%s7684_s25 + $0xac] sm:$0xff]  ;;  %v351_v44 = vpack.c.bf16 %v321_v41, %v320_v38  ;;  %v177_v38 = vld [vmem:[%s7684_s25 + $0x20] sm:$0xff]  ;;  %v8141_v41 = vld [vmem:[%s7684_s25 + $0x114] sm:$0xff] }
  0xad   : > { %3745 = vmatpush1.bf16.msra.mxu0 %v7421_v47  ;;  %v3022_v47 = vpack.c.bf16 %v8049_v43, %v8046_v42 }
  0xae   : > { %3746 = vmatprep.subr.bf16.mxu0 %v7429_v48  ;;  %v322_v48 = vld [vmem:[%s7684_s25 + $0x191] sm:$0xff] }
  0xaf   : > { %645 = vmatmul.mubr.bf16.gmra.mrb[64].mxu1 %v343_v49  ;;  %3190 = vmatmul.mubr.bf16.gmra.mrb[8].mxu0 %v3014_v50  ;;  %v323_v49 = vld [vmem:[%s7684_s25 + $0x199] sm:$0xff] }
  0xb0   : > { %654 = vmatprep.mubr.bf16.mxu1 %v9545_v2  ;;  %3199 = vmatprep.mubr.bf16.mxu0 %v9545_v2  ;;  %v8058_v50 = vld [vmem:[%s7684_s25 + $0xbc] sm:$0xff]  ;;  %v352_v52 = vpack.c.bf16 %v323_v49, %v322_v48 }
  0xb1   : > { %3747 = vmatpush1.bf16.msra.mxu0 %v7427_v51  ;;  %v8061_v51 = vld [vmem:[%s7684_s25 + $0xc4] sm:$0xff] }
  0xb2   : > { %3748 = vmatprep.subr.bf16.mxu0 %v7435_v53  ;;  %v3023_v53 = vpack.c.bf16 %v8061_v51, %v8058_v50 }
  0xb5   : > { %3749 = vmatpush1.bf16.msra.mxu0 %v7433_v57  ;;  %v325_v57 = vld [vmem:[%s7684_s25 + $0x1a9] sm:$0xff] }
  0xb6   : > { %3750 = vmatprep.subr.bf16.mxu0 %v7441_v17  ;;  %v353_v60 = vpack.c.bf16 %v325_v57, %v324_v54  ;;  %v7424_v17 = vld [vmem:[%s9542_s1 + $0x100] ss:$8 sps:$4 sm:$0xff]   ;;  %v179_v54 = vld [vmem:[%s7684_s25 + $0x30] sm:$0xff]  ;;  %v180_v57 = vld [vmem:[%s7684_s25 + $0x38] sm:$0xff] }
  0xb7   : > { %655 = vmatmul.mubr.bf16.gmra.mrb[68].mxu1 %v344_v58  ;;  %3200 = vmatmul.mubr.bf16.gmra.mrb[12].mxu0 %v3015_v59  ;;  %v8070_v58 = vld [vmem:[%s7684_s25 + $0xcc] sm:$0xff]  ;;  %v8073_v59 = vld [vmem:[%s7684_s25 + $0xd4] sm:$0xff] }
  0xb8   : > { %664 = vmatprep.mubr.bf16.mxu1 %v9545_v2  ;;  %3209 = vmatprep.mubr.bf16.mxu0 %v9545_v2  ;;  %v3024_v61 = vpack.c.bf16 %v8073_v59, %v8070_v58 }
  0xb9   : > { %3751 = vmatpush1.bf16.msra.mxu0 %v7439_v16 }
  0xba   : > { %3752 = vmatprep.subr.bf16.mxu0 %v7447_v40  ;;  %v8138_v40 = vld [vmem:[%s7684_s25 + $0x10c] sm:$0xff] }
  0xbb   : > { %v3028_v49 = vpack.c.bf16 %v8141_v41, %v8138_v40 }
  0xbd   : > { %3753 = vmatpush1.bf16.msra.mxu0 %v7445_v39  ;;  %v178_v39 = vld [vmem:[%s7684_s25 + $0x28] sm:$0xff] }
  0xbe   : > { %4339 = vmatprep.subr.bf16.mxu0 %v7453_v9  ;;  %v230_v48 = vpack.c.bf16 %v178_v39, %v177_v38  ;;  %v182_v9 = vld [vmem:[%s7684_s25 + $0x48] sm:$0xff] }
  0xbf   : > { %665 = vmatmul.mubr.bf16.gmra.mrb[72].mxu1 %v345_v0  ;;  %3210 = vmatmul.mubr.bf16.gmra.mrb[16].mxu0 %v3016_v1  ;;  %v326_v0 = vld [vmem:[%s7684_s25 + $0x1b1] sm:$0xff]  ;;  %v8081_v1 = vld [vmem:[%s7684_s25 + $0xdc] sm:$0xff]  ;;  %v186_v38 = vld [vmem:[%s7684_s25 + $0x68] sm:$0xff] }
  0xc0   : > { %674 = vmatprep.mubr.bf16.mxu1 %v9545_v2  ;;  %3219 = vmatprep.mubr.bf16.mxu0 %v9545_v2  ;;  %v354_v4 = vpack.c.bf16 %v326_v0, %v326_v0  ;;  %v7454_v0 = vld [vmem:[%s9542_s1 + $0x150] ss:$8 sps:$4 sm:$0xff]  }
  0xc1   : > { %v8207_v39 = vld [vmem:[%s7684_s25 + $0x14c] sm:$0xff] }
  0xc7   : > { %675 = vmatmul.mubr.bf16.gmra.mrb[76].mxu1 %v346_v7  ;;  %3220 = vmatmul.mubr.bf16.gmra.mrb[20].mxu0 %v3017_v8  ;;  %v3025_v7 = vpack.c.bf16 %v8084_v3, %v8081_v1  ;;  %v173_v8 = vld [vmem:[%s7684_s25] sm:$0xff] }
  0xc8   : > { %684 = vmatprep.mubr.bf16.mxu1 %v9545_v2  ;;  %3229 = vmatprep.mubr.bf16.mxu0 %v9545_v2  ;;  %v228_v15 = vpack.c.bf16 %v174_v10, %v173_v8  ;;  %v181_v8 = vld [vmem:[%s7684_s25 + $0x40] sm:$0xff]  ;;  %v8177_v10 = vld [vmem:[%s7684_s25 + $0x12c] sm:$0xff] }
  0xcf   : > { %685 = vmatmul.mubr.bf16.gmra.mrb[80].mxu1 %v347_v13  ;;  %3230 = vmatmul.mubr.bf16.gmra.mrb[24].mxu0 %v3018_v14  ;;  %v8096_v13 = vld [vmem:[%s7684_s25 + $0xec] sm:$0xff]  ;;  %v8099_v14 = vld [vmem:[%s7684_s25 + $0xf4] sm:$0xff] }
  0xd0   : > { %694 = vmatprep.mubr.bf16.mxu1 %v9545_v2  ;;  %3239 = vmatprep.mubr.bf16.mxu0 %v9545_v2  ;;  %v3026_v16 = vpack.c.bf16 %v8099_v14, %v8096_v13 }
  0xd7   : > { %695 = vmatmul.mubr.bf16.gmra.mrb[84].mxu1 %v348_v21  ;;  %3240 = vmatmul.mubr.bf16.gmra.mrb[28].mxu0 %v3019_v22  ;;  %v175_v21 = vld [vmem:[%s7684_s25 + $0x10] sm:$0xff]  ;;  %v176_v22 = vld [vmem:[%s7684_s25 + $0x18] sm:$0xff] }
  0xd8   : > { %704 = vmatprep.mubr.bf16.mxu1 %v9545_v2  ;;  %3249 = vmatprep.mubr.bf16.mxu0 %v9545_v2  ;;  %v229_v30 = vpack.c.bf16 %v176_v22, %v175_v21  ;;  %v184_v21 = vld [vmem:[%s7684_s25 + $0x58] sm:$0xff] }
  0xd9   : > { %v8189_v22 = vld [vmem:[%s7684_s25 + $0x13c] sm:$0xff] }
  0xdf   : > { %705 = vmatmul.mubr.bf16.gmra.mrb[88].mxu1 %v349_v27  ;;  %3250 = vmatmul.mubr.bf16.gmra.mrb[32].mxu0 %v3020_v29  ;;  %v7430_v27 = vld [vmem:[%s9542_s1 + $0x110] ss:$8 sps:$4 sm:$0xff]   ;;  %v7438_v29 = vld [vmem:[%s9542_s1 + $0x124] ss:$8 sps:$4 sm:$0xff]  }
  0xe0   : > { %714 = vmatprep.mubr.bf16.mxu1 %v9545_v2  ;;  %3259 = vmatprep.mubr.bf16.mxu0 %v9545_v2 }
  0xe7   : > { %715 = vmatmul.mubr.bf16.gmra.mrb[92].mxu1 %v350_v34  ;;  %3260 = vmatmul.mubr.bf16.gmra.mrb[36].mxu0 %v3021_v37  ;;  %v7436_v34 = vld [vmem:[%s9542_s1 + $0x120] ss:$8 sps:$4 sm:$0xff]   ;;  %v7444_v37 = vld [vmem:[%s9542_s1 + $0x134] ss:$8 sps:$4 sm:$0xff]  }
  0xe8   : > { %724 = vmatprep.mubr.bf16.mxu1 %v9545_v2  ;;  %3269 = vmatprep.mubr.bf16.mxu0 %v9545_v2 }
  0xef   : > { %725 = vmatmul.mubr.bf16.gmra.mrb[96].mxu1 %v351_v44  ;;  %3270 = vmatmul.mubr.bf16.gmra.mrb[40].mxu0 %v3022_v47  ;;  %v7442_v44 = vld [vmem:[%s9542_s1 + $0x130] ss:$8 sps:$4 sm:$0xff]   ;;  %v7450_v47 = vld [vmem:[%s9542_s1 + $0x144] ss:$8 sps:$4 sm:$0xff]  }
  0xf0   : > { %734 = vmatprep.mubr.bf16.mxu1 %v9545_v2  ;;  %3279 = vmatprep.mubr.bf16.mxu0 %v9545_v2 }
  0xf7   : > { %735 = vmatmul.mubr.bf16.gmra.mrb[100].mxu1 %v352_v52  ;;  %3280 = vmatmul.mubr.bf16.gmra.mrb[44].mxu0 %v3023_v53  ;;  %v7448_v52 = vld [vmem:[%s9542_s1 + $0x140] ss:$8 sps:$4 sm:$0xff]   ;;  %v7456_v53 = vld [vmem:[%s9542_s1 + $0x154] ss:$8 sps:$4 sm:$0xff]  }
  0xf8   : > { %744 = vmatprep.mubr.bf16.mxu1 %v9545_v2  ;;  %3289 = vmatprep.mubr.bf16.mxu0 %v9545_v2 }
  0xff   : > { %745 = vmatmul.mubr.bf16.gmra.mrb[104].mxu1 %v353_v60  ;;  %3290 = vmatmul.mubr.bf16.gmra.mrb[48].mxu0 %v3024_v61  ;;  %v8162_v60 = vld [vmem:[%s7684_s25 + $0x11c] sm:$0xff]  ;;  %v8165_v61 = vld [vmem:[%s7684_s25 + $0x124] sm:$0xff] }
 0x100   : > { %754 = vmatprep.mubr.bf16.mxu1 %v9545_v2  ;;  %3299 = vmatprep.mubr.bf16.mxu0 %v9545_v2 }
 0x107   : > { %755 = vmatmul.mubr.bf16.gmra.mrb[108].mxu1 %v354_v4  ;;  %3300 = vmatmul.mubr.bf16.gmra.mrb[52].mxu0 %v3025_v7  ;;  %v231_v4 = vpack.c.bf16 %v180_v57, %v179_v54  ;;  %v3029_v7 = vpack.c.bf16 %v8165_v61, %v8162_v60  ;;  %v8222_v54 = vld [vmem:[%s7684_s25 + $0x164] sm:$0xff] }
 0x108   : > { %875 = vmatprep.mubr.bf16.mxu1 %v9545_v2  ;;  %3309 = vmatprep.mubr.bf16.mxu0 %v9545_v2 }
 0x10f   : > { %876 = vmatmul.mubr.bf16.vlgmr.msra.gmra.mrb[0].mxu1 %v228_v15  ;;  %3310 = vmatmul.mubr.bf16.gmra.mrb[56].mxu0 %v3026_v16  ;;  %v8180_v15 = vld [vmem:[%s7684_s25 + $0x134] sm:$0xff]  ;;  %v232_v16 = vpack.c.bf16 %v182_v9, %v181_v8  ;;  %v8231_v8 = vld [vmem:[%s7684_s25 + $0x16c] sm:$0xff] }
 0x110   : > { %1335 = vmatpush1.bf16.msra.mxu1 %v7424_v17  ;;  %885 = vmatprep.mubr.bf16.mxu1 %v9545_v2  ;;  %v3030_v17 = vpack.c.bf16 %v8180_v15, %v8177_v10  ;;  %v8234_v9 = vld [vmem:[%s7684_s25 + $0x174] sm:$0xff] }
 0x111   : > { %3319 = vmatprep.mubr.bf16.mxu0 %v9545_v2  ;;  %1336 = vmatprep.subr.bf16.mxu1 %v7432_v18  ;;  %v183_v18 = vld [vmem:[%s7684_s25 + $0x50] sm:$0xff] }
 0x114   : > { %1337 = vmatpush1.bf16.msra.mxu1 %v7430_v27  ;;  %v8192_v27 = vld [vmem:[%s7684_s25 + $0x144] sm:$0xff] }
 0x115   : > { %1338 = vmatprep.subr.bf16.mxu1 %v7438_v29  ;;  %v233_v29 = vpack.c.bf16 %v184_v21, %v183_v18  ;;  %v191_v18 = vld [vmem:[%s7684_s25 + $0x90] sm:$0xff] }
 0x116   : > { %v7466_v21 = vld [vmem:[%s9542_s1 + $0x170] ss:$8 sps:$4 sm:$0xff]  }
 0x117   : > { %886 = vmatmul.mubr.bf16.gmra.mrb[4].mxu1 %v229_v30  ;;  %3320 = vmatmul.mubr.bf16.gmra.mrb[60].mxu0 %v3027_v31  ;;  %v3031_v30 = vpack.c.bf16 %v8192_v27, %v8189_v22  ;;  %v185_v31 = vld [vmem:[%s7684_s25 + $0x60] sm:$0xff] }
 0x118   : > { %895 = vmatprep.mubr.bf16.mxu1 %v9545_v2  ;;  %3329 = vmatprep.mubr.bf16.mxu0 %v9545_v2 }
 0x119   : > { %1339 = vmatpush1.bf16.msra.mxu1 %v7436_v34  ;;  %v7460_v34 = vld [vmem:[%s9542_s1 + $0x160] ss:$8 sps:$4 sm:$0xff]  }
 0x11a   : > { %1340 = vmatprep.subr.bf16.mxu1 %v7444_v37  ;;  %v7462_v37 = vld [vmem:[%s9542_s1 + $0x164] ss:$8 sps:$4 sm:$0xff]  }
 0x11d   : > { %1341 = vmatpush1.bf16.msra.mxu1 %v7442_v44  ;;  %v8210_v44 = vld [vmem:[%s7684_s25 + $0x154] sm:$0xff] }
 0x11e   : > { %1342 = vmatprep.subr.bf16.mxu1 %v7450_v47  ;;  %v234_v47 = vpack.c.bf16 %v186_v38, %v185_v31  ;;  %v8249_v31 = vld [vmem:[%s7684_s25 + $0x17c] sm:$0xff] }
 0x11f   : > { %896 = vmatmul.mubr.bf16.gmra.mrb[8].mxu1 %v230_v48  ;;  %3330 = vmatmul.mubr.bf16.gmra.mrb[64].mxu0 %v3028_v49  ;;  %v3032_v48 = vpack.c.bf16 %v8210_v44, %v8207_v39  ;;  %v187_v49 = vld [vmem:[%s7684_s25 + $0x70] sm:$0xff] }
 0x120   : > { %905 = vmatprep.mubr.bf16.mxu1 %v9545_v2  ;;  %3339 = vmatprep.mubr.bf16.mxu0 %v9545_v2 }
 0x121   : > { %1343 = vmatpush1.bf16.msra.mxu1 %v7448_v52  ;;  %v188_v52 = vld [vmem:[%s7684_s25 + $0x78] sm:$0xff] }
 0x122   : > { %1344 = vmatprep.subr.bf16.mxu1 %v7456_v53  ;;  %v8219_v53 = vld [vmem:[%s7684_s25 + $0x15c] sm:$0xff]  ;;  %v235_v57 = vpack.c.bf16 %v188_v52, %v187_v49  ;;  %v8261_v49 = vld [vmem:[%s7684_s25 + $0x18c] sm:$0xff]  ;;  %v8264_v52 = vld [vmem:[%s7684_s25 + $0x194] sm:$0xff] }
 0x125   : > { %1345 = vmatpush1.bf16.msra.mxu1 %v7454_v0  ;;  %v3033_v0 = vpack.c.bf16 %v8222_v54, %v8219_v53 }
 0x126   : > { %1346 = vmatprep.subr.bf16.mxu1 %v7462_v37 }
 0x127   : > { %906 = vmatmul.mubr.bf16.gmra.mrb[12].mxu1 %v231_v4  ;;  %3340 = vmatmul.mubr.bf16.gmra.mrb[68].mxu0 %v3029_v7  ;;  %v189_v4 = vld [vmem:[%s7684_s25 + $0x80] sm:$0xff]  ;;  %v190_v7 = vld [vmem:[%s7684_s25 + $0x88] sm:$0xff] }
 0x128   : > { %915 = vmatprep.mubr.bf16.mxu1 %v9545_v2  ;;  %3349 = vmatprep.mubr.bf16.mxu0 %v9545_v2 }
 0x129   : > { %1347 = vmatpush1.bf16.msra.mxu1 %v7460_v34  ;;  %v8252_v34 = vld [vmem:[%s7684_s25 + $0x184] sm:$0xff] }
 0x12a   : > { %v3035_v38 = vpack.c.bf16 %v8252_v34, %v8249_v31 }
 0x12f   : > { %916 = vmatmul.mubr.bf16.gmra.mrb[16].mxu1 %v232_v16  ;;  %3350 = vmatmul.mubr.bf16.gmra.mrb[72].mxu0 %v3030_v17  ;;  %v236_v16 = vpack.c.bf16 %v190_v7, %v189_v4  ;;  %v3034_v17 = vpack.c.bf16 %v8234_v9, %v8231_v8  ;;  %v195_v4 = vld [vmem:[%s7684_s25 + $0xb0] sm:$0xff]  ;;  %v196_v7 = vld [vmem:[%s7684_s25 + $0xb8] sm:$0xff] }
 0x130   : > { %925 = vmatprep.mubr.bf16.mxu1 %v9545_v2  ;;  %3359 = vmatprep.mubr.bf16.mxu0 %v9545_v2 }
 0x137   : > { %926 = vmatmul.mubr.bf16.gmra.mrb[20].mxu1 %v233_v29  ;;  %3360 = vmatmul.mubr.bf16.gmra.mrb[76].mxu0 %v3031_v30  ;;  %v7468_v29 = vld [vmem:[%s9542_s1 + $0x174] ss:$8 sps:$4 sm:$0xff]  }
 0x138   : > { %935 = vmatprep.mubr.bf16.mxu1 %v9545_v2  ;;  %3369 = vmatprep.mubr.bf16.mxu0 %v9545_v2  ;;  %v192_v30 = vld [vmem:[%s7684_s25 + $0x98] sm:$0xff] }
 0x139   : > { %1348 = vmatprep.subr.bf16.mxu1 %v7468_v29  ;;  %v237_v37 = vpack.c.bf16 %v192_v30, %v191_v18  ;;  %v239_v18 = vpack.c.bf16 %v196_v7, %v195_v4  ;;  %v197_v29 = vld [vmem:[%s7684_s25 + $0xc0] sm:$0xff]  ;;  %v198_v30 = vld [vmem:[%s7684_s25 + $0xc8] sm:$0xff]  ;;  %v200_v4 = vld [vmem:[%s7684_s25 + $0xd8] sm:$0xff] }
 0x13a   : > { %1349 = vmatpush1.bf16.msra.mxu1 %v7466_v21  ;;  %v8300_v7 = vld [vmem:[%s7684_s25 + $0x1bc] sm:$0xff] }
 0x13f   : > { %936 = vmatmul.mubr.bf16.gmra.mrb[24].mxu1 %v234_v47  ;;  %3370 = vmatmul.mubr.bf16.gmra.mrb[80].mxu0 %v3032_v48  ;;  %v193_v47 = vld [vmem:[%s7684_s25 + $0xa0] sm:$0xff]  ;;  %v194_v48 = vld [vmem:[%s7684_s25 + $0xa8] sm:$0xff] }
 0x140   : > { %945 = vmatprep.mubr.bf16.mxu1 %v9545_v2  ;;  %3379 = vmatprep.mubr.bf16.mxu0 %v9545_v2 }
 0x147   : > { %946 = vmatmul.mubr.bf16.gmra.mrb[28].mxu1 %v235_v57  ;;  %3380 = vmatmul.mubr.bf16.gmra.mrb[84].mxu0 %v3033_v0  ;;  %v238_v57 = vpack.c.bf16 %v194_v48, %v193_v47  ;;  %v3036_v0 = vpack.c.bf16 %v8264_v52, %v8261_v49  ;;  %v240_v47 = vpack.c.bf16 %v198_v30, %v197_v29  ;;  %v201_v29 = vld [vmem:[%s7684_s25 + $0xe0] sm:$0xff]  ;;  %v202_v30 = vld [vmem:[%s7684_s25 + $0xe8] sm:$0xff] }
 0x148   : > { %955 = vmatprep.mubr.bf16.mxu1 %v9545_v2  ;;  %3389 = vmatprep.mubr.bf16.mxu0 %v9545_v2 }
 0x14f   : > { %956 = vmatmul.mubr.bf16.gmra.mrb[32].mxu1 %v236_v16  ;;  %3390 = vmatmul.mubr.bf16.gmra.mrb[88].mxu0 %v3034_v17  ;;  %v8273_v16 = vld [vmem:[%s7684_s25 + $0x19c] sm:$0xff]  ;;  %v8276_v17 = vld [vmem:[%s7684_s25 + $0x1a4] sm:$0xff] }
 0x150   : > { %965 = vmatprep.mubr.bf16.mxu1 %v9545_v2  ;;  %3399 = vmatprep.mubr.bf16.mxu0 %v9545_v2  ;;  %v3037_v21 = vpack.c.bf16 %v8276_v17, %v8273_v16 }
 0x157   : > { %966 = vmatmul.mubr.bf16.gmra.mrb[36].mxu1 %v237_v37  ;;  %3400 = vmatmul.mubr.bf16.gmra.mrb[92].mxu0 %v3035_v38  ;;  %v8285_v37 = vld [vmem:[%s7684_s25 + $0x1ac] sm:$0xff]  ;;  %v8288_v38 = vld [vmem:[%s7684_s25 + $0x1b4] sm:$0xff] }
 0x158   : > { %975 = vmatprep.mubr.bf16.mxu1 %v9545_v2  ;;  %3409 = vmatprep.mubr.bf16.mxu0 %v9545_v2  ;;  %v3038_v48 = vpack.c.bf16 %v8288_v38, %v8285_v37 }
 0x15f   : > { %976 = vmatmul.mubr.bf16.gmra.mrb[40].mxu1 %v238_v57  ;;  %3410 = vmatmul.mubr.bf16.gmra.mrb[96].mxu0 %v3036_v0  ;;  %v7474_v57 = vld [vmem:[%s9542_s1 + $0x184] ss:$8 sps:$4 sm:$0xff]   ;;  %v199_v0 = vld [vmem:[%s7684_s25 + $0xd0] sm:$0xff] }
 0x160   : > { %985 = vmatprep.mubr.bf16.mxu1 %v9545_v2  ;;  %3419 = vmatprep.mubr.bf16.mxu0 %v9545_v2 }
 0x161   : > { %1935 = vmatprep.subr.bf16.mxu1 %v7474_v57  ;;  %v7451_v57 = vld [vmem:[%s9542_s1 + $0x380] ss:$8 sps:$4 sm:$0xff]  }
 0x167   : > { %986 = vmatmul.mubr.bf16.gmra.mrb[44].mxu1 %v239_v18  ;;  %3420 = vmatmul.mubr.bf16.gmra.mrb[100].mxu0 %v3037_v21  ;;  %v241_v18 = vpack.c.bf16 %v200_v4, %v199_v0  ;;  %v3039_v21 = vpack.c.bf16 %v8300_v7, %v8300_v7  ;;  %v7459_v0 = vld [vmem:[%s9542_s1 + $0x394] ss:$8 sps:$4 sm:$0xff]  }
 0x168   : > { %995 = vmatprep.mubr.bf16.mxu1 %v9545_v2  ;;  %3429 = vmatprep.mubr.bf16.mxu0 %v9545_v2  ;;  %v203_v4 = vld [vmem:[%s7684_s25 + $0xf0] sm:$0xff] }
 0x16f   : > { %996 = vmatmul.mubr.bf16.gmra.mrb[48].mxu1 %v240_v47  ;;  %3430 = vmatmul.mubr.bf16.gmra.mrb[104].mxu0 %v3038_v48  ;;  %v242_v47 = vpack.c.bf16 %v202_v30, %v201_v29  ;;  %v3613_v48 = vpack.c.bf16 %v7899_v35, %v7885_v28  ;;  %v7457_v28 = vld [vmem:[%s9542_s1 + $0x390] ss:$8 sps:$4 sm:$0xff]   ;;  %v7465_v35 = vld [vmem:[%s9542_s1 + $0x3a4] ss:$8 sps:$4 sm:$0xff]   ;;  %v3614_v29 = vpack.c.bf16 %v7923_v45, %v7902_v36  ;;  %v7463_v30 = vld [vmem:[%s9542_s1 + $0x3a0] ss:$8 sps:$4 sm:$0xff]  }
 0x170   : > { %1005 = vmatprep.mubr.bf16.mxu1 %v9545_v2  ;;  %3439 = vmatprep.mubr.bf16.mxu0 %v9545_v2  ;;  %v7469_v36 = vld [vmem:[%s9542_s1 + $0x3b0] ss:$8 sps:$4 sm:$0xff]   ;;  %v7477_v45 = vld [vmem:[%s9542_s1 + $0x3c4] ss:$8 sps:$4 sm:$0xff]  }
 0x177   : > { %1006 = vmatmul.mubr.bf16.gmra.mrb[52].mxu1 %v241_v18  ;;  %3440 = vmatmul.mubr.bf16.gmra.mrb[108].mxu0 %v3039_v21  ;;  %v204_v18 = vld [vmem:[%s7684_s25 + $0xf8] sm:$0xff] }
 0x178   : > { %1015 = vmatprep.mubr.bf16.mxu1 %v9545_v2  ;;  %3770 = vmatprep.mubr.bf16.mxu0 %v9545_v2  ;;  %v243_v21 = vpack.c.bf16 %v204_v18, %v203_v4  ;;  %v3615_v4 = vpack.c.bf16 %v7947_v55, %v7926_v46  ;;  %v7475_v18 = vld [vmem:[%s9542_s1 + $0x3c0] ss:$8 sps:$4 sm:$0xff]   ;;  %v208_v46 = vld [vmem:[%s7684_s25 + $0x118] sm:$0xff] }
 0x179   : > { %v7481_v55 = vld [vmem:[%s9542_s1 + $0x3d0] ss:$8 sps:$4 sm:$0xff]  }
 0x17f   : > { %1016 = vmatmul.mubr.bf16.gmra.mrb[56].mxu1 %v242_v47  ;;  %3771 = vmatmul.mubr.bf16.vlgmr.msra.gmra.mrb[0].mxu0 %v3613_v48  ;;  %v7471_v47 = vld [vmem:[%s9542_s1 + $0x3b4] ss:$8 sps:$4 sm:$0xff]   ;;  %v205_v48 = vld [vmem:[%s7684_s25 + $0x100] sm:$0xff] }
 0x180   : > { %1025 = vmatprep.mubr.bf16.mxu1 %v9545_v2  ;;  %3780 = vmatprep.mubr.bf16.mxu0 %v9545_v2 }
 0x181   : > { %4340 = vmatpush1.bf16.msra.mxu0 %v7451_v57  ;;  %v206_v57 = vld [vmem:[%s7684_s25 + $0x108] sm:$0xff] }
 0x182   : > { %4341 = vmatprep.subr.bf16.mxu0 %v7459_v0  ;;  %v244_v0 = vpack.c.bf16 %v206_v57, %v205_v48  ;;  %v3617_v57 = vpack.c.bf16 %v7974_v5, %v7965_v63  ;;  %v213_v63 = vld [vmem:[%s7684_s25 + $0x140] sm:$0xff]  ;;  %v214_v5 = vld [vmem:[%s7684_s25 + $0x148] sm:$0xff] }
 0x185   : > { %4342 = vmatpush1.bf16.msra.mxu0 %v7457_v28  ;;  %v7483_v28 = vld [vmem:[%s9542_s1 + $0x3d4] ss:$8 sps:$4 sm:$0xff]  }
 0x186   : > { %4343 = vmatprep.subr.bf16.mxu0 %v7465_v35  ;;  %v207_v35 = vld [vmem:[%s7684_s25 + $0x110] sm:$0xff] }
 0x187   : > { %1026 = vmatmul.mubr.bf16.gmra.mrb[60].mxu1 %v243_v21  ;;  %3781 = vmatmul.mubr.bf16.gmra.mrb[4].mxu0 %v3614_v29  ;;  %v245_v21 = vpack.c.bf16 %v208_v46, %v207_v35  ;;  %v3616_v29 = vpack.c.bf16 %v7962_v62, %v7950_v56  ;;  %v211_v56 = vld [vmem:[%s7684_s25 + $0x130] sm:$0xff]  ;;  %v212_v62 = vld [vmem:[%s7684_s25 + $0x138] sm:$0xff]  ;;  %v217_v35 = vld [vmem:[%s7684_s25 + $0x160] sm:$0xff] }
 0x188   : > { %1035 = vmatprep.mubr.bf16.mxu1 %v9545_v2  ;;  %3790 = vmatprep.mubr.bf16.mxu0 %v9545_v2  ;;  %v218_v46 = vld [vmem:[%s7684_s25 + $0x168] sm:$0xff] }
 0x189   : > { %4344 = vmatpush1.bf16.msra.mxu0 %v7463_v30  ;;  %v209_v30 = vld [vmem:[%s7684_s25 + $0x120] sm:$0xff] }
 0x18a   : > { %4345 = vmatprep.subr.bf16.mxu0 %v7471_v47  ;;  %v210_v47 = vld [vmem:[%s7684_s25 + $0x128] sm:$0xff] }
 0x18b   : > { %v246_v48 = vpack.c.bf16 %v210_v47, %v209_v30  ;;  %v3622_v30 = vpack.c.bf16 %v8046_v42, %v8031_v33  ;;  %v221_v47 = vld [vmem:[%s7684_s25 + $0x180] sm:$0xff]  ;;  %v3623_v42 = vpack.c.bf16 %v8058_v50, %v8049_v43  ;;  %v226_v50 = vld [vmem:[%s7684_s25 + $0x1a8] sm:$0xff] }
 0x18c   : > { %v225_v43 = vld [vmem:[%s7684_s25 + $0x1a0] sm:$0xff] }
 0x18d   : > { %4346 = vmatpush1.bf16.msra.mxu0 %v7469_v36  ;;  %v247_v36 = vpack.c.bf16 %v212_v62, %v211_v56  ;;  %v224_v56 = vld [vmem:[%s7684_s25 + $0x198] sm:$0xff] }
 0x18e   : > { %4347 = vmatprep.subr.bf16.mxu0 %v7477_v45  ;;  %v3618_v45 = vpack.c.bf16 %v7986_v11, %v7977_v6  ;;  %v7487_v6 = vld [vmem:[%s9542_s1 + $0x3e0] ss:$8 sps:$4 sm:$0xff]   ;;  %v7489_v11 = vld [vmem:[%s9542_s1 + $0x3e4] ss:$8 sps:$4 sm:$0xff]  }
 0x18f   : > { %1036 = vmatmul.mubr.bf16.gmra.mrb[64].mxu1 %v244_v0  ;;  %3791 = vmatmul.mubr.bf16.gmra.mrb[8].mxu0 %v3615_v4  ;;  %v248_v0 = vpack.c.bf16 %v214_v5, %v213_v63  ;;  %v3619_v4 = vpack.c.bf16 %v8004_v19, %v7989_v12  ;;  %v3620_v19 = vpack.c.bf16 %v8016_v25, %v8007_v20  ;;  %v219_v20 = vld [vmem:[%s7684_s25 + $0x170] sm:$0xff]  ;;  %v220_v25 = vld [vmem:[%s7684_s25 + $0x178] sm:$0xff] }
 0x190   : > { %1045 = vmatprep.mubr.bf16.mxu1 %v9545_v2  ;;  %3800 = vmatprep.mubr.bf16.mxu0 %v9545_v2  ;;  %v254_v5 = vpack.c.bf16 %v226_v50, %v225_v43  ;;  %v3632_v50 = vpack.c.bf16 %v8207_v39, %v8192_v27  ;;  %v3633_v39 = vpack.c.bf16 %v8219_v53, %v8210_v44  ;;  %v8574_v44 = vld [vmem:[%s7684_s25 + $0x82] sm:$0xff]  ;;  %v8577_v53 = vld [vmem:[%s7684_s25 + $0x8a] sm:$0xff] }
 0x191   : > { %4348 = vmatpush1.bf16.msra.mxu0 %v7475_v18  ;;  %v215_v18 = vld [vmem:[%s7684_s25 + $0x150] sm:$0xff] }
 0x192   : > { %4349 = vmatprep.subr.bf16.mxu0 %v7483_v28  ;;  %v216_v28 = vld [vmem:[%s7684_s25 + $0x158] sm:$0xff] }
 0x193   : > { %v249_v12 = vpack.c.bf16 %v216_v28, %v215_v18  ;;  %v8443_v18 = vld [vmem:[%s7684_s25 + $0xa] sm:$0xff] }
 0x195   : > { %4350 = vmatpush1.bf16.msra.mxu0 %v7481_v55  ;;  %v250_v55 = vpack.c.bf16 %v218_v46, %v217_v35  ;;  %v8459_v35 = vld [vmem:[%s7684_s25 + $0x1a] sm:$0xff] }
 0x196   : > { %4351 = vmatprep.subr.bf16.mxu0 %v7489_v11  ;;  %v3626_v11 = vpack.c.bf16 %v8096_v13, %v8084_v3  ;;  %v3627_v3 = vpack.c.bf16 %v8113_v23, %v8099_v14  ;;  %v7472_v13 = vld [vmem:[%s9542_s1 + $0x180] ss:$8 sps:$4 sm:$0xff]   ;;  %v7478_v14 = vld [vmem:[%s9542_s1 + $0x190] ss:$8 sps:$4 sm:$0xff]   ;;  %v7486_v23 = vld [vmem:[%s9542_s1 + $0x1a4] ss:$8 sps:$4 sm:$0xff]  }
 0x197   : > { %1046 = vmatmul.mubr.bf16.gmra.mrb[68].mxu1 %v245_v21  ;;  %3801 = vmatmul.mubr.bf16.gmra.mrb[12].mxu0 %v3616_v29  ;;  %v3621_v21 = vpack.c.bf16 %v8028_v32, %v8019_v26  ;;  %v251_v29 = vpack.c.bf16 %v220_v25, %v219_v20  ;;  %v7493_v26 = vld [vmem:[%s9542_s1 + $0x3f0] ss:$8 sps:$4 sm:$0xff]   ;;  %v7495_v32 = vld [vmem:[%s9542_s1 + $0x3f4] ss:$8 sps:$4 sm:$0xff]   ;;  %v8481_v25 = vld [vmem:[%s7684_s25 + $0x22] sm:$0xff] }
 0x198   : > { %1055 = vmatprep.mubr.bf16.mxu1 %v9545_v2  ;;  %3810 = vmatprep.mubr.bf16.mxu0 %v9545_v2  ;;  %v7492_v20 = vld [vmem:[%s9542_s1 + $0x1b4] ss:$8 sps:$4 sm:$0xff]  }
 0x199   : > { %4352 = vmatpush1.bf16.msra.mxu0 %v7487_v6 }
 0x19a   : > { %4353 = vmatprep.subr.bf16.mxu0 %v7495_v32  ;;  %v7496_v32 = vld [vmem:[%s9542_s1 + $0x1c0] ss:$8 sps:$4 sm:$0xff]  }
 0x19d   : > { %4354 = vmatpush1.bf16.msra.mxu0 %v7493_v26  ;;  %v3629_v26 = vpack.c.bf16 %v8162_v60, %v8141_v41  ;;  %v8508_v41 = vld [vmem:[%s7684_s25 + $0x3a] sm:$0xff] }
 0x19e   : > { %v7502_v60 = vld [vmem:[%s9542_s1 + $0x1d0] ss:$8 sps:$4 sm:$0xff]  }
 0x19f   : > { %1056 = vmatmul.mubr.bf16.gmra.mrb[72].mxu1 %v246_v48  ;;  %3811 = vmatmul.mubr.bf16.gmra.mrb[16].mxu0 %v3617_v57  ;;  %v222_v48 = vld [vmem:[%s7684_s25 + $0x188] sm:$0xff]  ;;  %v223_v57 = vld [vmem:[%s7684_s25 + $0x190] sm:$0xff] }
 0x1a0   : > { %1065 = vmatprep.mubr.bf16.mxu1 %v9545_v2  ;;  %3820 = vmatprep.mubr.bf16.mxu0 %v9545_v2  ;;  %v252_v33 = vpack.c.bf16 %v222_v48, %v221_v47  ;;  %v253_v62 = vpack.c.bf16 %v224_v56, %v223_v57  ;;  %v7504_v47 = vld [vmem:[%s9542_s1 + $0x1d4] ss:$8 sps:$4 sm:$0xff]   ;;  %v8520_v57 = vld [vmem:[%s7684_s25 + $0x42] sm:$0xff]  ;;  %v8523_v56 = vld [vmem:[%s7684_s25 + $0x4a] sm:$0xff] }
 0x1a1   : > { %v8505_v48 = vld [vmem:[%s7684_s25 + $0x32] sm:$0xff] }
 0x1a7   : > { %1066 = vmatmul.mubr.bf16.gmra.mrb[76].mxu1 %v247_v36  ;;  %3821 = vmatmul.mubr.bf16.gmra.mrb[20].mxu0 %v3618_v45  ;;  %v3624_v36 = vpack.c.bf16 %v8070_v58, %v8061_v51 }
 0x1a8   : > { %1075 = vmatprep.mubr.bf16.mxu1 %v9545_v2  ;;  %3830 = vmatprep.mubr.bf16.mxu0 %v9545_v2 }
 0x1af   : > { %1076 = vmatmul.mubr.bf16.gmra.mrb[80].mxu1 %v248_v0  ;;  %3831 = vmatmul.mubr.bf16.gmra.mrb[24].mxu0 %v3619_v4  ;;  %v3625_v0 = vpack.c.bf16 %v8081_v1, %v8073_v59  ;;  %v227_v4 = vld [vmem:[%s7684_s25 + $0x1b0] sm:$0xff]  ;;  %v7501_v59 = vld [vmem:[%s9542_s1 + $0x404] ss:$8 sps:$4 sm:$0xff]  }
 0x1b0   : > { %1085 = vmatprep.mubr.bf16.mxu1 %v9545_v2  ;;  %3840 = vmatprep.mubr.bf16.mxu0 %v9545_v2  ;;  %v255_v6 = vpack.c.bf16 %v227_v4, %v227_v4  ;;  %v1154_v1 = vld [vmem:[%s7684_s25 + $0x2] sm:$0xff] }
 0x1b1   : > { %4940 = vmatprep.subr.bf16.mxu0 %v7501_v59  ;;  %v1209_v28 = vpack.c.bf16 %v8443_v18, %v1154_v1  ;;  %v3635_v59 = vpack.c.bf16 %v8249_v31, %v8234_v9  ;;  %v8592_v1 = vld [vmem:[%s7684_s25 + $0x92] sm:$0xff]  ;;  %v3636_v31 = vpack.c.bf16 %v8261_v49, %v8252_v34  ;;  %v3637_v49 = vpack.c.bf16 %v8273_v16, %v8264_v52  ;;  %v8631_v52 = vld [vmem:[%s7684_s25 + $0xc2] sm:$0xff]  ;;  %v8634_v16 = vld [vmem:[%s7684_s25 + $0xca] sm:$0xff] }
 0x1b7   : > { %1086 = vmatmul.mubr.bf16.gmra.mrb[84].mxu1 %v249_v12  ;;  %3841 = vmatmul.mubr.bf16.gmra.mrb[28].mxu0 %v3620_v19  ;;  %v7480_v12 = vld [vmem:[%s9542_s1 + $0x194] ss:$8 sps:$4 sm:$0xff]  }
 0x1b8   : > { %1095 = vmatprep.mubr.bf16.mxu1 %v9545_v2  ;;  %3850 = vmatprep.mubr.bf16.mxu0 %v9545_v2  ;;  %v8456_v19 = vld [vmem:[%s7684_s25 + $0x12] sm:$0xff] }
 0x1b9   : > { %v1210_v46 = vpack.c.bf16 %v8459_v35, %v8456_v19 }
 0x1bf   : > { %1096 = vmatmul.mubr.bf16.gmra.mrb[88].mxu1 %v250_v55  ;;  %3851 = vmatmul.mubr.bf16.gmra.mrb[32].mxu0 %v3621_v21  ;;  %v3628_v55 = vpack.c.bf16 %v8138_v40, %v8116_v24  ;;  %v7484_v21 = vld [vmem:[%s9542_s1 + $0x1a0] ss:$8 sps:$4 sm:$0xff]   ;;  %v7490_v40 = vld [vmem:[%s9542_s1 + $0x1b0] ss:$8 sps:$4 sm:$0xff]  }
 0x1c0   : > { %1105 = vmatprep.mubr.bf16.mxu1 %v9545_v2  ;;  %3860 = vmatprep.mubr.bf16.mxu0 %v9545_v2  ;;  %v8484_v24 = vld [vmem:[%s7684_s25 + $0x2a] sm:$0xff] }
 0x1c7   : > { %1106 = vmatmul.mubr.bf16.gmra.mrb[92].mxu1 %v251_v29  ;;  %3861 = vmatmul.mubr.bf16.gmra.mrb[36].mxu0 %v3622_v30  ;;  %v7498_v29 = vld [vmem:[%s9542_s1 + $0x1c4] ss:$8 sps:$4 sm:$0xff]   ;;  %v1211_v30 = vpack.c.bf16 %v8484_v24, %v8481_v25 }
 0x1c8   : > { %1115 = vmatprep.mubr.bf16.mxu1 %v9545_v2  ;;  %3870 = vmatprep.mubr.bf16.mxu0 %v9545_v2 }
 0x1cf   : > { %1116 = vmatmul.mubr.bf16.gmra.mrb[96].mxu1 %v252_v33  ;;  %3871 = vmatmul.mubr.bf16.gmra.mrb[40].mxu0 %v3623_v42  ;;  %v1212_v33 = vpack.c.bf16 %v8508_v41, %v8505_v48  ;;  %v3630_v42 = vpack.c.bf16 %v8177_v10, %v8165_v61  ;;  %v8532_v61 = vld [vmem:[%s7684_s25 + $0x52] sm:$0xff]  ;;  %v8535_v10 = vld [vmem:[%s7684_s25 + $0x5a] sm:$0xff] }
 0x1d0   : > { %1125 = vmatprep.mubr.bf16.mxu1 %v9545_v2  ;;  %3880 = vmatprep.mubr.bf16.mxu0 %v9545_v2  ;;  %v1214_v43 = vpack.c.bf16 %v8535_v10, %v8532_v61 }
 0x1d7   : > { %1126 = vmatmul.mubr.bf16.gmra.mrb[100].mxu1 %v253_v62  ;;  %3881 = vmatmul.mubr.bf16.gmra.mrb[44].mxu0 %v3624_v36  ;;  %v1213_v62 = vpack.c.bf16 %v8523_v56, %v8520_v57  ;;  %v3631_v36 = vpack.c.bf16 %v8189_v22, %v8180_v15  ;;  %v7508_v15 = vld [vmem:[%s9542_s1 + $0x1e0] ss:$8 sps:$4 sm:$0xff]   ;;  %v7510_v22 = vld [vmem:[%s9542_s1 + $0x1e4] ss:$8 sps:$4 sm:$0xff]  }
 0x1d8   : > { %1135 = vmatprep.mubr.bf16.mxu1 %v9545_v2  ;;  %3890 = vmatprep.mubr.bf16.mxu0 %v9545_v2 }
 0x1da   : > { %v8425_v45 = vpop.f32.mrb[108].mxu1 }
 0x1db   : > { %v8427_v63 = vpop.f32.mrb[109].mxu1 }
 0x1dc   : > { %v760_v51 = vpop.f32.mrb[110].mxu1 }
 0x1dd   : > { %v761_v58 = vpop.f32.mrb[111].mxu1  ;;  %v8562_v51 = vld [vmem:[%s7684_s25 + $0x72] sm:$0xff] }
 0x1de   : > { %v8565_v58 = vld [vmem:[%s7684_s25 + $0x7a] sm:$0xff] }
 0x1df   : > { %1136 = vmatmul.mubr.bf16.gmra.mrb[104].mxu1 %v254_v5  ;;  %3891 = vmatmul.mubr.bf16.gmra.mrb[48].mxu0 %v3625_v0  ;;  %v8550_v5 = vld [vmem:[%s7684_s25 + $0x62] sm:$0xff]  ;;  %v8553_v0 = vld [vmem:[%s7684_s25 + $0x6a] sm:$0xff]  ;;  %v1216_v4 = vpack.c.bf16 %v8565_v58, %v8562_v51 }
 0x1e0   : > { %1145 = vmatprep.mubr.bf16.mxu1 %v9545_v2  ;;  %3900 = vmatprep.mubr.bf16.mxu0 %v9545_v2  ;;  %v1215_v27 = vpack.c.bf16 %v8553_v0, %v8550_v5 }
 0x1e7   : > { %1146 = vmatmul.mubr.bf16.gmra.mrb[112].mxu1 %v255_v6  ;;  %3901 = vmatmul.mubr.bf16.gmra.mrb[52].mxu0 %v3626_v11  ;;  %v3634_v6 = vpack.c.bf16 %v8231_v8, %v8222_v54  ;;  %v1217_v11 = vpack.c.bf16 %v8577_v53, %v8574_v44  ;;  %v7514_v54 = vld [vmem:[%s9542_s1 + $0x1f0] ss:$8 sps:$4 sm:$0xff]   ;;  %v7516_v8 = vld [vmem:[%s9542_s1 + $0x1f4] ss:$8 sps:$4 sm:$0xff]  }
 0x1e8   : > { %1366 = vmatprep.mubr.bf16.mxu1 %v9545_v2  ;;  %3910 = vmatprep.mubr.bf16.mxu0 %v9545_v2 }
 0x1ef   : > { %1367 = vmatmul.mubr.bf16.vlgmr.msra.gmra.mrb[0].mxu1 %v1209_v28  ;;  %3911 = vmatmul.mubr.bf16.gmra.mrb[56].mxu0 %v3627_v3  ;;  %v8595_v28 = vld [vmem:[%s7684_s25 + $0x9a] sm:$0xff]  ;;  %v7532_v3 = vld [vmem:[%s9542_s1 + $0x204] ss:$8 sps:$4 sm:$0xff]  }
 0x1f0   : > { %1936 = vmatpush1.bf16.msra.mxu1 %v7472_v13  ;;  %1376 = vmatprep.mubr.bf16.mxu1 %v9545_v2  ;;  %v1218_v9 = vpack.c.bf16 %v8595_v28, %v8592_v1  ;;  %v8607_v13 = vld [vmem:[%s7684_s25 + $0xa2] sm:$0xff] }
 0x1f1   : > { %3920 = vmatprep.mubr.bf16.mxu0 %v9545_v2  ;;  %1937 = vmatprep.subr.bf16.mxu1 %v7480_v12  ;;  %v8610_v12 = vld [vmem:[%s7684_s25 + $0xaa] sm:$0xff] }
 0x1f2   : > { %v1219_v34 = vpack.c.bf16 %v8610_v12, %v8607_v13 }
 0x1f4   : > { %1938 = vmatpush1.bf16.msra.mxu1 %v7478_v14  ;;  %v8619_v14 = vld [vmem:[%s7684_s25 + $0xb2] sm:$0xff] }
 0x1f5   : > { %1939 = vmatprep.subr.bf16.mxu1 %v7486_v23  ;;  %v8622_v23 = vld [vmem:[%s7684_s25 + $0xba] sm:$0xff] }
 0x1f7   : > { %1377 = vmatmul.mubr.bf16.gmra.mrb[4].mxu1 %v1210_v46  ;;  %3921 = vmatmul.mubr.bf16.gmra.mrb[60].mxu0 %v3628_v55  ;;  %v1220_v46 = vpack.c.bf16 %v8622_v23, %v8619_v14  ;;  %v3638_v55 = vpack.c.bf16 %v8285_v37, %v8276_v17  ;;  %v3639_v17 = vpack.c.bf16 %v8300_v7, %v8288_v38 }
 0x1f8   : > { %1386 = vmatprep.mubr.bf16.mxu1 %v9545_v2  ;;  %3930 = vmatprep.mubr.bf16.mxu0 %v9545_v2 }
 0x1f9   : > { %1940 = vmatpush1.bf16.msra.mxu1 %v7484_v21 }
 0x1fa   : > { %1941 = vmatprep.subr.bf16.mxu1 %v7492_v20  ;;  %v1221_v20 = vpack.c.bf16 %v8634_v16, %v8631_v52 }
 0x1fd   : > { %1942 = vmatpush1.bf16.msra.mxu1 %v7490_v40 }
 0x1fe   : > { %1943 = vmatprep.subr.bf16.mxu1 %v7498_v29 }
 0x1ff   : > { %1387 = vmatmul.mubr.bf16.gmra.mrb[8].mxu1 %v1211_v30  ;;  %3931 = vmatmul.mubr.bf16.gmra.mrb[64].mxu0 %v3629_v26  ;;  %v8647_v30 = vld [vmem:[%s7684_s25 + $0xd2] sm:$0xff]  ;;  %v8650_v26 = vld [vmem:[%s7684_s25 + $0xda] sm:$0xff] }
 0x200   : > { %1396 = vmatprep.mubr.bf16.mxu1 %v9545_v2  ;;  %3940 = vmatprep.mubr.bf16.mxu0 %v9545_v2  ;;  %v1222_v38 = vpack.c.bf16 %v8650_v26, %v8647_v30 }
 0x201   : > { %1944 = vmatpush1.bf16.msra.mxu1 %v7496_v32  ;;  %v3612_v32 = vld [vmem:[%s7684_s25 + $0x1c4] sm:$0xff] }
 0x202   : > { %1945 = vmatprep.subr.bf16.mxu1 %v7504_v47  ;;  %v3640_v7 = vpack.c.bf16 %v3612_v32, %v3612_v32  ;;  %v8656_v47 = vld [vmem:[%s7684_s25 + $0xe2] sm:$0xff]  ;;  %v8727_v32 = vld [vmem:[%s7684_s25 + $0x11a] sm:$0xff] }
 0x205   : > { %1946 = vmatpush1.bf16.msra.mxu1 %v7502_v60  ;;  %v8661_v60 = vld [vmem:[%s7684_s25 + $0xea] sm:$0xff] }
 0x206   : > { %1947 = vmatprep.subr.bf16.mxu1 %v7510_v22  ;;  %v8679_v22 = vld [vmem:[%s7684_s25 + $0xfa] sm:$0xff] }
 0x207   : > { %1397 = vmatmul.mubr.bf16.gmra.mrb[12].mxu1 %v1212_v33  ;;  %3941 = vmatmul.mubr.bf16.gmra.mrb[68].mxu0 %v3630_v42  ;;  %v4159_v33 = vld [vmem:[%s7684_s25 + $0x15] sm:$0xff]  ;;  %v4160_v42 = vld [vmem:[%s7684_s25 + $0x1d] sm:$0xff] }
 0x208   : > { %1406 = vmatprep.mubr.bf16.mxu1 %v9545_v2  ;;  %3950 = vmatprep.mubr.bf16.mxu0 %v9545_v2 }
 0x209   : > { %1948 = vmatpush1.bf16.msra.mxu1 %v7508_v15  ;;  %v8674_v15 = vld [vmem:[%s7684_s25 + $0xf2] sm:$0xff] }
 0x20a   : > { %1949 = vmatprep.subr.bf16.mxu1 %v7516_v8  ;;  %v7519_v8 = vld [vmem:[%s9542_s1 + $0x434] ss:$8 sps:$4 sm:$0xff]  }
 0x20d   : > { %1950 = vmatpush1.bf16.msra.mxu1 %v7514_v54  ;;  %v7511_v54 = vld [vmem:[%s9542_s1 + $0x420] ss:$8 sps:$4 sm:$0xff]  }
 0x20e   : > { %6425 = vmatprep.subr.bf16.mxu1 %v7532_v3  ;;  %v4163_v3 = vld [vmem:[%s7684_s25 + $0x35] sm:$0xff] }
 0x20f   : > { %1407 = vmatmul.mubr.bf16.gmra.mrb[16].mxu1 %v1213_v62  ;;  %3951 = vmatmul.mubr.bf16.gmra.mrb[72].mxu0 %v3631_v36  ;;  %v1223_v62 = vpack.c.bf16 %v8661_v60, %v8656_v47  ;;  %v4214_v36 = vpack.c.bf16 %v4160_v42, %v4159_v33  ;;  %v7523_v33 = vld [vmem:[%s9542_s1 + $0x450] ss:$8 sps:$4 sm:$0xff]  }
 0x210   : > { %1416 = vmatprep.mubr.bf16.mxu1 %v9545_v2  ;;  %3960 = vmatprep.mubr.bf16.mxu0 %v9545_v2 }
 0x217   : > { %1417 = vmatmul.mubr.bf16.gmra.mrb[20].mxu1 %v1214_v43  ;;  %3961 = vmatmul.mubr.bf16.gmra.mrb[76].mxu0 %v3632_v50  ;;  %v7499_v43 = vld [vmem:[%s9542_s1 + $0x400] ss:$8 sps:$4 sm:$0xff]   ;;  %v7507_v50 = vld [vmem:[%s9542_s1 + $0x414] ss:$8 sps:$4 sm:$0xff]  }
 0x218   : > { %1426 = vmatprep.mubr.bf16.mxu1 %v9545_v2  ;;  %3970 = vmatprep.mubr.bf16.mxu0 %v9545_v2 }
 0x21f   : > { %1427 = vmatmul.mubr.bf16.gmra.mrb[24].mxu1 %v1215_v27  ;;  %3971 = vmatmul.mubr.bf16.gmra.mrb[80].mxu0 %v3633_v39  ;;  %v4161_v27 = vld [vmem:[%s7684_s25 + $0x25] sm:$0xff]  ;;  %v4162_v39 = vld [vmem:[%s7684_s25 + $0x2d] sm:$0xff] }
 0x220   : > { %1436 = vmatprep.mubr.bf16.mxu1 %v9545_v2  ;;  %3980 = vmatprep.mubr.bf16.mxu0 %v9545_v2 }
 0x227   : > { %1437 = vmatmul.mubr.bf16.gmra.mrb[28].mxu1 %v1216_v4  ;;  %3981 = vmatmul.mubr.bf16.gmra.mrb[84].mxu0 %v3634_v6  ;;  %v7505_v4 = vld [vmem:[%s9542_s1 + $0x410] ss:$8 sps:$4 sm:$0xff]   ;;  %v7513_v6 = vld [vmem:[%s9542_s1 + $0x424] ss:$8 sps:$4 sm:$0xff]  }
 0x228   : > { %1446 = vmatprep.mubr.bf16.mxu1 %v9545_v2  ;;  %3990 = vmatprep.mubr.bf16.mxu0 %v9545_v2 }
 0x22f   : > { %1447 = vmatmul.mubr.bf16.gmra.mrb[32].mxu1 %v1217_v11  ;;  %3991 = vmatmul.mubr.bf16.gmra.mrb[88].mxu0 %v3635_v59  ;;  %v1224_v11 = vpack.c.bf16 %v8679_v22, %v8674_v15  ;;  %v4215_v59 = vpack.c.bf16 %v4162_v39, %v4161_v27  ;;  %v4168_v27 = vld [vmem:[%s7684_s25 + $0x5d] sm:$0xff] }
 0x230   : > { %1456 = vmatprep.mubr.bf16.mxu1 %v9545_v2  ;;  %4000 = vmatprep.mubr.bf16.mxu0 %v9545_v2 }
 0x237   : > { %1457 = vmatmul.mubr.bf16.gmra.mrb[36].mxu1 %v1218_v9  ;;  %4001 = vmatmul.mubr.bf16.gmra.mrb[92].mxu0 %v3636_v31  ;;  %v8698_v9 = vld [vmem:[%s7684_s25 + $0x102] sm:$0xff]  ;;  %v8703_v31 = vld [vmem:[%s7684_s25 + $0x10a] sm:$0xff] }
 0x238   : > { %1466 = vmatprep.mubr.bf16.mxu1 %v9545_v2  ;;  %4010 = vmatprep.mubr.bf16.mxu0 %v9545_v2 }
 0x23f   : > { %1467 = vmatmul.mubr.bf16.gmra.mrb[40].mxu1 %v1219_v34  ;;  %4011 = vmatmul.mubr.bf16.gmra.mrb[96].mxu0 %v3637_v49  ;;  %v4164_v34 = vld [vmem:[%s7684_s25 + $0x3d] sm:$0xff]  ;;  %v7517_v49 = vld [vmem:[%s9542_s1 + $0x430] ss:$8 sps:$4 sm:$0xff]  }
 0x240   : > { %1476 = vmatprep.mubr.bf16.mxu1 %v9545_v2  ;;  %4020 = vmatprep.mubr.bf16.mxu0 %v9545_v2 }
 0x247   : > { %1477 = vmatmul.mubr.bf16.gmra.mrb[44].mxu1 %v1220_v46  ;;  %4021 = vmatmul.mubr.bf16.gmra.mrb[100].mxu0 %v3638_v55  ;;  %v7522_v46 = vld [vmem:[%s9542_s1 + $0x444] ss:$8 sps:$4 sm:$0xff]   ;;  %v1225_v55 = vpack.c.bf16 %v8703_v31, %v8698_v9 }
 0x248   : > { %1486 = vmatprep.mubr.bf16.mxu1 %v9545_v2  ;;  %4030 = vmatprep.mubr.bf16.mxu0 %v9545_v2 }
 0x24a   : > { %v8636_v21 = vpop.f32.mrb[108].mxu0 }
 0x24b   : > { %9549 = vst [vmem:[#allocation2_spill] sm:$0xff] %v8636_v21  ;;  %v8642_v37 = vpop.f32.mrb[109].mxu0 }
 0x24c   : > { %9550 = vst [vmem:[#allocation3_spill] sm:$0xff] %v8642_v37  ;;  %v3445_v40 = vpop.f32.mrb[110].mxu0 }
 0x24d   : > { %v3446_v29 = vpop.f32.mrb[111].mxu0  ;;  %v8719_v40 = vld [vmem:[%s7684_s25 + $0x112] sm:$0xff] }
 0x24e   : > { %v7525_v29 = vld [vmem:[%s9542_s1 + $0x454] ss:$8 sps:$4 sm:$0xff]   ;;  %v1226_v42 = vpack.c.bf16 %v8727_v32, %v8719_v40 }
 0x24f   : > { %1487 = vmatmul.mubr.bf16.gmra.mrb[48].mxu1 %v1221_v20  ;;  %4031 = vmatmul.mubr.bf16.gmra.mrb[104].mxu0 %v3639_v17  ;;  %v4216_v20 = vpack.c.bf16 %v4164_v34, %v4163_v3  ;;  %v7520_v17 = vld [vmem:[%s9542_s1 + $0x440] ss:$8 sps:$4 sm:$0xff]  }
 0x250   : > { %1496 = vmatprep.mubr.bf16.mxu1 %v9545_v2  ;;  %4040 = vmatprep.mubr.bf16.mxu0 %v9545_v2  ;;  %v8761_v34 = vld [vmem:[%s7684_s25 + $0x142] sm:$0xff] }
 0x257   : > { %1497 = vmatmul.mubr.bf16.gmra.mrb[52].mxu1 %v1222_v38  ;;  %4041 = vmatmul.mubr.bf16.gmra.mrb[112].mxu0 %v3640_v7  ;;  %v4165_v38 = vld [vmem:[%s7684_s25 + $0x45] sm:$0xff]  ;;  %v4166_v7 = vld [vmem:[%s7684_s25 + $0x4d] sm:$0xff] }
 0x258   : > { %1506 = vmatprep.mubr.bf16.mxu1 %v9545_v2  ;;  %4371 = vmatprep.mubr.bf16.mxu0 %v9545_v2 }
 0x25f   : > { %1507 = vmatmul.mubr.bf16.gmra.mrb[56].mxu1 %v1223_v62  ;;  %4372 = vmatmul.mubr.bf16.vlgmr.msra.gmra.mrb[0].mxu0 %v4214_v36  ;;  %v4217_v62 = vpack.c.bf16 %v4166_v7, %v4165_v38  ;;  %v8737_v36 = vld [vmem:[%s7684_s25 + $0x122] sm:$0xff] }
 0x260   : > { %1516 = vmatprep.mubr.bf16.mxu1 %v9545_v2  ;;  %4381 = vmatprep.mubr.bf16.mxu0 %v9545_v2  ;;  %v7526_v38 = vld [vmem:[%s9542_s1 + $0x460] ss:$8 sps:$4 sm:$0xff]   ;;  %v7528_v7 = vld [vmem:[%s9542_s1 + $0x464] ss:$8 sps:$4 sm:$0xff]  }
 0x261   : > { %4941 = vmatpush1.bf16.msra.mxu0 %v7499_v43  ;;  %v8742_v43 = vld [vmem:[%s7684_s25 + $0x12a] sm:$0xff] }
 0x262   : > { %4942 = vmatprep.subr.bf16.mxu0 %v7507_v50  ;;  %v4167_v50 = vld [vmem:[%s7684_s25 + $0x55] sm:$0xff]  ;;  %v1227_v39 = vpack.c.bf16 %v8742_v43, %v8737_v36 }
 0x265   : > { %4943 = vmatpush1.bf16.msra.mxu0 %v7505_v4  ;;  %v4218_v4 = vpack.c.bf16 %v4168_v27, %v4167_v50 }
 0x266   : > { %4944 = vmatprep.subr.bf16.mxu0 %v7513_v6  ;;  %v8749_v6 = vld [vmem:[%s7684_s25 + $0x132] sm:$0xff] }
 0x267   : > { %1517 = vmatmul.mubr.bf16.gmra.mrb[60].mxu1 %v1224_v11  ;;  %4382 = vmatmul.mubr.bf16.gmra.mrb[4].mxu0 %v4215_v59  ;;  %v8754_v11 = vld [vmem:[%s7684_s25 + $0x13a] sm:$0xff]  ;;  %v4169_v59 = vld [vmem:[%s7684_s25 + $0x65] sm:$0xff] }
 0x268   : > { %1526 = vmatprep.mubr.bf16.mxu1 %v9545_v2  ;;  %4391 = vmatprep.mubr.bf16.mxu0 %v9545_v2 }
 0x269   : > { %4945 = vmatpush1.bf16.msra.mxu0 %v7511_v54  ;;  %v4170_v54 = vld [vmem:[%s7684_s25 + $0x6d] sm:$0xff] }
 0x26a   : > { %4946 = vmatprep.subr.bf16.mxu0 %v7519_v8  ;;  %v1228_v8 = vpack.c.bf16 %v8754_v11, %v8749_v6  ;;  %v4219_v3 = vpack.c.bf16 %v4170_v54, %v4169_v59  ;;  %v4175_v59 = vld [vmem:[%s7684_s25 + $0x95] sm:$0xff]  ;;  %v4176_v54 = vld [vmem:[%s7684_s25 + $0x9d] sm:$0xff] }
 0x26d   : > { %4947 = vmatpush1.bf16.msra.mxu0 %v7517_v49  ;;  %v8766_v49 = vld [vmem:[%s7684_s25 + $0x14a] sm:$0xff] }
 0x26e   : > { %4948 = vmatprep.subr.bf16.mxu0 %v7522_v46  ;;  %v4171_v46 = vld [vmem:[%s7684_s25 + $0x75] sm:$0xff] }
 0x26f   : > { %1527 = vmatmul.mubr.bf16.gmra.mrb[64].mxu1 %v1225_v55  ;;  %4392 = vmatmul.mubr.bf16.gmra.mrb[8].mxu0 %v4216_v20  ;;  %v4172_v55 = vld [vmem:[%s7684_s25 + $0x7d] sm:$0xff]  ;;  %v1229_v20 = vpack.c.bf16 %v8766_v49, %v8761_v34 }
 0x270   : > { %1536 = vmatprep.mubr.bf16.mxu1 %v9545_v2  ;;  %4401 = vmatprep.mubr.bf16.mxu0 %v9545_v2 }
 0x271   : > { %4949 = vmatpush1.bf16.msra.mxu0 %v7520_v17  ;;  %v4220_v17 = vpack.c.bf16 %v4172_v55, %v4171_v46  ;;  %v8803_v46 = vld [vmem:[%s7684_s25 + $0x172] sm:$0xff]  ;;  %v8808_v55 = vld [vmem:[%s7684_s25 + $0x17a] sm:$0xff] }
 0x272   : > { %4950 = vmatprep.subr.bf16.mxu0 %v7525_v29  ;;  %v8773_v29 = vld [vmem:[%s7684_s25 + $0x152] sm:$0xff] }
 0x275   : > { %4951 = vmatpush1.bf16.msra.mxu0 %v7523_v33  ;;  %v8784_v33 = vld [vmem:[%s7684_s25 + $0x15a] sm:$0xff] }
 0x276   : > { %4952 = vmatprep.subr.bf16.mxu0 %v7528_v7  ;;  %v1230_v50 = vpack.c.bf16 %v8784_v33, %v8773_v29 }
 0x277   : > { %1537 = vmatmul.mubr.bf16.gmra.mrb[68].mxu1 %v1226_v42  ;;  %4402 = vmatmul.mubr.bf16.gmra.mrb[12].mxu0 %v4217_v62  ;;  %v4173_v42 = vld [vmem:[%s7684_s25 + $0x85] sm:$0xff]  ;;  %v4174_v62 = vld [vmem:[%s7684_s25 + $0x8d] sm:$0xff] }
 0x278   : > { %1546 = vmatprep.mubr.bf16.mxu1 %v9545_v2  ;;  %4411 = vmatprep.mubr.bf16.mxu0 %v9545_v2  ;;  %v4221_v27 = vpack.c.bf16 %v4174_v62, %v4173_v42  ;;  %v8815_v42 = vld [vmem:[%s7684_s25 + $0x182] sm:$0xff]  ;;  %v7529_v62 = vld [vmem:[%s9542_s1 + $0x470] ss:$8 sps:$4 sm:$0xff]  }
 0x279   : > { %4953 = vmatpush1.bf16.msra.mxu0 %v7526_v38  ;;  %v1232_v38 = vpack.c.bf16 %v8808_v55, %v8803_v46 }
 0x27f   : > { %1547 = vmatmul.mubr.bf16.gmra.mrb[72].mxu1 %v1227_v39  ;;  %4412 = vmatmul.mubr.bf16.gmra.mrb[16].mxu0 %v4218_v4  ;;  %v8791_v39 = vld [vmem:[%s7684_s25 + $0x162] sm:$0xff]  ;;  %v8796_v4 = vld [vmem:[%s7684_s25 + $0x16a] sm:$0xff] }
 0x280   : > { %1556 = vmatprep.mubr.bf16.mxu1 %v9545_v2  ;;  %4421 = vmatprep.mubr.bf16.mxu0 %v9545_v2 }
 0x287   : > { %1557 = vmatmul.mubr.bf16.gmra.mrb[76].mxu1 %v1228_v8  ;;  %4422 = vmatmul.mubr.bf16.gmra.mrb[20].mxu0 %v4219_v3  ;;  %v1231_v8 = vpack.c.bf16 %v8796_v4, %v8791_v39  ;;  %v4222_v3 = vpack.c.bf16 %v4176_v54, %v4175_v59  ;;  %v4179_v59 = vld [vmem:[%s7684_s25 + $0xb5] sm:$0xff]  ;;  %v4180_v54 = vld [vmem:[%s7684_s25 + $0xbd] sm:$0xff] }
 0x288   : > { %1566 = vmatprep.mubr.bf16.mxu1 %v9545_v2  ;;  %4431 = vmatprep.mubr.bf16.mxu0 %v9545_v2 }
 0x28f   : > { %1567 = vmatmul.mubr.bf16.gmra.mrb[80].mxu1 %v1229_v20  ;;  %4432 = vmatmul.mubr.bf16.gmra.mrb[24].mxu0 %v4220_v17  ;;  %v4177_v20 = vld [vmem:[%s7684_s25 + $0xa5] sm:$0xff]  ;;  %v4178_v17 = vld [vmem:[%s7684_s25 + $0xad] sm:$0xff] }
 0x290   : > { %1576 = vmatprep.mubr.bf16.mxu1 %v9545_v2  ;;  %4441 = vmatprep.mubr.bf16.mxu0 %v9545_v2  ;;  %v4223_v7 = vpack.c.bf16 %v4178_v17, %v4177_v20  ;;  %v8833_v20 = vld [vmem:[%s7684_s25 + $0x192] sm:$0xff]  ;;  %v8838_v17 = vld [vmem:[%s7684_s25 + $0x19a] sm:$0xff] }
 0x291   : > { %9551 = vst [vmem:[#allocation4_spill] sm:$0xff] %v8833_v20  ;;  %9552 = vst [vmem:[#allocation5_spill] sm:$0xff] %v8838_v17 }
 0x297   : > { %1577 = vmatmul.mubr.bf16.gmra.mrb[84].mxu1 %v1230_v50  ;;  %4442 = vmatmul.mubr.bf16.gmra.mrb[28].mxu0 %v4221_v27  ;;  %v7531_v50 = vld [vmem:[%s9542_s1 + $0x474] ss:$8 sps:$4 sm:$0xff]   ;;  %v8826_v27 = vld [vmem:[%s7684_s25 + $0x18a] sm:$0xff] }
 0x298   : > { %1586 = vmatprep.mubr.bf16.mxu1 %v9545_v2  ;;  %4451 = vmatprep.mubr.bf16.mxu0 %v9545_v2 }
 0x299   : > { %4954 = vmatprep.subr.bf16.mxu0 %v7531_v50 }
 0x29a   : > { %4955 = vmatpush1.bf16.msra.mxu0 %v7529_v62  ;;  %v1234_v62 = vpack.c.bf16 %v8838_v17, %v8833_v20  ;;  %v9554_v20 = vmov 0  }
 0x29f   : > { %1587 = vmatmul.mubr.bf16.gmra.mrb[88].mxu1 %v1231_v8  ;;  %4452 = vmatmul.mubr.bf16.gmra.mrb[32].mxu0 %v4222_v3  ;;  %v1233_v8 = vpack.c.bf16 %v8826_v27, %v8815_v42  ;;  %v4224_v3 = vpack.c.bf16 %v4180_v54, %v4179_v59  ;;  %v8845_v59 = vld [vmem:[%s7684_s25 + $0x1a2] sm:$0xff]  ;;  %v8850_v54 = vld [vmem:[%s7684_s25 + $0x1aa] sm:$0xff] }
 0x2a0   : > { %1596 = vmatprep.mubr.bf16.mxu1 %v9545_v2  ;;  %4461 = vmatprep.mubr.bf16.mxu0 %v9545_v2 }
 0x2a7   : > { %1597 = vmatmul.mubr.bf16.gmra.mrb[92].mxu1 %v1232_v38  ;;  %4462 = vmatmul.mubr.bf16.gmra.mrb[36].mxu0 %v4223_v7  ;;  %v4181_v38 = vld [vmem:[%s7684_s25 + $0xc5] sm:$0xff]  ;;  %v4182_v7 = vld [vmem:[%s7684_s25 + $0xcd] sm:$0xff] }
 0x2a8   : > { %1606 = vmatprep.mubr.bf16.mxu1 %v9545_v2  ;;  %4471 = vmatprep.mubr.bf16.mxu0 %v9545_v2  ;;  %v4225_v50 = vpack.c.bf16 %v4182_v7, %v4181_v38  ;;  %v1235_v7 = vpack.c.bf16 %v8850_v54, %v8845_v59 }
 0x2af   : > { %1607 = vmatmul.mubr.bf16.gmra.mrb[96].mxu1 %v1233_v8  ;;  %4472 = vmatmul.mubr.bf16.gmra.mrb[40].mxu0 %v4224_v3  ;;  %v4183_v8 = vld [vmem:[%s7684_s25 + $0xd5] sm:$0xff]  ;;  %v4184_v3 = vld [vmem:[%s7684_s25 + $0xdd] sm:$0xff] }
 0x2b0   : > { %1616 = vmatprep.mubr.bf16.mxu1 %v9545_v2  ;;  %4481 = vmatprep.mubr.bf16.mxu0 %v9545_v2 }
 0x2b7   : > { %1617 = vmatmul.mubr.bf16.gmra.mrb[100].mxu1 %v1234_v62  ;;  %4482 = vmatmul.mubr.bf16.gmra.mrb[44].mxu0 %v4225_v50  ;;  %v4226_v62 = vpack.c.bf16 %v4184_v3, %v4183_v8  ;;  %v1810_v3 = vpack.c.bf16 %v8456_v19, %v8443_v18  ;;  %v7534_v18 = vld [vmem:[%s9542_s1 + $0x214] ss:$8 sps:$4 sm:$0xff]   ;;  %v1811_v19 = vpack.c.bf16 %v8481_v25, %v8459_v35  ;;  %v7537_v25 = vld [vmem:[%s9542_s1 + $0x220] ss:$8 sps:$4 sm:$0xff]  }
 0x2b8   : > { %1626 = vmatprep.mubr.bf16.mxu1 %v9545_v2  ;;  %4491 = vmatprep.mubr.bf16.mxu0 %v9545_v2  ;;  %v4192_v35 = vld [vmem:[%s7684_s25 + $0x11d] sm:$0xff] }
 0x2ba   : > { %v1147_v37 = vpop.f32.mrb[112].mxu1 }
 0x2bb   : > { %v8855_v21 = vadd.f32 %v1147_v37, %v8425_v45  ;;  %v1149_v38 = vpop.f32.mrb[113].mxu1  ;;  %v8865_v45 = vld [vmem:[%s7684_s25 + $0x1b2] sm:$0xff]  ;;  %v4185_v37 = vld [vmem:[%s7684_s25 + $0xe5] sm:$0xff] }
 0x2bc   : > { %v8860_v50 = vadd.f32 %v1149_v38, %v8427_v63  ;;  %v1151_v2 = vpop.f32.mrb[114].mxu1  ;;  %v1236_v8 = vpack.c.bf16 %v8865_v45, %v8865_v45 }
 0x2bd   : > { %9553 = vst [vmem:[#allocation6_spill] sm:$0xff] %v8855_v21  ;;  %v1152_v17 = vpop.f32.mrb[115].mxu1  ;;  %v4186_v21 = vld [vmem:[%s7684_s25 + $0xed] sm:$0xff]  ;;  %v4187_v2 = vld [vmem:[%s7684_s25 + $0xf5] sm:$0xff] }
 0x2be   : > { %v4227_v63 = vpack.c.bf16 %v4186_v21, %v4185_v37  ;;  %v4188_v17 = vld [vmem:[%s7684_s25 + $0xfd] sm:$0xff]  ;;  %v4189_v21 = vld [vmem:[%s7684_s25 + $0x105] sm:$0xff] }
 0x2bf   : > { %1627 = vmatmul.mubr.bf16.gmra.mrb[104].mxu1 %v1235_v7  ;;  %4492 = vmatmul.mubr.bf16.gmra.mrb[48].mxu0 %v4226_v62  ;;  %v4228_v38 = vpack.c.bf16 %v4188_v17, %v4187_v2  ;;  %v7533_v7 = vld [vmem:[%s9542_s1 + $0x200] ss:$8 sps:$4 sm:$0xff]   ;;  %v4190_v62 = vld [vmem:[%s7684_s25 + $0x10d] sm:$0xff]  ;;  %v4191_v2 = vld [vmem:[%s7684_s25 + $0x115] sm:$0xff] }
 0x2c0   : > { %1636 = vmatprep.mubr.bf16.mxu1 %v9554_v20  ;;  %4501 = vmatprep.mubr.bf16.mxu0 %v9554_v20  ;;  %v4229_v37 = vpack.c.bf16 %v4190_v62, %v4189_v21  ;;  %v7538_v17 = vld [vmem:[%s9542_s1 + $0x234] ss:$8 sps:$4 sm:$0xff]   ;;  %v7540_v21 = vld [vmem:[%s9542_s1 + $0x244] ss:$8 sps:$4 sm:$0xff]  }
 0x2c1   : > { %v4193_v62 = vld [vmem:[%s7684_s25 + $0x125] sm:$0xff] }
 0x2c7   : > { %1637 = vmatmul.mubr.bf16.gmra.mrb[116].mxu1 %v1236_v8  ;;  %4502 = vmatmul.mubr.bf16.gmra.mrb[52].mxu0 %v4227_v63  ;;  %v7535_v8 = vld [vmem:[%s9542_s1 + $0x210] ss:$8 sps:$4 sm:$0xff]   ;;  %v7536_v63 = vld [vmem:[%s9542_s1 + $0x224] ss:$8 sps:$4 sm:$0xff]  }
 0x2c8   : > { %1967 = vmatprep.mubr.bf16.mxu1 %v9554_v20  ;;  %4511 = vmatprep.mubr.bf16.mxu0 %v9554_v20 }
 0x2cf   : > { %1968 = vmatmul.mubr.bf16.vlgmr.msra.gmra.mrb[0].mxu1 %v1810_v3  ;;  %4512 = vmatmul.mubr.bf16.gmra.mrb[56].mxu0 %v4228_v38  ;;  %v1812_v3 = vpack.c.bf16 %v8505_v48, %v8484_v24  ;;  %v4230_v38 = vpack.c.bf16 %v4192_v35, %v4191_v2  ;;  %v4194_v24 = vld [vmem:[%s7684_s25 + $0x12d] sm:$0xff]  ;;  %v7541_v48 = vld [vmem:[%s9542_s1 + $0x240] ss:$8 sps:$4 sm:$0xff]  }
 0x2d0   : > { %6433 = vmatpush1.bf16.msra.mxu1 %v7533_v7  ;;  %1977 = vmatprep.mubr.bf16.mxu1 %v9554_v20  ;;  %v7539_v7 = vld [vmem:[%s9542_s1 + $0x230] ss:$8 sps:$4 sm:$0xff]   ;;  %v7545_v2 = vld [vmem:[%s9542_s1 + $0x260] ss:$8 sps:$4 sm:$0xff]   ;;  %v7546_v35 = vld [vmem:[%s9542_s1 + $0x274] ss:$8 sps:$4 sm:$0xff]  }
 0x2d1   : > { %4521 = vmatprep.mubr.bf16.mxu0 %v9554_v20  ;;  %6426 = vmatprep.subr.bf16.mxu1 %v7534_v18  ;;  %v7542_v18 = vld [vmem:[%s9542_s1 + $0x254] ss:$8 sps:$4 sm:$0xff]  }
 0x2d4   : > { %6434 = vmatpush1.bf16.msra.mxu1 %v7535_v8  ;;  %v7543_v8 = vld [vmem:[%s9542_s1 + $0x250] ss:$8 sps:$4 sm:$0xff]  }
 0x2d5   : > { %6427 = vmatprep.subr.bf16.mxu1 %v7536_v63  ;;  %v7544_v63 = vld [vmem:[%s9542_s1 + $0x264] ss:$8 sps:$4 sm:$0xff]  }
 0x2d7   : > { %1978 = vmatmul.mubr.bf16.gmra.mrb[4].mxu1 %v1811_v19  ;;  %4522 = vmatmul.mubr.bf16.gmra.mrb[60].mxu0 %v4229_v37  ;;  %v1813_v19 = vpack.c.bf16 %v8520_v57, %v8508_v41  ;;  %v4231_v37 = vpack.c.bf16 %v4194_v24, %v4193_v62  ;;  %v4195_v41 = vld [vmem:[%s7684_s25 + $0x135] sm:$0xff]  ;;  %v4196_v57 = vld [vmem:[%s7684_s25 + $0x13d] sm:$0xff]  ;;  %v1816_v24 = vpack.c.bf16 %v8562_v51, %v8553_v0 }
 0x2d8   : > { %1987 = vmatprep.mubr.bf16.mxu1 %v9554_v20  ;;  %4531 = vmatprep.mubr.bf16.mxu0 %v9554_v20  ;;  %v4200_v62 = vld [vmem:[%s7684_s25 + $0x15d] sm:$0xff]  ;;  %v4203_v0 = vld [vmem:[%s7684_s25 + $0x175] sm:$0xff] }
 0x2d9   : > { %6435 = vmatpush1.bf16.msra.mxu1 %v7537_v25  ;;  %v1814_v25 = vpack.c.bf16 %v8532_v61, %v8523_v56  ;;  %v1815_v56 = vpack.c.bf16 %v8550_v5, %v8535_v10  ;;  %v4201_v10 = vld [vmem:[%s7684_s25 + $0x165] sm:$0xff]  ;;  %v4202_v5 = vld [vmem:[%s7684_s25 + $0x16d] sm:$0xff]  ;;  %v4204_v51 = vld [vmem:[%s7684_s25 + $0x17d] sm:$0xff] }
 0x2da   : > { %6428 = vmatprep.subr.bf16.mxu1 %v7538_v17  ;;  %v4232_v17 = vpack.c.bf16 %v4196_v57, %v4195_v41  ;;  %v1820_v57 = vpack.c.bf16 %v8619_v14, %v8610_v12  ;;  %v4211_v12 = vld [vmem:[%s7684_s25 + $0x1b5] sm:$0xff]  ;;  %v4212_v14 = vld [vmem:[%s7684_s25 + $0x1bd] sm:$0xff] }
 0x2dd   : > { %6436 = vmatpush1.bf16.msra.mxu1 %v7539_v7  ;;  %v4198_v7 = vld [vmem:[%s7684_s25 + $0x14d] sm:$0xff] }
 0x2de   : > { %6429 = vmatprep.subr.bf16.mxu1 %v7540_v21  ;;  %v4199_v21 = vld [vmem:[%s7684_s25 + $0x155] sm:$0xff] }
 0x2df   : > { %1988 = vmatmul.mubr.bf16.gmra.mrb[8].mxu1 %v1812_v3  ;;  %4532 = vmatmul.mubr.bf16.gmra.mrb[64].mxu0 %v4230_v38  ;;  %v7547_v3 = vld [vmem:[%s9542_s1 + $0x270] ss:$8 sps:$4 sm:$0xff]   ;;  %v4197_v38 = vld [vmem:[%s7684_s25 + $0x145] sm:$0xff] }
 0x2e0   : > { %1997 = vmatprep.mubr.bf16.mxu1 %v9554_v20  ;;  %4541 = vmatprep.mubr.bf16.mxu0 %v9554_v20  ;;  %v4233_v61 = vpack.c.bf16 %v4198_v7, %v4197_v38  ;;  %v4240_v38 = vpack.c.bf16 %v4212_v14, %v4211_v12  ;;  %v9558_v12 = vld [vmem:[#allocation5_spill] sm:$0xff] }
 0x2e1   : > { %6437 = vmatpush1.bf16.msra.mxu1 %v7541_v48  ;;  %v4234_v48 = vpack.c.bf16 %v4200_v62, %v4199_v21  ;;  %v4761_v21 = vld [vmem:[%s7684_s25 + $0x1e] sm:$0xff]  ;;  %v1824_v62 = vpack.c.bf16 %v8674_v15, %v8661_v60  ;;  %v4764_v60 = vld [vmem:[%s7684_s25 + $0x36] sm:$0xff]  ;;  %v1835_v14 = vpack.c.bf16 %v8845_v59, %v9558_v12  ;;  %v1836_v59 = vpack.c.bf16 %v8865_v45, %v8850_v54 }
 0x2e2   : > { %6430 = vmatprep.subr.bf16.mxu1 %v7542_v18  ;;  %v1817_v18 = vpack.c.bf16 %v8574_v44, %v8565_v58  ;;  %v4205_v58 = vld [vmem:[%s7684_s25 + $0x185] sm:$0xff]  ;;  %v4206_v44 = vld [vmem:[%s7684_s25 + $0x18d] sm:$0xff] }
 0x2e3   : > { %v4237_v41 = vpack.c.bf16 %v4206_v44, %v4205_v58  ;;  %v4765_v15 = vld [vmem:[%s7684_s25 + $0x3e] sm:$0xff]  ;;  %v1830_v44 = vpack.c.bf16 %v8773_v29, %v8766_v49  ;;  %v4776_v49 = vld [vmem:[%s7684_s25 + $0x96] sm:$0xff] }
 0x2e4   : > { %v4777_v29 = vld [vmem:[%s7684_s25 + $0x9e] sm:$0xff] }
 0x2e5   : > { %6438 = vmatpush1.bf16.msra.mxu1 %v7543_v8  ;;  %v4236_v8 = vpack.c.bf16 %v4204_v51, %v4203_v0  ;;  %v1828_v51 = vpack.c.bf16 %v8749_v6, %v8742_v43  ;;  %v4772_v43 = vld [vmem:[%s7684_s25 + $0x76] sm:$0xff]  ;;  %v4773_v6 = vld [vmem:[%s7684_s25 + $0x7e] sm:$0xff] }
 0x2e6   : > { %6431 = vmatprep.subr.bf16.mxu1 %v7544_v63  ;;  %v1819_v63 = vpack.c.bf16 %v8607_v13, %v8595_v28  ;;  %v4209_v28 = vld [vmem:[%s7684_s25 + $0x1a5] sm:$0xff]  ;;  %v4210_v13 = vld [vmem:[%s7684_s25 + $0x1ad] sm:$0xff] }
 0x2e7   : > { %1998 = vmatmul.mubr.bf16.gmra.mrb[12].mxu1 %v1813_v19  ;;  %4542 = vmatmul.mubr.bf16.gmra.mrb[68].mxu0 %v4231_v37  ;;  %v4235_v19 = vpack.c.bf16 %v4202_v5, %v4201_v10  ;;  %v1818_v37 = vpack.c.bf16 %v8592_v1, %v8577_v53  ;;  %v4207_v53 = vld [vmem:[%s7684_s25 + $0x195] sm:$0xff]  ;;  %v4208_v1 = vld [vmem:[%s7684_s25 + $0x19d] sm:$0xff]  ;;  %v1826_v5 = vpack.c.bf16 %v8719_v40, %v8703_v31 }
 0x2e8   : > { %2007 = vmatprep.mubr.bf16.mxu1 %v9554_v20  ;;  %4551 = vmatprep.mubr.bf16.mxu0 %v9554_v20  ;;  %v4768_v31 = vld [vmem:[%s7684_s25 + $0x56] sm:$0xff]  ;;  %v4769_v40 = vld [vmem:[%s7684_s25 + $0x5e] sm:$0xff] }
 0x2e9   : > { %6439 = vmatpush1.bf16.msra.mxu1 %v7545_v2  ;;  %v4238_v2 = vpack.c.bf16 %v4208_v1, %v4207_v53  ;;  %v1832_v1 = vpack.c.bf16 %v8803_v46, %v8796_v4  ;;  %v4780_v4 = vld [vmem:[%s7684_s25 + $0xb6] sm:$0xff]  ;;  %v4781_v46 = vld [vmem:[%s7684_s25 + $0xbe] sm:$0xff] }
 0x2ea   : > { %6432 = vmatprep.subr.bf16.mxu1 %v7546_v35  ;;  %v1821_v35 = vpack.c.bf16 %v8631_v52, %v8622_v23 }
 0x2ed   : > { %6440 = vmatpush1.bf16.msra.mxu1 %v7547_v3  ;;  %v1822_v3 = vpack.c.bf16 %v8647_v30, %v8634_v16  ;;  %v4760_v30 = vld [vmem:[%s7684_s25 + $0x16] sm:$0xff] }
 0x2ef   : > { %2008 = vmatmul.mubr.bf16.gmra.mrb[16].mxu1 %v1814_v25  ;;  %4552 = vmatmul.mubr.bf16.gmra.mrb[72].mxu0 %v4232_v17  ;;  %v4239_v25 = vpack.c.bf16 %v4210_v13, %v4209_v28  ;;  %v9557_v13 = vld [vmem:[#allocation4_spill] sm:$0xff] }
 0x2f0   : > { %2017 = vmatprep.mubr.bf16.mxu1 %v9554_v20  ;;  %4561 = vmatprep.mubr.bf16.mxu0 %v9554_v20 }
 0x2f7   : > { %2018 = vmatmul.mubr.bf16.gmra.mrb[20].mxu1 %v1815_v56  ;;  %4562 = vmatmul.mubr.bf16.gmra.mrb[76].mxu0 %v4233_v61  ;;  %v4213_v56 = vld [vmem:[%s7684_s25 + $0x1c5] sm:$0xff]  ;;  %v1823_v61 = vpack.c.bf16 %v8656_v47, %v8650_v26  ;;  %v4763_v47 = vld [vmem:[%s7684_s25 + $0x2e] sm:$0xff] }
 0x2f8   : > { %2027 = vmatprep.mubr.bf16.mxu1 %v9554_v20  ;;  %4571 = vmatprep.mubr.bf16.mxu0 %v9554_v20  ;;  %v4241_v16 = vpack.c.bf16 %v4213_v56, %v4213_v56  ;;  %v4762_v26 = vld [vmem:[%s7684_s25 + $0x26] sm:$0xff] }
 0x2f9   : > { %v4816_v10 = vpack.c.bf16 %v4763_v47, %v4762_v26  ;;  %v4786_v26 = vld [vmem:[%s7684_s25 + $0xe6] sm:$0xff]  ;;  %v4787_v47 = vld [vmem:[%s7684_s25 + $0xee] sm:$0xff] }
 0x2ff   : > { %2028 = vmatmul.mubr.bf16.gmra.mrb[24].mxu1 %v1816_v24  ;;  %4572 = vmatmul.mubr.bf16.gmra.mrb[80].mxu0 %v4234_v48  ;;  %v4815_v24 = vpack.c.bf16 %v4761_v21, %v4760_v30  ;;  %v1825_v48 = vpack.c.bf16 %v8698_v9, %v8679_v22  ;;  %v4766_v22 = vld [vmem:[%s7684_s25 + $0x46] sm:$0xff]  ;;  %v4767_v9 = vld [vmem:[%s7684_s25 + $0x4e] sm:$0xff] }
 0x300   : > { %2037 = vmatprep.mubr.bf16.mxu1 %v9554_v20  ;;  %4581 = vmatprep.mubr.bf16.mxu0 %v9554_v20  ;;  %v4818_v0 = vpack.c.bf16 %v4767_v9, %v4766_v22  ;;  %v4789_v22 = vld [vmem:[%s7684_s25 + $0xfe] sm:$0xff] }
 0x307   : > { %2038 = vmatmul.mubr.bf16.gmra.mrb[28].mxu1 %v1817_v18  ;;  %4582 = vmatmul.mubr.bf16.gmra.mrb[84].mxu0 %v4235_v19  ;;  %v4817_v18 = vpack.c.bf16 %v4765_v15, %v4764_v60  ;;  %v1827_v19 = vpack.c.bf16 %v8737_v36, %v8727_v32  ;;  %v4770_v32 = vld [vmem:[%s7684_s25 + $0x66] sm:$0xff]  ;;  %v4771_v36 = vld [vmem:[%s7684_s25 + $0x6e] sm:$0xff] }
 0x308   : > { %2047 = vmatprep.mubr.bf16.mxu1 %v9554_v20  ;;  %4591 = vmatprep.mubr.bf16.mxu0 %v9554_v20  ;;  %v4820_v58 = vpack.c.bf16 %v4771_v36, %v4770_v32  ;;  %v2384_v15 = vld [vmem:[%s7684_s25 + $0xeb] sm:$0xff]  ;;  %v2387_v32 = vld [vmem:[%s7684_s25 + $0x103] sm:$0xff] }
 0x309   : > { %v4790_v36 = vld [vmem:[%s7684_s25 + $0x106] sm:$0xff] }
 0x30f   : > { %2048 = vmatmul.mubr.bf16.gmra.mrb[32].mxu1 %v1818_v37  ;;  %4592 = vmatmul.mubr.bf16.gmra.mrb[88].mxu0 %v4236_v8  ;;  %v4819_v37 = vpack.c.bf16 %v4769_v40, %v4768_v31  ;;  %v1829_v8 = vpack.c.bf16 %v8761_v34, %v8754_v11  ;;  %v4774_v11 = vld [vmem:[%s7684_s25 + $0x86] sm:$0xff]  ;;  %v4775_v34 = vld [vmem:[%s7684_s25 + $0x8e] sm:$0xff] }
 0x310   : > { %2057 = vmatprep.mubr.bf16.mxu1 %v9554_v20  ;;  %4601 = vmatprep.mubr.bf16.mxu0 %v9554_v20  ;;  %v4822_v53 = vpack.c.bf16 %v4775_v34, %v4774_v11  ;;  %v2388_v34 = vld [vmem:[%s7684_s25 + $0x10b] sm:$0xff] }
 0x317   : > { %2058 = vmatmul.mubr.bf16.gmra.mrb[36].mxu1 %v1819_v63  ;;  %4602 = vmatmul.mubr.bf16.gmra.mrb[92].mxu0 %v4237_v41  ;;  %v4821_v63 = vpack.c.bf16 %v4773_v6, %v4772_v43  ;;  %v1831_v41 = vpack.c.bf16 %v8791_v39, %v8784_v33  ;;  %v4778_v33 = vld [vmem:[%s7684_s25 + $0xa6] sm:$0xff]  ;;  %v4779_v39 = vld [vmem:[%s7684_s25 + $0xae] sm:$0xff] }
 0x318   : > { %2067 = vmatprep.mubr.bf16.mxu1 %v9554_v20  ;;  %4611 = vmatprep.mubr.bf16.mxu0 %v9554_v20  ;;  %v4824_v28 = vpack.c.bf16 %v4779_v39, %v4778_v33 }
 0x31f   : > { %2068 = vmatmul.mubr.bf16.gmra.mrb[40].mxu1 %v1820_v57  ;;  %4612 = vmatmul.mubr.bf16.gmra.mrb[96].mxu0 %v4238_v2  ;;  %v4823_v57 = vpack.c.bf16 %v4777_v29, %v4776_v49  ;;  %v1833_v2 = vpack.c.bf16 %v8815_v42, %v8808_v55  ;;  %v4782_v55 = vld [vmem:[%s7684_s25 + $0xc6] sm:$0xff]  ;;  %v4783_v42 = vld [vmem:[%s7684_s25 + $0xce] sm:$0xff]  ;;  %v4793_v49 = vld [vmem:[%s7684_s25 + $0x11e] sm:$0xff] }
 0x320   : > { %2077 = vmatprep.mubr.bf16.mxu1 %v9554_v20  ;;  %4621 = vmatprep.mubr.bf16.mxu0 %v9554_v20 }
 0x327   : > { %2078 = vmatmul.mubr.bf16.gmra.mrb[44].mxu1 %v1821_v35  ;;  %4622 = vmatmul.mubr.bf16.gmra.mrb[100].mxu0 %v4239_v25  ;;  %v1834_v35 = vpack.c.bf16 %v9557_v13, %v8826_v27  ;;  %v4825_v25 = vpack.c.bf16 %v4781_v46, %v4780_v4  ;;  %v4784_v27 = vld [vmem:[%s7684_s25 + $0xd6] sm:$0xff]  ;;  %v2391_v4 = vld [vmem:[%s7684_s25 + $0x123] sm:$0xff]  ;;  %v4795_v13 = vld [vmem:[%s7684_s25 + $0x12e] sm:$0xff] }
 0x328   : > { %2087 = vmatprep.mubr.bf16.mxu1 %v9554_v20  ;;  %4631 = vmatprep.mubr.bf16.mxu0 %v9554_v20  ;;  %v4794_v46 = vld [vmem:[%s7684_s25 + $0x126] sm:$0xff] }
 0x32a   : > { %v8992_v17 = vpop.f32.mrb[112].mxu0 }
 0x32b   : > { %9555 = vst [vmem:[#allocation7_spill] sm:$0xff] %v8992_v17  ;;  %v8996_v7 = vpop.f32.mrb[113].mxu0  ;;  %v2409_v17 = vld [vmem:[%s7684_s25 + $0x1b3] sm:$0xff] }
 0x32c   : > { %9556 = vst [vmem:[#allocation8_spill] sm:$0xff] %v8996_v7  ;;  %v4046_v23 = vpop.f32.mrb[114].mxu0  ;;  %v2408_v7 = vld [vmem:[%s7684_s25 + $0x1ab] sm:$0xff] }
 0x32d   : > { %v4047_v52 = vpop.f32.mrb[115].mxu0 }
 0x32e   : > { %v9559_v52 = vld [vmem:[#allocation6_spill] sm:$0xff] }
 0x32f   : > { %2088 = vmatmul.mubr.bf16.gmra.mrb[48].mxu1 %v1822_v3  ;;  %4632 = vmatmul.mubr.bf16.gmra.mrb[104].mxu0 %v4240_v38  ;;  %v4826_v3 = vpack.c.bf16 %v4783_v42, %v4782_v55  ;;  %v4785_v38 = vld [vmem:[%s7684_s25 + $0xde] sm:$0xff]  ;;  %v4832_v42 = vpack.c.bf16 %v4795_v13, %v4794_v46 }
 0x330   : > { %2097 = vmatprep.mubr.bf16.mxu1 %v9554_v20  ;;  %4641 = vmatprep.mubr.bf16.mxu0 %v9554_v20 }
 0x337   : > { %2098 = vmatmul.mubr.bf16.gmra.mrb[52].mxu1 %v1823_v61  ;;  %4642 = vmatmul.mubr.bf16.gmra.mrb[116].mxu0 %v4241_v16  ;;  %v4827_v16 = vpack.c.bf16 %v4785_v38, %v4784_v27  ;;  %v2393_v27 = vld [vmem:[%s7684_s25 + $0x133] sm:$0xff] }
 0x338   : > { %2107 = vmatprep.mubr.bf16.mxu1 %v9554_v20  ;;  %4972 = vmatprep.mubr.bf16.mxu0 %v9554_v20  ;;  %v4796_v38 = vld [vmem:[%s7684_s25 + $0x136] sm:$0xff] }
 0x33f   : > { %2108 = vmatmul.mubr.bf16.gmra.mrb[56].mxu1 %v1824_v62  ;;  %4973 = vmatmul.mubr.bf16.vlgmr.msra.gmra.mrb[0].mxu0 %v4815_v24  ;;  %v1809_v24 = vld [vmem:[%s7684_s25 + $0x1ba] sm:$0xff] }
 0x340   : > { %2117 = vmatprep.mubr.bf16.mxu1 %v9554_v20  ;;  %4982 = vmatprep.mubr.bf16.mxu0 %v9554_v20 }
 0x347   : > { %2118 = vmatmul.mubr.bf16.gmra.mrb[60].mxu1 %v1825_v48  ;;  %4983 = vmatmul.mubr.bf16.gmra.mrb[4].mxu0 %v4816_v10  ;;  %v4828_v48 = vpack.c.bf16 %v4787_v47, %v4786_v26  ;;  %v2395_v26 = vld [vmem:[%s7684_s25 + $0x143] sm:$0xff] }
 0x348   : > { %2127 = vmatprep.mubr.bf16.mxu1 %v9554_v20  ;;  %4992 = vmatprep.mubr.bf16.mxu0 %v9554_v20  ;;  %v4798_v47 = vld [vmem:[%s7684_s25 + $0x146] sm:$0xff] }
 0x34f   : > { %2128 = vmatmul.mubr.bf16.gmra.mrb[64].mxu1 %v1826_v5  ;;  %4993 = vmatmul.mubr.bf16.gmra.mrb[8].mxu0 %v4817_v18  ;;  %v2385_v5 = vld [vmem:[%s7684_s25 + $0xf3] sm:$0xff] }
 0x350   : > { %2137 = vmatprep.mubr.bf16.mxu1 %v9554_v20  ;;  %5002 = vmatprep.mubr.bf16.mxu0 %v9554_v20  ;;  %v4788_v18 = vld [vmem:[%s7684_s25 + $0xf6] sm:$0xff] }
 0x351   : > { %v4829_v31 = vpack.c.bf16 %v4789_v22, %v4788_v18 }
 0x357   : > { %2138 = vmatmul.mubr.bf16.gmra.mrb[68].mxu1 %v1827_v19  ;;  %5003 = vmatmul.mubr.bf16.gmra.mrb[12].mxu0 %v4818_v0  ;;  %v2425_v0 = vpack.c.bf16 %v2385_v5, %v2384_v15 }
 0x358   : > { %2147 = vmatprep.mubr.bf16.mxu1 %v9554_v20  ;;  %5012 = vmatprep.mubr.bf16.mxu0 %v9554_v20 }
 0x35f   : > { %2148 = vmatmul.mubr.bf16.gmra.mrb[72].mxu1 %v1828_v51  ;;  %5013 = vmatmul.mubr.bf16.gmra.mrb[16].mxu0 %v4819_v37  ;;  %v2386_v37 = vld [vmem:[%s7684_s25 + $0xfb] sm:$0xff] }
 0x360   : > { %2157 = vmatprep.mubr.bf16.mxu1 %v9554_v20  ;;  %5022 = vmatprep.mubr.bf16.mxu0 %v9554_v20  ;;  %v2426_v6 = vpack.c.bf16 %v2387_v32, %v2386_v37  ;;  %v2397_v37 = vld [vmem:[%s7684_s25 + $0x153] sm:$0xff] }
 0x361   : > { %v4800_v32 = vld [vmem:[%s7684_s25 + $0x156] sm:$0xff] }
 0x367   : > { %2158 = vmatmul.mubr.bf16.gmra.mrb[76].mxu1 %v1829_v8  ;;  %5023 = vmatmul.mubr.bf16.gmra.mrb[20].mxu0 %v4820_v58  ;;  %v4791_v8 = vld [vmem:[%s7684_s25 + $0x10e] sm:$0xff] }
 0x368   : > { %2167 = vmatprep.mubr.bf16.mxu1 %v9554_v20  ;;  %5032 = vmatprep.mubr.bf16.mxu0 %v9554_v20 }
 0x36f   : > { %2168 = vmatmul.mubr.bf16.gmra.mrb[80].mxu1 %v1830_v44  ;;  %5033 = vmatmul.mubr.bf16.gmra.mrb[24].mxu0 %v4821_v63  ;;  %v4830_v44 = vpack.c.bf16 %v4791_v8, %v4790_v36  ;;  %v4801_v36 = vld [vmem:[%s7684_s25 + $0x15e] sm:$0xff] }
 0x370   : > { %2177 = vmatprep.mubr.bf16.mxu1 %v9554_v20  ;;  %5042 = vmatprep.mubr.bf16.mxu0 %v9554_v20 }
 0x377   : > { %2178 = vmatmul.mubr.bf16.gmra.mrb[84].mxu1 %v1831_v41  ;;  %5043 = vmatmul.mubr.bf16.gmra.mrb[28].mxu0 %v4822_v53  ;;  %v2389_v41 = vld [vmem:[%s7684_s25 + $0x113] sm:$0xff] }
 0x378   : > { %2187 = vmatprep.mubr.bf16.mxu1 %v9554_v20  ;;  %5052 = vmatprep.mubr.bf16.mxu0 %v9554_v20  ;;  %v4792_v53 = vld [vmem:[%s7684_s25 + $0x116] sm:$0xff] }
 0x379   : > { %v4831_v33 = vpack.c.bf16 %v4793_v49, %v4792_v53  ;;  %v2398_v49 = vld [vmem:[%s7684_s25 + $0x15b] sm:$0xff] }
 0x37f   : > { %2188 = vmatmul.mubr.bf16.gmra.mrb[88].mxu1 %v1832_v1  ;;  %5053 = vmatmul.mubr.bf16.gmra.mrb[32].mxu0 %v4823_v57  ;;  %v2427_v57 = vpack.c.bf16 %v2389_v41, %v2388_v34  ;;  %v4835_v34 = vpack.c.bf16 %v4801_v36, %v4800_v32  ;;  %v4807_v32 = vld [vmem:[%s7684_s25 + $0x18e] sm:$0xff] }
 0x380   : > { %2197 = vmatprep.mubr.bf16.mxu1 %v9554_v20  ;;  %5062 = vmatprep.mubr.bf16.mxu0 %v9554_v20 }
 0x387   : > { %2198 = vmatmul.mubr.bf16.gmra.mrb[92].mxu1 %v1833_v2  ;;  %5063 = vmatmul.mubr.bf16.gmra.mrb[36].mxu0 %v4824_v28  ;;  %v2390_v28 = vld [vmem:[%s7684_s25 + $0x11b] sm:$0xff] }
 0x388   : > { %2207 = vmatprep.mubr.bf16.mxu1 %v9554_v20  ;;  %5072 = vmatprep.mubr.bf16.mxu0 %v9554_v20  ;;  %v2428_v55 = vpack.c.bf16 %v2391_v4, %v2390_v28  ;;  %v4803_v28 = vld [vmem:[%s7684_s25 + $0x16e] sm:$0xff] }
 0x38f   : > { %2208 = vmatmul.mubr.bf16.gmra.mrb[96].mxu1 %v1834_v35  ;;  %5073 = vmatmul.mubr.bf16.gmra.mrb[40].mxu0 %v4825_v25 }
 0x390   : > { %2217 = vmatprep.mubr.bf16.mxu1 %v9554_v20  ;;  %5082 = vmatprep.mubr.bf16.mxu0 %v9554_v20 }
 0x397   : > { %2218 = vmatmul.mubr.bf16.gmra.mrb[100].mxu1 %v1835_v14  ;;  %5083 = vmatmul.mubr.bf16.gmra.mrb[44].mxu0 %v4826_v3  ;;  %v2392_v3 = vld [vmem:[%s7684_s25 + $0x12b] sm:$0xff] }
 0x398   : > { %2227 = vmatprep.mubr.bf16.mxu1 %v9554_v20  ;;  %5092 = vmatprep.mubr.bf16.mxu0 %v9554_v20 }
 0x39a   : > { %v1638_v23 = vpop.f32.mrb[116].mxu1 }
 0x39b   : > { %v9080_v56 = vadd.f32 %v1638_v23, %v9559_v52  ;;  %v1640_v61 = vpop.f32.mrb[117].mxu1  ;;  %v4797_v23 = vld [vmem:[%s7684_s25 + $0x13e] sm:$0xff] }
 0x39c   : > { %v9085_v30 = vadd.f32 %v1640_v61, %v8860_v50  ;;  %v1642_v21 = vpop.f32.mrb[118].mxu1  ;;  %v1837_v50 = vpack.c.bf16 %v1809_v24, %v1809_v24  ;;  %v2394_v24 = vld [vmem:[%s7684_s25 + $0x13b] sm:$0xff] }
 0x39d   : > { %9560 = vst [vmem:[#allocation4_spill] sm:$0xff] %v9080_v56  ;;  %v1643_v62 = vpop.f32.mrb[119].mxu1  ;;  %v2430_v5 = vpack.c.bf16 %v2395_v26, %v2394_v24  ;;  %v4813_v56 = vld [vmem:[%s7684_s25 + $0x1be] sm:$0xff] }
 0x39e   : > { %9561 = vst [vmem:[#allocation5_spill] sm:$0xff] %v9085_v30  ;;  %v4812_v30 = vld [vmem:[%s7684_s25 + $0x1b6] sm:$0xff] }
 0x39f   : > { %2228 = vmatmul.mubr.bf16.gmra.mrb[104].mxu1 %v1836_v59  ;;  %5093 = vmatmul.mubr.bf16.gmra.mrb[48].mxu0 %v4827_v16  ;;  %v2429_v59 = vpack.c.bf16 %v2393_v27, %v2392_v3  ;;  %v4833_v16 = vpack.c.bf16 %v4797_v23, %v4796_v38  ;;  %v2400_v27 = vld [vmem:[%s7684_s25 + $0x16b] sm:$0xff]  ;;  %v2401_v38 = vld [vmem:[%s7684_s25 + $0x173] sm:$0xff] }
 0x3a0   : > { %2237 = vmatprep.mubr.bf16.mxu1 %v9554_v20  ;;  %5102 = vmatprep.mubr.bf16.mxu0 %v9554_v20  ;;  %v4804_v23 = vld [vmem:[%s7684_s25 + $0x176] sm:$0xff]  ;;  %v2433_v26 = vpack.c.bf16 %v2401_v38, %v2400_v27  ;;  %v4809_v27 = vld [vmem:[%s7684_s25 + $0x19e] sm:$0xff] }
 0x3a2   : > { %v9092_v54 = vpop.f32.mrb[0].mxu1 }
 0x3a3   : > { %v9094_v45 = vpop.f32.mrb[1].mxu1 }
 0x3a4   : > { %v9096_v10 = vpop.f32.mrb[2].mxu1 }
 0x3a5   : > { %v9098_v60 = vpop.f32.mrb[3].mxu1 }
 0x3a7   : > { %2238 = vmatmul.mubr.bf16.gmra.mrb[120].mxu1 %v1837_v50  ;;  %5103 = vmatmul.mubr.bf16.gmra.mrb[52].mxu0 %v4828_v48  ;;  %v4799_v50 = vld [vmem:[%s7684_s25 + $0x14e] sm:$0xff] }
 0x3a8   : > { %2708 = vmatprep.mubr.bf16.mxu1 %v9554_v20  ;;  %5112 = vmatprep.mubr.bf16.mxu0 %v9554_v20  ;;  %v4834_v18 = vpack.c.bf16 %v4799_v50, %v4798_v47 }
 0x3aa   : > { %v9106_v9 = vpop.f32.mrb[4].mxu1 }
 0x3ab   : > { %v9108_v19 = vpop.f32.mrb[5].mxu1 }
 0x3ac   : > { %v9110_v40 = vpop.f32.mrb[6].mxu1 }
 0x3ad   : > { %v9112_v51 = vpop.f32.mrb[7].mxu1 }
 0x3af   : > { %2709 = vmatmul.mubr.bf16.vlgmr.msra.gmra.mrb[56].mxu1 %v2425_v0  ;;  %5113 = vmatmul.mubr.bf16.gmra.mrb[56].mxu0 %v4829_v31  ;;  %v2396_v31 = vld [vmem:[%s7684_s25 + $0x14b] sm:$0xff] }
 0x3b0   : > { %2718 = vmatprep.mubr.bf16.mxu1 %v9554_v20  ;;  %5122 = vmatprep.mubr.bf16.mxu0 %v9554_v20 }
 0x3b2   : > { %v9120_v58 = vpop.f32.mrb[8].mxu1 }
 0x3b3   : > { %v9122_v43 = vpop.f32.mrb[9].mxu1 }
 0x3b4   : > { %v9124_v63 = vpop.f32.mrb[10].mxu1 }
 0x3b5   : > { %v9126_v11 = vpop.f32.mrb[11].mxu1 }
 0x3b7   : > { %2719 = vmatmul.mubr.bf16.gmra.mrb[60].mxu1 %v2426_v6  ;;  %5123 = vmatmul.mubr.bf16.gmra.mrb[60].mxu0 %v4830_v44  ;;  %v2431_v44 = vpack.c.bf16 %v2397_v37, %v2396_v31  ;;  %v2403_v31 = vld [vmem:[%s7684_s25 + $0x183] sm:$0xff] }
 0x3b8   : > { %2728 = vmatprep.mubr.bf16.mxu1 %v9554_v20  ;;  %5132 = vmatprep.mubr.bf16.mxu0 %v9554_v20  ;;  %v4806_v37 = vld [vmem:[%s7684_s25 + $0x186] sm:$0xff] }
 0x3ba   : > { %v9134_v29 = vpop.f32.mrb[12].mxu1 }
 0x3bb   : > { %v9136_v1 = vpop.f32.mrb[13].mxu1 }
 0x3bc   : > { %v9138_v39 = vpop.f32.mrb[14].mxu1 }
 0x3bd   : > { %v9140_v2 = vpop.f32.mrb[15].mxu1 }
 0x3bf   : > { %2729 = vmatmul.mubr.bf16.gmra.mrb[64].mxu1 %v2427_v57  ;;  %5133 = vmatmul.mubr.bf16.gmra.mrb[64].mxu0 %v4831_v33  ;;  %v2399_v57 = vld [vmem:[%s7684_s25 + $0x163] sm:$0xff] }
 0x3c0   : > { %2738 = vmatprep.mubr.bf16.mxu1 %v9554_v20  ;;  %5142 = vmatprep.mubr.bf16.mxu0 %v9554_v20  ;;  %v4802_v33 = vld [vmem:[%s7684_s25 + $0x166] sm:$0xff]  ;;  %v2432_v13 = vpack.c.bf16 %v2399_v57, %v2398_v49  ;;  %v4838_v49 = vpack.c.bf16 %v4807_v32, %v4806_v37 }
 0x3c1   : > { %v2407_v37 = vld [vmem:[%s7684_s25 + $0x1a3] sm:$0xff] }
 0x3c2   : > { %v9148_v35 = vpop.f32.mrb[16].mxu1  ;;  %v4810_v32 = vld [vmem:[%s7684_s25 + $0x1a6] sm:$0xff] }
 0x3c3   : > { %v9150_v25 = vpop.f32.mrb[17].mxu1 }
 0x3c4   : > { %v9152_v12 = vpop.f32.mrb[18].mxu1 }
 0x3c5   : > { %v9154_v14 = vpop.f32.mrb[19].mxu1 }
 0x3c7   : > { %2739 = vmatmul.mubr.bf16.gmra.mrb[68].mxu1 %v2428_v55  ;;  %5143 = vmatmul.mubr.bf16.gmra.mrb[68].mxu0 %v4832_v42  ;;  %v4836_v55 = vpack.c.bf16 %v4803_v28, %v4802_v33  ;;  %v2404_v28 = vld [vmem:[%s7684_s25 + $0x18b] sm:$0xff] }
 0x3c8   : > { %2748 = vmatprep.mubr.bf16.mxu1 %v9554_v20  ;;  %5152 = vmatprep.mubr.bf16.mxu0 %v9554_v20 }
 0x3ca   : > { %v9162_v52 = vpop.f32.mrb[20].mxu1 }
 0x3cb   : > { %v9164_v61 = vpop.f32.mrb[21].mxu1 }
 0x3cc   : > { %v9166_v21 = vpop.f32.mrb[22].mxu1 }
 0x3cd   : > { %v9168_v62 = vpop.f32.mrb[23].mxu1 }
 0x3cf   : > { %2749 = vmatmul.mubr.bf16.gmra.mrb[72].mxu1 %v2429_v59  ;;  %5153 = vmatmul.mubr.bf16.gmra.mrb[72].mxu0 %v4833_v16  ;;  %v4805_v59 = vld [vmem:[%s7684_s25 + $0x17e] sm:$0xff] }
 0x3d0   : > { %2758 = vmatprep.mubr.bf16.mxu1 %v9554_v20  ;;  %5162 = vmatprep.mubr.bf16.mxu0 %v9554_v20  ;;  %v4837_v47 = vpack.c.bf16 %v4805_v59, %v4804_v23 }
 0x3d2   : > { %v9176_v48 = vpop.f32.mrb[24].mxu1 }
 0x3d3   : > { %v9178_v15 = vpop.f32.mrb[25].mxu1 }
 0x3d4   : > { %v9180_v22 = vpop.f32.mrb[26].mxu1 }
 0x3d5   : > { %v9182_v0 = vpop.f32.mrb[27].mxu1 }
 0x3d7   : > { %2759 = vmatmul.mubr.bf16.gmra.mrb[76].mxu1 %v2430_v5  ;;  %5163 = vmatmul.mubr.bf16.gmra.mrb[76].mxu0 %v4834_v18  ;;  %v2402_v18 = vld [vmem:[%s7684_s25 + $0x17b] sm:$0xff] }
 0x3d8   : > { %2768 = vmatprep.mubr.bf16.mxu1 %v9554_v20  ;;  %5172 = vmatprep.mubr.bf16.mxu0 %v9554_v20 }
 0x3da   : > { %v9190_v8 = vpop.f32.mrb[28].mxu1 }
 0x3db   : > { %v9192_v6 = vpop.f32.mrb[29].mxu1 }
 0x3dc   : > { %v9194_v41 = vpop.f32.mrb[30].mxu1 }
 0x3dd   : > { %v9196_v53 = vpop.f32.mrb[31].mxu1 }
 0x3df   : > { %2769 = vmatmul.mubr.bf16.gmra.mrb[80].mxu1 %v2431_v44  ;;  %5173 = vmatmul.mubr.bf16.gmra.mrb[80].mxu0 %v4835_v34  ;;  %v2434_v34 = vpack.c.bf16 %v2403_v31, %v2402_v18  ;;  %v2406_v31 = vld [vmem:[%s7684_s25 + $0x19b] sm:$0xff] }
 0x3e0   : > { %2778 = vmatprep.mubr.bf16.mxu1 %v9554_v20  ;;  %5182 = vmatprep.mubr.bf16.mxu0 %v9554_v20 }
 0x3e2   : > { %v9204_v4 = vpop.f32.mrb[32].mxu1 }
 0x3e3   : > { %v9206_v46 = vpop.f32.mrb[33].mxu1 }
 0x3e4   : > { %v9208_v42 = vpop.f32.mrb[34].mxu1 }
 0x3e5   : > { %v9210_v3 = vpop.f32.mrb[35].mxu1 }
 0x3e7   : > { %2779 = vmatmul.mubr.bf16.gmra.mrb[84].mxu1 %v2432_v13  ;;  %5183 = vmatmul.mubr.bf16.gmra.mrb[84].mxu0 %v4836_v55  ;;  %v2405_v13 = vld [vmem:[%s7684_s25 + $0x193] sm:$0xff] }
 0x3e8   : > { %2788 = vmatprep.mubr.bf16.mxu1 %v9554_v20  ;;  %5192 = vmatprep.mubr.bf16.mxu0 %v9554_v20  ;;  %v4808_v55 = vld [vmem:[%s7684_s25 + $0x196] sm:$0xff]  ;;  %v2435_v59 = vpack.c.bf16 %v2405_v13, %v2404_v28  ;;  %v2436_v13 = vpack.c.bf16 %v2407_v37, %v2406_v31 }
 0x3ea   : > { %v9218_v16 = vpop.f32.mrb[36].mxu1 }
 0x3eb   : > { %v9220_v24 = vpop.f32.mrb[37].mxu1 }
 0x3ec   : > { %v9222_v50 = vpop.f32.mrb[38].mxu1 }
 0x3ed   : > { %v9224_v5 = vpop.f32.mrb[39].mxu1 }
 0x3ef   : > { %2789 = vmatmul.mubr.bf16.gmra.mrb[88].mxu1 %v2433_v26  ;;  %5193 = vmatmul.mubr.bf16.gmra.mrb[88].mxu0 %v4837_v47  ;;  %v4839_v26 = vpack.c.bf16 %v4809_v27, %v4808_v55 }
 0x3f0   : > { %2798 = vmatprep.mubr.bf16.mxu1 %v9554_v20  ;;  %5202 = vmatprep.mubr.bf16.mxu0 %v9554_v20 }
 0x3f2   : > { %v9232_v36 = vpop.f32.mrb[40].mxu1 }
 0x3f3   : > { %v9234_v44 = vpop.f32.mrb[41].mxu1 }
 0x3f4   : > { %v9236_v57 = vpop.f32.mrb[42].mxu1 }
 0x3f5   : > { %v9238_v33 = vpop.f32.mrb[43].mxu1 }
 0x3f7   : > { %2799 = vmatmul.mubr.bf16.gmra.mrb[92].mxu1 %v2434_v34  ;;  %5203 = vmatmul.mubr.bf16.gmra.mrb[92].mxu0 %v4838_v49  ;;  %v4811_v34 = vld [vmem:[%s7684_s25 + $0x1ae] sm:$0xff] }
 0x3f8   : > { %2808 = vmatprep.mubr.bf16.mxu1 %v9554_v20  ;;  %5212 = vmatprep.mubr.bf16.mxu0 %v9554_v20  ;;  %v4840_v55 = vpack.c.bf16 %v4811_v34, %v4810_v32  ;;  %v2437_v32 = vpack.c.bf16 %v2409_v17, %v2408_v7  ;;  %v2410_v17 = vld [vmem:[%s7684_s25 + $0x1bb] sm:$0xff]  ;;  %v4814_v7 = vld [vmem:[%s7684_s25 + $0x1c6] sm:$0xff] }
 0x3fa   : > { %v9246_v38 = vpop.f32.mrb[44].mxu1 }
 0x3fb   : > { %v9248_v23 = vpop.f32.mrb[45].mxu1 }
 0x3fc   : > { %v9250_v47 = vpop.f32.mrb[46].mxu1 }
 0x3fd   : > { %9562 = vst [vmem:[#allocation6_spill] sm:$0xff] %v9250_v47  ;;  %v9252_v18 = vpop.f32.mrb[47].mxu1 }
 0x3fe   : > { %9563 = vst [vmem:[#allocation9_spill] sm:$0xff] %v9252_v18 }
 0x3ff   : > { %2809 = vmatmul.mubr.bf16.gmra.mrb[96].mxu1 %v2435_v59  ;;  %5213 = vmatmul.mubr.bf16.gmra.mrb[96].mxu0 %v4839_v26  ;;  %v5362_v26 = vlaneseq }
 0x400   : > { %2818 = vmatprep.mubr.bf16.mxu1 %v9554_v20  ;;  %5222 = vmatprep.mubr.bf16.mxu0 %v9554_v20 }
 0x402   : > { %v9260_v49 = vpop.f32.mrb[48].mxu1 }
 0x403   : > { %9564 = vst [vmem:[#allocation10_spill] sm:$0xff] %v9260_v49  ;;  %v9262_v28 = vpop.f32.mrb[49].mxu1  ;;  %v5363_v49 = vshrl.u32 %v5362_v26, 7  ;;  %v172_v26 = vld [vmem:[%s9543_s2] sm:$0x3] }
 0x404   : > { %9565 = vst [vmem:[#allocation11_spill] sm:$0xff] %v9262_v28  ;;  %v9264_v27 = vpop.f32.mrb[50].mxu1 }
 0x405   : > { %9566 = vst [vmem:[#allocation12_spill] sm:$0xff] %v9264_v27  ;;  %v9266_v59 = vpop.f32.mrb[51].mxu1  ;;  %v5364_v47 = vsub.s32 0, %v5363_v49 }
 0x406   : > { %9567 = vst [vmem:[#allocation13_spill] sm:$0xff] %v9266_v59 }
 0x407   : > { %2819 = vmatmul.mubr.bf16.gmra.mrb[100].mxu1 %v2436_v13  ;;  %5223 = vmatmul.mubr.bf16.gmra.mrb[100].mxu0 %v4840_v55  ;;  %v4841_v13 = vpack.c.bf16 %v4813_v56, %v4812_v30  ;;  %v9293_v56 = vrot.slane %v172_v26, %v5364_v47 }
 0x408   : > { %2828 = vmatprep.mubr.bf16.mxu1 %v9554_v20  ;;  %5232 = vmatprep.mubr.bf16.mxu0 %v9554_v20 }
 0x40a   : > { %v9274_v18 = vpop.f32.mrb[52].mxu1  ;;  %v9276_v31 = vpop.f32.mrb[116].mxu0 }
 0x40b   : > { %9568 = vst [vmem:[#allocation14_spill] sm:$0xff] %v9274_v18  ;;  %9569 = vst [vmem:[#allocation15_spill] sm:$0xff] %v9276_v31  ;;  %v9278_v37 = vpop.f32.mrb[53].mxu1  ;;  %v9280_v34 = vpop.f32.mrb[117].mxu0  ;;  %v5368_v18 = vsub.s32 1, %v5363_v49  ;;  %v2438_v31 = vpack.c.bf16 %v2410_v17, %v2410_v17 }
 0x40c   : > { %9570 = vst [vmem:[#allocation16_spill] sm:$0xff] %v9278_v37  ;;  %9571 = vst [vmem:[#allocation17_spill] sm:$0xff] %v9280_v34  ;;  %v9282_v55 = vpop.f32.mrb[54].mxu1  ;;  %v4647_v59 = vpop.f32.mrb[118].mxu0 }
 0x40d   : > { %9572 = vst [vmem:[#allocation18_spill] sm:$0xff] %v9282_v55  ;;  %v9284_v27 = vpop.f32.mrb[55].mxu1  ;;  %v4648_v28 = vpop.f32.mrb[119].mxu0  ;;  %v9295_v59 = vrot.slane %v172_v26, %v5368_v18 }
 0x40e   : > { %9573 = vst [vmem:[#allocation19_spill] sm:$0xff] %v9284_v27  ;;  %v4842_v27 = vpack.c.bf16 %v4814_v7, %v4814_v7 }
 0x40f   : > { %2829 = vmatmul.mubr.bf16.gmra.mrb[104].mxu1 %v2437_v32  ;;  %5233 = vmatmul.mubr.bf16.gmra.mrb[104].mxu0 %v4841_v13 }
 0x410   : > { %2838 = vmatprep.mubr.bf16.mxu1 %v9554_v20  ;;  %5242 = vmatprep.mubr.bf16.mxu0 %v9554_v20 }
 0x412   : > { %v4974_v30 = vpop.f32.mrb[0].mxu0 }
 0x413   : > { %v6441_v28 = vadd.f32 %v4974_v30, %v9092_v54  ;;  %v4976_v34 = vpop.f32.mrb[1].mxu0 }
 0x414   : > { %v6442_v49 = vadd.f32 %v4976_v34, %v9094_v45  ;;  %v4978_v32 = vpop.f32.mrb[2].mxu0 }
 0x415   : > { %v5372_v13 = vadd.f32 %v6441_v28, %v9293_v56  ;;  %v6443_v55 = vadd.f32 %v4978_v32, %v9096_v10  ;;  %v4980_v20 = vpop.f32.mrb[3].mxu0 }
 0x416   : > { %v5373_v47 = vadd.f32 %v6442_v49, %v9295_v59  ;;  %v6444_v37 = vadd.f32 %v4980_v20, %v9098_v60 }
 0x417   : > { %v5482_v18 = vmax.f32 %v5372_v13, 0.0  ;;  %v5374_v26 = vadd.f32 %v6443_v55, %v9293_v56  ;;  %2839 = vmatmul.mubr.bf16.gmra.mrb[124].mxu1 %v2438_v31  ;;  %5243 = vmatmul.mubr.bf16.gmra.mrb[120].mxu0 %v4842_v27 }
 0x418   : > { %v5483_v54 = vmax.f32 %v5373_v47, 0.0  ;;  %v5375_v17 = vadd.f32 %v6444_v37, %v9295_v59 }
 0x419   : > { %v5484_v45 = vmax.f32 %v5374_v26, 0.0 }
 0x41a   : > { %v6370_v10 = vpack.c.bf16 %v5483_v54, %v5482_v18  ;;  %v5485_v34 = vmax.f32 %v5375_v17, 0.0  ;;  %v4984_v7 = vpop.f32.mrb[4].mxu0 }
 0x41b   : > { %v6445_v60 = vadd.f32 %v4984_v7, %v9106_v9  ;;  %v4986_v30 = vpop.f32.mrb[5].mxu0 }
 0x41c   : > { %5924 = vst [vmem:[%s9309_s28] sm:$0xff] %v6370_v10  ;;  %v6371_v31 = vpack.c.bf16 %v5485_v34, %v5484_v45  ;;  %v6446_v27 = vadd.f32 %v4986_v30, %v9108_v19  ;;  %v4988_v55 = vpop.f32.mrb[6].mxu0 }
 0x41d   : > { %v5376_v37 = vadd.f32 %v6445_v60, %v9293_v56  ;;  %v6447_v28 = vadd.f32 %v4988_v55, %v9110_v40  ;;  %v4990_v49 = vpop.f32.mrb[7].mxu0 }
 0x41e   : > { %5925 = vst [vmem:[%s9309_s28 + $0x8] sm:$0xff] %v6371_v31  ;;  %v5377_v32 = vadd.f32 %v6446_v27, %v9295_v59  ;;  %v6448_v13 = vadd.f32 %v4990_v49, %v9112_v51 }
 0x41f   : > { %v5486_v20 = vmax.f32 %v5376_v37, 0.0  ;;  %v5378_v9 = vadd.f32 %v6447_v28, %v9293_v56 }
 0x420   : > { %v5487_v47 = vmax.f32 %v5377_v32, 0.0  ;;  %v5379_v18 = vadd.f32 %v6448_v13, %v9295_v59 }
 0x421   : > { %v5488_v19 = vmax.f32 %v5378_v9, 0.0 }
 0x422   : > { %v6372_v26 = vpack.c.bf16 %v5487_v47, %v5486_v20  ;;  %v5489_v54 = vmax.f32 %v5379_v18, 0.0  ;;  %v4994_v17 = vpop.f32.mrb[8].mxu0 }
 0x423   : > { %v6449_v45 = vadd.f32 %v4994_v17, %v9120_v58  ;;  %v4996_v40 = vpop.f32.mrb[9].mxu0 }
 0x424   : > { %5926 = vst [vmem:[%s9309_s28 + $0x10] sm:$0xff] %v6372_v26  ;;  %v6373_v10 = vpack.c.bf16 %v5489_v54, %v5488_v19  ;;  %v6450_v34 = vadd.f32 %v4996_v40, %v9122_v43  ;;  %v4998_v7 = vpop.f32.mrb[10].mxu0 }
 0x425   : > { %v5380_v51 = vadd.f32 %v6449_v45, %v9293_v56  ;;  %v6451_v60 = vadd.f32 %v4998_v7, %v9124_v63  ;;  %v5000_v30 = vpop.f32.mrb[11].mxu0 }
 0x426   : > { %5927 = vst [vmem:[%s9309_s28 + $0x18] sm:$0xff] %v6373_v10  ;;  %v5381_v31 = vadd.f32 %v6450_v34, %v9295_v59  ;;  %v6452_v27 = vadd.f32 %v5000_v30, %v9126_v11 }
 0x427   : > { %v5490_v55 = vmax.f32 %v5380_v51, 0.0  ;;  %v5382_v58 = vadd.f32 %v6451_v60, %v9293_v56 }
 0x428   : > { %v5491_v37 = vmax.f32 %v5381_v31, 0.0  ;;  %v5383_v28 = vadd.f32 %v6452_v27, %v9295_v59 }
 0x429   : > { %v5492_v43 = vmax.f32 %v5382_v58, 0.0 }
 0x42a   : > { %v6374_v49 = vpack.c.bf16 %v5491_v37, %v5490_v55  ;;  %v5493_v32 = vmax.f32 %v5383_v28, 0.0  ;;  %v5004_v13 = vpop.f32.mrb[12].mxu0 }
 0x42b   : > { %v6453_v20 = vadd.f32 %v5004_v13, %v9134_v29  ;;  %v5006_v63 = vpop.f32.mrb[13].mxu0 }
 0x42c   : > { %5928 = vst [vmem:[%s9309_s28 + $0x20] sm:$0xff] %v6374_v49  ;;  %v6375_v9 = vpack.c.bf16 %v5493_v32, %v5492_v43  ;;  %v6454_v47 = vadd.f32 %v5006_v63, %v9136_v1  ;;  %v5008_v18 = vpop.f32.mrb[14].mxu0 }
 0x42d   : > { %v5384_v11 = vadd.f32 %v6453_v20, %v9293_v56  ;;  %v6455_v19 = vadd.f32 %v5008_v18, %v9138_v39  ;;  %v5010_v26 = vpop.f32.mrb[15].mxu0 }
 0x42e   : > { %5929 = vst [vmem:[%s9309_s28 + $0x28] sm:$0xff] %v6375_v9  ;;  %v5385_v54 = vadd.f32 %v6454_v47, %v9295_v59  ;;  %v6456_v17 = vadd.f32 %v5010_v26, %v9140_v2 }
 0x42f   : > { %v5494_v45 = vmax.f32 %v5384_v11, 0.0  ;;  %v5386_v29 = vadd.f32 %v6455_v19, %v9293_v56 }
 0x430   : > { %v5495_v40 = vmax.f32 %v5385_v54, 0.0  ;;  %v5387_v10 = vadd.f32 %v6456_v17, %v9295_v59 }
 0x431   : > { %v5496_v1 = vmax.f32 %v5386_v29, 0.0 }
 0x432   : > { %v6376_v34 = vpack.c.bf16 %v5495_v40, %v5494_v45  ;;  %v5497_v7 = vmax.f32 %v5387_v10, 0.0  ;;  %v5014_v51 = vpop.f32.mrb[16].mxu0 }
 0x433   : > { %v6457_v60 = vadd.f32 %v5014_v51, %v9148_v35  ;;  %v5016_v39 = vpop.f32.mrb[17].mxu0 }
 0x434   : > { %5930 = vst [vmem:[%s9309_s28 + $0x30] sm:$0xff] %v6376_v34  ;;  %v6377_v30 = vpack.c.bf16 %v5497_v7, %v5496_v1  ;;  %v6458_v31 = vadd.f32 %v5016_v39, %v9150_v25  ;;  %v5018_v27 = vpop.f32.mrb[18].mxu0 }
 0x435   : > { %v5388_v2 = vadd.f32 %v6457_v60, %v9293_v56  ;;  %v6459_v55 = vadd.f32 %v5018_v27, %v9152_v12  ;;  %v5020_v58 = vpop.f32.mrb[19].mxu0 }
 0x436   : > { %5931 = vst [vmem:[%s9309_s28 + $0x38] sm:$0xff] %v6377_v30  ;;  %v5389_v37 = vadd.f32 %v6458_v31, %v9295_v59  ;;  %v6460_v28 = vadd.f32 %v5020_v58, %v9154_v14 }
 0x437   : > { %v5498_v43 = vmax.f32 %v5388_v2, 0.0  ;;  %v5390_v35 = vadd.f32 %v6459_v55, %v9293_v56 }
 0x438   : > { %v5499_v49 = vmax.f32 %v5389_v37, 0.0  ;;  %v5391_v32 = vadd.f32 %v6460_v28, %v9295_v59 }
 0x439   : > { %v5500_v25 = vmax.f32 %v5390_v35, 0.0 }
 0x43a   : > { %v6378_v13 = vpack.c.bf16 %v5499_v49, %v5498_v43  ;;  %v5501_v20 = vmax.f32 %v5391_v32, 0.0  ;;  %v5024_v63 = vpop.f32.mrb[20].mxu0 }
 0x43b   : > { %v6461_v9 = vadd.f32 %v5024_v63, %v9162_v52  ;;  %v5026_v12 = vpop.f32.mrb[21].mxu0 }
 0x43c   : > { %5932 = vst [vmem:[%s9309_s28 + $0x40] sm:$0xff] %v6378_v13  ;;  %v6379_v47 = vpack.c.bf16 %v5501_v20, %v5500_v25  ;;  %v6462_v18 = vadd.f32 %v5026_v12, %v9164_v61  ;;  %v5028_v11 = vpop.f32.mrb[22].mxu0 }
 0x43d   : > { %v5392_v14 = vadd.f32 %v6461_v9, %v9293_v56  ;;  %v6463_v19 = vadd.f32 %v5028_v11, %v9166_v21  ;;  %v5030_v26 = vpop.f32.mrb[23].mxu0 }
 0x43e   : > { %5933 = vst [vmem:[%s9309_s28 + $0x48] sm:$0xff] %v6379_v47  ;;  %v5393_v54 = vadd.f32 %v6462_v18, %v9295_v59  ;;  %v6464_v17 = vadd.f32 %v5030_v26, %v9168_v62 }
 0x43f   : > { %v5502_v45 = vmax.f32 %v5392_v14, 0.0  ;;  %v5394_v52 = vadd.f32 %v6463_v19, %v9293_v56 }
 0x440   : > { %v5503_v29 = vmax.f32 %v5393_v54, 0.0  ;;  %v5395_v40 = vadd.f32 %v6464_v17, %v9295_v59 }
 0x441   : > { %v5504_v61 = vmax.f32 %v5394_v52, 0.0 }
 0x442   : > { %v6380_v10 = vpack.c.bf16 %v5503_v29, %v5502_v45  ;;  %v5505_v1 = vmax.f32 %v5395_v40, 0.0  ;;  %v5034_v34 = vpop.f32.mrb[24].mxu0 }
 0x443   : > { %v6465_v7 = vadd.f32 %v5034_v34, %v9176_v48  ;;  %v5036_v21 = vpop.f32.mrb[25].mxu0 }
 0x444   : > { %5934 = vst [vmem:[%s9309_s28 + $0x50] sm:$0xff] %v6380_v10  ;;  %v6381_v51 = vpack.c.bf16 %v5505_v1, %v5504_v61  ;;  %v6466_v60 = vadd.f32 %v5036_v21, %v9178_v15  ;;  %v5038_v39 = vpop.f32.mrb[26].mxu0 }
 0x445   : > { %v5396_v62 = vadd.f32 %v6465_v7, %v9293_v56  ;;  %v6467_v30 = vadd.f32 %v5038_v39, %v9180_v22  ;;  %v5040_v31 = vpop.f32.mrb[27].mxu0 }
 0x446   : > { %5935 = vst [vmem:[%s9309_s28 + $0x58] sm:$0xff] %v6381_v51  ;;  %v5397_v27 = vadd.f32 %v6466_v60, %v9295_v59  ;;  %v6468_v2 = vadd.f32 %v5040_v31, %v9182_v0 }
 0x447   : > { %v5506_v55 = vmax.f32 %v5396_v62, 0.0  ;;  %v5398_v48 = vadd.f32 %v6467_v30, %v9293_v56 }
 0x448   : > { %v5507_v58 = vmax.f32 %v5397_v27, 0.0  ;;  %v5399_v37 = vadd.f32 %v6468_v2, %v9295_v59 }
 0x449   : > { %v5508_v15 = vmax.f32 %v5398_v48, 0.0 }
 0x44a   : > { %v6382_v28 = vpack.c.bf16 %v5507_v58, %v5506_v55  ;;  %v5509_v43 = vmax.f32 %v5399_v37, 0.0  ;;  %v5044_v35 = vpop.f32.mrb[28].mxu0 }
 0x44b   : > { %v6469_v49 = vadd.f32 %v5044_v35, %v9190_v8  ;;  %v5046_v22 = vpop.f32.mrb[29].mxu0 }
 0x44c   : > { %5936 = vst [vmem:[%s9309_s28 + $0x60] sm:$0xff] %v6382_v28  ;;  %v6383_v32 = vpack.c.bf16 %v5509_v43, %v5508_v15  ;;  %v6470_v25 = vadd.f32 %v5046_v22, %v9192_v6  ;;  %v5048_v13 = vpop.f32.mrb[30].mxu0 }
 0x44d   : > { %v5400_v0 = vadd.f32 %v6469_v49, %v9293_v56  ;;  %v6471_v20 = vadd.f32 %v5048_v13, %v9194_v41  ;;  %v5050_v63 = vpop.f32.mrb[31].mxu0 }
 0x44e   : > { %5937 = vst [vmem:[%s9309_s28 + $0x68] sm:$0xff] %v6383_v32  ;;  %v5401_v9 = vadd.f32 %v6470_v25, %v9295_v59  ;;  %v6472_v12 = vadd.f32 %v5050_v63, %v9196_v53 }
 0x44f   : > { %v5510_v47 = vmax.f32 %v5400_v0, 0.0  ;;  %v5402_v8 = vadd.f32 %v6471_v20, %v9293_v56 }
 0x450   : > { %v5511_v18 = vmax.f32 %v5401_v9, 0.0  ;;  %v5403_v11 = vadd.f32 %v6472_v12, %v9295_v59 }
 0x451   : > { %v5512_v6 = vmax.f32 %v5402_v8, 0.0 }
 0x452   : > { %v6384_v14 = vpack.c.bf16 %v5511_v18, %v5510_v47  ;;  %v5513_v19 = vmax.f32 %v5403_v11, 0.0  ;;  %v5054_v26 = vpop.f32.mrb[32].mxu0 }
 0x453   : > { %v6473_v54 = vadd.f32 %v5054_v26, %v9204_v4  ;;  %v5056_v41 = vpop.f32.mrb[33].mxu0 }
 0x454   : > { %5938 = vst [vmem:[%s9309_s28 + $0x70] sm:$0xff] %v6384_v14  ;;  %v6385_v17 = vpack.c.bf16 %v5513_v19, %v5512_v6  ;;  %v6474_v45 = vadd.f32 %v5056_v41, %v9206_v46  ;;  %v5058_v52 = vpop.f32.mrb[34].mxu0 }
 0x455   : > { %v5404_v53 = vadd.f32 %v6473_v54, %v9293_v56  ;;  %v6475_v29 = vadd.f32 %v5058_v52, %v9208_v42  ;;  %v5060_v40 = vpop.f32.mrb[35].mxu0  ;;  %v9574_v54 = vld [vmem:[#allocation6_spill] sm:$0xff]  ;;  %v9575_v52 = vld [vmem:[#allocation9_spill] sm:$0xff] }
 0x456   : > { %5939 = vst [vmem:[%s9309_s28 + $0x78] sm:$0xff] %v6385_v17  ;;  %v5405_v61 = vadd.f32 %v6474_v45, %v9295_v59  ;;  %v6476_v10 = vadd.f32 %v5060_v40, %v9210_v3 }
 0x457   : > { %v5514_v1 = vmax.f32 %v5404_v53, 0.0  ;;  %v5406_v4 = vadd.f32 %v6475_v29, %v9293_v56 }
 0x458   : > { %v5515_v34 = vmax.f32 %v5405_v61, 0.0  ;;  %v5407_v7 = vadd.f32 %v6476_v10, %v9295_v59 }
 0x459   : > { %v5516_v46 = vmax.f32 %v5406_v4, 0.0 }
 0x45a   : > { %v6386_v21 = vpack.c.bf16 %v5515_v34, %v5514_v1  ;;  %v5517_v51 = vmax.f32 %v5407_v7, 0.0  ;;  %v5064_v60 = vpop.f32.mrb[36].mxu0  ;;  %v9576_v34 = vld [vmem:[#allocation10_spill] sm:$0xff] }
 0x45b   : > { %v6477_v39 = vadd.f32 %v5064_v60, %v9218_v16  ;;  %v5066_v42 = vpop.f32.mrb[37].mxu0 }
 0x45c   : > { %5940 = vst [vmem:[%s9309_s28 + $0x80] sm:$0xff] %v6386_v21  ;;  %v6387_v62 = vpack.c.bf16 %v5517_v51, %v5516_v46  ;;  %v6478_v30 = vadd.f32 %v5066_v42, %v9220_v24  ;;  %v5068_v31 = vpop.f32.mrb[38].mxu0  ;;  %v9577_v51 = vld [vmem:[#allocation11_spill] sm:$0xff] }
 0x45d   : > { %v5408_v3 = vadd.f32 %v6477_v39, %v9293_v56  ;;  %v6479_v27 = vadd.f32 %v5068_v31, %v9222_v50  ;;  %v5070_v2 = vpop.f32.mrb[39].mxu0 }
 0x45e   : > { %5941 = vst [vmem:[%s9309_s28 + $0x88] sm:$0xff] %v6387_v62  ;;  %v5409_v55 = vadd.f32 %v6478_v30, %v9295_v59  ;;  %v6480_v48 = vadd.f32 %v5070_v2, %v9224_v5  ;;  %v9578_v62 = vld [vmem:[#allocation12_spill] sm:$0xff] }
 0x45f   : > { %v5518_v58 = vmax.f32 %v5408_v3, 0.0  ;;  %v5410_v16 = vadd.f32 %v6479_v27, %v9293_v56  ;;  %v9579_v27 = vld [vmem:[#allocation13_spill] sm:$0xff] }
 0x460   : > { %v5519_v37 = vmax.f32 %v5409_v55, 0.0  ;;  %v5411_v15 = vadd.f32 %v6480_v48, %v9295_v59 }
 0x461   : > { %v5520_v24 = vmax.f32 %v5410_v16, 0.0 }
 0x462   : > { %v6388_v28 = vpack.c.bf16 %v5519_v37, %v5518_v58  ;;  %v5521_v43 = vmax.f32 %v5411_v15, 0.0  ;;  %v5074_v35 = vpop.f32.mrb[40].mxu0 }
 0x463   : > { %v6481_v49 = vadd.f32 %v5074_v35, %v9232_v36  ;;  %v5076_v50 = vpop.f32.mrb[41].mxu0  ;;  %v9580_v35 = vld [vmem:[#allocation4_spill] sm:$0xff] }
 0x464   : > { %5942 = vst [vmem:[%s9309_s28 + $0x90] sm:$0xff] %v6388_v28  ;;  %v6389_v22 = vpack.c.bf16 %v5521_v43, %v5520_v24  ;;  %v6482_v32 = vadd.f32 %v5076_v50, %v9234_v44  ;;  %v5078_v25 = vpop.f32.mrb[42].mxu0  ;;  %v9581_v50 = vld [vmem:[#allocation14_spill] sm:$0xff] }
 0x465   : > { %v5412_v5 = vadd.f32 %v6481_v49, %v9293_v56  ;;  %v6483_v13 = vadd.f32 %v5078_v25, %v9236_v57  ;;  %v5080_v0 = vpop.f32.mrb[43].mxu0 }
 0x466   : > { %5943 = vst [vmem:[%s9309_s28 + $0x98] sm:$0xff] %v6389_v22  ;;  %v5413_v20 = vadd.f32 %v6482_v32, %v9295_v59  ;;  %v6484_v63 = vadd.f32 %v5080_v0, %v9238_v33 }
 0x467   : > { %v5522_v9 = vmax.f32 %v5412_v5, 0.0  ;;  %v5414_v36 = vadd.f32 %v6483_v13, %v9293_v56  ;;  %v9582_v13 = vld [vmem:[#allocation5_spill] sm:$0xff] }
 0x468   : > { %v5523_v12 = vmax.f32 %v5413_v20, 0.0  ;;  %v5415_v47 = vadd.f32 %v6484_v63, %v9295_v59  ;;  %v9583_v20 = vld [vmem:[#allocation16_spill] sm:$0xff] }
 0x469   : > { %v5524_v44 = vmax.f32 %v5414_v36, 0.0 }
 0x46a   : > { %v6390_v8 = vpack.c.bf16 %v5523_v12, %v5522_v9  ;;  %v5525_v18 = vmax.f32 %v5415_v47, 0.0  ;;  %v5084_v11 = vpop.f32.mrb[44].mxu0  ;;  %v9584_v47 = vld [vmem:[#allocation18_spill] sm:$0xff] }
 0x46b   : > { %v6485_v6 = vadd.f32 %v5084_v11, %v9246_v38  ;;  %v5086_v57 = vpop.f32.mrb[45].mxu0 }
 0x46c   : > { %5944 = vst [vmem:[%s9309_s28 + $0xa0] sm:$0xff] %v6390_v8  ;;  %v6391_v14 = vpack.c.bf16 %v5525_v18, %v5524_v44  ;;  %v6486_v19 = vadd.f32 %v5086_v57, %v9248_v23  ;;  %v5088_v26 = vpop.f32.mrb[46].mxu0 }
 0x46d   : > { %v5416_v33 = vadd.f32 %v6485_v6, %v9293_v56  ;;  %v6487_v41 = vadd.f32 %v5088_v26, %v9574_v54  ;;  %v5090_v17 = vpop.f32.mrb[47].mxu0  ;;  %v9585_v6 = vld [vmem:[#allocation19_spill] sm:$0xff] }
 0x46e   : > { %5945 = vst [vmem:[%s9309_s28 + $0xa8] sm:$0xff] %v6391_v14  ;;  %v5417_v45 = vadd.f32 %v6486_v19, %v9295_v59  ;;  %v6488_v53 = vadd.f32 %v5090_v17, %v9575_v52 }
 0x46f   : > { %v5526_v29 = vmax.f32 %v5416_v33, 0.0  ;;  %v5418_v38 = vadd.f32 %v6487_v41, %v9293_v56 }
 0x470   : > { %v5527_v40 = vmax.f32 %v5417_v45, 0.0  ;;  %v5419_v61 = vadd.f32 %v6488_v53, %v9295_v59 }
 0x471   : > { %v5528_v23 = vmax.f32 %v5418_v38, 0.0 }
 0x472   : > { %v6392_v10 = vpack.c.bf16 %v5527_v40, %v5526_v29  ;;  %v5529_v1 = vmax.f32 %v5419_v61, 0.0  ;;  %v5094_v4 = vpop.f32.mrb[48].mxu0 }
 0x473   : > { %v6489_v7 = vadd.f32 %v5094_v4, %v9576_v34  ;;  %v5096_v46 = vpop.f32.mrb[49].mxu0 }
 0x474   : > { %5946 = vst [vmem:[%s9309_s28 + $0xb0] sm:$0xff] %v6392_v10  ;;  %v6393_v21 = vpack.c.bf16 %v5529_v1, %v5528_v23  ;;  %v6490_v60 = vadd.f32 %v5096_v46, %v9577_v51  ;;  %v5098_v39 = vpop.f32.mrb[50].mxu0 }
 0x475   : > { %v5420_v42 = vadd.f32 %v6489_v7, %v9293_v56  ;;  %v6491_v30 = vadd.f32 %v5098_v39, %v9578_v62  ;;  %v5100_v31 = vpop.f32.mrb[51].mxu0 }
 0x476   : > { %5947 = vst [vmem:[%s9309_s28 + $0xb8] sm:$0xff] %v6393_v21  ;;  %v5421_v3 = vadd.f32 %v6490_v60, %v9295_v59  ;;  %v6492_v2 = vadd.f32 %v5100_v31, %v9579_v27 }
 0x477   : > { %v5530_v55 = vmax.f32 %v5420_v42, 0.0  ;;  %v5422_v48 = vadd.f32 %v6491_v30, %v9293_v56 }
 0x478   : > { %v5531_v58 = vmax.f32 %v5421_v3, 0.0  ;;  %v5423_v16 = vadd.f32 %v6492_v2, %v9295_v59 }
 0x479   : > { %v5532_v37 = vmax.f32 %v5422_v48, 0.0 }
 0x47a   : > { %v6394_v15 = vpack.c.bf16 %v5531_v58, %v5530_v55  ;;  %v5533_v24 = vmax.f32 %v5423_v16, 0.0  ;;  %v2239_v28 = vpop.f32.mrb[120].mxu1  ;;  %v5104_v43 = vpop.f32.mrb[52].mxu0 }
 0x47b   : > { %v9432_v49 = vadd.f32 %v2239_v28, %v9580_v35  ;;  %v6493_v22 = vadd.f32 %v5104_v43, %v9581_v50  ;;  %v2241_v32 = vpop.f32.mrb[121].mxu1  ;;  %v5106_v25 = vpop.f32.mrb[53].mxu0 }
 0x47c   : > { %5948 = vst [vmem:[%s9309_s28 + $0xc0] sm:$0xff] %v6394_v15  ;;  %v6395_v5 = vpack.c.bf16 %v5533_v24, %v5532_v37  ;;  %v9437_v0 = vadd.f32 %v2241_v32, %v9582_v13  ;;  %v6494_v63 = vadd.f32 %v5106_v25, %v9583_v20  ;;  %v2243_v9 = vpop.f32.mrb[122].mxu1  ;;  %v5108_v36 = vpop.f32.mrb[54].mxu0 }
 0x47d   : > { %v5424_v12 = vadd.f32 %v6493_v22, %v9293_v56  ;;  %v6495_v44 = vadd.f32 %v5108_v36, %v9584_v47  ;;  %v2244_v8 = vpop.f32.mrb[123].mxu1  ;;  %v5110_v18 = vpop.f32.mrb[55].mxu0 }
 0x47e   : > { %5949 = vst [vmem:[%s9309_s28 + $0xc8] sm:$0xff] %v6395_v5  ;;  %v5425_v11 = vadd.f32 %v6494_v63, %v9295_v59  ;;  %v6496_v57 = vadd.f32 %v5110_v18, %v9585_v6 }
 0x47f   : > { %v5534_v14 = vmax.f32 %v5424_v12, 0.0  ;;  %v5426_v19 = vadd.f32 %v6495_v44, %v9293_v56 }
 0x480   : > { %v5535_v26 = vmax.f32 %v5425_v11, 0.0  ;;  %v5427_v33 = vadd.f32 %v6496_v57, %v9295_v59 }
 0x481   : > { %v5536_v54 = vmax.f32 %v5426_v19, 0.0 }
 0x482   : > { %v6396_v41 = vpack.c.bf16 %v5535_v26, %v5534_v14  ;;  %v5537_v17 = vmax.f32 %v5427_v33, 0.0  ;;  %v2710_v45 = vpop.f32.mrb[56].mxu1  ;;  %v5114_v52 = vpop.f32.mrb[56].mxu0 }
 0x483   : > { %v6497_v53 = vadd.f32 %v5114_v52, %v2710_v45  ;;  %v2712_v29 = vpop.f32.mrb[57].mxu1  ;;  %v5116_v38 = vpop.f32.mrb[57].mxu0 }
 0x484   : > { %5950 = vst [vmem:[%s9309_s28 + $0xd0] sm:$0xff] %v6396_v41  ;;  %v6397_v40 = vpack.c.bf16 %v5537_v17, %v5536_v54  ;;  %v6498_v61 = vadd.f32 %v5116_v38, %v2712_v29  ;;  %v2714_v23 = vpop.f32.mrb[58].mxu1  ;;  %v5118_v10 = vpop.f32.mrb[58].mxu0 }
 0x485   : > { %v5428_v1 = vadd.f32 %v6497_v53, %v9293_v56  ;;  %v6499_v4 = vadd.f32 %v5118_v10, %v2714_v23  ;;  %v2716_v34 = vpop.f32.mrb[59].mxu1  ;;  %v5120_v7 = vpop.f32.mrb[59].mxu0 }
 0x486   : > { %5951 = vst [vmem:[%s9309_s28 + $0xd8] sm:$0xff] %v6397_v40  ;;  %v5429_v46 = vadd.f32 %v6498_v61, %v9295_v59  ;;  %v6500_v21 = vadd.f32 %v5120_v7, %v2716_v34 }
 0x487   : > { %v5538_v51 = vmax.f32 %v5428_v1, 0.0  ;;  %v5430_v60 = vadd.f32 %v6499_v4, %v9293_v56 }
 0x488   : > { %v5539_v39 = vmax.f32 %v5429_v46, 0.0  ;;  %v5431_v42 = vadd.f32 %v6500_v21, %v9295_v59 }
 0x489   : > { %v5540_v62 = vmax.f32 %v5430_v60, 0.0 }
 0x48a   : > { %v6398_v30 = vpack.c.bf16 %v5539_v39, %v5538_v51  ;;  %v5541_v31 = vmax.f32 %v5431_v42, 0.0  ;;  %v2720_v3 = vpop.f32.mrb[60].mxu1  ;;  %v5124_v27 = vpop.f32.mrb[60].mxu0 }
 0x48b   : > { %v6501_v2 = vadd.f32 %v5124_v27, %v2720_v3  ;;  %v2722_v55 = vpop.f32.mrb[61].mxu1  ;;  %v5126_v48 = vpop.f32.mrb[61].mxu0 }
 0x48c   : > { %5952 = vst [vmem:[%s9309_s28 + $0xe0] sm:$0xff] %v6398_v30  ;;  %v6399_v58 = vpack.c.bf16 %v5541_v31, %v5540_v62  ;;  %v6502_v16 = vadd.f32 %v5126_v48, %v2722_v55  ;;  %v2724_v37 = vpop.f32.mrb[62].mxu1  ;;  %v5128_v15 = vpop.f32.mrb[62].mxu0 }
 0x48d   : > { %v5432_v24 = vadd.f32 %v6501_v2, %v9293_v56  ;;  %v6503_v28 = vadd.f32 %v5128_v15, %v2724_v37  ;;  %v2726_v43 = vpop.f32.mrb[63].mxu1  ;;  %v5130_v35 = vpop.f32.mrb[63].mxu0 }
 0x48e   : > { %5953 = vst [vmem:[%s9309_s28 + $0xe8] sm:$0xff] %v6399_v58  ;;  %v5433_v50 = vadd.f32 %v6502_v16, %v9295_v59  ;;  %v6504_v22 = vadd.f32 %v5130_v35, %v2726_v43 }
 0x48f   : > { %v5542_v32 = vmax.f32 %v5432_v24, 0.0  ;;  %v5434_v25 = vadd.f32 %v6503_v28, %v9293_v56 }
 0x490   : > { %v5543_v5 = vmax.f32 %v5433_v50, 0.0  ;;  %v5435_v13 = vadd.f32 %v6504_v22, %v9295_v59 }
 0x491   : > { %v5544_v20 = vmax.f32 %v5434_v25, 0.0 }
 0x492   : > { %v6400_v63 = vpack.c.bf16 %v5543_v5, %v5542_v32  ;;  %v5545_v9 = vmax.f32 %v5435_v13, 0.0  ;;  %v2730_v36 = vpop.f32.mrb[64].mxu1  ;;  %v5134_v12 = vpop.f32.mrb[64].mxu0 }
 0x493   : > { %v6505_v47 = vadd.f32 %v5134_v12, %v2730_v36  ;;  %v2732_v44 = vpop.f32.mrb[65].mxu1  ;;  %v5136_v8 = vpop.f32.mrb[65].mxu0 }
 0x494   : > { %5954 = vst [vmem:[%s9309_s28 + $0xf0] sm:$0xff] %v6400_v63  ;;  %v6401_v18 = vpack.c.bf16 %v5545_v9, %v5544_v20  ;;  %v6506_v11 = vadd.f32 %v5136_v8, %v2732_v44  ;;  %v2734_v6 = vpop.f32.mrb[66].mxu1  ;;  %v5138_v57 = vpop.f32.mrb[66].mxu0 }
 0x495   : > { %v5436_v14 = vadd.f32 %v6505_v47, %v9293_v56  ;;  %v6507_v19 = vadd.f32 %v5138_v57, %v2734_v6  ;;  %v2736_v26 = vpop.f32.mrb[67].mxu1  ;;  %v5140_v33 = vpop.f32.mrb[67].mxu0 }
 0x496   : > { %5955 = vst [vmem:[%s9309_s28 + $0xf8] sm:$0xff] %v6401_v18  ;;  %v5437_v54 = vadd.f32 %v6506_v11, %v9295_v59  ;;  %v6508_v41 = vadd.f32 %v5140_v33, %v2736_v26 }
 0x497   : > { %v5546_v17 = vmax.f32 %v5436_v14, 0.0  ;;  %v5438_v45 = vadd.f32 %v6507_v19, %v9293_v56 }
 0x498   : > { %v5547_v52 = vmax.f32 %v5437_v54, 0.0  ;;  %v5439_v53 = vadd.f32 %v6508_v41, %v9295_v59 }
 0x499   : > { %v5548_v29 = vmax.f32 %v5438_v45, 0.0 }
 0x49a   : > { %v6402_v38 = vpack.c.bf16 %v5547_v52, %v5546_v17  ;;  %v5549_v40 = vmax.f32 %v5439_v53, 0.0  ;;  %v2740_v61 = vpop.f32.mrb[68].mxu1  ;;  %v5144_v23 = vpop.f32.mrb[68].mxu0 }
 0x49b   : > { %v6509_v10 = vadd.f32 %v5144_v23, %v2740_v61  ;;  %v2742_v1 = vpop.f32.mrb[69].mxu1  ;;  %v5146_v4 = vpop.f32.mrb[69].mxu0 }
 0x49c   : > { %5956 = vst [vmem:[%s9309_s28 + $0x100] sm:$0xff] %v6402_v38  ;;  %v6403_v34 = vpack.c.bf16 %v5549_v40, %v5548_v29  ;;  %v6510_v7 = vadd.f32 %v5146_v4, %v2742_v1  ;;  %v2744_v46 = vpop.f32.mrb[70].mxu1  ;;  %v5148_v21 = vpop.f32.mrb[70].mxu0 }
 0x49d   : > { %v5440_v51 = vadd.f32 %v6509_v10, %v9293_v56  ;;  %v6511_v60 = vadd.f32 %v5148_v21, %v2744_v46  ;;  %v2746_v39 = vpop.f32.mrb[71].mxu1  ;;  %v5150_v42 = vpop.f32.mrb[71].mxu0 }
 0x49e   : > { %5957 = vst [vmem:[%s9309_s28 + $0x108] sm:$0xff] %v6403_v34  ;;  %v5441_v62 = vadd.f32 %v6510_v7, %v9295_v59  ;;  %v6512_v30 = vadd.f32 %v5150_v42, %v2746_v39 }
 0x49f   : > { %v5550_v31 = vmax.f32 %v5440_v51, 0.0  ;;  %v5442_v3 = vadd.f32 %v6511_v60, %v9293_v56 }
 0x4a0   : > { %v5551_v27 = vmax.f32 %v5441_v62, 0.0  ;;  %v5443_v2 = vadd.f32 %v6512_v30, %v9295_v59 }
 0x4a1   : > { %v5552_v55 = vmax.f32 %v5442_v3, 0.0 }
 0x4a2   : > { %v6404_v48 = vpack.c.bf16 %v5551_v27, %v5550_v31  ;;  %v5553_v58 = vmax.f32 %v5443_v2, 0.0  ;;  %v2750_v16 = vpop.f32.mrb[72].mxu1  ;;  %v5154_v37 = vpop.f32.mrb[72].mxu0 }
 0x4a3   : > { %v6513_v15 = vadd.f32 %v5154_v37, %v2750_v16  ;;  %v2752_v24 = vpop.f32.mrb[73].mxu1  ;;  %v5156_v28 = vpop.f32.mrb[73].mxu0 }
 0x4a4   : > { %5958 = vst [vmem:[%s9309_s28 + $0x110] sm:$0xff] %v6404_v48  ;;  %v6405_v43 = vpack.c.bf16 %v5553_v58, %v5552_v55  ;;  %v6514_v35 = vadd.f32 %v5156_v28, %v2752_v24  ;;  %v2754_v50 = vpop.f32.mrb[74].mxu1  ;;  %v5158_v22 = vpop.f32.mrb[74].mxu0 }
 0x4a5   : > { %v5444_v32 = vadd.f32 %v6513_v15, %v9293_v56  ;;  %v6515_v25 = vadd.f32 %v5158_v22, %v2754_v50  ;;  %v2756_v5 = vpop.f32.mrb[75].mxu1  ;;  %v5160_v13 = vpop.f32.mrb[75].mxu0 }
 0x4a6   : > { %5959 = vst [vmem:[%s9309_s28 + $0x118] sm:$0xff] %v6405_v43  ;;  %v5445_v20 = vadd.f32 %v6514_v35, %v9295_v59  ;;  %v6516_v63 = vadd.f32 %v5160_v13, %v2756_v5 }
 0x4a7   : > { %v5554_v9 = vmax.f32 %v5444_v32, 0.0  ;;  %v5446_v36 = vadd.f32 %v6515_v25, %v9293_v56 }
 0x4a8   : > { %v5555_v12 = vmax.f32 %v5445_v20, 0.0  ;;  %v5447_v47 = vadd.f32 %v6516_v63, %v9295_v59 }
 0x4a9   : > { %v5556_v44 = vmax.f32 %v5446_v36, 0.0 }
 0x4aa   : > { %v6406_v8 = vpack.c.bf16 %v5555_v12, %v5554_v9  ;;  %v5557_v18 = vmax.f32 %v5447_v47, 0.0  ;;  %v2760_v11 = vpop.f32.mrb[76].mxu1  ;;  %v5164_v6 = vpop.f32.mrb[76].mxu0 }
 0x4ab   : > { %v6517_v57 = vadd.f32 %v5164_v6, %v2760_v11  ;;  %v2762_v14 = vpop.f32.mrb[77].mxu1  ;;  %v5166_v19 = vpop.f32.mrb[77].mxu0 }
 0x4ac   : > { %5960 = vst [vmem:[%s9309_s28 + $0x120] sm:$0xff] %v6406_v8  ;;  %v6407_v26 = vpack.c.bf16 %v5557_v18, %v5556_v44  ;;  %v6518_v33 = vadd.f32 %v5166_v19, %v2762_v14  ;;  %v2764_v54 = vpop.f32.mrb[78].mxu1  ;;  %v5168_v41 = vpop.f32.mrb[78].mxu0 }
 0x4ad   : > { %v5448_v17 = vadd.f32 %v6517_v57, %v9293_v56  ;;  %v6519_v45 = vadd.f32 %v5168_v41, %v2764_v54  ;;  %v2766_v52 = vpop.f32.mrb[79].mxu1  ;;  %v5170_v53 = vpop.f32.mrb[79].mxu0 }
 0x4ae   : > { %5961 = vst [vmem:[%s9309_s28 + $0x128] sm:$0xff] %v6407_v26  ;;  %v5449_v29 = vadd.f32 %v6518_v33, %v9295_v59  ;;  %v6520_v38 = vadd.f32 %v5170_v53, %v2766_v52 }
 0x4af   : > { %v5558_v40 = vmax.f32 %v5448_v17, 0.0  ;;  %v5450_v61 = vadd.f32 %v6519_v45, %v9293_v56 }
 0x4b0   : > { %v5559_v23 = vmax.f32 %v5449_v29, 0.0  ;;  %v5451_v10 = vadd.f32 %v6520_v38, %v9295_v59 }
 0x4b1   : > { %v5560_v1 = vmax.f32 %v5450_v61, 0.0 }
 0x4b2   : > { %v6408_v4 = vpack.c.bf16 %v5559_v23, %v5558_v40  ;;  %v5561_v34 = vmax.f32 %v5451_v10, 0.0  ;;  %v2770_v7 = vpop.f32.mrb[80].mxu1  ;;  %v5174_v46 = vpop.f32.mrb[80].mxu0 }
 0x4b3   : > { %v6521_v21 = vadd.f32 %v5174_v46, %v2770_v7  ;;  %v2772_v51 = vpop.f32.mrb[81].mxu1  ;;  %v5176_v60 = vpop.f32.mrb[81].mxu0 }
 0x4b4   : > { %5962 = vst [vmem:[%s9309_s28 + $0x130] sm:$0xff] %v6408_v4  ;;  %v6409_v39 = vpack.c.bf16 %v5561_v34, %v5560_v1  ;;  %v6522_v42 = vadd.f32 %v5176_v60, %v2772_v51  ;;  %v2774_v62 = vpop.f32.mrb[82].mxu1  ;;  %v5178_v30 = vpop.f32.mrb[82].mxu0 }
 0x4b5   : > { %v5452_v31 = vadd.f32 %v6521_v21, %v9293_v56  ;;  %v6523_v3 = vadd.f32 %v5178_v30, %v2774_v62  ;;  %v2776_v27 = vpop.f32.mrb[83].mxu1  ;;  %v5180_v2 = vpop.f32.mrb[83].mxu0 }
 0x4b6   : > { %5963 = vst [vmem:[%s9309_s28 + $0x138] sm:$0xff] %v6409_v39  ;;  %v5453_v55 = vadd.f32 %v6522_v42, %v9295_v59  ;;  %v6524_v48 = vadd.f32 %v5180_v2, %v2776_v27 }
 0x4b7   : > { %v5562_v58 = vmax.f32 %v5452_v31, 0.0  ;;  %v5454_v16 = vadd.f32 %v6523_v3, %v9293_v56 }
 0x4b8   : > { %v5563_v37 = vmax.f32 %v5453_v55, 0.0  ;;  %v5455_v15 = vadd.f32 %v6524_v48, %v9295_v59 }
 0x4b9   : > { %v5564_v24 = vmax.f32 %v5454_v16, 0.0 }
 0x4ba   : > { %v6410_v28 = vpack.c.bf16 %v5563_v37, %v5562_v58  ;;  %v5565_v43 = vmax.f32 %v5455_v15, 0.0  ;;  %v2780_v35 = vpop.f32.mrb[84].mxu1  ;;  %v5184_v50 = vpop.f32.mrb[84].mxu0 }
 0x4bb   : > { %v6525_v22 = vadd.f32 %v5184_v50, %v2780_v35  ;;  %v2782_v32 = vpop.f32.mrb[85].mxu1  ;;  %v5186_v25 = vpop.f32.mrb[85].mxu0 }
 0x4bc   : > { %5964 = vst [vmem:[%s9309_s28 + $0x140] sm:$0xff] %v6410_v28  ;;  %v6411_v5 = vpack.c.bf16 %v5565_v43, %v5564_v24  ;;  %v6526_v13 = vadd.f32 %v5186_v25, %v2782_v32  ;;  %v2784_v20 = vpop.f32.mrb[86].mxu1  ;;  %v5188_v63 = vpop.f32.mrb[86].mxu0 }
 0x4bd   : > { %v5456_v9 = vadd.f32 %v6525_v22, %v9293_v56  ;;  %v6527_v36 = vadd.f32 %v5188_v63, %v2784_v20  ;;  %v2786_v12 = vpop.f32.mrb[87].mxu1  ;;  %v5190_v47 = vpop.f32.mrb[87].mxu0 }
 0x4be   : > { %5965 = vst [vmem:[%s9309_s28 + $0x148] sm:$0xff] %v6411_v5  ;;  %v5457_v44 = vadd.f32 %v6526_v13, %v9295_v59  ;;  %v6528_v8 = vadd.f32 %v5190_v47, %v2786_v12 }
 0x4bf   : > { %v5566_v18 = vmax.f32 %v5456_v9, 0.0  ;;  %v5458_v11 = vadd.f32 %v6527_v36, %v9293_v56 }
 0x4c0   : > { %v5567_v6 = vmax.f32 %v5457_v44, 0.0  ;;  %v5459_v57 = vadd.f32 %v6528_v8, %v9295_v59 }
 0x4c1   : > { %v5568_v14 = vmax.f32 %v5458_v11, 0.0 }
 0x4c2   : > { %v6412_v19 = vpack.c.bf16 %v5567_v6, %v5566_v18  ;;  %v5569_v26 = vmax.f32 %v5459_v57, 0.0  ;;  %v2790_v33 = vpop.f32.mrb[88].mxu1  ;;  %v5194_v54 = vpop.f32.mrb[88].mxu0 }
 0x4c3   : > { %v6529_v41 = vadd.f32 %v5194_v54, %v2790_v33  ;;  %v2792_v17 = vpop.f32.mrb[89].mxu1  ;;  %v5196_v45 = vpop.f32.mrb[89].mxu0 }
 0x4c4   : > { %5966 = vst [vmem:[%s9309_s28 + $0x150] sm:$0xff] %v6412_v19  ;;  %v6413_v52 = vpack.c.bf16 %v5569_v26, %v5568_v14  ;;  %v6530_v53 = vadd.f32 %v5196_v45, %v2792_v17  ;;  %v2794_v29 = vpop.f32.mrb[90].mxu1  ;;  %v5198_v38 = vpop.f32.mrb[90].mxu0 }
 0x4c5   : > { %v5460_v40 = vadd.f32 %v6529_v41, %v9293_v56  ;;  %v6531_v61 = vadd.f32 %v5198_v38, %v2794_v29  ;;  %v2796_v23 = vpop.f32.mrb[91].mxu1  ;;  %v5200_v10 = vpop.f32.mrb[91].mxu0 }
 0x4c6   : > { %5967 = vst [vmem:[%s9309_s28 + $0x158] sm:$0xff] %v6413_v52  ;;  %v5461_v1 = vadd.f32 %v6530_v53, %v9295_v59  ;;  %v6532_v4 = vadd.f32 %v5200_v10, %v2796_v23 }
 0x4c7   : > { %v5570_v34 = vmax.f32 %v5460_v40, 0.0  ;;  %v5462_v7 = vadd.f32 %v6531_v61, %v9293_v56 }
 0x4c8   : > { %v5571_v46 = vmax.f32 %v5461_v1, 0.0  ;;  %v5463_v21 = vadd.f32 %v6532_v4, %v9295_v59 }
 0x4c9   : > { %v5572_v51 = vmax.f32 %v5462_v7, 0.0 }
 0x4ca   : > { %v6414_v60 = vpack.c.bf16 %v5571_v46, %v5570_v34  ;;  %v5573_v39 = vmax.f32 %v5463_v21, 0.0  ;;  %v2800_v42 = vpop.f32.mrb[92].mxu1  ;;  %v5204_v62 = vpop.f32.mrb[92].mxu0 }
 0x4cb   : > { %v6533_v30 = vadd.f32 %v5204_v62, %v2800_v42  ;;  %v2802_v31 = vpop.f32.mrb[93].mxu1  ;;  %v5206_v3 = vpop.f32.mrb[93].mxu0 }
 0x4cc   : > { %5968 = vst [vmem:[%s9309_s28 + $0x160] sm:$0xff] %v6414_v60  ;;  %v6415_v27 = vpack.c.bf16 %v5573_v39, %v5572_v51  ;;  %v6534_v2 = vadd.f32 %v5206_v3, %v2802_v31  ;;  %v2804_v55 = vpop.f32.mrb[94].mxu1  ;;  %v5208_v48 = vpop.f32.mrb[94].mxu0 }
 0x4cd   : > { %v5464_v58 = vadd.f32 %v6533_v30, %v9293_v56  ;;  %v6535_v16 = vadd.f32 %v5208_v48, %v2804_v55  ;;  %v2806_v37 = vpop.f32.mrb[95].mxu1  ;;  %v5210_v15 = vpop.f32.mrb[95].mxu0 }
 0x4ce   : > { %5969 = vst [vmem:[%s9309_s28 + $0x168] sm:$0xff] %v6415_v27  ;;  %v5465_v24 = vadd.f32 %v6534_v2, %v9295_v59  ;;  %v6536_v28 = vadd.f32 %v5210_v15, %v2806_v37 }
 0x4cf   : > { %v5574_v43 = vmax.f32 %v5464_v58, 0.0  ;;  %v5466_v35 = vadd.f32 %v6535_v16, %v9293_v56 }
 0x4d0   : > { %v5575_v50 = vmax.f32 %v5465_v24, 0.0  ;;  %v5467_v22 = vadd.f32 %v6536_v28, %v9295_v59 }
 0x4d1   : > { %v5576_v32 = vmax.f32 %v5466_v35, 0.0 }
 0x4d2   : > { %v6416_v25 = vpack.c.bf16 %v5575_v50, %v5574_v43  ;;  %v5577_v5 = vmax.f32 %v5467_v22, 0.0  ;;  %v2810_v13 = vpop.f32.mrb[96].mxu1  ;;  %v5214_v20 = vpop.f32.mrb[96].mxu0 }
 0x4d3   : > { %v6537_v63 = vadd.f32 %v5214_v20, %v2810_v13  ;;  %v2812_v9 = vpop.f32.mrb[97].mxu1  ;;  %v5216_v36 = vpop.f32.mrb[97].mxu0 }
 0x4d4   : > { %5970 = vst [vmem:[%s9309_s28 + $0x170] sm:$0xff] %v6416_v25  ;;  %v6417_v12 = vpack.c.bf16 %v5577_v5, %v5576_v32  ;;  %v6538_v47 = vadd.f32 %v5216_v36, %v2812_v9  ;;  %v2814_v44 = vpop.f32.mrb[98].mxu1  ;;  %v5218_v8 = vpop.f32.mrb[98].mxu0 }
 0x4d5   : > { %v5468_v18 = vadd.f32 %v6537_v63, %v9293_v56  ;;  %v6539_v11 = vadd.f32 %v5218_v8, %v2814_v44  ;;  %v2816_v6 = vpop.f32.mrb[99].mxu1  ;;  %v5220_v57 = vpop.f32.mrb[99].mxu0 }
 0x4d6   : > { %5971 = vst [vmem:[%s9309_s28 + $0x178] sm:$0xff] %v6417_v12  ;;  %v5469_v14 = vadd.f32 %v6538_v47, %v9295_v59  ;;  %v6540_v19 = vadd.f32 %v5220_v57, %v2816_v6 }
 0x4d7   : > { %v5578_v26 = vmax.f32 %v5468_v18, 0.0  ;;  %v5470_v33 = vadd.f32 %v6539_v11, %v9293_v56 }
 0x4d8   : > { %v5579_v54 = vmax.f32 %v5469_v14, 0.0  ;;  %v5471_v41 = vadd.f32 %v6540_v19, %v9295_v59 }
 0x4d9   : > { %v5580_v17 = vmax.f32 %v5470_v33, 0.0 }
 0x4da   : > { %v6418_v45 = vpack.c.bf16 %v5579_v54, %v5578_v26  ;;  %v5581_v52 = vmax.f32 %v5471_v41, 0.0  ;;  %v2820_v53 = vpop.f32.mrb[100].mxu1  ;;  %v5224_v29 = vpop.f32.mrb[100].mxu0  ;;  %v9586_v26 = vld [vmem:[#allocation2_spill] sm:$0xff] }
 0x4db   : > { %v6541_v38 = vadd.f32 %v5224_v29, %v2820_v53  ;;  %v2822_v40 = vpop.f32.mrb[101].mxu1  ;;  %v5226_v61 = vpop.f32.mrb[101].mxu0  ;;  %v9589_v29 = vld [vmem:[#allocation8_spill] sm:$0xff] }
 0x4dc   : > { %5972 = vst [vmem:[%s9309_s28 + $0x180] sm:$0xff] %v6418_v45  ;;  %v6419_v23 = vpack.c.bf16 %v5581_v52, %v5580_v17  ;;  %v6542_v10 = vadd.f32 %v5226_v61, %v2822_v40  ;;  %v2824_v1 = vpop.f32.mrb[102].mxu1  ;;  %v5228_v4 = vpop.f32.mrb[102].mxu0  ;;  %v9587_v17 = vld [vmem:[#allocation3_spill] sm:$0xff]  ;;  %v9591_v61 = vld [vmem:[#allocation17_spill] sm:$0xff] }
 0x4dd   : > { %v5472_v34 = vadd.f32 %v6541_v38, %v9293_v56  ;;  %v6543_v7 = vadd.f32 %v5228_v4, %v2824_v1  ;;  %v2826_v46 = vpop.f32.mrb[103].mxu1  ;;  %v5230_v21 = vpop.f32.mrb[103].mxu0  ;;  %v9588_v52 = vld [vmem:[#allocation7_spill] sm:$0xff] }
 0x4de   : > { %5973 = vst [vmem:[%s9309_s28 + $0x188] sm:$0xff] %v6419_v23  ;;  %v5473_v51 = vadd.f32 %v6542_v10, %v9295_v59  ;;  %v6544_v60 = vadd.f32 %v5230_v21, %v2826_v46  ;;  %v9590_v38 = vld [vmem:[#allocation15_spill] sm:$0xff] }
 0x4df   : > { %v5582_v39 = vmax.f32 %v5472_v34, 0.0  ;;  %v5474_v42 = vadd.f32 %v6543_v7, %v9293_v56 }
 0x4e0   : > { %v5583_v62 = vmax.f32 %v5473_v51, 0.0  ;;  %v5475_v30 = vadd.f32 %v6544_v60, %v9295_v59 }
 0x4e1   : > { %v5584_v31 = vmax.f32 %v5474_v42, 0.0 }
 0x4e2   : > { %v6420_v3 = vpack.c.bf16 %v5583_v62, %v5582_v39  ;;  %v5585_v27 = vmax.f32 %v5475_v30, 0.0  ;;  %v2830_v2 = vpop.f32.mrb[104].mxu1  ;;  %v5234_v55 = vpop.f32.mrb[104].mxu0 }
 0x4e3   : > { %v6545_v48 = vadd.f32 %v5234_v55, %v2830_v2  ;;  %v2832_v58 = vpop.f32.mrb[105].mxu1  ;;  %v5236_v16 = vpop.f32.mrb[105].mxu0 }
 0x4e4   : > { %5974 = vst [vmem:[%s9309_s28 + $0x190] sm:$0xff] %v6420_v3  ;;  %v6421_v37 = vpack.c.bf16 %v5585_v27, %v5584_v31  ;;  %v6546_v15 = vadd.f32 %v5236_v16, %v2832_v58  ;;  %v2834_v24 = vpop.f32.mrb[106].mxu1  ;;  %v5238_v28 = vpop.f32.mrb[106].mxu0 }
 0x4e5   : > { %v5476_v43 = vadd.f32 %v6545_v48, %v9293_v56  ;;  %v6547_v35 = vadd.f32 %v5238_v28, %v2834_v24  ;;  %v2836_v50 = vpop.f32.mrb[107].mxu1  ;;  %v5240_v22 = vpop.f32.mrb[107].mxu0 }
 0x4e6   : > { %5975 = vst [vmem:[%s9309_s28 + $0x198] sm:$0xff] %v6421_v37  ;;  %v5477_v32 = vadd.f32 %v6546_v15, %v9295_v59  ;;  %v6548_v25 = vadd.f32 %v5240_v22, %v2836_v50 }
 0x4e7   : > { %v5586_v5 = vmax.f32 %v5476_v43, 0.0  ;;  %v5478_v13 = vadd.f32 %v6547_v35, %v9293_v56 }
 0x4e8   : > { %v5587_v20 = vmax.f32 %v5477_v32, 0.0  ;;  %v5479_v63 = vadd.f32 %v6548_v25, %v9295_v59 }
 0x4e9   : > { %v5588_v9 = vmax.f32 %v5478_v13, 0.0 }
 0x4ea   : > { %v6422_v36 = vpack.c.bf16 %v5587_v20, %v5586_v5  ;;  %v5589_v12 = vmax.f32 %v5479_v63, 0.0  ;;  %v2840_v47 = vpop.f32.mrb[124].mxu1  ;;  %v5244_v44 = vpop.f32.mrb[120].mxu0 }
 0x4eb   : > { %v2955_v8 = vadd.f32 %v2840_v47, %v9432_v49  ;;  %v2842_v18 = vpop.f32.mrb[125].mxu1  ;;  %v5246_v11 = vpop.f32.mrb[121].mxu0 }
 0x4ec   : > { %5976 = vst [vmem:[%s9309_s28 + $0x1a0] sm:$0xff] %v6422_v36  ;;  %v6423_v6 = vpack.c.bf16 %v5589_v12, %v5588_v9  ;;  %v2956_v57 = vadd.f32 %v2842_v18, %v9437_v0  ;;  %v2844_v14 = vpop.f32.mrb[126].mxu1  ;;  %v5248_v19 = vpop.f32.mrb[122].mxu0 }
 0x4ed   : > { %v3556_v33 = vadd.f32 %v9586_v26, %v2955_v8  ;;  %v2845_v54 = vpop.f32.mrb[127].mxu1  ;;  %v5249_v41 = vpop.f32.mrb[123].mxu0 }
 0x4ee   : > { %5977 = vst [vmem:[%s9309_s28 + $0x1a8] sm:$0xff] %v6423_v6  ;;  %v3557_v45 = vadd.f32 %v9587_v17, %v2956_v57 }
 0x4ef   : > { %v4157_v53 = vadd.f32 %v9588_v52, %v3556_v33 }
 0x4f0   : > { %v4158_v49 = vadd.f32 %v9589_v29, %v3557_v45 }
 0x4f1   : > { %v4758_v40 = vadd.f32 %v9590_v38, %v4157_v53 }
 0x4f2   : > { %v4759_v23 = vadd.f32 %v9591_v61, %v4158_v49 }
 0x4f3   : > { %v5359_v10 = vadd.f32 %v5244_v44, %v4758_v40 }
 0x4f4   : > { %v5360_v0 = vadd.f32 %v5246_v11, %v4759_v23 }
 0x4f5   : > { %v5480_v1 = vadd.f32 %v9293_v56, %v5359_v10 }
 0x4f6   : > { %v5481_v4 = vadd.f32 %v9295_v59, %v5360_v0 }
 0x4f7   : > { %v5590_v34 = vmax.f32 %v5480_v1, 0.0 }
 0x4f8   : > { %v5591_v7 = vmax.f32 %v5481_v4, 0.0 }
 0x4fa   : > { %v6424_v46 = vpack.c.bf16 %v5591_v7, %v5590_v34 }
 0x4fc   : > { %5978 = vst [vmem:[%s9309_s28 + $0x1b0] sm:$0xff] %v6424_v46 }
 0x4fd PF: > { %s13_s12 = sadd.s32 1, %s7554_s12  }
 0x4fe   : > { %p10_p4 = scmp.ge.s32.totalorder %s13_s12, 4  }
 0x500   :  { %12 = sbr.rel (!%p10_p4) target bundleno = 1 (0x1), region = 70 }

// kernel: mixed_5b_forward.7
= control target key start
LH: loop header
LB: loop body
LE: loop exit
PB: predicated region body
PF: predicated region fallthrough
CT: control target
= control target key end

     0   :  { %s2773_s12 = smov 0   ;;  %s5820_s0 = inlined_call_operand.vmem [shape: f32[2,700,4], index: 0, kind: input, shape index: {}]   ;;  %s5821_s1 = inlined_call_operand.vmem [shape: bf16[4,64], index: 1, kind: input, shape index: {}]   ;;  %s5822_s2 = inlined_call_operand.vmem [shape: f32[1,64], index: 2, kind: input, shape index: {}]   ;;  %s5823_s3 = inlined_call_operand.vmem [shape: f32[2,400,64], index: 3, kind: output, shape index: {}]  }
   0x1 LB: > { %s2551_s13 = sadd.s32 4294967295, %s2749_s12   ;;  %p2555_p0 = scmp.ge.s32.totalorder %s2749_s12, 1  ;;  %s2749_s12 = sphi %s2773_s12, %s13_s12  }
   0x2   : > { %p137_p1 = scmp.lt.s32.totalorder %s2749_s12, 3 }
   0x4   : > { %p138_p2 = pnand %p2555_p0, %p137_p1 }
   0x6   : > { %141 = sbr.rel (%p138_p2) target bundleno = 612 (0x264), region = 32 }
   0xd   : > { %v2074_v0 = vld [vmem:[%s5821_s1] sm:$0x3]  ;;  %vm2158_vm0 = vcmask 1041408   ;;  %p161_p3 = scmp.lt.s32.totalorder %s2551_s13, 1  ;;  %v5824_v1 = vmov 0.0   ;;  %vm2752_vm1 = vmmov 0  }
   0xe   : > { %2612 = vmatprep.subr.bf16.mxu0 %v5824_v1  ;;  %v2160_v2 = vsel %vm2158_vm0, %v2074_v0, 0  ;;  %2614 = vmatprep.mubr.msk.bf16.mxu0 %vm2752_vm1, %v5824_v1  ;;  %vm2082_vm2 = vcmask 31744   ;;  %vm2445_vm3 = vcmask 523264  }
   0xf   : > { %2613 = vmatpush3.bf16.msra.mxu0 %v2160_v2  ;;  %s6142_s13 = smov (!%p161_p3, %s2551_s13), 1  ;;  %2714 = vmatprep.subr.bf16.mxu1 %v5824_v1 }
  0x10   : > { %2715 = vmatpush3.bf16.msra.mxu1 %v2160_v2  ;;  %2666 = vmatprep.mubr.msk.bf16.mxu1 %vm2752_vm1, %v5824_v1  ;;  %s2716_s16 = smul.u32 704, %s6142_s13 }
  0x11   : > { %s2717_s20 = smul.u32 400, %s6142_s13 }
  0x12   : > { %s2796_s19 = scalar_lea.vmem %s5820_s0, %s2716_s16 }
  0x13   : > { %v2799_v3 = vld [vmem:[%s2796_s19 + $0x70] sm:$0xff]  ;;  %v2802_v4 = vld [vmem:[%s2796_s19 + $0x78] sm:$0xff]  ;;  %v2805_v5 = vld [vmem:[%s2796_s19 + $0x80] sm:$0xff]  ;;  %s5625_s25 = scalar_lea.vmem %s5823_s3, %s2717_s20 }
  0x14   : > { %v934_v6 = vmax.f32 %v2802_v4, %v2799_v3  ;;  %v935_v7 = vmax.f32 %v2805_v5, %v2802_v4  ;;  %v2812_v8 = vld [vmem:[%s2796_s19 + $0x88] sm:$0xff]  ;;  %v2815_v9 = vld [vmem:[%s2796_s19 + $0x90] sm:$0xff]  ;;  %v191_v10 = vld [vmem:[%s2796_s19 + $0x98] sm:$0xff] }
  0x15   : > { %5888 = vst [vmem:[#allocation2_spill] sm:$0xff] %v2815_v9  ;;  %v2819_v11 = vld [vmem:[%s2796_s19] sm:$0xff]  ;;  %v936_v12 = vmax.f32 %v2812_v8, %v2805_v5  ;;  %v937_v13 = vmax.f32 %v2815_v9, %v2812_v8  ;;  %v938_v14 = vmax.f32 %v191_v10, %v2815_v9  ;;  %v2833_v17 = vld [vmem:[%s2796_s19 + $0xc8] sm:$0xff]  ;;  %v2839_v19 = vld [vmem:[%s2796_s19 + $0x10] sm:$0xff] }
  0x16   : > { %v2827_v15 = vld [vmem:[%s2796_s19 + $0xa0] sm:$0xff]  ;;  %v2836_v18 = vld [vmem:[%s2796_s19 + $0x8] sm:$0xff]  ;;  %v2842_v20 = vld [vmem:[%s2796_s19 + $0x18] sm:$0xff]  ;;  %v994_v30 = vmax.f32 %v934_v6, %v2833_v17 }
  0x17   : > { %v2830_v16 = vld [vmem:[%s2796_s19 + $0xc0] sm:$0xff]  ;;  %v939_v21 = vmax.f32 %v2827_v15, %v191_v10  ;;  %v2848_v23 = vld [vmem:[%s2796_s19 + $0xd0] sm:$0xff]  ;;  %v2851_v24 = vld [vmem:[%s2796_s19 + $0xd8] sm:$0xff] }
  0x18   : > { %v382_v22 = vmax.f32 %v2833_v17, %v2830_v16  ;;  %v2854_v25 = vld [vmem:[%s2796_s19 + $0xe0] sm:$0xff]  ;;  %v2860_v27 = vld [vmem:[%s2796_s19 + $0x28] sm:$0xff]  ;;  %v2863_v28 = vld [vmem:[%s2796_s19 + $0x30] sm:$0xff]  ;;  %v434_v31 = vmax.f32 %v2848_v23, %v2833_v17  ;;  %v995_v32 = vmax.f32 %v935_v7, %v2848_v23  ;;  %v435_v33 = vmax.f32 %v2851_v24, %v2848_v23 }
  0x19   : > { %5889 = vst [vmem:[#allocation3_spill] sm:$0xff] %v2854_v25  ;;  %v2857_v26 = vld [vmem:[%s2796_s19 + $0x20] sm:$0xff]  ;;  %v2866_v29 = vld [vmem:[%s2796_s19 + $0x38] sm:$0xff]  ;;  %v2875_v34 = vld [vmem:[%s2796_s19 + $0xe8] sm:$0xff]  ;;  %v996_v38 = vmax.f32 %v936_v12, %v2851_v24  ;;  %v2890_v40 = vmax.f32 %v937_v13, %v2854_v25 }
  0x1a   : > { %5890 = vst [vmem:[#allocation4_spill] sm:$0xff] %v2875_v34  ;;  %v2878_v35 = vld [vmem:[%s2796_s19 + $0xf0] sm:$0xff]  ;;  %v2881_v36 = vld [vmem:[%s2796_s19 + $0xf8] sm:$0xff]  ;;  %v2884_v37 = vld [vmem:[%s2796_s19 + $0x68] sm:$0xff]  ;;  %v948_v41 = vmax.f32 %v2875_v34, %v2854_v25  ;;  %v2904_v45 = vmax.f32 %v938_v14, %v2875_v34 }
  0x1b   : > { %5891 = vst [vmem:[#allocation5_spill] sm:$0xff] %v2881_v36  ;;  %v2895_v42 = vld [vmem:[%s2796_s19 + $0x138] sm:$0xff]  ;;  %v2898_v43 = vld [vmem:[%s2796_s19 + $0x140] sm:$0xff]  ;;  %v949_v46 = vmax.f32 %v2878_v35, %v2875_v34  ;;  %v2909_v47 = vmax.f32 %v939_v21, %v2878_v35  ;;  %v950_v48 = vmax.f32 %v2881_v36, %v2878_v35  ;;  %v2914_v49 = vld [vmem:[%s2796_s19 + $0x9] sm:$0xff]  ;;  %v940_v52 = vmax.f32 %v2881_v36, %v2827_v15 }
  0x1c   : > { %5892 = vst [vmem:[#allocation6_spill] sm:$0xff] %v2895_v42  ;;  %5893 = vst [vmem:[#allocation7_spill] sm:$0xff] %v2898_v43  ;;  %v2901_v44 = vld [vmem:[%s2796_s19 + $0x1] sm:$0xff]  ;;  %v2917_v50 = vld [vmem:[%s2796_s19 + $0x11] sm:$0xff]  ;;  %v1008_v53 = vmax.f32 %v948_v41, %v2895_v42 }
  0x1d   : > { %v2920_v51 = vld [vmem:[%s2796_s19 + $0x19] sm:$0xff]  ;;  %v2928_v55 = vld [vmem:[%s2796_s19 + $0x21] sm:$0xff]  ;;  %v2931_v56 = vld [vmem:[%s2796_s19 + $0x29] sm:$0xff]  ;;  %v2939_v59 = vmax.f32 %v949_v46, %v2898_v43 }
  0x1e   : > { %v2934_v57 = vld [vmem:[%s2796_s19 + $0x31] sm:$0xff]  ;;  %v2942_v60 = vld [vmem:[%s2796_s19 + $0x39] sm:$0xff]  ;;  %v2945_v61 = vld [vmem:[%s2796_s19 + $0x69] sm:$0xff] }
  0x1f   : > { %5894 = vst [vmem:[#allocation8_spill] sm:$0xff] %v2939_v59  ;;  %v2948_v62 = vld [vmem:[%s2796_s19 + $0x71] sm:$0xff]  ;;  %v2957_v6 = vld [vmem:[%s2796_s19 + $0x79] sm:$0xff]  ;;  %v2960_v7 = vld [vmem:[%s2796_s19 + $0x81] sm:$0xff] }
  0x20   : > { %v2963_v10 = vld [vmem:[%s2796_s19 + $0x89] sm:$0xff]  ;;  %v1054_v21 = vmax.f32 %v994_v30, %v2957_v6  ;;  %v1055_v35 = vmax.f32 %v995_v32, %v2960_v7  ;;  %v2977_v46 = vld [vmem:[%s2796_s19 + $0xc1] sm:$0xff]  ;;  %v2983_v54 = vld [vmem:[%s2796_s19 + $0xd1] sm:$0xff] }
  0x21   : > { %v1056_v41 = vmax.f32 %v996_v38, %v2963_v10  ;;  %v2980_v1 = vld [vmem:[%s2796_s19 + $0xc9] sm:$0xff]  ;;  %v2991_v30 = vmax.f32 %v434_v31, %v2983_v54  ;;  %v2994_v32 = vld [vmem:[%s2796_s19 + $0xd9] sm:$0xff]  ;;  %v2997_v15 = vld [vmem:[%s2796_s19 + $0xf1] sm:$0xff]  ;;  %v683_v13 = vmax.f32 %v2977_v46, %v2830_v16  ;;  %v289_v38 = vmax.f32 %v2812_v8, %v2963_v10 }
  0x22   : > { %v2988_v14 = vmax.f32 %v382_v22, %v2980_v1  ;;  %5895 = vst [vmem:[#allocation9_spill] sm:$0xff] %v2997_v15  ;;  %v1105_v22 = vmax.f32 %v1054_v21, %v2980_v1  ;;  %v1106_v2 = vmax.f32 %v1055_v35, %v2983_v54  ;;  %v535_v31 = vmax.f32 %v435_v33, %v2994_v32  ;;  %v3009_v0 = vld [vmem:[%s2796_s19 + $0xe9] sm:$0xff]  ;;  %v3018_v39 = vld [vmem:[%s2796_s19 + $0xf9] sm:$0xff] }
  0x23   : > { %5896 = vst [vmem:[#allocation10_spill] sm:$0xff] %v3009_v0  ;;  %v1107_v63 = vmax.f32 %v1056_v41, %v2994_v32  ;;  %v1068_v58 = vmax.f32 %v1008_v53, %v3009_v0  ;;  %5897 = vst [vmem:[#allocation11_spill] sm:$0xff] %v3018_v39  ;;  %v3023_v21 = vmax.f32 %v950_v48, %v3018_v39  ;;  %v3029_v53 = vld [vmem:[%s2796_s19 + $0x139] sm:$0xff]  ;;  %v335_v33 = vld [vmem:[%s2796_s19 + $0x6a] sm:$0xff] }
  0x24   : > { %v3026_v35 = vmax.f32 %v940_v52, %v3018_v39  ;;  %5900 = vst [vmem:[#allocation14_spill] sm:$0xff] %v3029_v53  ;;  %v288_v41 = vmax.f32 %v2805_v5, %v2960_v7  ;;  %v296_v48 = vmax.f32 %v2830_v16, %v2977_v46  ;;  %v297_v52 = vmax.f32 %v2833_v17, %v2980_v1  ;;  %v322_v16 = vld [vmem:[%s2796_s19 + $0x2] sm:$0xff]  ;;  %v3053_v10 = vld [vmem:[%s2796_s19 + $0x7a] sm:$0xff]  ;;  %v3063_v46 = vld [vmem:[%s2796_s19 + $0x8a] sm:$0xff] }
  0x25   : > { %5898 = vst [vmem:[#allocation12_spill] sm:$0xff] %v3023_v21  ;;  %v3043_v43 = vmax.f32 %v1068_v58, %v3029_v53  ;;  %v298_v5 = vmax.f32 %v2848_v23, %v2983_v54  ;;  %v299_v7 = vmax.f32 %v2851_v24, %v2994_v32  ;;  %v3056_v1 = vld [vmem:[%s2796_s19 + $0x82] sm:$0xff]  ;;  %v635_v58 = vmax.f32 %v535_v31, %v335_v33  ;;  %v3066_v32 = vld [vmem:[%s2796_s19 + $0x92] sm:$0xff]  ;;  %v3074_v34 = vld [vmem:[%s2796_s19 + $0xa] sm:$0xff] }
  0x26   : > { %5899 = vst [vmem:[#allocation13_spill] sm:$0xff] %v3026_v35  ;;  %v1205_v23 = vmax.f32 %v1105_v22, %v3053_v10  ;;  %v1206_v54 = vmax.f32 %v1106_v2, %v3056_v1  ;;  %5902 = vst [vmem:[#allocation16_spill] sm:$0xff] %v3066_v32  ;;  %v3069_v8 = vld [vmem:[%s2796_s19 + $0xc2] sm:$0xff]  ;;  %v1207_v31 = vmax.f32 %v1107_v63, %v3063_v46  ;;  %v3082_v17 = vld [vmem:[%s2796_s19 + $0xca] sm:$0xff] }
  0x27   : > { %5901 = vst [vmem:[#allocation15_spill] sm:$0xff] %v3043_v43  ;;  %v3085_v39 = vld [vmem:[%s2796_s19 + $0xd2] sm:$0xff]  ;;  %v3088_v36 = vld [vmem:[%s2796_s19 + $0x1a] sm:$0xff]  ;;  %v3104_v9 = vld [vmem:[%s2796_s19 + $0xe2] sm:$0xff] }
  0x28   : > { %v3093_v53 = vmax.f32 %v1205_v23, %v3082_v17  ;;  %v3098_v2 = vmax.f32 %v1206_v54, %v3085_v39  ;;  %v3101_v22 = vld [vmem:[%s2796_s19 + $0xda] sm:$0xff]  ;;  %v3107_v42 = vld [vmem:[%s2796_s19 + $0x2a] sm:$0xff]  ;;  %v3113_v23 = vmax.f32 %v683_v13, %v3069_v8  ;;  %v5904_v54 = vmax.f32 %v2854_v25, %v2851_v24  ;;  %v3128_v43 = vld [vmem:[%s2796_s19 + $0x12] sm:$0xff] }
  0x29   : > { %v3110_v21 = vld [vmem:[%s2796_s19 + $0x3a] sm:$0xff]  ;;  %v3116_v12 = vmax.f32 %v635_v58, %v3101_v22  ;;  %v3119_v63 = vmax.f32 %v1207_v31, %v3101_v22  ;;  %v5905_v31 = vmax.f32 %v2819_v11, %v2901_v44  ;;  %v3140_v15 = vld [vmem:[%s2796_s19 + $0x22] sm:$0xff]  ;;  %v3143_v24 = vld [vmem:[%s2796_s19 + $0x32] sm:$0xff]  ;;  %v5907_v58 = vmax.f32 %v2839_v19, %v2917_v50 }
  0x2a   : > { %5903 = vst [vmem:[#allocation17_spill] sm:$0xff] %v3113_v23  ;;  %v3125_v59 = vmax.f32 %v5904_v54, %v3104_v9  ;;  %v1320_v35 = vmax.f32 %v3093_v53, %v3085_v39  ;;  %v1321_v13 = vmax.f32 %v3098_v2, %v3101_v22  ;;  %v5906_v53 = vmax.f32 %v2836_v18, %v2914_v49 }
  0x2b   : > { %v372_v23 = vmax.f32 %v5905_v31, %v322_v16  ;;  %v1322_v54 = vmax.f32 %v3119_v63, %v3104_v9  ;;  %v374_v25 = vmax.f32 %v5907_v58, %v3128_v43  ;;  %v5908_v11 = vmax.f32 %v2842_v20, %v2920_v51  ;;  %v336_v16 = vld [vmem:[%s2796_s19 + $0x72] sm:$0xff] }
  0x2c   : > { %v373_v2 = vmax.f32 %v5906_v53, %v3074_v34  ;;  %v5909_v63 = vmax.f32 %v2857_v26, %v2928_v55  ;;  %v5910_v18 = vmax.f32 %v2860_v27, %v2931_v56  ;;  %v5911_v19 = vmax.f32 %v2863_v28, %v2934_v57  ;;  %v330_v53 = vld [vmem:[%s2796_s19 + $0x42] sm:$0xff] }
  0x2d   : > { %v375_v44 = vmax.f32 %v5908_v11, %v3088_v36  ;;  %v5912_v20 = vmax.f32 %v2866_v29, %v2942_v60  ;;  %v5913_v26 = vmax.f32 %v2884_v37, %v2945_v61  ;;  %v5914_v58 = vmax.f32 %v2799_v3, %v2948_v62 }
  0x2e   : > { %v376_v31 = vmax.f32 %v5909_v63, %v3140_v15  ;;  %v377_v49 = vmax.f32 %v5910_v18, %v3107_v42  ;;  %v378_v50 = vmax.f32 %v5911_v19, %v3143_v24  ;;  %v5915_v56 = vmax.f32 %v2802_v4, %v2957_v6 }
  0x2f   : > { %v379_v51 = vmax.f32 %v5912_v20, %v3110_v21  ;;  %v385_v55 = vmax.f32 %v5913_v26, %v335_v33  ;;  %v386_v27 = vmax.f32 %v5914_v58, %v336_v16  ;;  %v388_v57 = vmax.f32 %v288_v41, %v3056_v1  ;;  %v473_v33 = vld [vmem:[%s2796_s19 + $0xb] sm:$0xff]  ;;  %v500_v20 = vld [vmem:[%s2796_s19 + $0xe3] sm:$0xff] }
  0x30   : > { %v387_v28 = vmax.f32 %v5915_v56, %v3053_v10  ;;  %v389_v29 = vmax.f32 %v289_v38, %v3063_v46  ;;  %v396_v37 = vmax.f32 %v296_v48, %v3069_v8  ;;  %v397_v60 = vmax.f32 %v297_v52, %v3082_v17  ;;  %v489_v26 = vld [vmem:[%s2796_s19 + $0x8b] sm:$0xff] }
  0x31   : > { %v398_v3 = vmax.f32 %v298_v5, %v3085_v39  ;;  %v3193_v61 = vmax.f32 %v299_v7, %v3101_v22  ;;  %v423_v4 = vmax.f32 %v372_v23, %v3074_v34  ;;  %v424_v62 = vmax.f32 %v373_v2, %v3128_v43  ;;  %v474_v5 = vld [vmem:[%s2796_s19 + $0x13] sm:$0xff]  ;;  %v475_v34 = vld [vmem:[%s2796_s19 + $0x1b] sm:$0xff] }
  0x32   : > { %v425_v6 = vmax.f32 %v374_v25, %v3088_v36  ;;  %v426_v38 = vmax.f32 %v375_v44, %v3140_v15  ;;  %v427_v41 = vmax.f32 %v376_v31, %v3107_v42  ;;  %v428_v48 = vmax.f32 %v377_v49, %v3143_v24  ;;  %v498_v7 = vld [vmem:[%s2796_s19 + $0xd3] sm:$0xff]  ;;  %v476_v15 = vld [vmem:[%s2796_s19 + $0x23] sm:$0xff]  ;;  %v477_v42 = vld [vmem:[%s2796_s19 + $0x2b] sm:$0xff] }
  0x33   : > { %v429_v52 = vmax.f32 %v378_v50, %v3110_v21  ;;  %v430_v23 = vmax.f32 %v379_v51, %v330_v53  ;;  %v436_v43 = vmax.f32 %v385_v55, %v336_v16  ;;  %v437_v25 = vmax.f32 %v386_v27, %v3053_v10  ;;  %v478_v24 = vld [vmem:[%s2796_s19 + $0x33] sm:$0xff]  ;;  %v479_v16 = vld [vmem:[%s2796_s19 + $0x3b] sm:$0xff]  ;;  %v480_v10 = vld [vmem:[%s2796_s19 + $0x43] sm:$0xff] }
  0x34   : > { %v438_v36 = vmax.f32 %v387_v28, %v3056_v1  ;;  %v439_v21 = vmax.f32 %v388_v57, %v3063_v46  ;;  %v440_v2 = vmax.f32 %v389_v29, %v3066_v32  ;;  %v447_v11 = vmax.f32 %v396_v37, %v3082_v17  ;;  %v486_v1 = vld [vmem:[%s2796_s19 + $0x73] sm:$0xff]  ;;  %v487_v49 = vld [vmem:[%s2796_s19 + $0x7b] sm:$0xff]  ;;  %v488_v51 = vld [vmem:[%s2796_s19 + $0x83] sm:$0xff] }
  0x35   : > { %v448_v44 = vmax.f32 %v397_v60, %v3085_v39  ;;  %v5916_v63 = vmax.f32 %v2890_v40, %v3066_v32  ;;  %v449_v18 = vmax.f32 %v398_v3, %v3101_v22  ;;  %v450_v46 = vmax.f32 %v3193_v61, %v3104_v9  ;;  %v499_v50 = vld [vmem:[%s2796_s19 + $0xdb] sm:$0xff]  ;;  %v490_v55 = vld [vmem:[%s2796_s19 + $0x93] sm:$0xff]  ;;  %v497_v22 = vld [vmem:[%s2796_s19 + $0xcb] sm:$0xff] }
  0x36   : > { %v1385_v19 = vmax.f32 %v1320_v35, %v498_v7  ;;  %v1386_v58 = vmax.f32 %v1321_v13, %v499_v50  ;;  %v1387_v27 = vmax.f32 %v1322_v54, %v500_v20  ;;  %v3233_v40 = vmax.f32 %v423_v4, %v473_v33  ;;  %v584_v60 = vld [vmem:[%s2796_s19 + $0x64] sm:$0xff]  ;;  %v585_v3 = vld [vmem:[%s2796_s19 + $0x6c] sm:$0xff]  ;;  %v3257_v61 = vld [vmem:[%s2796_s19 + $0x74] sm:$0xff] }
  0x37   : > { %v3222_v31 = vmax.f32 %v5916_v63, %v3104_v9  ;;  %v3235_v56 = vmax.f32 %v424_v62, %v474_v5  ;;  %v3238_v28 = vmax.f32 %v425_v6, %v475_v34  ;;  %v3240_v35 = vmax.f32 %v426_v38, %v476_v15  ;;  %v3268_v38 = vld [vmem:[%s2796_s19 + $0x7c] sm:$0xff] }
  0x38   : > { %v3242_v57 = vmax.f32 %v427_v41, %v477_v42  ;;  %v3244_v53 = vmax.f32 %v428_v48, %v478_v24  ;;  %v3246_v29 = vmax.f32 %v429_v52, %v479_v16  ;;  %v3248_v37 = vmax.f32 %v430_v23, %v480_v10  ;;  %v3271_v41 = vld [vmem:[%s2796_s19 + $0x84] sm:$0xff]  ;;  %v579_v32 = vld [vmem:[%s2796_s19 + $0x3c] sm:$0xff] }
  0x39   : > { %v3250_v13 = vmax.f32 %v436_v43, %v486_v1  ;;  %v3252_v54 = vmax.f32 %v437_v25, %v487_v49  ;;  %v3259_v4 = vmax.f32 %v438_v36, %v488_v51  ;;  %v3261_v62 = vmax.f32 %v439_v21, %v489_v26  ;;  %v3286_v25 = vld [vmem:[%s2796_s19 + $0x8c] sm:$0xff]  ;;  %v5922_v1 = vld [vmem:[#allocation13_spill] sm:$0xff]  ;;  %v3341_v51 = vld [vmem:[%s2796_s19 + $0xe4] sm:$0xff] }
  0x3a   : > { %v3263_v6 = vmax.f32 %v440_v2, %v490_v55  ;;  %v3265_v33 = vmax.f32 %v448_v44, %v498_v7  ;;  %v3273_v48 = vmax.f32 %v447_v11, %v497_v22  ;;  %v3275_v52 = vmax.f32 %v449_v18, %v499_v50  ;;  %v3289_v7 = vld [vmem:[%s2796_s19 + $0x94] sm:$0xff]  ;;  %v3292_v36 = vld [vmem:[%s2796_s19 + $0xcc] sm:$0xff]  ;;  %v3321_v18 = vld [vmem:[%s2796_s19 + $0xdc] sm:$0xff] }
  0x3b   : > { %v5917_v5 = vmax.f32 %v2991_v30, %v3085_v39  ;;  %v5918_v23 = vmax.f32 %v2988_v14, %v3082_v17  ;;  %v1449_v15 = vmax.f32 %v1385_v19, %v584_v60  ;;  %v786_v42 = vmax.f32 %v3116_v12, %v585_v3  ;;  %v3297_v30 = vld [vmem:[%s2796_s19 + $0xd4] sm:$0xff]  ;;  %v3385_v49 = vld [vmem:[%s2796_s19 + $0x13c] sm:$0xff] }
  0x3c   : > { %v1450_v24 = vmax.f32 %v1386_v58, %v585_v3  ;;  %v1451_v39 = vmax.f32 %v1387_v27, %v3257_v61  ;;  %v3299_v14 = vmax.f32 %v450_v46, %v500_v20  ;;  %v1208_v21 = vmax.f32 %v3222_v31, %v3268_v38  ;;  %v5920_v44 = vld [vmem:[#allocation9_spill] sm:$0xff]  ;;  %v5923_v46 = vld [vmem:[#allocation15_spill] sm:$0xff]  ;;  %v5924_v19 = vld [vmem:[#allocation8_spill] sm:$0xff] }
  0x3d   : > { %v685_v34 = vmax.f32 %v5917_v5, %v584_v60  ;;  %v3283_v43 = vmax.f32 %v5918_v23, %v584_v60  ;;  %v5919_v2 = vmax.f32 %v2904_v45, %v3009_v0  ;;  %v886_v12 = vmax.f32 %v786_v42, %v3257_v61  ;;  %v3324_v45 = vld [vmem:[%s2796_s19 + $0xec] sm:$0xff]  ;;  %v5927_v22 = vld [vmem:[#allocation5_spill] sm:$0xff]  ;;  %v5933_v58 = vld [vmem:[#allocation6_spill] sm:$0xff] }
  0x3e   : > { %v5921_v16 = vmax.f32 %v2909_v47, %v5920_v44  ;;  %v1067_v31 = vmax.f32 %v3125_v59, %v3292_v36  ;;  %v3329_v47 = vmax.f32 %v1449_v15, %v3297_v30  ;;  %v5925_v50 = vmax.f32 %v5924_v19, %v5920_v44  ;;  %v5926_v55 = vld [vmem:[#allocation12_spill] sm:$0xff]  ;;  %v5928_v23 = vld [vmem:[#allocation3_spill] sm:$0xff]  ;;  %v575_v5 = vld [vmem:[%s2796_s19 + $0x1c] sm:$0xff] }
  0x3f   : > { %v785_v17 = vmax.f32 %v685_v34, %v585_v3  ;;  %v3307_v11 = vmax.f32 %v5919_v2, %v3271_v41  ;;  %v3338_v59 = vmax.f32 %v1450_v24, %v3321_v18  ;;  %v3348_v27 = vmax.f32 %v1451_v39, %v3341_v51  ;;  %v573_v3 = vld [vmem:[%s2796_s19 + $0xc] sm:$0xff]  ;;  %v3370_v2 = vld [vmem:[%s2796_s19 + $0x134] sm:$0xff]  ;;  %v3408_v19 = vld [vmem:[%s2796_s19 + $0x44] sm:$0xff] }
  0x40   : > { %v3314_v10 = vmax.f32 %v5921_v16, %v3286_v25  ;;  %v3335_v20 = vmax.f32 %v5925_v50, %v3321_v18  ;;  %v691_v60 = vmax.f32 %v3324_v45, %v5927_v22  ;;  %v5929_v15 = vmax.f32 %v5928_v23, %v3104_v9  ;;  %v3367_v39 = vld [vmem:[%s2796_s19 + $0x12c] sm:$0xff]  ;;  %v574_v44 = vld [vmem:[%s2796_s19 + $0x14] sm:$0xff]  ;;  %v576_v16 = vld [vmem:[%s2796_s19 + $0x24] sm:$0xff] }
  0x41   : > { %v3364_v24 = vmax.f32 %v1208_v21, %v3324_v45  ;;  %5931 = vst [vmem:[#allocation13_spill] sm:$0xff] %v3367_v39  ;;  %v5932_v50 = vld [vmem:[#allocation7_spill] sm:$0xff]  ;;  %v885_v21 = vmax.f32 %v785_v17, %v3367_v39  ;;  %v578_v26 = vld [vmem:[%s2796_s19 + $0x34] sm:$0xff]  ;;  %v684_v63 = vmax.f32 %v3283_v43, %v3367_v39  ;;  %v3393_v34 = vmax.f32 %v1067_v31, %v3385_v49 }
  0x42   : > { %v3361_v42 = vmax.f32 %v5929_v15, %v3324_v45  ;;  %v5934_v9 = vmax.f32 %v5932_v50, %v5933_v58  ;;  %v946_v15 = vmax.f32 %v886_v12, %v3370_v2  ;;  %v577_v0 = vld [vmem:[%s2796_s19 + $0x2c] sm:$0xff]  ;;  %v623_v43 = vmax.f32 %v3233_v40, %v573_v3 }
  0x43   : > { %v945_v17 = vmax.f32 %v885_v21, %v3370_v2  ;;  %v624_v31 = vmax.f32 %v3235_v56, %v574_v44  ;;  %v627_v58 = vmax.f32 %v3242_v57, %v577_v0  ;;  %v628_v21 = vmax.f32 %v3244_v53, %v578_v26 }
  0x44   : > { %5930 = vst [vmem:[#allocation9_spill] sm:$0xff] %v3361_v42  ;;  %v3380_v23 = vmax.f32 %v5934_v9, %v3367_v39  ;;  %v3403_v22 = vmax.f32 %v946_v15, %v3385_v49  ;;  %v625_v42 = vmax.f32 %v3238_v28, %v575_v5  ;;  %v626_v9 = vmax.f32 %v3240_v35, %v576_v16 }
  0x45   : > { %v629_v12 = vmax.f32 %v3246_v29, %v579_v32  ;;  %v636_v15 = vmax.f32 %v3250_v13, %v3257_v61  ;;  %v637_v40 = vmax.f32 %v3252_v54, %v3268_v38  ;;  %v638_v3 = vmax.f32 %v3259_v4, %v3271_v41 }
  0x46   : > { %v639_v56 = vmax.f32 %v3261_v62, %v3286_v25  ;;  %v640_v28 = vmax.f32 %v3263_v6, %v3289_v7  ;;  %v647_v35 = vmax.f32 %v3273_v48, %v3292_v36  ;;  %v648_v53 = vmax.f32 %v3265_v33, %v3297_v30 }
  0x47   : > { %v649_v29 = vmax.f32 %v3275_v52, %v3321_v18  ;;  %v650_v13 = vmax.f32 %v3299_v14, %v3341_v51  ;;  %v3438_v61 = vmax.f32 %v623_v43, %v574_v44  ;;  %v3440_v4 = vmax.f32 %v624_v31, %v575_v5  ;;  %v734_v14 = vld [vmem:[%s2796_s19 + $0x65] sm:$0xff]  ;;  %v3489_v43 = vld [vmem:[%s2796_s19 + $0x95] sm:$0xff]  ;;  %v3492_v31 = vld [vmem:[%s2796_s19 + $0xcd] sm:$0xff] }
  0x48   : > { %v3436_v54 = vmax.f32 %v691_v60, %v640_v28  ;;  %v3442_v62 = vmax.f32 %v625_v42, %v576_v16  ;;  %v3444_v6 = vmax.f32 %v626_v9, %v577_v0  ;;  %v3446_v33 = vmax.f32 %v627_v58, %v578_v26  ;;  %v735_v60 = vld [vmem:[%s2796_s19 + $0x6d] sm:$0xff]  ;;  %v736_v26 = vld [vmem:[%s2796_s19 + $0x75] sm:$0xff]  ;;  %v3472_v58 = vld [vmem:[%s2796_s19 + $0x85] sm:$0xff]  ;;  %5940 = vst [vmem:[#allocation19_spill] sm:$0xff] %v3489_v43 }
  0x49   : > { %v3448_v48 = vmax.f32 %v628_v21, %v579_v32  ;;  %v3451_v52 = vmax.f32 %v636_v15, %v3268_v38  ;;  %v3456_v44 = vmax.f32 %v637_v40, %v3271_v41  ;;  %v3459_v5 = vmax.f32 %v638_v3, %v3286_v25  ;;  %v3469_v38 = vld [vmem:[%s2796_s19 + $0x7d] sm:$0xff]  ;;  %5938 = vst [vmem:[#allocation3_spill] sm:$0xff] %v3472_v58  ;;  %v3486_v9 = vld [vmem:[%s2796_s19 + $0x8d] sm:$0xff] }
  0x4a   : > { %v3462_v0 = vmax.f32 %v639_v56, %v3289_v7  ;;  %v3465_v32 = vmax.f32 %v647_v35, %v3297_v30  ;;  %5937 = vst [vmem:[#allocation12_spill] sm:$0xff] %v3469_v38  ;;  %v3475_v42 = vmax.f32 %v629_v12, %v3408_v19  ;;  %v3478_v41 = vmax.f32 %v648_v53, %v3321_v18  ;;  %v748_v56 = vld [vmem:[%s2796_s19 + $0xd5] sm:$0xff]  ;;  %v3503_v28 = vld [vmem:[%s2796_s19 + $0xdd] sm:$0xff] }
  0x4b   : > { %5935 = vst [vmem:[#allocation15_spill] sm:$0xff] %v3456_v44  ;;  %v3481_v25 = vmax.f32 %v649_v29, %v3341_v51  ;;  %v3483_v16 = vmax.f32 %v684_v63, %v734_v14  ;;  %5939 = vst [vmem:[#allocation18_spill] sm:$0xff] %v3486_v9  ;;  %v5941_v21 = vmax.f32 %v3329_v47, %v3321_v18  ;;  %v836_v44 = vld [vmem:[%s2796_s19 + $0x76] sm:$0xff] }
  0x4c   : > { %5936 = vst [vmem:[#allocation8_spill] sm:$0xff] %v3465_v32  ;;  %v1005_v15 = vmax.f32 %v945_v17, %v735_v60  ;;  %v5942_v40 = vmax.f32 %v3338_v59, %v3341_v51  ;;  %v1066_v63 = vmax.f32 %v3403_v22, %v736_v26  ;;  %v3506_v35 = vmax.f32 %v650_v13, %v3324_v45  ;;  %v3516_v22 = vld [vmem:[%s2796_s19 + $0x15] sm:$0xff]  ;;  %v3535_v13 = vld [vmem:[%s2796_s19 + $0xe5] sm:$0xff] }
  0x4d   : > { %v1629_v12 = vmax.f32 %v5941_v21, %v734_v14  ;;  %v5943_v18 = vmax.f32 %v3348_v27, %v3324_v45  ;;  %v1323_v17 = vmax.f32 %v3364_v24, %v3469_v38  ;;  %v1209_v59 = vmax.f32 %v3307_v11, %v3472_v58  ;;  %5947 = vst [vmem:[#allocation21_spill] sm:$0xff] %v3535_v13  ;;  %v3538_v14 = vld [vmem:[%s2796_s19 + $0x12d] sm:$0xff]  ;;  %v760_v21 = vld [vmem:[%s2796_s19 + $0x135] sm:$0xff]  ;;  %v841_v32 = vld [vmem:[%s2796_s19 + $0x9e] sm:$0xff] }
  0x4e   : > { %v1630_v3 = vmax.f32 %v5942_v40, %v735_v60  ;;  %v1210_v53 = vmax.f32 %v3314_v10, %v3486_v9  ;;  %v5944_v45 = vmax.f32 %v5922_v1, %v3289_v7  ;;  %v5945_v24 = vmax.f32 %v3292_v36, %v3069_v8  ;;  %5948 = vst [vmem:[#allocation22_spill] sm:$0xff] %v3538_v14  ;;  %v3559_v40 = vld [vmem:[%s2796_s19 + $0x13d] sm:$0xff] }
  0x4f   : > { %v1631_v47 = vmax.f32 %v5943_v18, %v736_v26  ;;  %v5949_v10 = vmax.f32 %v5923_v46, %v3297_v30  ;;  %v1680_v8 = vmax.f32 %v1629_v12, %v3503_v28  ;;  %v5950_v36 = vmax.f32 %v5926_v55, %v3341_v51  ;;  %v3555_v26 = vld [vmem:[%s2796_s19 + $0xed] sm:$0xff]  ;;  %v3562_v30 = vld [vmem:[%s2796_s19 + $0x1d] sm:$0xff]  ;;  %v3565_v46 = vld [vmem:[%s2796_s19 + $0x25] sm:$0xff] }
  0x50   : > { %v3524_v27 = vmax.f32 %v5944_v45, %v3489_v43  ;;  %v3530_v29 = vmax.f32 %v5945_v24, %v3492_v31  ;;  %5951 = vst [vmem:[#allocation23_spill] sm:$0xff] %v3555_v26  ;;  %v1681_v12 = vmax.f32 %v1630_v3, %v3535_v13  ;;  %v891_v18 = vmax.f32 %v3436_v54, %v3555_v26  ;;  %v3577_v45 = vld [vmem:[%s2796_s19 + $0x35] sm:$0xff]  ;;  %v3580_v24 = vld [vmem:[%s2796_s19 + $0x3d] sm:$0xff]  ;;  %v3592_v55 = vld [vmem:[%s2796_s19 + $0x45] sm:$0xff] }
  0x51   : > { %v3543_v7 = vmax.f32 %v5949_v10, %v748_v56  ;;  %v3552_v60 = vmax.f32 %v5950_v36, %v3535_v13  ;;  %v3568_v56 = vld [vmem:[%s2796_s19 + $0x2d] sm:$0xff]  ;;  %v1682_v51 = vmax.f32 %v1631_v47, %v3555_v26  ;;  %v884_v10 = vmax.f32 %v3483_v16, %v3538_v14 }
  0x52   : > { %5946 = vst [vmem:[#allocation20_spill] sm:$0xff] %v3530_v29  ;;  %v5952_v3 = vmax.f32 %v3370_v2, %v3367_v39  ;;  %v1065_v47 = vmax.f32 %v1005_v15, %v760_v21  ;;  %v5954_v1 = vmax.f32 %v5932_v50, %v3370_v2  ;;  %v1117_v16 = vmax.f32 %v1066_v63, %v3559_v40  ;;  %v3638_v50 = vld [vmem:[%s2796_s19 + $0x8e] sm:$0xff]  ;;  %v3651_v43 = vld [vmem:[%s2796_s19 + $0x86] sm:$0xff]  ;;  %v3654_v15 = vld [vmem:[%s2796_s19 + $0x96] sm:$0xff] }
  0x53   : > { %v5955_v36 = vmax.f32 %v3385_v49, %v3370_v2  ;;  %v1757_v9 = vmax.f32 %v1682_v51, %v836_v44  ;;  %v3668_v51 = vld [vmem:[%s2796_s19 + $0xce] sm:$0xff]  ;;  %v3671_v13 = vmax.f32 %v891_v18, %v841_v32  ;;  %v5962_v18 = vmax.f32 %v3393_v34, %v3492_v31  ;;  %v825_v29 = vld [vmem:[%s2796_s19 + $0x1e] sm:$0xff] }
  0x54   : > { %v3589_v54 = vmax.f32 %v5952_v3, %v760_v21  ;;  %v3597_v11 = vmax.f32 %v5954_v1, %v760_v21  ;;  %v834_v21 = vld [vmem:[%s2796_s19 + $0x66] sm:$0xff]  ;;  %v835_v3 = vld [vmem:[%s2796_s19 + $0x6e] sm:$0xff]  ;;  %v3627_v1 = vld [vmem:[%s2796_s19 + $0x7e] sm:$0xff]  ;;  %v1217_v2 = vmax.f32 %v1117_v16, %v836_v44  ;;  %5958 = vst [vmem:[#allocation27_spill] sm:$0xff] %v3668_v51 }
  0x55   : > { %v3604_v57 = vmax.f32 %v5955_v36, %v3559_v40  ;;  %v3642_v39 = vmax.f32 %v884_v10, %v834_v21  ;;  %v1755_v58 = vmax.f32 %v1680_v8, %v834_v21  ;;  %v3644_v63 = vmax.f32 %v1065_v47, %v835_v3  ;;  %5959 = vst [vmem:[#allocation28_spill] sm:$0xff] %v3671_v13 }
  0x56   : > { %5953 = vst [vmem:[#allocation24_spill] sm:$0xff] %v3589_v54  ;;  %v1756_v38 = vmax.f32 %v1681_v12, %v835_v3  ;;  %v3648_v36 = vmax.f32 %v1323_v17, %v3627_v1  ;;  %v3660_v8 = vmax.f32 %v1209_v59, %v3651_v43  ;;  %v3663_v12 = vmax.f32 %v1210_v53, %v3638_v50 }
  0x57   : > { %5956 = vst [vmem:[#allocation25_spill] sm:$0xff] %v3642_v39  ;;  %5957 = vst [vmem:[#allocation26_spill] sm:$0xff] %v3644_v63  ;;  %v1211_v17 = vmax.f32 %v3524_v27, %v3654_v15  ;;  %v1819_v47 = vmax.f32 %v1755_v58, %v835_v3  ;;  %v1821_v21 = vmax.f32 %v1757_v9, %v3627_v1  ;;  %v830_v39 = vld [vmem:[%s2796_s19 + $0x46] sm:$0xff]  ;;  %v5973_v63 = vld [vmem:[#allocation9_spill] sm:$0xff] }
  0x58   : > { %v1820_v16 = vmax.f32 %v1756_v38, %v836_v44  ;;  %v1452_v59 = vmax.f32 %v3648_v36, %v3651_v43  ;;  %v1324_v53 = vmax.f32 %v3660_v8, %v3638_v50  ;;  %v5960_v27 = vmax.f32 %v3248_v37, %v3408_v19  ;;  %v848_v44 = vld [vmem:[%s2796_s19 + $0xd6] sm:$0xff]  ;;  %v3686_v38 = vld [vmem:[%s2796_s19 + $0xde] sm:$0xff] }
  0x59   : > { %v3688_v58 = vmax.f32 %v1211_v17, %v841_v32  ;;  %v1282_v3 = vmax.f32 %v5962_v18, %v3668_v51  ;;  %v5963_v36 = vld [vmem:[#allocation14_spill] sm:$0xff]  ;;  %v3705_v10 = vmax.f32 %v1217_v2, %v3668_v51  ;;  %v5968_v17 = vmax.f32 %v3335_v20, %v3503_v28  ;;  %v3717_v18 = vld [vmem:[%s2796_s19 + $0xee] sm:$0xff]  ;;  %v824_v51 = vld [vmem:[%s2796_s19 + $0x16] sm:$0xff] }
  0x5a   : > { %v3682_v26 = vmax.f32 %v5960_v27, %v841_v32  ;;  %v5964_v8 = vld [vmem:[#allocation6_spill] sm:$0xff]  ;;  %v1334_v32 = vmax.f32 %v3543_v7, %v848_v44  ;;  %v3720_v9 = vmax.f32 %v1819_v47, %v3686_v38  ;;  %v3728_v7 = vld [vmem:[%s2796_s19 + $0x12e] sm:$0xff]  ;;  %v5972_v54 = vmax.f32 %v3559_v40, %v3385_v49 }
  0x5b   : > { %v5965_v37 = vmax.f32 %v5963_v36, %v5964_v8  ;;  %v3702_v27 = vld [vmem:[%s2796_s19 + $0xe6] sm:$0xff]  ;;  %5967 = vst [vmem:[#allocation31_spill] sm:$0xff] %v3705_v10  ;;  %v3712_v34 = vmax.f32 %v5968_v17, %v3686_v38  ;;  %v3731_v17 = vld [vmem:[%s2796_s19 + $0x136] sm:$0xff]  ;;  %v3746_v20 = vld [vmem:[%s2796_s19 + $0x13e] sm:$0xff]  ;;  %v5974_v10 = vmax.f32 %v3438_v61, %v3516_v22  ;;  %v5978_v61 = vmax.f32 %v3446_v33, %v3577_v45 }
  0x5c   : > { %5961 = vst [vmem:[#allocation29_spill] sm:$0xff] %v3682_v26  ;;  %v1221_v31 = vmax.f32 %v3552_v60, %v3702_v27  ;;  %v3723_v2 = vmax.f32 %v1820_v16, %v3702_v27  ;;  %5969 = vst [vmem:[#allocation32_spill] sm:$0xff] %v3731_v17  ;;  %v3734_v60 = vmax.f32 %v1334_v32, %v3686_v38  ;;  %v827_v36 = vld [vmem:[%s2796_s19 + $0x2e] sm:$0xff]  ;;  %v828_v8 = vld [vmem:[%s2796_s19 + $0x36] sm:$0xff] }
  0x5d   : > { %v3699_v19 = vmax.f32 %v5965_v37, %v848_v44  ;;  %v1333_v37 = vmax.f32 %v1282_v3, %v848_v44  ;;  %v1335_v47 = vmax.f32 %v3712_v34, %v3702_v27  ;;  %v5970_v16 = vmax.f32 %v3380_v23, %v3538_v14  ;;  %5971 = vst [vmem:[#allocation33_spill] sm:$0xff] %v3746_v20  ;;  %v3760_v23 = vld [vmem:[%s2796_s19 + $0x146] sm:$0xff] }
  0x5e   : > { %v3739_v44 = vmax.f32 %v1221_v31, %v3717_v18  ;;  %v3751_v32 = vmax.f32 %v1821_v21, %v3717_v18  ;;  %v1080_v14 = vmax.f32 %v3597_v11, %v3731_v17  ;;  %v829_v31 = vld [vmem:[%s2796_s19 + $0x3e] sm:$0xff]  ;;  %v451_v34 = vmax.f32 %v5973_v63, %v3760_v23 }
  0x5f   : > { %5966 = vst [vmem:[#allocation30_spill] sm:$0xff] %v3699_v19  ;;  %v1130_v3 = vmax.f32 %v5970_v16, %v3728_v7  ;;  %v826_v16 = vld [vmem:[%s2796_s19 + $0x26] sm:$0xff]  ;;  %v1021_v19 = vmax.f32 %v5972_v54, %v3746_v20  ;;  %v1398_v21 = vmax.f32 %v1333_v37, %v3760_v23  ;;  %v874_v26 = vmax.f32 %v5974_v10, %v824_v51 }
  0x60   : > { %v1131_v11 = vmax.f32 %v1080_v14, %v3746_v20  ;;  %v5977_v14 = vmax.f32 %v3444_v6, %v3568_v56  ;;  %v878_v22 = vmax.f32 %v5978_v61, %v828_v8  ;;  %v5984_v51 = vld [vmem:[#allocation15_spill] sm:$0xff]  ;;  %v1156_v8 = vld [vmem:[%s2796_s19 + $0x77] sm:$0xff] }
  0x61   : > { %v1230_v13 = vmax.f32 %v1130_v3, %v3731_v17  ;;  %v5975_v17 = vmax.f32 %v3440_v4, %v3562_v30  ;;  %v1081_v54 = vmax.f32 %v1021_v19, %v3760_v23  ;;  %v5976_v3 = vmax.f32 %v3442_v62, %v3565_v46 }
  0x62   : > { %v877_v63 = vmax.f32 %v5977_v14, %v827_v36  ;;  %v1935_v4 = vmax.f32 %v3720_v9, %v874_v26  ;;  %v5979_v30 = vmax.f32 %v3448_v48, %v3580_v24  ;;  %v5980_v46 = vmax.f32 %v3475_v42, %v3592_v55  ;;  %v5981_v26 = vld [vmem:[#allocation12_spill] sm:$0xff]  ;;  %v5987_v36 = vld [vmem:[#allocation18_spill] sm:$0xff] }
  0x63   : > { %v875_v40 = vmax.f32 %v5975_v17, %v825_v29  ;;  %v3796_v37 = vmax.f32 %v5976_v3, %v826_v16  ;;  %v3816_v45 = vmax.f32 %v1324_v53, %v878_v22  ;;  %v5982_v10 = vmax.f32 %v3451_v52, %v5981_v26  ;;  %v1155_v24 = vld [vmem:[%s2796_s19 + $0x6f] sm:$0xff]  ;;  %v3857_v3 = vld [vmem:[%s2796_s19 + $0x97] sm:$0xff]  ;;  %v1170_v14 = vld [vmem:[%s2796_s19 + $0xe7] sm:$0xff] }
  0x64   : > { %v879_v62 = vmax.f32 %v5979_v30, %v829_v31  ;;  %v880_v6 = vmax.f32 %v5980_v46, %v830_v39  ;;  %v3814_v56 = vmax.f32 %v1452_v59, %v877_v63  ;;  %v5983_v42 = vmax.f32 %v3663_v12, %v3654_v15  ;;  %v5985_v59 = vld [vmem:[#allocation3_spill] sm:$0xff]  ;;  %v5996_v46 = vld [vmem:[#allocation22_spill] sm:$0xff] }
  0x65   : > { %v1936_v29 = vmax.f32 %v3723_v2, %v875_v40  ;;  %v887_v48 = vmax.f32 %v5982_v10, %v3627_v1  ;;  %v5986_v9 = vmax.f32 %v5984_v51, %v5985_v59  ;;  %v5988_v52 = vmax.f32 %v3459_v5, %v5987_v36  ;;  %v5989_v12 = vld [vmem:[#allocation19_spill] sm:$0xff]  ;;  %v1169_v40 = vld [vmem:[%s2796_s19 + $0xdf] sm:$0xff] }
  0x66   : > { %v3826_v55 = vmax.f32 %v5983_v42, %v879_v62  ;;  %v1326_v39 = vmax.f32 %v3688_v58, %v880_v6  ;;  %v5990_v2 = vmax.f32 %v3462_v0, %v5989_v12  ;;  %v5991_v58 = vmax.f32 %v3478_v41, %v3503_v28  ;;  %v5994_v41 = vld [vmem:[#allocation23_spill] sm:$0xff]  ;;  %v5997_v6 = vld [vmem:[#allocation13_spill] sm:$0xff] }
  0x67   : > { %v888_v53 = vmax.f32 %v5986_v9, %v3651_v43  ;;  %v889_v1 = vmax.f32 %v5988_v52, %v3638_v50  ;;  %v1462_v19 = vmax.f32 %v1398_v21, %v887_v48  ;;  %v5992_v43 = vld [vmem:[#allocation21_spill] sm:$0xff]  ;;  %v3851_v50 = vld [vmem:[%s2796_s19 + $0x87] sm:$0xff]  ;;  %v3854_v21 = vld [vmem:[%s2796_s19 + $0x8f] sm:$0xff]  ;;  %v5995_v28 = vmax.f32 %v3506_v35, %v5994_v41 }
  0x68   : > { %v890_v17 = vmax.f32 %v5990_v2, %v3654_v15  ;;  %v899_v31 = vmax.f32 %v5991_v58, %v3686_v38  ;;  %v5993_v16 = vmax.f32 %v3481_v25, %v5992_v43  ;;  %v1999_v25 = vmax.f32 %v1935_v4, %v1155_v24  ;;  %v1171_v62 = vld [vmem:[%s2796_s19 + $0xef] sm:$0xff] }
  0x69   : > { %v1463_v0 = vmax.f32 %v3734_v60, %v888_v53  ;;  %v1400_v15 = vmax.f32 %v1335_v47, %v889_v1  ;;  %v901_v38 = vmax.f32 %v5995_v28, %v3717_v18  ;;  %v2000_v30 = vmax.f32 %v1936_v29, %v1156_v8  ;;  %v1180_v60 = vld [vmem:[%s2796_s19 + $0x137] sm:$0xff]  ;;  %v1181_v47 = vld [vmem:[%s2796_s19 + $0x13f] sm:$0xff] }
  0x6a   : > { %v900_v5 = vmax.f32 %v5993_v16, %v3702_v27  ;;  %v1161_v27 = vld [vmem:[%s2796_s19 + $0x9f] sm:$0xff]  ;;  %v1336_v63 = vmax.f32 %v3739_v44, %v890_v17  ;;  %v1294_v61 = vmax.f32 %v1230_v13, %v899_v31  ;;  %v5998_v35 = vmax.f32 %v5996_v46, %v5997_v6  ;;  %v1168_v13 = vld [vmem:[%s2796_s19 + $0xd7] sm:$0xff]  ;;  %v213_v44 = vld [vmem:[%s2796_s19 + $0x148] sm:$0xff] }
  0x6b   : > { %v1132_v4 = vmax.f32 %v1081_v54, %v901_v38  ;;  %v3886_v24 = vmax.f32 %v1326_v39, %v1161_v27  ;;  %v1523_v42 = vmax.f32 %v1463_v0, %v1169_v40  ;;  %v1464_v51 = vmax.f32 %v1400_v15, %v1170_v14  ;;  %v5999_v1 = vld [vmem:[#allocation28_spill] sm:$0xff]  ;;  %v262_v17 = vld [vmem:[%s2796_s19 + $0x141] sm:$0xff] }
  0x6c   : > { %v1231_v22 = vmax.f32 %v1131_v11, %v900_v5  ;;  %v3875_v26 = vmax.f32 %v5998_v35, %v3728_v7  ;;  %v214_v11 = vld [vmem:[%s2796_s19 + $0x150] sm:$0xff]  ;;  %v1401_v54 = vmax.f32 %v1336_v63, %v1171_v62  ;;  %v1345_v59 = vmax.f32 %v1294_v61, %v1180_v60  ;;  %v3912_v61 = vld [vmem:[%s2796_s19 + $0x15a] sm:$0xff]  ;;  %v3926_v35 = vld [vmem:[%s2796_s19 + $0x142] sm:$0xff] }
  0x6d   : > { %v2049_v53 = vpack.c.bf16 %v2000_v30, %v1999_v25  ;;  %v3888_v36 = vmax.f32 %v1462_v19, %v1168_v13  ;;  %v1232_v52 = vmax.f32 %v1132_v4, %v213_v44  ;;  %v6000_v8 = vmax.f32 %v5999_v1, %v3717_v18  ;;  %v263_v39 = vld [vmem:[%s2796_s19 + $0x149] sm:$0xff]  ;;  %v264_v16 = vld [vmem:[%s2796_s19 + $0x151] sm:$0xff]  ;;  %v6003_v30 = vld [vmem:[#allocation30_spill] sm:$0xff] }
  0x6e   : > { %v1295_v9 = vmax.f32 %v1231_v22, %v1181_v47  ;;  %v3893_v2 = vmax.f32 %v451_v34, %v214_v11  ;;  %v1465_v58 = vmax.f32 %v1401_v54, %v213_v44  ;;  %v3898_v43 = vmax.f32 %v1345_v59, %v262_v17  ;;  %v361_v34 = vld [vmem:[%s2796_s19 + $0x13a] sm:$0xff]  ;;  %v6002_v25 = vld [vmem:[#allocation7_spill] sm:$0xff]  ;;  %v364_v63 = vld [vmem:[%s2796_s19 + $0x152] sm:$0xff] }
  0x6f   : > { %v1071_v12 = vmax.f32 %v6000_v8, %v214_v11  ;;  %2615 = vmatmul.mubr.msk.bf16.vlgmr.msra.gmra.mrb[0].mxu0 %vm2082_vm2, %v2049_v53  ;;  %v1524_v19 = vmax.f32 %v1464_v51, %v262_v17  ;;  %v1296_v5 = vmax.f32 %v1232_v52, %v214_v11  ;;  %v313_v18 = vmax.f32 %v213_v44, %v263_v39  ;;  %v3908_v14 = vld [vmem:[%s2796_s19 + $0x14a] sm:$0xff]  ;;  %v6007_v53 = vld [vmem:[#allocation14_spill] sm:$0xff] }
  0x70   : > { %v1346_v31 = vmax.f32 %v1295_v9, %v213_v44  ;;  %v314_v15 = vmax.f32 %v214_v11, %v264_v16  ;;  %v6001_v41 = vmov 0.0   ;;  %v1525_v28 = vmax.f32 %v1465_v58, %v263_v39  ;;  %v6006_v9 = vld [vmem:[#allocation6_spill] sm:$0xff] }
  0x71   : > { %v1122_v0 = vmax.f32 %v1071_v12, %v264_v16  ;;  %2618 = vmatprep.mubr.msk.bf16.mxu0 %vm2752_vm1, %v6001_v41  ;;  %v312_v27 = vmax.f32 %v6002_v25, %v262_v17  ;;  %v1583_v40 = vmax.f32 %v1523_v42, %v361_v34  ;;  %v1347_v22 = vmax.f32 %v1296_v5, %v264_v16  ;;  %v512_v8 = vld [vmem:[%s2796_s19 + $0x143] sm:$0xff] }
  0x72   : > { %v3904_v38 = vmax.f32 %v1346_v31, %v263_v39  ;;  %v6004_v62 = vmax.f32 %v6003_v30, %v3728_v7  ;;  %v6005_v47 = vmax.f32 %v3760_v23, %v3385_v49  ;;  %v1582_v6 = vmax.f32 %v3888_v36, %v361_v34  ;;  %v513_v31 = vld [vmem:[%s2796_s19 + $0x14b] sm:$0xff] }
  0x73   : > { %v1474_v4 = vmax.f32 %v3898_v43, %v3926_v35  ;;  %v1584_v13 = vmax.f32 %v1524_v19, %v3926_v35  ;;  %v1643_v44 = vmax.f32 %v1583_v40, %v3926_v35  ;;  %v1585_v11 = vmax.f32 %v1525_v28, %v3908_v14  ;;  %v3953_v28 = vld [vmem:[%s2796_s19 + $0x144] sm:$0xff] }
  0x74   : > { %v3917_v60 = vmax.f32 %v6004_v62, %v361_v34  ;;  %v3922_v46 = vmax.f32 %v6005_v47, %v361_v34  ;;  %v1475_v49 = vmax.f32 %v3904_v38, %v3908_v14  ;;  %v1222_v23 = vmax.f32 %v1122_v0, %v364_v63  ;;  %v3963_v47 = vld [vmem:[%s2796_s19 + $0x14c] sm:$0xff]  ;;  %v986_v38 = vld [vmem:[%s2796_s19 + $0x1b5] sm:$0xff] }
  0x75   : > { %v3935_v42 = vmax.f32 %v1347_v22, %v364_v63  ;;  %v651_v51 = vmax.f32 %v3893_v2, %v3912_v61  ;;  %v1644_v54 = vmax.f32 %v1584_v13, %v3908_v14  ;;  %v1645_v59 = vmax.f32 %v1585_v11, %v364_v63  ;;  %v514_v2 = vld [vmem:[%s2796_s19 + $0x153] sm:$0xff]  ;;  %v615_v13 = vld [vmem:[%s2796_s19 + $0x15c] sm:$0xff] }
  0x76   : > { %v6008_v36 = vmax.f32 %v6006_v9, %v6007_v53  ;;  %v412_v1 = vmax.f32 %v312_v27, %v3926_v35  ;;  %v1286_v12 = vmax.f32 %v1222_v23, %v3912_v61  ;;  %v413_v17 = vmax.f32 %v313_v18, %v3908_v14  ;;  %v614_v53 = vld [vmem:[%s2796_s19 + $0x154] sm:$0xff] }
  0x77   : > { %v414_v39 = vmax.f32 %v314_v15, %v364_v63  ;;  %v1694_v58 = vmax.f32 %v1643_v44, %v512_v8  ;;  %v1695_v5 = vmax.f32 %v1644_v54, %v513_v31  ;;  %v1696_v0 = vmax.f32 %v1645_v59, %v514_v2  ;;  %v6009_v44 = vld [vmem:[#allocation2_spill] sm:$0xff] }
  0x78   : > { %v411_v52 = vmax.f32 %v6008_v36, %v361_v34  ;;  %v463_v16 = vmax.f32 %v412_v1, %v3908_v14  ;;  %v515_v34 = vld [vmem:[%s2796_s19 + $0x15b] sm:$0xff]  ;;  %v464_v25 = vmax.f32 %v413_v17, %v364_v63  ;;  %v561_v30 = vmax.f32 %v3922_v46, %v3953_v28  ;;  %v6010_v63 = vld [vmem:[#allocation16_spill] sm:$0xff]  ;;  %v6013_v17 = vld [vmem:[#allocation11_spill] sm:$0xff] }
  0x79   : > { %v465_v27 = vmax.f32 %v414_v39, %v3912_v61  ;;  %v1337_v18 = vmax.f32 %v1286_v12, %v515_v34  ;;  %v1769_v15 = vmax.f32 %v1694_v58, %v3953_v28  ;;  %v3960_v62 = vmax.f32 %v1582_v6, %v3953_v28  ;;  %v6012_v12 = vld [vmem:[#allocation5_spill] sm:$0xff] }
  0x7a   : > { %v462_v19 = vmax.f32 %v411_v52, %v3926_v35  ;;  %v563_v22 = vmax.f32 %v463_v16, %v513_v31  ;;  %v6011_v11 = vmax.f32 %v6009_v44, %v6010_v63  ;;  %v564_v54 = vmax.f32 %v464_v25, %v514_v2  ;;  %v3982_v31 = vld [vmem:[%s2796_s19 + $0x164] sm:$0xff]  ;;  %v764_v25 = vld [vmem:[%s2796_s19 + $0x155] sm:$0xff]  ;;  %v3998_v44 = vld [vmem:[%s2796_s19 + $0x14d] sm:$0xff] }
  0x7b   : > { %v565_v59 = vmax.f32 %v465_v27, %v515_v34  ;;  %v1770_v9 = vmax.f32 %v1695_v5, %v3963_v47  ;;  %v3975_v6 = vmax.f32 %v651_v51, %v3953_v28  ;;  %v1833_v36 = vmax.f32 %v1769_v15, %v3963_v47  ;;  %v765_v27 = vld [vmem:[%s2796_s19 + $0x15d] sm:$0xff]  ;;  %v766_v63 = vld [vmem:[%s2796_s19 + $0x165] sm:$0xff] }
  0x7c   : > { %v562_v40 = vmax.f32 %v462_v19, %v512_v8  ;;  %v3970_v23 = vmax.f32 %v6011_v11, %v3912_v61  ;;  %v1771_v52 = vmax.f32 %v1696_v0, %v614_v53  ;;  %v1402_v1 = vmax.f32 %v1337_v18, %v615_v13  ;;  %v3988_v0 = vld [vmem:[%s2796_s19 + $0x19c] sm:$0xff]  ;;  %v4043_v35 = vld [vmem:[%s2796_s19 + $0x166] sm:$0xff] }
  0x7d   : > { %v1834_v8 = vmax.f32 %v1770_v9, %v614_v53  ;;  %v6014_v39 = vmax.f32 %v6012_v12, %v6013_v17  ;;  %v663_v19 = vmax.f32 %v563_v22, %v3963_v47  ;;  %v664_v5 = vmax.f32 %v564_v54, %v614_v53  ;;  %v773_v17 = vld [vmem:[%s2796_s19 + $0x19d] sm:$0xff] }
  0x7e   : > { %v662_v2 = vmax.f32 %v562_v40, %v3953_v28  ;;  %v1835_v16 = vmax.f32 %v1771_v52, %v615_v13  ;;  %v1466_v51 = vmax.f32 %v1402_v1, %v3982_v31  ;;  %v665_v34 = vmax.f32 %v565_v59, %v615_v13  ;;  %v1256_v14 = vld [vmem:[%s2796_s19 + $0x198] sm:$0xff]  ;;  %v4106_v18 = vld [vmem:[%s2796_s19 + $0x1c0] sm:$0xff] }
  0x7f   : > { %v403_v58 = vmax.f32 %v6014_v39, %v615_v13  ;;  %v1129_v15 = vmax.f32 %v3917_v60, %v3988_v0  ;;  %v714_v22 = vmax.f32 %v663_v19, %v614_v53  ;;  %v715_v11 = vmax.f32 %v664_v5, %v615_v13  ;;  %v4011_v39 = vld [vmem:[%s2796_s19 + $0x156] sm:$0xff] }
  0x80   : > { %v713_v40 = vmax.f32 %v662_v2, %v3963_v47  ;;  %v716_v54 = vmax.f32 %v665_v34, %v3982_v31  ;;  %v4003_v59 = vmax.f32 %v1833_v36, %v3998_v44  ;;  %v4005_v9 = vmax.f32 %v1834_v8, %v764_v25  ;;  %v4014_v2 = vld [vmem:[%s2796_s19 + $0x15e] sm:$0xff] }
  0x81   : > { %v402_v52 = vmax.f32 %v764_v25, %v614_v53  ;;  %v4007_v1 = vmax.f32 %v1835_v16, %v765_v27  ;;  %v454_v60 = vmax.f32 %v403_v58, %v765_v27  ;;  %v1526_v12 = vmax.f32 %v1466_v51, %v766_v63  ;;  %v4021_v53 = vld [vmem:[%s2796_s19 + $0x14e] sm:$0xff]  ;;  %v4030_v34 = vld [vmem:[%s2796_s19 + $0x19e] sm:$0xff] }
  0x82   : > { %v404_v13 = vmax.f32 %v766_v63, %v3982_v31  ;;  %v4017_v19 = vmax.f32 %v1129_v15, %v773_v17  ;;  %v813_v36 = vmax.f32 %v713_v40, %v3998_v44  ;;  %v814_v8 = vmax.f32 %v714_v22, %v764_v25  ;;  %6016 = vst [vmem:[#allocation12_spill] sm:$0xff] %v4030_v34  ;;  %v984_v15 = vld [vmem:[%s2796_s19 + $0x1a5] sm:$0xff] }
  0x83   : > { %v1534_v58 = vmax.f32 %v1474_v4, %v3988_v0  ;;  %v815_v16 = vmax.f32 %v715_v11, %v765_v27  ;;  %v816_v51 = vmax.f32 %v716_v54, %v766_v63  ;;  %v4035_v25 = vmax.f32 %v402_v52, %v4011_v39  ;;  %v924_v4 = vld [vmem:[%s2796_s19 + $0x1a4] sm:$0xff]  ;;  %v925_v54 = vld [vmem:[%s2796_s19 + $0x1ac] sm:$0xff] }
  0x84   : > { %6015 = vst [vmem:[#allocation9_spill] sm:$0xff] %v4017_v19  ;;  %v4040_v43 = vmax.f32 %v454_v60, %v4014_v2  ;;  %v802_v27 = vmax.f32 %v3975_v6, %v4021_v53  ;;  %v4049_v22 = vmax.f32 %v1526_v12, %v4043_v35  ;;  %v4052_v63 = vmax.f32 %v404_v13, %v4043_v35  ;;  %v926_v13 = vld [vmem:[%s2796_s19 + $0x1b4] sm:$0xff] }
  0x85   : > { %v553_v52 = vmax.f32 %v4035_v25, %v4014_v2  ;;  %v661_v60 = vmax.f32 %v561_v30, %v4030_v34  ;;  %v913_v6 = vmax.f32 %v813_v36, %v4021_v53  ;;  %v914_v12 = vmax.f32 %v814_v8, %v4011_v39  ;;  %v985_v8 = vld [vmem:[%s2796_s19 + $0x1ad] sm:$0xff] }
  0x86   : > { %v915_v40 = vmax.f32 %v815_v16, %v4014_v2  ;;  %v916_v11 = vmax.f32 %v816_v51, %v4043_v35  ;;  %v1594_v33 = vmax.f32 %v1534_v58, %v924_v4  ;;  %v1535_v25 = vmax.f32 %v1475_v49, %v924_v4 }
  0x87   : > { %v654_v46 = vmax.f32 %v4040_v43, %v4043_v35  ;;  %v1476_v28 = vmax.f32 %v3935_v42, %v925_v54  ;;  %v973_v30 = vmax.f32 %v913_v6, %v3988_v0  ;;  %v974_v36 = vmax.f32 %v914_v12, %v924_v4  ;;  %v1045_v42 = vld [vmem:[%s2796_s19 + $0x1ae] sm:$0xff] }
  0x88   : > { %v1595_v16 = vmax.f32 %v1535_v25, %v925_v54  ;;  %v4077_v51 = vmax.f32 %v802_v27, %v926_v13  ;;  %v975_v58 = vmax.f32 %v915_v40, %v925_v54  ;;  %v976_v29 = vmax.f32 %v916_v11, %v926_v13  ;;  %v1044_v11 = vld [vmem:[%s2796_s19 + $0x1a6] sm:$0xff]  ;;  %v4089_v54 = vld [vmem:[%s2796_s19 + $0x1b6] sm:$0xff] }
  0x89   : > { %v1536_v49 = vmax.f32 %v1476_v28, %v926_v13  ;;  %v1033_v5 = vmax.f32 %v973_v30, %v773_v17  ;;  %v1034_v43 = vmax.f32 %v974_v36, %v984_v15  ;;  %v6017_v0 = vmax.f32 %v3604_v57, %v3746_v20  ;;  %v1182_v25 = vld [vmem:[%s2796_s19 + $0x147] sm:$0xff]  ;;  %v6018_v28 = vld [vmem:[#allocation24_spill] sm:$0xff] }
  0x8a   : > { %v1654_v4 = vmax.f32 %v1594_v33, %v984_v15  ;;  %v1655_v6 = vmax.f32 %v1595_v16, %v985_v8  ;;  %v1035_v27 = vmax.f32 %v975_v58, %v985_v8  ;;  %v4085_v40 = vmax.f32 %v976_v29, %v986_v38  ;;  %v1194_v57 = vld [vmem:[%s2796_s19 + $0x1a7] sm:$0xff]  ;;  %v6019_v33 = vld [vmem:[#allocation32_spill] sm:$0xff] }
  0x8b   : > { %v660_v35 = vmax.f32 %v6017_v0, %v1256_v14  ;;  %v1596_v12 = vmax.f32 %v1536_v49, %v986_v38  ;;  %v1093_v17 = vmax.f32 %v1033_v5, %v4030_v34  ;;  %v1094_v13 = vmax.f32 %v1034_v43, %v1044_v11  ;;  %v1257_v36 = vld [vmem:[%s2796_s19 + $0x1a0] sm:$0xff]  ;;  %v1195_v58 = vld [vmem:[%s2796_s19 + $0x1af] sm:$0xff]  ;;  %v1196_v38 = vld [vmem:[%s2796_s19 + $0x1b7] sm:$0xff] }
  0x8c   : > { %v6020_v15 = vmax.f32 %v6018_v28, %v6019_v33  ;;  %v1706_v29 = vmax.f32 %v1655_v6, %v1045_v42  ;;  %v1095_v8 = vmax.f32 %v1035_v27, %v1045_v42  ;;  %v712_v49 = vmax.f32 %v661_v60, %v1257_v36  ;;  %v1260_v5 = vld [vmem:[%s2796_s19 + $0x1b8] sm:$0xff]  ;;  %v1258_v28 = vld [vmem:[%s2796_s19 + $0x1a8] sm:$0xff] }
  0x8d   : > { %v1656_v43 = vmax.f32 %v1596_v12, %v4089_v54  ;;  %v1144_v0 = vmax.f32 %v1093_v17, %v1044_v11  ;;  %v1145_v48 = vmax.f32 %v1094_v13, %v1045_v42  ;;  %v711_v10 = vmax.f32 %v660_v35, %v1257_v36  ;;  %v1371_v6 = vld [vmem:[%s2796_s19 + $0x199] sm:$0xff]  ;;  %v4118_v17 = vld [vmem:[%s2796_s19 + $0x1b0] sm:$0xff]  ;;  %v1372_v13 = vld [vmem:[%s2796_s19 + $0x1a1] sm:$0xff] }
  0x8e   : > { %v659_v30 = vmax.f32 %v6020_v15, %v1256_v14  ;;  %v1705_v27 = vmax.f32 %v1654_v4, %v1044_v11  ;;  %v1146_v15 = vmax.f32 %v1095_v8, %v4089_v54  ;;  %v1781_v16 = vmax.f32 %v1706_v29, %v1256_v14  ;;  %v4115_v42 = vld [vmem:[%s2796_s19 + $0x1b9] sm:$0xff]  ;;  %6021 = vst [vmem:[#allocation15_spill] sm:$0xff] %v4118_v17  ;;  %v231_v33 = vld [vmem:[%s2796_s19 + $0x49] sm:$0xff] }
  0x8f   : > { %v4110_v34 = vmax.f32 %v712_v49, %v1258_v28  ;;  %v1707_v60 = vmax.f32 %v1656_v43, %v1182_v25  ;;  %v1244_v19 = vmax.f32 %v1144_v0, %v1194_v57  ;;  %v1245_v20 = vmax.f32 %v1145_v48, %v1195_v58  ;;  %v1435_v57 = vld [vmem:[%s2796_s19 + $0x19a] sm:$0xff]  ;;  %v4149_v49 = vld [vmem:[%s2796_s19 + $0x1aa] sm:$0xff] }
  0x90   : > { %v4112_v12 = vmax.f32 %v553_v52, %v1260_v5  ;;  %v1246_v35 = vmax.f32 %v1146_v15, %v1196_v38  ;;  %v4121_v4 = vmax.f32 %v654_v46, %v4106_v18  ;;  %v710_v14 = vmax.f32 %v659_v30, %v1371_v6  ;;  %v4134_v38 = vld [vmem:[%s2796_s19 + $0x1c1] sm:$0xff]  ;;  %v4152_v43 = vld [vmem:[%s2796_s19 + $0xb0] sm:$0xff] }
  0x91   : > { %v1845_v11 = vmax.f32 %v1781_v16, %v1371_v6  ;;  %v1782_v29 = vmax.f32 %v1707_v60, %v1257_v36  ;;  %v4124_v25 = vmax.f32 %v1244_v19, %v1258_v28  ;;  %v1309_v48 = vmax.f32 %v1245_v20, %v4118_v17  ;;  %6025 = vst [vmem:[#allocation21_spill] sm:$0xff] %v4134_v38  ;;  %v4139_v36 = vld [vmem:[%s2796_s19 + $0x1a2] sm:$0xff]  ;;  %v241_v6 = vld [vmem:[%s2796_s19 + $0x99] sm:$0xff] }
  0x92   : > { %6022 = vst [vmem:[#allocation3_spill] sm:$0xff] %v4121_v4  ;;  %v4127_v52 = vmax.f32 %v711_v10, %v1372_v13  ;;  %v962_v8 = vmax.f32 %v4077_v51, %v1258_v28  ;;  %v1310_v58 = vmax.f32 %v1246_v35, %v1260_v5  ;;  %v4136_v30 = vmax.f32 %v1705_v27, %v1435_v57  ;;  %v4142_v19 = vld [vmem:[%s2796_s19 + $0xa8] sm:$0xff]  ;;  %v204_v20 = vld [vmem:[%s2796_s19 + $0x100] sm:$0xff] }
  0x93   : > { %6023 = vst [vmem:[#allocation18_spill] sm:$0xff] %v4124_v25  ;;  %6027 = vst [vmem:[#allocation22_spill] sm:$0xff] %v4139_v36  ;;  %v1360_v10 = vmax.f32 %v1309_v48, %v1260_v5  ;;  %v1846_v16 = vmax.f32 %v1782_v29, %v1372_v13  ;;  %v4146_v51 = vmax.f32 %v710_v14, %v1435_v57  ;;  %v1731_v35 = vld [vmem:[%s2796_s19 + $0x1a3] sm:$0xff]  ;;  %v6031_v14 = vld [vmem:[#allocation29_spill] sm:$0xff] }
  0x94   : > { %6024 = vst [vmem:[#allocation19_spill] sm:$0xff] %v4127_v52  ;;  %6026 = vst [vmem:[#allocation23_spill] sm:$0xff] %v4136_v30  ;;  %v1361_v0 = vmax.f32 %v1310_v58, %v4106_v18  ;;  %v1896_v28 = vmax.f32 %v1845_v11, %v1435_v57  ;;  %v781_v11 = vmax.f32 %v6031_v14, %v4142_v19  ;;  %v240_v13 = vld [vmem:[%s2796_s19 + $0x91] sm:$0xff]  ;;  %v4189_v46 = vld [vmem:[%s2796_s19 + $0xe1] sm:$0xff] }
  0x95   : > { %6028 = vst [vmem:[#allocation13_spill] sm:$0xff] %v4146_v51  ;;  %6029 = vst [vmem:[#allocation28_spill] sm:$0xff] %v4152_v43  ;;  %v4162_v15 = vmax.f32 %v1360_v10, %v4115_v42  ;;  %v1897_v60 = vmax.f32 %v1846_v16, %v4139_v36  ;;  %v1022_v57 = vmax.f32 %v962_v8, %v4149_v49  ;;  %v1732_v58 = vld [vmem:[%s2796_s19 + $0x1ab] sm:$0xff]  ;;  %v2728_v10 = vld [vmem:[%s2796_s19 + $0x42] sm:$0xff] }
  0x96   : > { %v4170_v29 = vmax.f32 %v1361_v0, %v4134_v38  ;;  %v1961_v48 = vmax.f32 %v1896_v28, %v4139_v36  ;;  %v380_v16 = vmax.f32 %v4152_v43, %v2728_v10  ;;  %v881_v14 = vmax.f32 %v781_v11, %v4152_v43  ;;  %v4186_v8 = vld [vmem:[%s2796_s19 + $0x108] sm:$0xff]  ;;  %v180_v25 = vld [vmem:[%s2796_s19 + $0x40] sm:$0xff] }
  0x97   : > { %6030 = vst [vmem:[#allocation7_spill] sm:$0xff] %v4162_v15  ;;  %v1962_v27 = vmax.f32 %v1897_v60, %v4149_v49  ;;  %v6033_v0 = vmax.f32 %v3970_v23, %v3982_v31  ;;  %v1646_v28 = vmax.f32 %v4049_v22, %v204_v20  ;;  %v181_v30 = vld [vmem:[%s2796_s19 + $0x48] sm:$0xff]  ;;  %v2729_v60 = vld [vmem:[%s2796_s19 + $0x98] sm:$0xff]  ;;  %v6034_v23 = vmax.f32 %v3814_v56, %v3851_v50 }
  0x98   : > { %6032 = vst [vmem:[#allocation30_spill] sm:$0xff] %v4170_v29  ;;  %v2025_v10 = vmax.f32 %v1961_v48, %v1731_v35  ;;  %v291_v11 = vmax.f32 %v2729_v60, %v4186_v8  ;;  %v431_v36 = vmax.f32 %v380_v16, %v4186_v8  ;;  %v941_v52 = vmax.f32 %v881_v14, %v204_v20  ;;  %v230_v51 = vld [vmem:[%s2796_s19 + $0x41] sm:$0xff] }
  0x99   : > { %v541_v5 = vmax.f32 %v6033_v0, %v204_v20  ;;  %v1632_v0 = vmax.f32 %v6034_v23, %v240_v13  ;;  %v2026_v22 = vmax.f32 %v1962_v27, %v1732_v58  ;;  %v6035_v35 = vmax.f32 %v3816_v45, %v3854_v21  ;;  %v254_v43 = vld [vmem:[%s2796_s19 + $0x101] sm:$0xff]  ;;  %v4212_v20 = vld [vmem:[%s2796_s19 + $0x109] sm:$0xff] }
  0x9a   : > { %v391_v38 = vmax.f32 %v291_v11, %v241_v6  ;;  %v1082_v50 = vmax.f32 %v1022_v57, %v4189_v46  ;;  %v4216_v21 = vmax.f32 %v1646_v28, %v254_v43  ;;  %v531_v16 = vmax.f32 %v431_v36, %v4212_v20  ;;  %v4225_v28 = vld [vmem:[%s2796_s19 + $0xa2] sm:$0xff]  ;;  %v331_v36 = vld [vmem:[%s2796_s19 + $0x4a] sm:$0xff] }
  0x9b   : > { %v641_v29 = vmax.f32 %v541_v5, %v4186_v8  ;;  %v1513_v48 = vmax.f32 %v6035_v35, %v241_v6  ;;  %v341_v5 = vld [vmem:[%s2796_s19 + $0x9a] sm:$0xff]  ;;  %v2062_v27 = vpack.c.bf16 %v2026_v22, %v2025_v10  ;;  %v1683_v45 = vmax.f32 %v1632_v0, %v4189_v46  ;;  %v4245_v35 = vld [vmem:[%s2796_s19 + $0xf2] sm:$0xff] }
  0x9c   : > { %v1001_v6 = vmax.f32 %v941_v52, %v254_v43  ;;  %v280_v14 = vmax.f32 %v180_v25, %v230_v51  ;;  %v281_v11 = vmax.f32 %v181_v30, %v231_v33  ;;  %v442_v10 = vmax.f32 %v391_v38, %v341_v5  ;;  %v351_v52 = vld [vmem:[%s2796_s19 + $0xea] sm:$0xff]  ;;  %v6036_v33 = vld [vmem:[#allocation25_spill] sm:$0xff]  ;;  %v4235_v43 = vld [vmem:[%s2796_s19 + $0xa0] sm:$0xff] }
  0x9d   : > { %v692_v58 = vmax.f32 %v641_v29, %v240_v13  ;;  %2667 = vmatmul.mubr.msk.bf16.vlgmr.msra.gmra.mrb[0].mxu1 %vm2082_vm2, %v2062_v27  ;;  %v332_v29 = vld [vmem:[%s2796_s19 + $0x52] sm:$0xff]  ;;  %v1573_v23 = vmax.f32 %v1513_v48, %v341_v5  ;;  %v6037_v30 = vmax.f32 %v6036_v33, %v3728_v7  ;;  %v6038_v38 = vmax.f32 %v4003_v59, %v4021_v53  ;;  %v492_v33 = vld [vmem:[%s2796_s19 + $0xa3] sm:$0xff]  ;;  %v1734_v15 = vld [vmem:[%s2796_s19 + $0x1bb] sm:$0xff] }
  0x9e   : > { %v631_v25 = vmax.f32 %v531_v16, %v280_v14  ;;  %v481_v48 = vld [vmem:[%s2796_s19 + $0x4b] sm:$0xff]  ;;  %2670 = vmatprep.mubr.msk.bf16.mxu1 %vm2752_vm1, %v6001_v41  ;;  %v542_v27 = vmax.f32 %v442_v10, %v4225_v28  ;;  %v1133_v16 = vmax.f32 %v1082_v50, %v351_v52  ;;  %v491_v14 = vld [vmem:[%s2796_s19 + $0x9b] sm:$0xff]  ;;  %v1758_v13 = vmax.f32 %v1683_v45, %v351_v52 }
  0x9f   : > { %v792_v57 = vmax.f32 %v692_v58, %v4212_v20  ;;  %v4232_v51 = vmax.f32 %v6037_v30, %v332_v29  ;;  %v4242_v22 = vmax.f32 %v6038_v38, %v351_v52  ;;  %v1633_v58 = vmax.f32 %v1573_v23, %v351_v52  ;;  %v501_v30 = vld [vmem:[%s2796_s19 + $0xeb] sm:$0xff] }
  0xa0   : > { %v682_v59 = vmax.f32 %v631_v25, %v331_v36  ;;  %v6040_v38 = vmax.f32 %v3826_v55, %v3857_v3  ;;  %v6043_v50 = vmax.f32 %v4112_v12, %v4115_v42  ;;  %v381_v25 = vmax.f32 %v281_v11, %v331_v36  ;;  %v6044_v55 = vld [vmem:[#allocation4_spill] sm:$0xff]  ;;  %v6045_v3 = vld [vmem:[#allocation10_spill] sm:$0xff] }
  0xa1   : > { %6039 = vst [vmem:[#allocation6_spill] sm:$0xff] %v4242_v22  ;;  %v892_v7 = vmax.f32 %v792_v57, %v341_v5  ;;  %v6041_v5 = vmax.f32 %v4005_v9, %v4011_v39  ;;  %v1684_v23 = vmax.f32 %v1633_v58, %v4245_v35  ;;  %v581_v0 = vld [vmem:[%s2796_s19 + $0x4c] sm:$0xff]  ;;  %v1233_v22 = vmax.f32 %v1133_v16, %v501_v30  ;;  %v591_v11 = vld [vmem:[%s2796_s19 + $0x9c] sm:$0xff] }
  0xa2   : > { %v4258_v60 = vmax.f32 %v6040_v38, %v4225_v28  ;;  %v4270_v10 = vmax.f32 %v6043_v50, %v4245_v35  ;;  %v6046_v38 = vmax.f32 %v6044_v55, %v6045_v3  ;;  %v782_v56 = vmax.f32 %v682_v59, %v481_v48  ;;  %v482_v9 = vld [vmem:[%s2796_s19 + $0x53] sm:$0xff]  ;;  %v592_v59 = vld [vmem:[%s2796_s19 + $0xa4] sm:$0xff] }
  0xa3   : > { %v4264_v57 = vmax.f32 %v6041_v5, %v4245_v35  ;;  %v952_v5 = vmax.f32 %v892_v7, %v491_v14  ;;  %v502_v12 = vld [vmem:[%s2796_s19 + $0xf3] sm:$0xff]  ;;  %v432_v42 = vmax.f32 %v381_v25, %v332_v29  ;;  %v1822_v4 = vmax.f32 %v1758_v13, %v501_v30 }
  0xa4   : > { %v401_v45 = vmax.f32 %v6046_v38, %v351_v52  ;;  %v1759_v58 = vmax.f32 %v1684_v23, %v502_v12  ;;  %v882_v36 = vmax.f32 %v782_v56, %v581_v0  ;;  %v1061_v52 = vmax.f32 %v1001_v6, %v581_v0  ;;  %v602_v7 = vld [vmem:[%s2796_s19 + $0xf4] sm:$0xff]  ;;  %v4286_v56 = vld [vmem:[%s2796_s19 + $0xfc] sm:$0xff] }
  0xa5   : > { %6042 = vst [vmem:[#allocation14_spill] sm:$0xff] %v4264_v57  ;;  %v642_v57 = vmax.f32 %v542_v27, %v492_v33  ;;  %v1012_v55 = vmax.f32 %v952_v5, %v591_v11  ;;  %v1772_v48 = vmax.f32 %v4216_v21, %v591_v11  ;;  %v532_v27 = vmax.f32 %v432_v42, %v482_v9  ;;  %v582_v14 = vld [vmem:[%s2796_s19 + $0x54] sm:$0xff]  ;;  %v741_v42 = vld [vmem:[%s2796_s19 + $0x9d] sm:$0xff] }
  0xa6   : > { %v452_v50 = vmax.f32 %v401_v45, %v4245_v35  ;;  %v1823_v33 = vmax.f32 %v1759_v58, %v602_v7  ;;  %v942_v25 = vmax.f32 %v882_v36, %v582_v14  ;;  %v1112_v13 = vmax.f32 %v1061_v52, %v591_v11  ;;  %v731_v6 = vld [vmem:[%s2796_s19 + $0x4d] sm:$0xff]  ;;  %v752_v0 = vld [vmem:[%s2796_s19 + $0xf5] sm:$0xff] }
  0xa7   : > { %v693_v29 = vmax.f32 %v642_v57, %v592_v59  ;;  %v1072_v30 = vmax.f32 %v1012_v55, %v592_v59  ;;  %v1297_v23 = vmax.f32 %v1233_v22, %v602_v7  ;;  %v1574_v21 = vmax.f32 %v4258_v60, %v4245_v35  ;;  %v732_v45 = vld [vmem:[%s2796_s19 + $0x55] sm:$0xff] }
  0xa8   : > { %v552_v16 = vmax.f32 %v452_v50, %v502_v12  ;;  %v1873_v3 = vmax.f32 %v1822_v4, %v602_v7  ;;  %v904_v57 = vmax.f32 %v4270_v10, %v4286_v56  ;;  %v1002_v9 = vmax.f32 %v942_v25, %v592_v59  ;;  %v742_v4 = vld [vmem:[%s2796_s19 + $0xa5] sm:$0xff]  ;;  %v6047_v11 = vld [vmem:[#allocation17_spill] sm:$0xff] }
  0xa9   : > { %v793_v38 = vmax.f32 %v693_v29, %v4286_v56  ;;  %v1123_v22 = vmax.f32 %v1072_v30, %v602_v7  ;;  %v1874_v5 = vmax.f32 %v1823_v33, %v4286_v56  ;;  %v632_v12 = vmax.f32 %v532_v27, %v582_v14  ;;  %v753_v29 = vld [vmem:[%s2796_s19 + $0xfd] sm:$0xff]  ;;  %v762_v33 = vld [vmem:[%s2796_s19 + $0x145] sm:$0xff]  ;;  %v831_v27 = vld [vmem:[%s2796_s19 + $0x4e] sm:$0xff] }
  0xaa   : > { %v652_v50 = vmax.f32 %v552_v16, %v602_v7  ;;  %v1212_v58 = vmax.f32 %v1112_v13, %v731_v6  ;;  %v4298_v60 = vmax.f32 %v1772_v48, %v741_v42  ;;  %v1348_v35 = vmax.f32 %v1297_v23, %v752_v0  ;;  %v832_v25 = vld [vmem:[%s2796_s19 + $0x56] sm:$0xff] }
  0xab   : > { %v4302_v36 = vmax.f32 %v6047_v11, %v632_v12  ;;  %v1062_v52 = vmax.f32 %v1002_v9, %v732_v45  ;;  %v1223_v55 = vmax.f32 %v1123_v22, %v742_v4  ;;  %v1938_v59 = vmax.f32 %v1873_v3, %v752_v0  ;;  %v842_v9 = vld [vmem:[%s2796_s19 + $0xa6] sm:$0xff]  ;;  %v4321_v22 = vld [vmem:[%s2796_s19 + $0xae] sm:$0xff] }
  0xac   : > { %v703_v7 = vmax.f32 %v652_v50, %v4286_v56  ;;  %v1276_v16 = vmax.f32 %v1212_v58, %v741_v42  ;;  %v893_v48 = vmax.f32 %v793_v38, %v753_v29  ;;  %v1939_v14 = vmax.f32 %v1874_v5, %v753_v29  ;;  %v852_v38 = vld [vmem:[%s2796_s19 + $0xf6] sm:$0xff]  ;;  %v853_v50 = vld [vmem:[%s2796_s19 + $0xfe] sm:$0xff] }
  0xad   : > { %v1113_v13 = vmax.f32 %v1062_v52, %v742_v4  ;;  %v1287_v30 = vmax.f32 %v1223_v55, %v752_v0  ;;  %v6048_v23 = vmax.f32 %v4110_v34, %v4149_v49  ;;  %v6049_v3 = vmax.f32 %v3960_v62, %v4189_v46  ;;  %v1157_v46 = vld [vmem:[%s2796_s19 + $0x7f] sm:$0xff]  ;;  %v4332_v4 = vld [vmem:[%s2796_s19 + $0xa7] sm:$0xff]  ;;  %v1183_v11 = vld [vmem:[%s2796_s19 + $0x14f] sm:$0xff] }
  0xae   : > { %v1413_v5 = vmax.f32 %v1348_v35, %v762_v33  ;;  %v803_v12 = vmax.f32 %v703_v7, %v753_v29  ;;  %v1327_v42 = vmax.f32 %v1276_v16, %v831_v27  ;;  %v953_v0 = vmax.f32 %v893_v48, %v4321_v22  ;;  %v4340_v7 = vld [vmem:[%s2796_s19 + $0x160] sm:$0xff] }
  0xaf   : > { %v4312_v6 = vmax.f32 %v6048_v23, %v762_v33  ;;  %v4317_v45 = vmax.f32 %v6049_v3, %v762_v33  ;;  %v4327_v34 = vmax.f32 %v1574_v21, %v4286_v56  ;;  %v1213_v49 = vmax.f32 %v1113_v13, %v832_v25  ;;  %v1172_v13 = vld [vmem:[%s2796_s19 + $0xf7] sm:$0xff]  ;;  %v4464_v21 = vld [vmem:[%s2796_s19 + $0x1c8] sm:$0xff] }
  0xb0   : > { %v1338_v58 = vmax.f32 %v1287_v30, %v842_v9  ;;  %v1887_v62 = vmax.f32 %v4298_v60, %v852_v38  ;;  %v4335_v35 = vmax.f32 %v1327_v42, %v842_v9  ;;  %v1477_v52 = vmax.f32 %v1413_v5, %v852_v38  ;;  %v1173_v30 = vld [vmem:[%s2796_s19 + $0xff] sm:$0xff] }
  0xb1   : > { %6050 = vst [vmem:[#allocation2_spill] sm:$0xff] %v4317_v45  ;;  %v2002_v55 = vmax.f32 %v1938_v59, %v852_v38  ;;  %v1013_v29 = vmax.f32 %v953_v0, %v853_v50  ;;  %v1277_v33 = vmax.f32 %v1213_v49, %v842_v9  ;;  %v903_v60 = vmax.f32 %v803_v12, %v853_v50  ;;  %v4359_v5 = vld [vmem:[%s2796_s19 + $0x158] sm:$0xff] }
  0xb2   : > { %v1403_v27 = vmax.f32 %v1338_v58, %v852_v38  ;;  %v4342_v16 = vmax.f32 %v1939_v14, %v853_v50  ;;  %v6051_v48 = vmax.f32 %v3751_v32, %v3796_v37  ;;  %v1537_v23 = vmax.f32 %v1477_v52, %v1183_v11  ;;  %v4356_v38 = vld [vmem:[%s2796_s19 + $0xaf] sm:$0xff]  ;;  %v265_v37 = vld [vmem:[%s2796_s19 + $0x159] sm:$0xff] }
  0xb3   : > { %v4352_v3 = vmax.f32 %v1277_v33, %v4321_v22  ;;  %v963_v14 = vmax.f32 %v903_v60, %v3963_v47  ;;  %v1073_v32 = vmax.f32 %v1013_v29, %v4340_v7  ;;  %v964_v0 = vmax.f32 %v904_v57, %v4340_v7  ;;  %v4377_v52 = vld [vmem:[%s2796_s19 + $0x16a] sm:$0xff]  ;;  %v4388_v57 = vld [vmem:[%s2796_s19 + $0x162] sm:$0xff]  ;;  %v4397_v33 = vld [vmem:[%s2796_s19 + $0x174] sm:$0xff] }
  0xb4   : > { %v2001_v25 = vmax.f32 %v6051_v48, %v1157_v46  ;;  %v1467_v9 = vmax.f32 %v1403_v27, %v853_v50  ;;  %v1597_v42 = vmax.f32 %v1537_v23, %v4359_v5  ;;  %v4369_v50 = vld [vmem:[%s2796_s19 + $0x161] sm:$0xff]  ;;  %v315_v47 = vmax.f32 %v4359_v5, %v265_v37  ;;  %v4400_v27 = vld [vmem:[%s2796_s19 + $0x175] sm:$0xff] }
  0xb5   : > { %v1023_v49 = vmax.f32 %v963_v14, %v3998_v44  ;;  %v4373_v58 = vmax.f32 %v1887_v62, %v1172_v13  ;;  %v1124_v11 = vmax.f32 %v1073_v32, %v4369_v50  ;;  %v316_v44 = vmax.f32 %v4340_v7, %v4369_v50  ;;  %v516_v23 = vld [vmem:[%s2796_s19 + $0x163] sm:$0xff] }
  0xb6   : > { %v2050_v12 = vpack.c.bf16 %v2002_v55, %v2001_v25  ;;  %v1527_v46 = vmax.f32 %v1467_v9, %v1173_v30  ;;  %v4380_v55 = vld [vmem:[%s2796_s19 + $0x16c] sm:$0xff]  ;;  %v1657_v56 = vmax.f32 %v1597_v42, %v265_v37  ;;  %v6053_v62 = vmax.f32 %v4235_v43, %v4225_v28  ;;  %v4424_v32 = vld [vmem:[%s2796_s19 + $0x1bc] sm:$0xff] }
  0xb7   : > { %6052 = vst [vmem:[#allocation16_spill] sm:$0xff] %v4373_v58  ;;  %v1083_v60 = vmax.f32 %v1023_v49, %v4021_v53  ;;  %v1224_v25 = vmax.f32 %v1124_v11, %v4388_v57  ;;  %v415_v13 = vmax.f32 %v315_v47, %v3912_v61  ;;  %v4407_v30 = vld [vmem:[%s2796_s19 + $0x16d] sm:$0xff]  ;;  %v1024_v43 = vmax.f32 %v964_v0, %v4377_v52 }
  0xb8   : > { %2619 = vmatmul.mubr.msk.bf16.gmra.mrb[4].mxu0 %vm2082_vm2, %v2050_v12  ;;  %v4394_v29 = vmax.f32 %v6053_v62, %v4377_v52  ;;  %v1587_v48 = vmax.f32 %v1527_v46, %v4359_v5  ;;  %v4410_v28 = vld [vmem:[%s2796_s19 + $0x16e] sm:$0xff]  ;;  %v416_v53 = vmax.f32 %v316_v44, %v4388_v57  ;;  %v6054_v9 = vmax.f32 %v4186_v8, %v4212_v20  ;;  %v4432_v46 = vld [vmem:[%s2796_s19 + $0x1c4] sm:$0xff]  ;;  %v4440_v44 = vld [vmem:[%s2796_s19 + $0x176] sm:$0xff] }
  0xb9   : > { %2622 = vmatprep.mubr.msk.bf16.mxu0 %vm2752_vm1, %v6001_v41  ;;  %v1288_v42 = vmax.f32 %v1224_v25, %v4377_v52  ;;  %v466_v0 = vmax.f32 %v415_v13, %v4388_v57  ;;  %v517_v47 = vld [vmem:[%s2796_s19 + $0x16b] sm:$0xff]  ;;  %v406_v49 = vmax.f32 %v4400_v27, %v4397_v33  ;;  %v1134_v8 = vmax.f32 %v1083_v60, %v4011_v39  ;;  %v4443_v62 = vld [vmem:[%s2796_s19 + $0x1bd] sm:$0xff] }
  0xba   : > { %v405_v14 = vmax.f32 %v6054_v9, %v4380_v55  ;;  %v1647_v12 = vmax.f32 %v1587_v48, %v265_v37  ;;  %v467_v20 = vmax.f32 %v416_v53, %v4377_v52  ;;  %v555_v37 = vmax.f32 %v4052_v63, %v4410_v28  ;;  %v4448_v39 = vld [vmem:[%s2796_s19 + $0x1be] sm:$0xff] }
  0xbb   : > { %v1339_v25 = vmax.f32 %v1288_v42, %v517_v47  ;;  %v566_v13 = vmax.f32 %v466_v0, %v516_v23  ;;  %v1708_v9 = vmax.f32 %v1657_v56, %v4424_v32  ;;  %v1184_v60 = vld [vmem:[%s2796_s19 + $0x157] sm:$0xff]  ;;  %v1197_v53 = vld [vmem:[%s2796_s19 + $0x1bf] sm:$0xff]  ;;  %v4454_v63 = vmax.f32 %v1024_v43, %v4432_v46 }
  0xbc   : > { %v456_v11 = vmax.f32 %v405_v14, %v4407_v30  ;;  %v1698_v48 = vmax.f32 %v1647_v12, %v4388_v57  ;;  %v567_v14 = vmax.f32 %v467_v20, %v517_v47  ;;  %v6055_v10 = vmax.f32 %v4085_v40, %v4089_v54  ;;  %v4467_v47 = vld [vmem:[%s2796_s19 + $0x1d0] sm:$0xff] }
  0xbd   : > { %v1404_v0 = vmax.f32 %v1339_v25, %v4380_v55  ;;  %v666_v56 = vmax.f32 %v566_v13, %v3982_v31  ;;  %v1783_v61 = vmax.f32 %v1708_v9, %v4443_v62  ;;  %v4480_v13 = vmax.f32 %v555_v37, %v4464_v21 }
  0xbe   : > { %v556_v59 = vmax.f32 %v456_v11, %v4410_v28  ;;  %v1147_v12 = vmax.f32 %v6055_v10, %v4448_v39  ;;  %v1773_v42 = vmax.f32 %v1698_v48, %v516_v23  ;;  %v667_v43 = vmax.f32 %v567_v14, %v4380_v55  ;;  %v4476_v48 = vld [vmem:[%s2796_s19 + $0x1a9] sm:$0xff] }
  0xbf   : > { %v1234_v11 = vmax.f32 %v1134_v8, %v1184_v60  ;;  %v1468_v10 = vmax.f32 %v1404_v0, %v4397_v33  ;;  %v717_v23 = vmax.f32 %v666_v56, %v4380_v55  ;;  %v1847_v31 = vmax.f32 %v1783_v61, %v4448_v39 }
  0xc0   : > { %v656_v20 = vmax.f32 %v556_v59, %v4440_v44  ;;  %v1247_v40 = vmax.f32 %v1147_v12, %v1197_v53  ;;  %v1837_v54 = vmax.f32 %v1773_v42, %v4380_v55  ;;  %v718_v25 = vmax.f32 %v667_v43, %v4397_v33  ;;  %v4493_v53 = vld [vmem:[%s2796_s19 + $0x1c9] sm:$0xff]  ;;  %v4501_v42 = vld [vmem:[%s2796_s19 + $0x1d1] sm:$0xff] }
  0xc1   : > { %v1298_v8 = vmax.f32 %v1234_v11, %v4359_v5  ;;  %v1528_v55 = vmax.f32 %v1468_v10, %v4400_v27  ;;  %v817_v61 = vmax.f32 %v717_v23, %v4407_v30  ;;  %v1898_v12 = vmax.f32 %v1847_v31, %v4476_v48  ;;  %v195_v10 = vld [vmem:[%s2796_s19 + $0xb8] sm:$0xff] }
  0xc2   : > { %v4483_v59 = vmax.f32 %v656_v20, %v4467_v47  ;;  %v4487_v9 = vmax.f32 %v1837_v54, %v4407_v30  ;;  %v1311_v60 = vmax.f32 %v1247_v40, %v4106_v18  ;;  %v818_v37 = vmax.f32 %v718_v25, %v4400_v27  ;;  %v4509_v27 = vld [vmem:[%s2796_s19 + $0x1ba] sm:$0xff]  ;;  %v1438_v40 = vld [vmem:[%s2796_s19 + $0x1b2] sm:$0xff] }
  0xc3   : > { %v1349_v14 = vmax.f32 %v1298_v8, %v4340_v7  ;;  %v1588_v18 = vmax.f32 %v1528_v55, %v4440_v44  ;;  %v917_v0 = vmax.f32 %v817_v61, %v4410_v28  ;;  %6056 = vst [vmem:[#allocation5_spill] sm:$0xff] %v4509_v27  ;;  %v4512_v7 = vmax.f32 %v406_v49, %v4440_v44  ;;  %v1733_v54 = vld [vmem:[%s2796_s19 + $0x1b3] sm:$0xff] }
  0xc4   : > { %v1362_v56 = vmax.f32 %v1311_v60, %v4464_v21  ;;  %v918_v43 = vmax.f32 %v818_v37, %v4440_v44  ;;  %v1963_v25 = vmax.f32 %v1898_v12, %v1438_v40  ;;  %v1135_v8 = vmax.f32 %v4454_v63, %v4509_v27  ;;  %v206_v61 = vld [vmem:[%s2796_s19 + $0x110] sm:$0xff]  ;;  %v4535_v60 = vld [vmem:[%s2796_s19 + $0x1c5] sm:$0xff] }
  0xc5   : > { %v1414_v11 = vmax.f32 %v1349_v14, %v4369_v50  ;;  %v977_v23 = vmax.f32 %v917_v0, %v4424_v32  ;;  %v1374_v14 = vld [vmem:[%s2796_s19 + $0x1b1] sm:$0xff]  ;;  %v6063_v31 = vmax.f32 %v4352_v3, %v4356_v38  ;;  %v6064_v3 = vmax.f32 %v3886_v24, %v4142_v19 }
  0xc6   : > { %v4525_v49 = vmax.f32 %v1362_v56, %v4493_v53  ;;  %v978_v44 = vmax.f32 %v918_v43, %v4432_v46  ;;  %v4539_v12 = vmax.f32 %v1963_v25, %v1733_v54  ;;  %v6058_v0 = vld [vmem:[#allocation20_spill] sm:$0xff]  ;;  %v6059_v56 = vld [vmem:[#allocation27_spill] sm:$0xff]  ;;  %v207_v25 = vld [vmem:[%s2796_s19 + $0x118] sm:$0xff] }
  0xc7   : > { %v1478_v50 = vmax.f32 %v1414_v11, %v4388_v57  ;;  %v1037_v37 = vmax.f32 %v977_v23, %v4443_v62  ;;  %v6060_v43 = vmax.f32 %v6058_v0, %v6059_v56  ;;  %v6061_v57 = vmax.f32 %v4302_v36, %v4321_v22  ;;  %v4560_v0 = vld [vmem:[%s2796_s19 + $0xa1] sm:$0xff]  ;;  %v243_v56 = vld [vmem:[%s2796_s19 + $0xa9] sm:$0xff] }
  0xc8   : > { %6057 = vst [vmem:[#allocation11_spill] sm:$0xff] %v4525_v49  ;;  %v4550_v55 = vmax.f32 %v978_v44, %v4535_v60  ;;  %v6062_v62 = vmax.f32 %v4394_v29, %v4397_v33  ;;  %v4556_v23 = vmax.f32 %v1588_v18, %v206_v61  ;;  %v4564_v36 = vld [vmem:[%s2796_s19 + $0x1c6] sm:$0xff]  ;;  %v1115_v29 = vmax.f32 %v4232_v51, %v207_v25 }
  0xc9   : > { %v4544_v63 = vmax.f32 %v6060_v43, %v195_v10  ;;  %v1003_v11 = vmax.f32 %v6061_v57, %v195_v10  ;;  %v1538_v5 = vmax.f32 %v1478_v50, %v4118_v17  ;;  %v1097_v22 = vmax.f32 %v1037_v37, %v4448_v39  ;;  %v1198_v44 = vld [vmem:[%s2796_s19 + $0x1c7] sm:$0xff]  ;;  %v4580_v37 = vld [vmem:[%s2796_s19 + $0x111] sm:$0xff] }
  0xca   : > { %v543_v54 = vmax.f32 %v6062_v62, %v206_v61  ;;  %v293_v50 = vmax.f32 %v4142_v19, %v207_v25  ;;  %v182_v62 = vld [vmem:[%s2796_s19 + $0x50] sm:$0xff]  ;;  %v4576_v30 = vmax.f32 %v6063_v31, %v195_v10  ;;  %v1515_v38 = vmax.f32 %v6064_v3, %v243_v56  ;;  %v257_v10 = vld [vmem:[%s2796_s19 + $0x119] sm:$0xff]  ;;  %v334_v49 = vld [vmem:[%s2796_s19 + $0x62] sm:$0xff] }
  0xcb   : > { %v1063_v43 = vmax.f32 %v1003_v11, %v206_v61  ;;  %v1598_v57 = vmax.f32 %v1538_v5, %v1374_v14  ;;  %v232_v61 = vld [vmem:[%s2796_s19 + $0x51] sm:$0xff]  ;;  %v1148_v51 = vmax.f32 %v1097_v22, %v4564_v36  ;;  %v1685_v11 = vmax.f32 %v4327_v34, %v4560_v0  ;;  %v233_v34 = vld [vmem:[%s2796_s19 + $0x59] sm:$0xff] }
  0xcc   : > { %v643_v39 = vmax.f32 %v543_v54, %v207_v25  ;;  %v393_v5 = vmax.f32 %v293_v50, %v243_v56  ;;  %v1215_v18 = vmax.f32 %v1115_v29, %v257_v10  ;;  %v343_v22 = vld [vmem:[%s2796_s19 + $0xaa] sm:$0xff]  ;;  %v183_v17 = vld [vmem:[%s2796_s19 + $0x58] sm:$0xff]  ;;  %v282_v24 = vmax.f32 %v182_v62, %v232_v61 }
  0xcd   : > { %v1658_v31 = vmax.f32 %v1598_v57, %v1438_v40  ;;  %v1248_v20 = vmax.f32 %v1148_v51, %v1198_v44  ;;  %v4597_v50 = vmax.f32 %v1063_v43, %v4580_v37  ;;  %v2731_v19 = vld [vmem:[%s2796_s19 + $0xf0] sm:$0xff]  ;;  %v1575_v45 = vmax.f32 %v1515_v38, %v343_v22  ;;  %v353_v43 = vld [vmem:[%s2796_s19 + $0xfa] sm:$0xff]  ;;  %v6068_v38 = vld [vmem:[#allocation3_spill] sm:$0xff] }
  0xce   : > { %v694_v14 = vmax.f32 %v643_v39, %v4560_v0  ;;  %v2732_v40 = vld [vmem:[%s2796_s19 + $0xf1] sm:$0xff]  ;;  %v307_v39 = vmax.f32 %v207_v25, %v257_v10  ;;  %v444_v3 = vmax.f32 %v393_v5, %v343_v22  ;;  %v1279_v51 = vmax.f32 %v1215_v18, %v282_v24  ;;  %v4629_v24 = vld [vmem:[%s2796_s19 + $0x102] sm:$0xff] }
  0xcf   : > { %v302_v56 = vmax.f32 %v2731_v19, %v2732_v40  ;;  %v1709_v0 = vmax.f32 %v1658_v31, %v4509_v27  ;;  %v4603_v29 = vld [vmem:[%s2796_s19 + $0xb2] sm:$0xff]  ;;  %v1312_v44 = vmax.f32 %v1248_v20, %v4464_v21  ;;  %v283_v61 = vmax.f32 %v183_v17, %v233_v34  ;;  %v333_v31 = vld [vmem:[%s2796_s19 + $0x5a] sm:$0xff]  ;;  %6071 = vst [vmem:[#allocation29_spill] sm:$0xff] %v4629_v24 }
  0xd0   : > { %v794_v57 = vmax.f32 %v694_v14, %v257_v10  ;;  %v4608_v19 = vmax.f32 %v3875_v26, %v307_v39  ;;  %v1330_v5 = vmax.f32 %v1279_v51, %v333_v31  ;;  %v544_v21 = vmax.f32 %v444_v3, %v4603_v29  ;;  %v6069_v10 = vld [vmem:[#allocation21_spill] sm:$0xff] }
  0xd1   : > { %v1235_v54 = vmax.f32 %v1135_v8, %v302_v56  ;;  %v1784_v62 = vmax.f32 %v1709_v0, %v1734_v15  ;;  %v1363_v25 = vmax.f32 %v1312_v44, %v4467_v47  ;;  %v6065_v20 = vmax.f32 %v4335_v35, %v4332_v4  ;;  %v483_v40 = vld [vmem:[%s2796_s19 + $0x5b] sm:$0xff]  ;;  %v493_v56 = vld [vmem:[%s2796_s19 + $0xab] sm:$0xff] }
  0xd2   : > { %v894_v14 = vmax.f32 %v794_v57, %v343_v22  ;;  %v6066_v26 = vmax.f32 %v4007_v1, %v4014_v2  ;;  %v1635_v18 = vmax.f32 %v1575_v45, %v353_v43  ;;  %v6070_v22 = vmax.f32 %v6068_v38, %v6069_v10  ;;  %v494_v2 = vld [vmem:[%s2796_s19 + $0xb3] sm:$0xff]  ;;  %v503_v45 = vld [vmem:[%s2796_s19 + $0xfb] sm:$0xff]  ;;  %v604_v38 = vld [vmem:[%s2796_s19 + $0x104] sm:$0xff] }
  0xd3   : > { %v4617_v8 = vmax.f32 %v6065_v20, %v4603_v29  ;;  %v1848_v17 = vmax.f32 %v1784_v62, %v4424_v32  ;;  %v4634_v4 = vmax.f32 %v1363_v25, %v4501_v42  ;;  %v1299_v35 = vmax.f32 %v1235_v54, %v353_v43  ;;  %v6072_v57 = vld [vmem:[#allocation28_spill] sm:$0xff]  ;;  %v504_v54 = vld [vmem:[%s2796_s19 + $0x103] sm:$0xff] }
  0xd4   : > { %v4623_v15 = vmax.f32 %v6066_v26, %v353_v43  ;;  %v905_v34 = vmax.f32 %v6070_v22, %v353_v43  ;;  %v1760_v32 = vmax.f32 %v1685_v11, %v353_v43  ;;  %v294_v39 = vmax.f32 %v6072_v57, %v4603_v29  ;;  %v583_v25 = vld [vmem:[%s2796_s19 + $0x5c] sm:$0xff] }
  0xd5   : > { %v1899_v0 = vmax.f32 %v1848_v17, %v4432_v46  ;;  %v6073_v3 = vmax.f32 %v4480_v13, %v4493_v53  ;;  %v1686_v11 = vmax.f32 %v1635_v18, %v4629_v24  ;;  %v1576_v51 = vmax.f32 %v4617_v8, %v4629_v24  ;;  %v594_v53 = vld [vmem:[%s2796_s19 + $0xb4] sm:$0xff]  ;;  %v593_v8 = vld [vmem:[%s2796_s19 + $0xac] sm:$0xff]  ;;  %v4760_v29 = vld [vmem:[%s2796_s19 + $0x17e] sm:$0xff] }
  0xd6   : > { %6067 = vst [vmem:[#allocation24_spill] sm:$0xff] %v4623_v15  ;;  %v965_v43 = vmax.f32 %v905_v34, %v4629_v24  ;;  %v1395_v62 = vmax.f32 %v1330_v5, %v483_v40  ;;  %v954_v46 = vmax.f32 %v894_v14, %v493_v56  ;;  %v383_v17 = vmax.f32 %v283_v61, %v333_v31  ;;  %v4665_v31 = vld [vmem:[%s2796_s19 + $0x10c] sm:$0xff] }
  0xd7   : > { %v4647_v44 = vmax.f32 %v6073_v3, %v4629_v24  ;;  %v1964_v20 = vmax.f32 %v1899_v0, %v4535_v60  ;;  %v644_v26 = vmax.f32 %v544_v21, %v494_v2  ;;  %v1350_v13 = vmax.f32 %v1299_v35, %v503_v45  ;;  %v1186_v24 = vld [vmem:[%s2796_s19 + $0x167] sm:$0xff] }
  0xd8   : > { %v1824_v18 = vmax.f32 %v1760_v32, %v503_v45  ;;  %v1761_v10 = vmax.f32 %v1686_v11, %v504_v54  ;;  %v1025_v22 = vmax.f32 %v965_v43, %v504_v54  ;;  %v1459_v3 = vmax.f32 %v1395_v62, %v583_v25  ;;  %v733_v32 = vld [vmem:[%s2796_s19 + $0x5d] sm:$0xff]  ;;  %v754_v54 = vld [vmem:[%s2796_s19 + $0x105] sm:$0xff]  ;;  %v6076_v62 = vld [vmem:[#allocation32_spill] sm:$0xff] }
  0xd9   : > { %v2028_v5 = vmax.f32 %v1964_v20, %v4564_v36  ;;  %v1214_v14 = vmax.f32 %v4597_v50, %v583_v25  ;;  %v1014_v34 = vmax.f32 %v954_v46, %v593_v8  ;;  %v6074_v60 = vmax.f32 %v4556_v23, %v4580_v37  ;;  %v744_v50 = vld [vmem:[%s2796_s19 + $0xb5] sm:$0xff]  ;;  %v6075_v43 = vld [vmem:[#allocation26_spill] sm:$0xff] }
  0xda   : > { %v695_v21 = vmax.f32 %v644_v26, %v594_v53  ;;  %v1519_v40 = vmax.f32 %v1459_v3, %v594_v53  ;;  %v1825_v56 = vmax.f32 %v1761_v10, %v604_v38  ;;  %v1085_v35 = vmax.f32 %v1025_v22, %v604_v38  ;;  %v755_v10 = vld [vmem:[%s2796_s19 + $0x10d] sm:$0xff] }
  0xdb   : > { %v1774_v61 = vmax.f32 %v6074_v60, %v593_v8  ;;  %v2063_v2 = vpack.c.bf16 %v2028_v5, %v4539_v12  ;;  %v1278_v45 = vmax.f32 %v1214_v14, %v593_v8  ;;  %v1074_v0 = vmax.f32 %v1014_v34, %v594_v53  ;;  %v743_v12 = vld [vmem:[%s2796_s19 + $0xad] sm:$0xff]  ;;  %v833_v5 = vld [vmem:[%s2796_s19 + $0x5e] sm:$0xff] }
  0xdc   : > { %v1415_v11 = vmax.f32 %v1350_v13, %v604_v38  ;;  %v6077_v23 = vmax.f32 %v6075_v43, %v6076_v62  ;;  %v1875_v46 = vmax.f32 %v1824_v18, %v604_v38  ;;  %v795_v25 = vmax.f32 %v695_v21, %v4665_v31  ;;  %v854_v14 = vld [vmem:[%s2796_s19 + $0x106] sm:$0xff]  ;;  %v844_v21 = vld [vmem:[%s2796_s19 + $0xb6] sm:$0xff] }
  0xdd   : > { %v906_v20 = vmax.f32 %v4647_v44, %v4665_v31  ;;  %2671 = vmatmul.mubr.msk.bf16.gmra.mrb[4].mxu1 %vm2082_vm2, %v2063_v2  ;;  %v1125_v26 = vmax.f32 %v1074_v0, %v604_v38  ;;  %v1876_v13 = vmax.f32 %v1825_v56, %v4665_v31  ;;  %v1136_v53 = vmax.f32 %v1085_v35, %v4665_v31  ;;  %v4690_v56 = vld [vmem:[%s2796_s19 + $0xbe] sm:$0xff]  ;;  %v855_v35 = vld [vmem:[%s2796_s19 + $0x10e] sm:$0xff] }
  0xde   : > { %v4674_v37 = vmax.f32 %v6077_v23, %v383_v17  ;;  %v1329_v17 = vmax.f32 %v1278_v45, %v733_v32  ;;  %v1838_v22 = vmax.f32 %v1774_v61, %v743_v12  ;;  %v1579_v18 = vmax.f32 %v1519_v40, %v744_v50  ;;  %2674 = vmatprep.mubr.msk.bf16.mxu1 %vm2752_vm1, %v6001_v41  ;;  %v4700_v43 = vld [vmem:[%s2796_s19 + $0x107] sm:$0xff]  ;;  %v1185_v62 = vld [vmem:[%s2796_s19 + $0x15f] sm:$0xff] }
  0xdf   : > { %v1479_v3 = vmax.f32 %v1415_v11, %v754_v54  ;;  %v1940_v8 = vmax.f32 %v1875_v46, %v754_v54  ;;  %v1225_v38 = vmax.f32 %v1125_v26, %v744_v50  ;;  %v895_v34 = vmax.f32 %v795_v25, %v755_v10  ;;  %v4704_v23 = vld [vmem:[%s2796_s19 + $0x168] sm:$0xff] }
  0xe0   : > { %v1394_v44 = vmax.f32 %v1329_v17, %v743_v12  ;;  %v1941_v60 = vmax.f32 %v1876_v13, %v755_v10  ;;  %v4694_v61 = vmax.f32 %v1576_v51, %v4665_v31  ;;  %v1236_v40 = vmax.f32 %v1136_v53, %v755_v10  ;;  %v1165_v12 = vld [vmem:[%s2796_s19 + $0xbf] sm:$0xff]  ;;  %v4716_v10 = vld [vmem:[%s2796_s19 + $0xb7] sm:$0xff] }
  0xe1   : > { %v1639_v32 = vmax.f32 %v1579_v18, %v844_v21  ;;  %v4696_v2 = vmax.f32 %v1838_v22, %v854_v14  ;;  %v1289_v45 = vmax.f32 %v1225_v38, %v754_v54  ;;  %v955_v11 = vmax.f32 %v895_v34, %v4690_v56  ;;  %v218_v54 = vld [vmem:[%s2796_s19 + $0x170] sm:$0xff] }
  0xe2   : > { %v1458_v0 = vmax.f32 %v1394_v44, %v833_v5  ;;  %v1539_v50 = vmax.f32 %v1479_v3, %v854_v14  ;;  %v2004_v46 = vmax.f32 %v1940_v8, %v854_v14  ;;  %v1300_v25 = vmax.f32 %v1236_v40, %v855_v35  ;;  %v4729_v40 = vld [vmem:[%s2796_s19 + $0x17a] sm:$0xff] }
  0xe3   : > { %v1690_v31 = vmax.f32 %v1639_v32, %v4690_v56  ;;  %v1340_v26 = vmax.f32 %v1289_v45, %v844_v21  ;;  %v1015_v53 = vmax.f32 %v955_v11, %v855_v35  ;;  %v4713_v17 = vmax.f32 %v1941_v60, %v855_v35  ;;  %v267_v60 = vld [vmem:[%s2796_s19 + $0x169] sm:$0xff]  ;;  %v4736_v11 = vld [vmem:[%s2796_s19 + $0x17c] sm:$0xff] }
  0xe4   : > { %v4711_v13 = vmax.f32 %v1458_v0, %v844_v21  ;;  %v1599_v18 = vmax.f32 %v1539_v50, %v1185_v62  ;;  %v2051_v3 = vpack.c.bf16 %v2004_v46, %v4342_v16  ;;  %v1351_v8 = vmax.f32 %v1300_v25, %v4704_v23  ;;  %v268_v21 = vld [vmem:[%s2796_s19 + $0x171] sm:$0xff]  ;;  %v4748_v25 = vld [vmem:[%s2796_s19 + $0x184] sm:$0xff] }
  0xe5   : > { %v1405_v5 = vmax.f32 %v1340_v26, %v854_v14  ;;  %v4722_v44 = vmax.f32 %v1690_v31, %v1165_v12  ;;  %v1075_v38 = vmax.f32 %v1015_v53, %v218_v54  ;;  %v4724_v34 = vmax.f32 %v906_v20, %v218_v54  ;;  %v1175_v32 = vld [vmem:[%s2796_s19 + $0x10f] sm:$0xff] }
  0xe6   : > { %2623 = vmatmul.mubr.msk.bf16.gmra.mrb[8].mxu0 %vm2082_vm2, %v2051_v3  ;;  %v1659_v45 = vmax.f32 %v1599_v18, %v4704_v23  ;;  %v1416_v16 = vmax.f32 %v1351_v8, %v218_v54  ;;  %v317_v14 = vmax.f32 %v4704_v23, %v267_v60  ;;  %v318_v0 = vmax.f32 %v218_v54, %v268_v21  ;;  %v368_v31 = vld [vmem:[%s2796_s19 + $0x172] sm:$0xff]  ;;  %v4757_v18 = vld [vmem:[%s2796_s19 + $0x17d] sm:$0xff] }
  0xe7   : > { %v1469_v20 = vmax.f32 %v1405_v5, %v855_v35  ;;  %v1126_v62 = vmax.f32 %v1075_v38, %v268_v21  ;;  %v4745_v46 = vmax.f32 %v294_v39, %v4729_v40  ;;  %2626 = vmatprep.mubr.msk.bf16.mxu0 %vm2752_vm1, %v6001_v41  ;;  %v518_v53 = vld [vmem:[%s2796_s19 + $0x173] sm:$0xff]  ;;  %v519_v8 = vld [vmem:[%s2796_s19 + $0x17b] sm:$0xff]  ;;  %v658_v5 = vmax.f32 %v4608_v19, %v4736_v11  ;;  %v770_v38 = vld [vmem:[%s2796_s19 + $0x185] sm:$0xff] }
  0xe8   : > { %v1480_v35 = vmax.f32 %v1416_v16, %v268_v21  ;;  %v417_v54 = vmax.f32 %v317_v14, %v4377_v52  ;;  %v418_v26 = vmax.f32 %v318_v0, %v368_v31  ;;  %v1710_v39 = vmax.f32 %v1659_v45, %v267_v60  ;;  %v4767_v21 = vld [vmem:[%s2796_s19 + $0x1cc] sm:$0xff]  ;;  %v6078_v14 = vld [vmem:[#allocation13_spill] sm:$0xff] }
  0xe9   : > { %v1529_v57 = vmax.f32 %v1469_v20, %v1175_v32  ;;  %v1226_v3 = vmax.f32 %v1126_v62, %v368_v31  ;;  %v910_v0 = vmax.f32 %v6078_v14, %v4748_v25  ;;  %v709_v20 = vmax.f32 %v658_v5, %v4757_v18  ;;  %v989_v5 = vld [vmem:[%s2796_s19 + $0x1cd] sm:$0xff]  ;;  %v4806_v22 = vld [vmem:[%s2796_s19 + $0x1d6] sm:$0xff] }
  0xea   : > { %v1540_v16 = vmax.f32 %v1480_v35, %v368_v31  ;;  %v468_v1 = vmax.f32 %v417_v54, %v368_v31  ;;  %v469_v52 = vmax.f32 %v418_v26, %v4729_v40  ;;  %v557_v19 = vmax.f32 %v4512_v7, %v4760_v29  ;;  %v4780_v26 = vld [vmem:[%s2796_s19 + $0x186] sm:$0xff] }
  0xeb   : > { %v1589_v32 = vmax.f32 %v1529_v57, %v4704_v23  ;;  %v1290_v45 = vmax.f32 %v1226_v3, %v4729_v40  ;;  %v4777_v54 = vmax.f32 %v910_v0, %v770_v38  ;;  %v809_v57 = vmax.f32 %v709_v20, %v4760_v29  ;;  %v4795_v0 = vld [vmem:[%s2796_s19 + $0x1d8] sm:$0xff] }
  0xec   : > { %v568_v62 = vmax.f32 %v468_v1, %v518_v53  ;;  %v569_v35 = vmax.f32 %v469_v52, %v519_v8  ;;  %v1600_v14 = vmax.f32 %v1540_v16, %v4767_v21  ;;  %v1785_v3 = vmax.f32 %v1710_v39, %v4767_v21  ;;  %v930_v16 = vld [vmem:[%s2796_s19 + $0x1d4] sm:$0xff] }
  0xed   : > { %v1649_v50 = vmax.f32 %v1589_v32, %v267_v60  ;;  %v1341_v23 = vmax.f32 %v1290_v45, %v519_v8  ;;  %v445_v7 = vmax.f32 %v4745_v46, %v4748_v25  ;;  %v990_v8 = vld [vmem:[%s2796_s19 + $0x1d5] sm:$0xff]  ;;  %v909_v45 = vmax.f32 %v809_v57, %v4780_v26 }
  0xee   : > { %v668_v1 = vmax.f32 %v568_v62, %v4397_v33  ;;  %v669_v52 = vmax.f32 %v569_v35, %v4736_v11  ;;  %v1660_v20 = vmax.f32 %v1600_v14, %v930_v16  ;;  %v4800_v46 = vld [vmem:[%s2796_s19 + $0x1ce] sm:$0xff]  ;;  %v1849_v60 = vmax.f32 %v1785_v3, %v989_v5 }
  0xef   : > { %v1700_v32 = vmax.f32 %v1649_v50, %v368_v31  ;;  %v1406_v39 = vmax.f32 %v1341_v23, %v4736_v11  ;;  %v1199_v33 = vld [vmem:[%s2796_s19 + $0x1cf] sm:$0xff]  ;;  %v6079_v50 = vmax.f32 %v4550_v55, %v4564_v36  ;;  %v4813_v23 = vld [vmem:[%s2796_s19 + $0x1e0] sm:$0xff]  ;;  %v4817_v12 = vmax.f32 %v557_v19, %v4795_v0 }
  0xf0   : > { %v719_v62 = vmax.f32 %v668_v1, %v4736_v11  ;;  %v720_v35 = vmax.f32 %v669_v52, %v4748_v25  ;;  %v1711_v51 = vmax.f32 %v1660_v20, %v990_v8  ;;  %v1900_v52 = vmax.f32 %v1849_v60, %v4800_v46  ;;  %v4823_v55 = vld [vmem:[%s2796_s19 + $0x1d9] sm:$0xff]  ;;  %v4829_v19 = vld [vmem:[%s2796_s19 + $0x1e1] sm:$0xff] }
  0xf1   : > { %v1149_v31 = vmax.f32 %v6079_v50, %v4800_v46  ;;  %v1775_v14 = vmax.f32 %v1700_v32, %v518_v53  ;;  %v1470_v57 = vmax.f32 %v1406_v39, %v4748_v25  ;;  %v969_v39 = vmax.f32 %v909_v45, %v4813_v23 }
  0xf2   : > { %v819_v3 = vmax.f32 %v719_v62, %v4757_v18  ;;  %v820_v1 = vmax.f32 %v720_v35, %v770_v38  ;;  %v1786_v32 = vmax.f32 %v1711_v51, %v4806_v22  ;;  %v6080_v60 = vmax.f32 %v4724_v34, %v4729_v40 }
  0xf3   : > { %v1249_v58 = vmax.f32 %v1149_v31, %v1199_v33  ;;  %v1839_v36 = vmax.f32 %v1775_v14, %v4736_v11  ;;  %v1530_v53 = vmax.f32 %v1470_v57, %v770_v38  ;;  %v4840_v11 = vld [vmem:[%s2796_s19 + $0x1c2] sm:$0xff]  ;;  %v4849_v31 = vld [vmem:[%s2796_s19 + $0x1ca] sm:$0xff] }
  0xf4   : > { %v919_v20 = vmax.f32 %v819_v3, %v4760_v29  ;;  %v920_v62 = vmax.f32 %v820_v1, %v4780_v26  ;;  %v4836_v33 = vmax.f32 %v6080_v60, %v930_v16  ;;  %6081 = vst [vmem:[#allocation25_spill] sm:$0xff] %v4840_v11  ;;  %v1850_v45 = vmax.f32 %v1786_v32, %v1186_v24  ;;  %v6086_v24 = vld [vmem:[#allocation33_spill] sm:$0xff] }
  0xf5   : > { %v1313_v35 = vmax.f32 %v1249_v58, %v4467_v47  ;;  %v4843_v51 = vmax.f32 %v1839_v36, %v4757_v18  ;;  %v1590_v38 = vmax.f32 %v1530_v53, %v4780_v26  ;;  %6082 = vst [vmem:[#allocation4_spill] sm:$0xff] %v4849_v31  ;;  %v4853_v58 = vmax.f32 %v969_v39, %v4829_v19  ;;  %v1735_v18 = vld [vmem:[%s2796_s19 + $0x1c3] sm:$0xff]  ;;  %v1736_v39 = vld [vmem:[%s2796_s19 + $0x1cb] sm:$0xff] }
  0xf6   : > { %v979_v34 = vmax.f32 %v919_v20, %v4767_v21  ;;  %v980_v14 = vmax.f32 %v920_v62, %v930_v16  ;;  %v1965_v47 = vmax.f32 %v1900_v52, %v4840_v11  ;;  %v1901_v3 = vmax.f32 %v1850_v45, %v4840_v11  ;;  %v4864_v16 = vld [vmem:[%s2796_s19 + $0x120] sm:$0xff]  ;;  %v6085_v21 = vld [vmem:[#allocation31_spill] sm:$0xff] }
  0xf7   : > { %v1364_v57 = vmax.f32 %v1313_v35, %v4795_v0  ;;  %v1137_v52 = vmax.f32 %v4836_v33, %v4849_v31  ;;  %v545_v60 = vmax.f32 %v445_v7, %v4864_v16  ;;  %v244_v35 = vld [vmem:[%s2796_s19 + $0xb1] sm:$0xff]  ;;  %v245_v45 = vld [vmem:[%s2796_s19 + $0xb9] sm:$0xff]  ;;  %v2734_v11 = vld [vmem:[%s2796_s19 + $0x101] sm:$0xff] }
  0xf8   : > { %v1039_v36 = vmax.f32 %v979_v34, %v989_v5  ;;  %v4866_v53 = vmax.f32 %v980_v14, %v990_v8  ;;  %v1966_v20 = vmax.f32 %v1901_v3, %v4849_v31  ;;  %v2029_v62 = vmax.f32 %v1965_v47, %v1735_v18  ;;  %v209_v8 = vld [vmem:[%s2796_s19 + $0x128] sm:$0xff]  ;;  %v1200_v18 = vld [vmem:[%s2796_s19 + $0x1d7] sm:$0xff] }
  0xf9   : > { %v4876_v5 = vmax.f32 %v1590_v38, %v4864_v16  ;;  %v6084_v14 = vmax.f32 %v4674_v37, %v4690_v56  ;;  %v646_v7 = vmax.f32 %v4544_v63, %v209_v8  ;;  %v4890_v38 = vld [vmem:[%s2796_s19 + $0x121] sm:$0xff]  ;;  %v4894_v3 = vmax.f32 %v1364_v57, %v4823_v55  ;;  %v259_v37 = vld [vmem:[%s2796_s19 + $0x129] sm:$0xff] }
  0xfa   : > { %v1099_v33 = vmax.f32 %v1039_v36, %v4800_v46  ;;  %v2030_v32 = vmax.f32 %v1966_v20, %v1736_v39  ;;  %v184_v46 = vld [vmem:[%s2796_s19 + $0x60] sm:$0xff]  ;;  %v645_v36 = vmax.f32 %v545_v60, %v209_v8  ;;  %v6087_v34 = vmax.f32 %v6085_v21, %v6086_v24 }
  0xfb   : > { %v1396_v47 = vmax.f32 %v6084_v14, %v4864_v16  ;;  %v234_v14 = vld [vmem:[%s2796_s19 + $0x61] sm:$0xff]  ;;  %v1687_v63 = vmax.f32 %v4694_v61, %v244_v35  ;;  %v697_v31 = vmax.f32 %v646_v7, %v245_v45  ;;  %v1517_v57 = vmax.f32 %v4576_v30, %v245_v45  ;;  %v355_v61 = vld [vmem:[%s2796_s19 + $0x10a] sm:$0xff] }
  0xfc   : > { %v1397_v50 = vmax.f32 %v6087_v34, %v209_v8  ;;  %v1150_v56 = vmax.f32 %v1099_v33, %v4806_v22  ;;  %v345_v39 = vld [vmem:[%s2796_s19 + $0xba] sm:$0xff]  ;;  %v2064_v20 = vpack.c.bf16 %v2030_v32, %v2029_v62  ;;  %v696_v60 = vmax.f32 %v645_v36, %v244_v35  ;;  %v496_v36 = vld [vmem:[%s2796_s19 + $0xc3] sm:$0xff] }
  0xfd   : > { %v1701_v24 = vmax.f32 %v4876_v5, %v4890_v38  ;;  %v1460_v21 = vmax.f32 %v1396_v47, %v4890_v38  ;;  %v2733_v33 = vld [vmem:[%s2796_s19 + $0x100] sm:$0xff]  ;;  %v309_v27 = vmax.f32 %v209_v8, %v259_v37  ;;  %v284_v32 = vmax.f32 %v184_v46, %v234_v14  ;;  %v356_v8 = vld [vmem:[%s2796_s19 + $0x112] sm:$0xff] }
  0xfe   : > { %v1250_v34 = vmax.f32 %v1150_v56, %v1200_v18  ;;  %v1461_v15 = vmax.f32 %v1397_v50, %v259_v37  ;;  %v304_v1 = vmax.f32 %v2733_v33, %v2734_v11  ;;  %2675 = vmatmul.mubr.msk.bf16.gmra.mrb[8].mxu1 %vm2082_vm2, %v2064_v20  ;;  %v796_v30 = vmax.f32 %v696_v60, %v259_v37  ;;  %v6091_v37 = vld [vmem:[#allocation22_spill] sm:$0xff]  ;;  %v506_v33 = vld [vmem:[%s2796_s19 + $0x113] sm:$0xff] }
  0xff   : > { %v1520_v62 = vmax.f32 %v1460_v21, %v334_v49  ;;  %v1577_v35 = vmax.f32 %v1517_v57, %v345_v39  ;;  %v797_v47 = vmax.f32 %v697_v31, %v345_v39  ;;  %v6088_v50 = vmax.f32 %v4487_v9, %v4410_v28  ;;  %2678 = vmatprep.mubr.msk.bf16.mxu1 %vm2752_vm1, %v6001_v41  ;;  %v495_v31 = vld [vmem:[%s2796_s19 + $0xbb] sm:$0xff]  ;;  %v6090_v9 = vld [vmem:[#allocation19_spill] sm:$0xff] }
 0x100   : > { %v1314_v5 = vmax.f32 %v1250_v34, %v4795_v0  ;;  %v1237_v45 = vmax.f32 %v1137_v52, %v304_v1  ;;  %v896_v7 = vmax.f32 %v796_v30, %v345_v39  ;;  %v6089_v46 = vmax.f32 %v4483_v59, %v4501_v42  ;;  %v484_v52 = vld [vmem:[%s2796_s19 + $0x63] sm:$0xff]  ;;  %v505_v59 = vld [vmem:[%s2796_s19 + $0x10b] sm:$0xff] }
 0x101   : > { %v4918_v11 = vmax.f32 %v6088_v50, %v355_v61  ;;  %v1637_v18 = vmax.f32 %v1577_v35, %v355_v61  ;;  %v1762_v1 = vmax.f32 %v1687_v63, %v355_v61  ;;  %v6092_v56 = vmax.f32 %v6090_v9, %v6091_v37  ;;  %v485_v30 = vld [vmem:[%s2796_s19 + $0x6b] sm:$0xff] }
 0x102   : > { %v907_v0 = vmax.f32 %v6089_v46, %v355_v61  ;;  %v1365_v28 = vmax.f32 %v1314_v5, %v4813_v23  ;;  %v1301_v57 = vmax.f32 %v1237_v45, %v355_v61  ;;  %v6093_v39 = vmax.f32 %v4696_v2, %v4700_v43  ;;  %v746_v9 = vld [vmem:[%s2796_s19 + $0xc5] sm:$0xff] }
 0x103   : > { %v4933_v14 = vmax.f32 %v6092_v56, %v309_v27  ;;  %v6094_v42 = vmax.f32 %v4817_v12, %v4823_v55  ;;  %v1688_v60 = vmax.f32 %v1637_v18, %v356_v8  ;;  %v384_v34 = vmax.f32 %v284_v32, %v334_v49  ;;  %v595_v27 = vld [vmem:[%s2796_s19 + $0xbc] sm:$0xff]  ;;  %v606_v18 = vld [vmem:[%s2796_s19 + $0x114] sm:$0xff] }
 0x104   : > { %v4938_v20 = vmax.f32 %v6093_v39, %v356_v8  ;;  %v967_v21 = vmax.f32 %v907_v0, %v356_v8  ;;  %v6095_v61 = vmax.f32 %v4711_v13, %v4716_v10  ;;  %v1580_v43 = vmax.f32 %v1520_v62, %v484_v52  ;;  %v596_v13 = vld [vmem:[%s2796_s19 + $0xc4] sm:$0xff]  ;;  %v4957_v10 = vld [vmem:[%s2796_s19 + $0x11c] sm:$0xff] }
 0x105   : > { %v4944_v63 = vmax.f32 %v6094_v42, %v356_v8  ;;  %v956_v35 = vmax.f32 %v896_v7, %v495_v31  ;;  %v897_v5 = vmax.f32 %v797_v47, %v496_v36  ;;  %v1521_v12 = vmax.f32 %v1461_v15, %v384_v34  ;;  %v745_v15 = vld [vmem:[%s2796_s19 + $0xbd] sm:$0xff]  ;;  %v846_v42 = vld [vmem:[%s2796_s19 + $0xc6] sm:$0xff] }
 0x106   : > { %v4951_v2 = vmax.f32 %v6095_v61, %v356_v8  ;;  %v1352_v55 = vmax.f32 %v1301_v57, %v505_v59  ;;  %v1826_v45 = vmax.f32 %v1762_v1, %v505_v59  ;;  %v1763_v50 = vmax.f32 %v1688_v60, %v506_v33  ;;  %v757_v59 = vld [vmem:[%s2796_s19 + $0x11d] sm:$0xff] }
 0x107   : > { %v1027_v49 = vmax.f32 %v967_v21, %v506_v33  ;;  %v1016_v32 = vmax.f32 %v956_v35, %v595_v27  ;;  %v1776_v46 = vmax.f32 %v1701_v24, %v595_v27  ;;  %v1640_v0 = vmax.f32 %v1580_v43, %v595_v27  ;;  %v756_v24 = vld [vmem:[%s2796_s19 + $0x115] sm:$0xff] }
 0x108   : > { %v1581_v62 = vmax.f32 %v1521_v12, %v485_v30  ;;  %v957_v8 = vmax.f32 %v897_v5, %v596_v13  ;;  %v1827_v47 = vmax.f32 %v1763_v50, %v606_v18  ;;  %v1417_v7 = vmax.f32 %v1352_v55, %v606_v18  ;;  %v856_v34 = vld [vmem:[%s2796_s19 + $0x116] sm:$0xff]  ;;  %v4974_v30 = vld [vmem:[%s2796_s19 + $0x11e] sm:$0xff]  ;;  %v1166_v55 = vld [vmem:[%s2796_s19 + $0xc7] sm:$0xff] }
 0x109   : > { %v4961_v1 = vmax.f32 %v1365_v28, %v4829_v19  ;;  %v1076_v52 = vmax.f32 %v1016_v32, %v596_v13  ;;  %v1087_v31 = vmax.f32 %v1027_v49, %v606_v18  ;;  %v1877_v36 = vmax.f32 %v1826_v45, %v606_v18  ;;  %v1167_v45 = vld [vmem:[%s2796_s19 + $0xcf] sm:$0xff] }
 0x10a   : > { %v1641_v37 = vmax.f32 %v1581_v62, %v596_v13  ;;  %v1017_v56 = vmax.f32 %v957_v8, %v4957_v10  ;;  %v908_v57 = vmax.f32 %v4944_v63, %v4957_v10  ;;  %v1878_v39 = vmax.f32 %v1827_v47, %v4957_v10  ;;  %v1187_v50 = vld [vmem:[%s2796_s19 + $0x16f] sm:$0xff] }
 0x10b   : > { %v1127_v19 = vmax.f32 %v1076_v52, %v606_v18  ;;  %v1138_v28 = vmax.f32 %v1087_v31, %v4957_v10  ;;  %v1840_v60 = vmax.f32 %v1776_v46, %v745_v15  ;;  %v1691_v21 = vmax.f32 %v1640_v0, %v745_v15  ;;  %v4984_v0 = vld [vmem:[%s2796_s19 + $0x178] sm:$0xff]  ;;  %v220_v15 = vld [vmem:[%s2796_s19 + $0x180] sm:$0xff] }
 0x10c   : > { %v1692_v33 = vmax.f32 %v1641_v37, %v746_v9  ;;  %v1481_v27 = vmax.f32 %v1417_v7, %v756_v24  ;;  %v1942_v61 = vmax.f32 %v1877_v36, %v756_v24  ;;  %v1077_v43 = vmax.f32 %v1017_v56, %v757_v59  ;;  %v4991_v7 = vld [vmem:[%s2796_s19 + $0x117] sm:$0xff] }
 0x10d   : > { %v1227_v63 = vmax.f32 %v1127_v19, %v746_v9  ;;  %v4976_v35 = vmax.f32 %v1878_v39, %v757_v59  ;;  %v1238_v5 = vmax.f32 %v1138_v28, %v757_v59  ;;  %v1766_v12 = vmax.f32 %v1691_v21, %v846_v42  ;;  %v269_v59 = vld [vmem:[%s2796_s19 + $0x179] sm:$0xff]  ;;  %v5000_v19 = vld [vmem:[%s2796_s19 + $0x12a] sm:$0xff] }
 0x10e   : > { %v1767_v18 = vmax.f32 %v1692_v33, %v846_v42  ;;  %v4981_v49 = vmax.f32 %v1840_v60, %v856_v34  ;;  %v1541_v32 = vmax.f32 %v1481_v27, %v856_v34  ;;  %v2006_v46 = vmax.f32 %v1942_v61, %v856_v34  ;;  %v270_v33 = vld [vmem:[%s2796_s19 + $0x181] sm:$0xff] }
 0x10f   : > { %v1291_v62 = vmax.f32 %v1227_v63, %v756_v24  ;;  %v1128_v8 = vmax.f32 %v1077_v43, %v4974_v30  ;;  %v1302_v47 = vmax.f32 %v1238_v5, %v4974_v30  ;;  %v1830_v31 = vmax.f32 %v1766_v12, %v1166_v55  ;;  %v5012_v63 = vld [vmem:[%s2796_s19 + $0x132] sm:$0xff]  ;;  %v1177_v5 = vld [vmem:[%s2796_s19 + $0x11f] sm:$0xff] }
 0x110   : > { %v1831_v36 = vmax.f32 %v1767_v18, %v1167_v45  ;;  %v1601_v9 = vmax.f32 %v1541_v32, %v1187_v50  ;;  %v2052_v56 = vpack.c.bf16 %v2006_v46, %v4713_v17  ;;  %v5005_v21 = vmax.f32 %v908_v57, %v220_v15  ;;  %v370_v50 = vld [vmem:[%s2796_s19 + $0x182] sm:$0xff] }
 0x111   : > { %v1342_v37 = vmax.f32 %v1291_v62, %v846_v42  ;;  %v1353_v24 = vmax.f32 %v1302_v47, %v4984_v0  ;;  %v1228_v39 = vmax.f32 %v1128_v8, %v220_v15  ;;  %v319_v42 = vmax.f32 %v4984_v0, %v269_v59  ;;  %v5035_v8 = vld [vmem:[%s2796_s19 + $0x18a] sm:$0xff]  ;;  %v5101_v52 = vld [vmem:[%s2796_s19 + $0x1de] sm:$0xff] }
 0x112   : > { %v1661_v60 = vmax.f32 %v1601_v9, %v4984_v0  ;;  %2627 = vmatmul.mubr.msk.bf16.gmra.mrb[12].mxu0 %vm2082_vm2, %v2052_v56  ;;  %v1882_v43 = vmax.f32 %v1831_v36, %v5000_v19  ;;  %v320_v57 = vmax.f32 %v220_v15, %v270_v33  ;;  %v1031_v55 = vmax.f32 %v4933_v14, %v5000_v19  ;;  %v6098_v36 = vld [vmem:[#allocation9_spill] sm:$0xff]  ;;  %v6099_v9 = vld [vmem:[#allocation12_spill] sm:$0xff]  ;;  %v5106_v28 = vld [vmem:[%s2796_s19 + $0x1e6] sm:$0xff] }
 0x113   : > { %v1407_v27 = vmax.f32 %v1342_v37, %v856_v34  ;;  %v1418_v17 = vmax.f32 %v1353_v24, %v220_v15  ;;  %v1292_v61 = vmax.f32 %v1228_v39, %v270_v33  ;;  %v6096_v34 = vmax.f32 %v4777_v54, %v4780_v26  ;;  %2630 = vmatprep.mubr.msk.bf16.mxu0 %vm2752_vm1, %v6001_v41  ;;  %v510_v54 = vld [vmem:[%s2796_s19 + $0x133] sm:$0xff]  ;;  %v6101_v24 = vld [vmem:[#allocation2_spill] sm:$0xff] }
 0x114   : > { %v5015_v12 = vmax.f32 %v1661_v60, %v269_v59  ;;  %v6097_v14 = vmax.f32 %v4312_v6, %v4476_v48  ;;  %v5039_v26 = vmax.f32 %v1830_v31, %v5000_v19  ;;  %v1947_v47 = vmax.f32 %v1882_v43, %v5012_v63  ;;  %v5050_v6 = vld [vmem:[%s2796_s19 + $0x194] sm:$0xff] }
 0x115   : > { %v5023_v45 = vmax.f32 %v6096_v34, %v5000_v19  ;;  %v1471_v18 = vmax.f32 %v1407_v27, %v4974_v30  ;;  %v1482_v32 = vmax.f32 %v1418_v17, %v270_v33  ;;  %v1343_v46 = vmax.f32 %v1292_v61, %v5012_v63  ;;  %v621_v33 = vld [vmem:[%s2796_s19 + $0x18c] sm:$0xff]  ;;  %v5062_v34 = vld [vmem:[%s2796_s19 + $0x1dc] sm:$0xff] }
 0x116   : > { %v1092_v62 = vmax.f32 %v6097_v14, %v5012_v63  ;;  %v1091_v15 = vmax.f32 %v1031_v55, %v5012_v63  ;;  %v6100_v37 = vmax.f32 %v6098_v36, %v6099_v9  ;;  %v1028_v27 = vmax.f32 %v5005_v21, %v5035_v8  ;;  %v5059_v55 = vld [vmem:[%s2796_s19 + $0x195] sm:$0xff] }
 0x117   : > { %v1531_v48 = vmax.f32 %v1471_v18, %v1177_v5  ;;  %v1408_v31 = vmax.f32 %v1343_v46, %v370_v50  ;;  %v1542_v60 = vmax.f32 %v1482_v32, %v370_v50  ;;  %v419_v17 = vmax.f32 %v319_v42, %v4729_v40  ;;  %v520_v32 = vld [vmem:[%s2796_s19 + $0x183] sm:$0xff]  ;;  %v521_v46 = vld [vmem:[%s2796_s19 + $0x18b] sm:$0xff]  ;;  %v1188_v36 = vld [vmem:[%s2796_s19 + $0x177] sm:$0xff] }
 0x118   : > { %v5047_v56 = vmax.f32 %v6100_v37, %v5035_v8  ;;  %v420_v61 = vmax.f32 %v320_v57, %v370_v50  ;;  %v1142_v43 = vmax.f32 %v1091_v15, %v510_v54  ;;  %v5066_v14 = vmax.f32 %v1947_v47, %v510_v54  ;;  %v5072_v40 = vld [vmem:[%s2796_s19 + $0x18d] sm:$0xff] }
 0x119   : > { %v1591_v5 = vmax.f32 %v1531_v48, %v4984_v0  ;;  %v1472_v18 = vmax.f32 %v1408_v31, %v5035_v8  ;;  %v1143_v21 = vmax.f32 %v1092_v62, %v5050_v6  ;;  %v470_v42 = vmax.f32 %v419_v17, %v370_v50  ;;  %v5078_v0 = vld [vmem:[%s2796_s19 + $0x18e] sm:$0xff]  ;;  %v5086_v17 = vld [vmem:[%s2796_s19 + $0x196] sm:$0xff] }
 0x11a   : > { %v471_v57 = vmax.f32 %v420_v61, %v5035_v8  ;;  %v1242_v15 = vmax.f32 %v1142_v43, %v621_v33  ;;  %v1602_v62 = vmax.f32 %v1542_v60, %v5062_v34  ;;  %v1787_v61 = vmax.f32 %v5015_v12, %v5062_v34  ;;  %v991_v43 = vld [vmem:[%s2796_s19 + $0x1dd] sm:$0xff] }
 0x11b   : > { %v1651_v54 = vmax.f32 %v1591_v5, %v269_v59  ;;  %v1532_v47 = vmax.f32 %v1472_v18, %v521_v46  ;;  %v5081_v9 = vmax.f32 %v1143_v21, %v5059_v55  ;;  %v570_v37 = vmax.f32 %v470_v42, %v520_v32  ;;  %v992_v21 = vld [vmem:[%s2796_s19 + $0x1e5] sm:$0xff] }
 0x11c   : > { %v571_v48 = vmax.f32 %v471_v57, %v521_v46  ;;  %v1306_v31 = vmax.f32 %v1242_v15, %v5072_v40  ;;  %v1141_v60 = vmax.f32 %v5023_v45, %v5078_v0  ;;  %v932_v46 = vld [vmem:[%s2796_s19 + $0x1e4] sm:$0xff] }
 0x11d   : > { %v1702_v59 = vmax.f32 %v1651_v54, %v5000_v19  ;;  %v1592_v5 = vmax.f32 %v1532_v47, %v621_v33  ;;  %v670_v42 = vmax.f32 %v570_v37, %v4748_v25  ;;  %v1662_v15 = vmax.f32 %v1602_v62, %v932_v46  ;;  %v1201_v19 = vld [vmem:[%s2796_s19 + $0x1df] sm:$0xff] }
 0x11e   : > { %v671_v57 = vmax.f32 %v571_v48, %v621_v33  ;;  %v1357_v12 = vmax.f32 %v1306_v31, %v5078_v0  ;;  %v1851_v47 = vmax.f32 %v1787_v61, %v991_v43  ;;  %v6102_v25 = vmax.f32 %v4866_v53, %v4806_v22  ;;  %v1192_v48 = vld [vmem:[%s2796_s19 + $0x197] sm:$0xff] }
 0x11f   : > { %v1777_v54 = vmax.f32 %v1702_v59, %v370_v50  ;;  %v1652_v45 = vmax.f32 %v1592_v5, %v5050_v6  ;;  %v721_v18 = vmax.f32 %v670_v42, %v621_v33  ;;  %v1713_v13 = vmax.f32 %v1662_v15, %v992_v21  ;;  %v5116_v50 = vld [vmem:[%s2796_s19 + $0x1e8] sm:$0xff]  ;;  %v5122_v22 = vld [vmem:[%s2796_s19 + $0x1f0] sm:$0xff] }
 0x120   : > { %v1151_v37 = vmax.f32 %v6102_v25, %v5101_v52  ;;  %v722_v62 = vmax.f32 %v671_v57, %v5050_v6  ;;  %v1422_v31 = vmax.f32 %v1357_v12, %v5086_v17  ;;  %v1902_v5 = vmax.f32 %v1851_v47, %v5101_v52 }
 0x121   : > { %v1841_v59 = vmax.f32 %v1777_v54, %v520_v32  ;;  %v1703_v61 = vmax.f32 %v1652_v45, %v5059_v55  ;;  %v821_v53 = vmax.f32 %v721_v18, %v5072_v40  ;;  %v1788_v57 = vmax.f32 %v1713_v13, %v5106_v28  ;;  %v1381_v45 = vld [vmem:[%s2796_s19 + $0x1e9] sm:$0xff]  ;;  %v5137_v13 = vld [vmem:[%s2796_s19 + $0x1f1] sm:$0xff] }
 0x122   : > { %v1251_v39 = vmax.f32 %v1151_v37, %v1201_v19  ;;  %v822_v42 = vmax.f32 %v722_v62, %v5059_v55  ;;  %v1486_v12 = vmax.f32 %v1422_v31, %v1192_v48  ;;  %v1088_v25 = vmax.f32 %v1028_v27, %v932_v46  ;;  %v5131_v19 = vld [vmem:[%s2796_s19 + $0x1d2] sm:$0xff] }
 0x123   : > { %v1892_v15 = vmax.f32 %v1841_v59, %v621_v33  ;;  %v1241_v32 = vmax.f32 %v1141_v60, %v5116_v50  ;;  %v921_v47 = vmax.f32 %v821_v53, %v5078_v0  ;;  %v1852_v37 = vmax.f32 %v1788_v57, %v1188_v36  ;;  %v5140_v33 = vld [vmem:[%s2796_s19 + $0x1da] sm:$0xff]  ;;  %v5150_v53 = vld [vmem:[%s2796_s19 + $0x130] sm:$0xff] }
 0x124   : > { %v1315_v54 = vmax.f32 %v1251_v39, %v4813_v23  ;;  %v922_v18 = vmax.f32 %v822_v42, %v5086_v17  ;;  %v1546_v55 = vmax.f32 %v1486_v12, %v5122_v22  ;;  %v1778_v23 = vmax.f32 %v1703_v61, %v5086_v17  ;;  %v1737_v59 = vld [vmem:[%s2796_s19 + $0x1d3] sm:$0xff] }
 0x125   : > { %v1957_v27 = vmax.f32 %v1892_v15, %v5072_v40  ;;  %v1967_v60 = vmax.f32 %v1902_v5, %v5131_v19  ;;  %v981_v48 = vmax.f32 %v921_v47, %v5062_v34  ;;  %v1305_v31 = vmax.f32 %v1241_v32, %v1381_v45 }
 0x126   : > { %v1366_v39 = vmax.f32 %v1315_v54, %v5116_v50  ;;  %v982_v62 = vmax.f32 %v922_v18, %v932_v46  ;;  %v1903_v36 = vmax.f32 %v1852_v37, %v5131_v19  ;;  %v5156_v40 = vmax.f32 %v1546_v55, %v5137_v13  ;;  %v1738_v46 = vld [vmem:[%s2796_s19 + $0x1db] sm:$0xff]  ;;  %v5181_v37 = vld [vmem:[%s2796_s19 + $0x131] sm:$0xff] }
 0x127   : > { %v5153_v42 = vmax.f32 %v1957_v27, %v5078_v0  ;;  %v1139_v34 = vmax.f32 %v1088_v25, %v5140_v33  ;;  %v1041_v5 = vmax.f32 %v981_v48, %v991_v43  ;;  %v2031_v32 = vmax.f32 %v1967_v60, %v1737_v59  ;;  %v2735_v55 = vld [vmem:[%s2796_s19 + $0x110] sm:$0xff] }
 0x128   : > { %v5158_v61 = vmax.f32 %v1366_v39, %v1381_v45  ;;  %v5162_v57 = vmax.f32 %v982_v62, %v992_v21  ;;  %v1968_v12 = vmax.f32 %v1903_v36, %v5140_v33  ;;  %v1842_v54 = vmax.f32 %v1778_v23, %v5150_v53  ;;  %v357_v21 = vld [vmem:[%s2796_s19 + $0x11a] sm:$0xff]  ;;  %v2736_v27 = vld [vmem:[%s2796_s19 + $0x111] sm:$0xff]  ;;  %v1202_v23 = vld [vmem:[%s2796_s19 + $0x1e7] sm:$0xff] }
 0x129   : > { %v6103_v25 = vmax.f32 %v6101_v24, %v5012_v63  ;;  %v1101_v45 = vmax.f32 %v1041_v5, %v5101_v52  ;;  %v306_v39 = vmax.f32 %v2735_v55, %v2736_v27  ;;  %v6104_v63 = vmax.f32 %v5047_v56, %v5050_v6  ;;  %v5195_v62 = vld [vmem:[%s2796_s19 + $0x122] sm:$0xff]  ;;  %v2737_v27 = vld [vmem:[%s2796_s19 + $0xd5] sm:$0xff] }
 0x12a   : > { %v1102_v47 = vmax.f32 %v5162_v57, %v5106_v28  ;;  %v2032_v18 = vmax.f32 %v1968_v12, %v1738_v46  ;;  %v1893_v60 = vmax.f32 %v1842_v54, %v5181_v37  ;;  %v1829_v48 = vmax.f32 %v4722_v44, %v357_v21  ;;  %v1383_v57 = vld [vmem:[%s2796_s19 + $0x1f9] sm:$0xff] }
 0x12b   : > { %v5174_v43 = vmax.f32 %v6103_v25, %v5150_v53  ;;  %v1473_v24 = vmax.f32 %v6104_v63, %v5150_v53  ;;  %v1152_v36 = vmax.f32 %v1101_v45, %v5106_v28  ;;  %v1239_v46 = vmax.f32 %v1139_v34, %v306_v39 }
 0x12c   : > { %v2065_v59 = vpack.c.bf16 %v2032_v18, %v2031_v32  ;;  %v1089_v5 = vmax.f32 %v4853_v58, %v357_v21  ;;  %v6105_v56 = vmax.f32 %v4843_v51, %v4760_v29  ;;  %v6106_v54 = vmax.f32 %v4951_v2, %v4957_v10  ;;  %v507_v58 = vld [vmem:[%s2796_s19 + $0x11b] sm:$0xff]  ;;  %v508_v32 = vld [vmem:[%s2796_s19 + $0x123] sm:$0xff] }
 0x12d   : > { %v1948_v52 = vmax.f32 %v5174_v43, %v5181_v37  ;;  %v6107_v25 = vmax.f32 %v4981_v49, %v4991_v7  ;;  %v5214_v34 = vmax.f32 %v1305_v31, %v5195_v62  ;;  %v1252_v29 = vmax.f32 %v1152_v36, %v1202_v23  ;;  %v608_v49 = vld [vmem:[%s2796_s19 + $0x124] sm:$0xff]  ;;  %v6108_v31 = vld [vmem:[#allocation8_spill] sm:$0xff] }
 0x12e   : > { %v5202_v12 = vmax.f32 %v6105_v56, %v357_v21  ;;  %v1764_v44 = vmax.f32 %v6106_v54, %v357_v21  ;;  %2679 = vmatmul.mubr.msk.bf16.gmra.mrb[12].mxu1 %vm2082_vm2, %v2065_v59  ;;  %v1303_v51 = vmax.f32 %v1239_v46, %v357_v21  ;;  %v1880_v2 = vmax.f32 %v1829_v48, %v5195_v62  ;;  %v858_v7 = vld [vmem:[%s2796_s19 + $0x126] sm:$0xff] }
 0x12f   : > { %v5211_v45 = vmax.f32 %v6107_v25, %v5195_v62  ;;  %v1140_v10 = vmax.f32 %v1089_v5, %v5195_v62  ;;  %v1533_v55 = vmax.f32 %v1473_v24, %v608_v49  ;;  %v798_v39 = vmax.f32 %v6108_v31, %v2737_v27  ;;  %v1178_v56 = vld [vmem:[%s2796_s19 + $0x127] sm:$0xff]  ;;  %2682 = vmatprep.mubr.msk.bf16.mxu1 %vm2752_vm1, %v6001_v41  ;;  %v1203_v31 = vld [vmem:[%s2796_s19 + $0x1ef] sm:$0xff] }
 0x130   : > { %v1828_v18 = vmax.f32 %v1764_v44, %v507_v58  ;;  %v1958_v63 = vmax.f32 %v1893_v60, %v858_v7  ;;  %v1316_v21 = vmax.f32 %v1252_v29, %v5116_v50  ;;  %v1354_v23 = vmax.f32 %v1303_v51, %v507_v58  ;;  %v758_v59 = vld [vmem:[%s2796_s19 + $0x125] sm:$0xff]  ;;  %v5244_v29 = vld [vmem:[%s2796_s19 + $0x192] sm:$0xff] }
 0x131   : > { %v1945_v48 = vmax.f32 %v1880_v2, %v508_v32  ;;  %v1240_v36 = vmax.f32 %v1140_v10, %v508_v32  ;;  %v5231_v46 = vld [vmem:[%s2796_s19 + $0x188] sm:$0xff]  ;;  %v1946_v60 = vmax.f32 %v5039_v26, %v5195_v62  ;;  %v1593_v54 = vmax.f32 %v1533_v55, %v758_v59 }
 0x132   : > { %v5234_v24 = vld [vmem:[%s2796_s19 + $0x189] sm:$0xff]  ;;  %v1879_v5 = vmax.f32 %v1828_v18, %v608_v49  ;;  %v1367_v44 = vmax.f32 %v1316_v21, %v5122_v22  ;;  %v1419_v58 = vmax.f32 %v1354_v23, %v608_v49  ;;  %v5241_v32 = vmax.f32 %v1958_v63, %v1178_v56 }
 0x133   : > { %v321_v50 = vmax.f32 %v5231_v46, %v5234_v24  ;;  %v1304_v25 = vmax.f32 %v1240_v36, %v608_v49  ;;  %v1653_v2 = vmax.f32 %v1593_v54, %v798_v39  ;;  %v6109_v18 = vld [vmem:[#allocation23_spill] sm:$0xff]  ;;  %v5254_v21 = vld [vmem:[%s2796_s19 + $0x190] sm:$0xff]  ;;  %v5256_v23 = vmax.f32 %v1945_v48, %v608_v49  ;;  %v5268_v39 = vld [vmem:[%s2796_s19 + $0x1f8] sm:$0xff] }
 0x134   : > { %v1944_v51 = vmax.f32 %v1879_v5, %v758_v59  ;;  %v1844_v55 = vmax.f32 %v6109_v18, %v5244_v29  ;;  %v5250_v27 = vld [vmem:[%s2796_s19 + $0x1ee] sm:$0xff]  ;;  %v1483_v63 = vmax.f32 %v1419_v58, %v758_v59  ;;  %v1189_v49 = vld [vmem:[%s2796_s19 + $0x17f] sm:$0xff]  ;;  %v1421_v28 = vmax.f32 %v5214_v34, %v5254_v21 }
 0x135   : > { %v421_v10 = vmax.f32 %v321_v50, %v5035_v8  ;;  %v1179_v56 = vld [vmem:[%s2796_s19 + $0x12f] sm:$0xff]  ;;  %v1355_v36 = vmax.f32 %v1304_v25, %v5231_v46  ;;  %v1153_v8 = vmax.f32 %v1102_v47, %v5250_v27  ;;  %v1704_v54 = vmax.f32 %v1653_v2, %v858_v7 }
 0x136   : > { %v5261_v5 = vld [vmem:[%s2796_s19 + $0x193] sm:$0xff]  ;;  %v2008_v50 = vmax.f32 %v1944_v51, %v858_v7  ;;  %v5276_v25 = vmax.f32 %v1844_v55, %v5254_v21  ;;  %v1543_v58 = vmax.f32 %v1483_v63, %v858_v7  ;;  %v6110_v51 = vmax.f32 %v4976_v35, %v4974_v30  ;;  %v5294_v63 = vld [vmem:[%s2796_s19 + $0x1ea] sm:$0xff] }
 0x137   : > { %v472_v48 = vmax.f32 %v421_v10, %v5244_v29  ;;  %v5273_v59 = vld [vmem:[%s2796_s19 + $0x1ec] sm:$0xff]  ;;  %v1420_v18 = vmax.f32 %v1355_v36, %v5244_v29  ;;  %v1253_v15 = vmax.f32 %v1153_v8, %v1203_v31  ;;  %v1779_v47 = vmax.f32 %v1704_v54, %v1179_v56  ;;  %v5287_v55 = vld [vmem:[%s2796_s19 + $0x1f6] sm:$0xff] }
 0x138   : > { %v2053_v2 = vpack.c.bf16 %v2008_v50, %v6110_v51  ;;  %v6111_v7 = vmax.f32 %v5081_v9, %v5086_v17  ;;  %v5297_v34 = vmax.f32 %v1367_v44, %v5137_v13  ;;  %v1603_v56 = vmax.f32 %v1543_v58, %v1189_v49  ;;  %v1190_v17 = vld [vmem:[%s2796_s19 + $0x187] sm:$0xff]  ;;  %v2738_v54 = vld [vmem:[%s2796_s19 + $0x1b1] sm:$0xff] }
 0x139   : > { %v572_v10 = vmax.f32 %v472_v48, %v5261_v5  ;;  %v1484_v30 = vmax.f32 %v1420_v18, %v5273_v59  ;;  %v1317_v35 = vmax.f32 %v1253_v15, %v5122_v22  ;;  %v1843_v36 = vmax.f32 %v1779_v47, %v5231_v46  ;;  %v6112_v50 = vld [vmem:[#allocation18_spill] sm:$0xff]  ;;  %v6113_v13 = vld [vmem:[#allocation15_spill] sm:$0xff]  ;;  %v5319_v18 = vld [vmem:[%s2796_s19 + $0x191] sm:$0xff] }
 0x13a   : > { %v1358_v31 = vmax.f32 %v6111_v7, %v5268_v39  ;;  %2631 = vmatmul.mubr.msk.bf16.gmra.mrb[16].mxu0 %vm2082_vm2, %v2053_v2  ;;  %v6114_v44 = vmax.f32 %v6112_v50, %v6113_v13  ;;  %v5310_v48 = vld [vmem:[%s2796_s19 + $0x202] sm:$0xff]  ;;  %v1663_v22 = vmax.f32 %v1603_v56, %v5231_v46  ;;  %v1485_v47 = vmax.f32 %v1421_v28, %v5294_v63  ;;  %v2740_v7 = vld [vmem:[%s2796_s19 + $0x1b2] sm:$0xff] }
 0x13b   : > { %v672_v9 = vmax.f32 %v572_v10, %v5050_v6  ;;  %v1544_v15 = vmax.f32 %v1484_v30, %v5287_v55  ;;  %v5315_v58 = vld [vmem:[%s2796_s19 + $0x200] sm:$0xff]  ;;  %v1368_v6 = vmax.f32 %v1317_v35, %v5268_v39  ;;  %2634 = vmatprep.mubr.msk.bf16.mxu0 %vm2752_vm1, %v6001_v41  ;;  %v1894_v51 = vmax.f32 %v1843_v36, %v5234_v24  ;;  %v5330_v56 = vld [vmem:[%s2796_s19 + $0x1f4] sm:$0xff] }
 0x13c   : > { %v1423_v8 = vmax.f32 %v1358_v31, %v1383_v57  ;;  %v1424_v49 = vmax.f32 %v6114_v44, %v2738_v54  ;;  %v2739_v2 = vld [vmem:[%s2796_s19 + $0x19c] sm:$0xff]  ;;  %v1714_v30 = vmax.f32 %v1663_v22, %v5234_v24  ;;  %v993_v44 = vld [vmem:[%s2796_s19 + $0x1ed] sm:$0xff] }
 0x13d   : > { %v723_v46 = vmax.f32 %v672_v9, %v2739_v2  ;;  %v1604_v28 = vmax.f32 %v1544_v15, %v1190_v17  ;;  %v5333_v35 = vmax.f32 %v1368_v6, %v1383_v57  ;;  %v5336_v54 = vld [vmem:[%s2796_s19 + $0x1e2] sm:$0xff]  ;;  %v1959_v9 = vmax.f32 %v1894_v51, %v5244_v29  ;;  %v5346_v17 = vld [vmem:[%s2796_s19 + $0x1f2] sm:$0xff] }
 0x13e   : > { %v1488_v31 = vmax.f32 %v1424_v49, %v2740_v7  ;;  %v1487_v36 = vmax.f32 %v1423_v8, %v5310_v48  ;;  %v2741_v50 = vld [vmem:[%s2796_s19 + $0x19d] sm:$0xff]  ;;  %v1789_v57 = vmax.f32 %v1714_v30, %v5273_v59  ;;  %v1545_v29 = vmax.f32 %v1485_v47, %v5330_v56  ;;  %v509_v6 = vld [vmem:[%s2796_s19 + $0x12b] sm:$0xff] }
 0x13f   : > { %v823_v13 = vmax.f32 %v723_v46, %v2741_v50  ;;  %v1664_v22 = vmax.f32 %v1604_v28, %v5254_v21  ;;  %v5351_v15 = vld [vmem:[%s2796_s19 + $0x201] sm:$0xff]  ;;  %v308_v8 = vmax.f32 %v4864_v16, %v4890_v38  ;;  %v5358_v51 = vmax.f32 %v1959_v9, %v5261_v5 }
 0x140   : > { %v1548_v24 = vmax.f32 %v1488_v31, %v5315_v58  ;;  %v2742_v2 = vld [vmem:[%s2796_s19 + $0x19e] sm:$0xff]  ;;  %v2010_v21 = vmax.f32 %v1946_v60, %v509_v6  ;;  %v1853_v47 = vmax.f32 %v1789_v57, %v993_v44  ;;  %v1666_v5 = vmax.f32 %v5156_v40, %v5346_v17  ;;  %v1191_v60 = vld [vmem:[%s2796_s19 + $0x18f] sm:$0xff] }
 0x141   : > { %v923_v46 = vmax.f32 %v823_v13, %v2742_v2  ;;  %v5367_v31 = vld [vmem:[%s2796_s19 + $0x1fa] sm:$0xff]  ;;  %v1715_v16 = vmax.f32 %v1664_v22, %v5319_v18  ;;  %v1605_v38 = vmax.f32 %v1545_v29, %v308_v8  ;;  %v5373_v30 = vld [vmem:[%s2796_s19 + $0x204] sm:$0xff] }
 0x142   : > { %v1608_v26 = vmax.f32 %v1548_v24, %v5351_v15  ;;  %v2054_v62 = vpack.c.bf16 %v2010_v21, %v5256_v23  ;;  %v1547_v9 = vmax.f32 %v1487_v36, %v5367_v31  ;;  %v1742_v50 = vld [vmem:[%s2796_s19 + $0x1fb] sm:$0xff]  ;;  %v1904_v13 = vmax.f32 %v1853_v47, %v5250_v27  ;;  %v5386_v8 = vld [vmem:[%s2796_s19 + $0x1e3] sm:$0xff]  ;;  %v1740_v24 = vld [vmem:[%s2796_s19 + $0x1eb] sm:$0xff] }
 0x143   : > { %v983_v28 = vmax.f32 %v923_v46, %v5273_v59  ;;  %v1790_v57 = vmax.f32 %v1715_v16, %v5336_v54  ;;  %v1665_v22 = vmax.f32 %v1605_v38, %v509_v6  ;;  %v1717_v40 = vmax.f32 %v1666_v5, %v5367_v31  ;;  %v511_v29 = vld [vmem:[%s2796_s19 + $0x13b] sm:$0xff]  ;;  %v5401_v16 = vld [vmem:[%s2796_s19 + $0x20a] sm:$0xff] }
 0x144   : > { %2635 = vmatmul.mubr.msk.bf16.gmra.mrb[20].mxu0 %vm2082_vm2, %v2054_v62  ;;  %v1806_v36 = vld [vmem:[%s2796_s19 + $0x1fc] sm:$0xff]  ;;  %v1607_v2 = vmax.f32 %v1547_v9, %v5373_v30  ;;  %v310_v6 = vmax.f32 %v5150_v53, %v5181_v37  ;;  %v1969_v46 = vmax.f32 %v1904_v13, %v5336_v54  ;;  %v1741_v53 = vld [vmem:[%s2796_s19 + $0x1f3] sm:$0xff]  ;;  %v2012_v62 = vmax.f32 %v1948_v52, %v511_v29  ;;  %v5410_v9 = vpop.f32.mrb[0].mxu0  ;;  %v1922_v52 = vld [vmem:[%s2796_s19 + $0x205] sm:$0xff] }
 0x145   : > { %v1043_v59 = vmax.f32 %v983_v28, %v993_v44  ;;  %v1854_v21 = vmax.f32 %v1790_v57, %v5294_v63  ;;  %v1716_v44 = vmax.f32 %v1665_v22, %v1191_v60  ;;  %v1792_v47 = vmax.f32 %v1717_v40, %v1742_v50  ;;  %2638 = vmatprep.mubr.msk.bf16.mxu0 %vm2752_vm1, %v6001_v41  ;;  %v1204_v5 = vld [vmem:[%s2796_s19 + $0x1f7] sm:$0xff]  ;;  %v1193_v22 = vld [vmem:[%s2796_s19 + $0x19f] sm:$0xff]  ;;  %v1744_v40 = vld [vmem:[%s2796_s19 + $0x20b] sm:$0xff] }
 0x146   : > { %v1667_v28 = vmax.f32 %v1607_v2, %v310_v6  ;;  %v1668_v60 = vmax.f32 %v1608_v26, %v5310_v48  ;;  %6115 = vst [vmem:[#allocation10_spill] sm:$0xff] %v5410_v9  ;;  %v2033_v50 = vmax.f32 %v1969_v46, %v5386_v8  ;;  %v2616_v2 = vpop.f32.mrb[1].mxu0  ;;  %v1920_v37 = vld [vmem:[%s2796_s19 + $0x1f5] sm:$0xff]  ;;  %v2055_v8 = vpack.c.bf16 %v2012_v62, %v5066_v14  ;;  %v6118_v10 = vld [vmem:[#allocation14_spill] sm:$0xff] }
 0x147   : > { %v1103_v38 = vmax.f32 %v1043_v59, %v5250_v27  ;;  %v1905_v13 = vmax.f32 %v1854_v21, %v1740_v24  ;;  %v1791_v57 = vmax.f32 %v1716_v44, %v5346_v17  ;;  %v1856_v27 = vmax.f32 %v1792_v47, %v1806_v36  ;;  %v1499_v59 = vld [vmem:[%s2796_s19 + $0x208] sm:$0xff]  ;;  %v1500_v6 = vld [vmem:[%s2796_s19 + $0x210] sm:$0xff]  ;;  %v5423_v46 = vpop.f32.mrb[2].mxu0  ;;  %v6117_v2 = vld [vmem:[#allocation6_spill] sm:$0xff] }
 0x148   : > { %v1718_v26 = vmax.f32 %v1667_v28, %v511_v29  ;;  %v1719_v24 = vmax.f32 %v1668_v60, %v5401_v16  ;;  %6116 = vst [vmem:[#allocation17_spill] sm:$0xff] %v5423_v46  ;;  %v1559_v29 = vld [vmem:[%s2796_s19 + $0x209] sm:$0xff]  ;;  %v2617_v14 = vpop.f32.mrb[3].mxu0  ;;  %v1921_v62 = vld [vmem:[%s2796_s19 + $0x1fd] sm:$0xff]  ;;  %v5439_v46 = vld [vmem:[%s2796_s19 + $0x214] sm:$0xff] }
 0x149   : > { %v1154_v43 = vmax.f32 %v1103_v38, %v5287_v55  ;;  %v1970_v21 = vmax.f32 %v1905_v13, %v5330_v56  ;;  %v1855_v44 = vmax.f32 %v1791_v57, %v1741_v53  ;;  %v1907_v47 = vmax.f32 %v1856_v27, %v5373_v30  ;;  %v1743_v55 = vld [vmem:[%s2796_s19 + $0x203] sm:$0xff]  ;;  %v1808_v38 = vld [vmem:[%s2796_s19 + $0x20c] sm:$0xff]  ;;  %v6120_v53 = vld [vmem:[#allocation5_spill] sm:$0xff] }
 0x14a   : > { %v1986_v60 = vld [vmem:[%s2796_s19 + $0x206] sm:$0xff]  ;;  %v1793_v7 = vmax.f32 %v1718_v26, %v1193_v22  ;;  %v1794_v49 = vmax.f32 %v1719_v24, %v1744_v40  ;;  %v1560_v57 = vld [vmem:[%s2796_s19 + $0x211] sm:$0xff]  ;;  %v1985_v26 = vld [vmem:[%s2796_s19 + $0x1fe] sm:$0xff] }
 0x14b   : > { %v1254_v28 = vmax.f32 %v1154_v43, %v1204_v5  ;;  %v6119_v56 = vld [vmem:[#allocation7_spill] sm:$0xff]  ;;  %v2034_v27 = vmax.f32 %v1970_v21, %v1920_v37  ;;  %v1906_v0 = vmax.f32 %v1855_v44, %v1806_v36  ;;  %v1972_v23 = vmax.f32 %v1907_v47, %v1922_v52  ;;  %v6122_v14 = vld [vmem:[#allocation30_spill] sm:$0xff]  ;;  %v6123_v5 = vld [vmem:[#allocation25_spill] sm:$0xff] }
 0x14c   : > { %v6121_v13 = vmax.f32 %v6119_v56, %v6120_v53  ;;  %v6124_v43 = vmax.f32 %v6122_v14, %v6123_v5  ;;  %2639 = vmatmul.mubr.msk.bf16.gmra.mrb[24].mxu0 %vm2082_vm2, %v2055_v8  ;;  %v1857_v40 = vmax.f32 %v1793_v7, %v1743_v55  ;;  %v1620_v36 = vld [vmem:[%s2796_s19 + $0x212] sm:$0xff]  ;;  %v1621_v55 = vld [vmem:[%s2796_s19 + $0x21a] sm:$0xff] }
 0x14d   : > { %v1318_v22 = vmax.f32 %v1254_v28, %v5268_v39  ;;  %v1501_v24 = vld [vmem:[%s2796_s19 + $0x218] sm:$0xff]  ;;  %v2066_v52 = vpack.c.bf16 %v2034_v27, %v2033_v50  ;;  %v1971_v21 = vmax.f32 %v1906_v0, %v1921_v62  ;;  %v2036_v44 = vmax.f32 %v1972_v23, %v1986_v60  ;;  %v1923_v47 = vld [vmem:[%s2796_s19 + $0x20d] sm:$0xff]  ;;  %2642 = vmatprep.mubr.msk.bf16.mxu0 %vm2752_vm1, %v6001_v41  ;;  %v1502_v50 = vld [vmem:[%s2796_s19 + $0x220] sm:$0xff] }
 0x14e   : > { %v1549_v30 = vmax.f32 %v6121_v13, %v1499_v59  ;;  %v1550_v9 = vmax.f32 %v6124_v43, %v1500_v6  ;;  %v1858_v59 = vmax.f32 %v1794_v49, %v1808_v38  ;;  %v1924_v6 = vld [vmem:[%s2796_s19 + $0x215] sm:$0xff]  ;;  %v1908_v49 = vmax.f32 %v1857_v40, %v1808_v38  ;;  %v1562_v40 = vld [vmem:[%s2796_s19 + $0x221] sm:$0xff] }
 0x14f   : > { %v1369_v7 = vmax.f32 %v1318_v22, %v5315_v58  ;;  %v1561_v0 = vld [vmem:[%s2796_s19 + $0x219] sm:$0xff]  ;;  %2683 = vmatmul.mubr.msk.bf16.gmra.mrb[16].mxu1 %vm2082_vm2, %v2066_v52  ;;  %v2035_v23 = vmax.f32 %v1971_v21, %v1985_v26  ;;  %v1987_v28 = vld [vmem:[%s2796_s19 + $0x20e] sm:$0xff] }
 0x150   : > { %v1609_v37 = vmax.f32 %v1549_v30, %v1559_v29  ;;  %v1610_v39 = vmax.f32 %v1550_v9, %v1560_v57  ;;  %v1909_v8 = vmax.f32 %v1858_v59, %v5439_v46  ;;  %v1988_v62 = vld [vmem:[%s2796_s19 + $0x216] sm:$0xff]  ;;  %v6129_v30 = vld [vmem:[#allocation11_spill] sm:$0xff]  ;;  %2686 = vmatprep.mubr.msk.bf16.mxu1 %vm2752_vm1, %v6001_v41  ;;  %v1973_v5 = vmax.f32 %v1908_v49, %v1923_v47 }
 0x151   : > { %v1745_v9 = vld [vmem:[%s2796_s19 + $0x213] sm:$0xff]  ;;  %v5473_v14 = vmax.f32 %v1369_v7, %v5351_v15  ;;  %v1746_v26 = vld [vmem:[%s2796_s19 + $0x21b] sm:$0xff]  ;;  %v2067_v59 = vpack.c.bf16 %v2036_v44, %v2035_v23  ;;  %v1503_v21 = vld [vmem:[%s2796_s19 + $0x228] sm:$0xff] }
 0x152   : > { %v1669_v29 = vmax.f32 %v1609_v37, %v5401_v16  ;;  %v1670_v60 = vmax.f32 %v1610_v39, %v1620_v36  ;;  %v6125_v56 = vld [vmem:[#allocation24_spill] sm:$0xff]  ;;  %v6127_v38 = vld [vmem:[#allocation29_spill] sm:$0xff]  ;;  %v1974_v43 = vmax.f32 %v1909_v8, %v1924_v6  ;;  %v1497_v39 = vmax.f32 %v5333_v35, %v5367_v31  ;;  %v1622_v7 = vld [vmem:[%s2796_s19 + $0x222] sm:$0xff] }
 0x153   : > { %v6126_v58 = vld [vmem:[#allocation16_spill] sm:$0xff]  ;;  %v5485_v47 = vmax.f32 %v1973_v5, %v1987_v28  ;;  %v1810_v44 = vld [vmem:[%s2796_s19 + $0x21c] sm:$0xff]  ;;  %v1498_v28 = vmax.f32 %v5473_v14, %v5310_v48  ;;  %v6138_v31 = vmax.f32 %v5276_v25, %v5319_v18 }
 0x154   : > { %v6128_v53 = vmax.f32 %v6126_v58, %v6127_v38  ;;  %v6130_v16 = vld [vmem:[#allocation4_spill] sm:$0xff]  ;;  %v1720_v22 = vmax.f32 %v1669_v29, %v1620_v36  ;;  %v1721_v37 = vmax.f32 %v1670_v60, %v1621_v55  ;;  %v5487_v6 = vmax.f32 %v1974_v43, %v1988_v62  ;;  %v1505_v23 = vld [vmem:[%s2796_s19 + $0x238] sm:$0xff] }
 0x155   : > { %v6131_v57 = vmax.f32 %v6129_v30, %v6130_v16  ;;  %v1504_v49 = vld [vmem:[%s2796_s19 + $0x230] sm:$0xff]  ;;  %v6133_v60 = vpack.c.bf16 %v6118_v10, %v6117_v2  ;;  %v6134_v58 = vmax.f32 %v4894_v3, %v5140_v33  ;;  %v1925_v16 = vld [vmem:[%s2796_s19 + $0x21d] sm:$0xff]  ;;  %v1926_v3 = vld [vmem:[%s2796_s19 + $0x225] sm:$0xff] }
 0x156   : > { %v5467_v13 = vpack.c.bf16 %v6128_v53, %v6125_v56  ;;  %v1795_v36 = vmax.f32 %v1720_v22, %v1745_v9  ;;  %v2068_v62 = vpack.c.bf16 %v5487_v6, %v5485_v47  ;;  %v1623_v9 = vld [vmem:[%s2796_s19 + $0x22a] sm:$0xff]  ;;  %v1565_v5 = vld [vmem:[%s2796_s19 + $0x239] sm:$0xff] }
 0x157   : > { %v1551_v27 = vmax.f32 %v6131_v57, %v1501_v24  ;;  %v6132_v24 = vmax.f32 %v4634_v4, %v5131_v19  ;;  %v1796_v4 = vmax.f32 %v1721_v37, %v1746_v26  ;;  %v1811_v19 = vld [vmem:[%s2796_s19 + $0x224] sm:$0xff]  ;;  %2643 = vmatmul.mubr.msk.bf16.gmra.mrb[28].mxu0 %vm2082_vm2, %v6133_v60  ;;  %v1553_v38 = vmax.f32 %v6134_v58, %v1503_v21  ;;  %v1564_v53 = vld [vmem:[%s2796_s19 + $0x231] sm:$0xff] }
 0x158   : > { %v1747_v56 = vld [vmem:[%s2796_s19 + $0x223] sm:$0xff]  ;;  %2646 = vmatprep.mubr.msk.bf16.mxu0 %vm2752_vm1, %v6001_v41  ;;  %v6135_v57 = vmax.f32 %v4961_v1, %v5336_v54  ;;  %v1748_v33 = vld [vmem:[%s2796_s19 + $0x22b] sm:$0xff]  ;;  %v6136_v37 = vmax.f32 %v5158_v61, %v5294_v63  ;;  %2687 = vmatmul.mubr.msk.bf16.gmra.mrb[20].mxu1 %vm2082_vm2, %v2067_v59  ;;  %v1625_v63 = vld [vmem:[%s2796_s19 + $0x23a] sm:$0xff]  ;;  %v6137_v59 = vmax.f32 %v5297_v34, %v5346_v17 }
 0x159   : > { %v1552_v15 = vmax.f32 %v6132_v24, %v1502_v50  ;;  %v1611_v52 = vmax.f32 %v1551_v27, %v1561_v0  ;;  %v2058_v50 = vpack.c.bf16 %v4938_v20, %v4918_v11  ;;  %v1563_v0 = vld [vmem:[%s2796_s19 + $0x229] sm:$0xff]  ;;  %v1860_v30 = vmax.f32 %v1796_v4, %v1810_v44  ;;  %v1506_v27 = vld [vmem:[%s2796_s19 + $0x240] sm:$0xff]  ;;  %v1624_v26 = vld [vmem:[%s2796_s19 + $0x232] sm:$0xff]  ;;  %2690 = vmatprep.mubr.msk.bf16.mxu1 %vm2752_vm1, %v6001_v41 }
 0x15a   : > { %v1613_v22 = vmax.f32 %v1553_v38, %v1563_v0  ;;  %v1555_v24 = vmax.f32 %v6136_v37, %v1505_v23  ;;  %v1989_v54 = vld [vmem:[%s2796_s19 + $0x21e] sm:$0xff]  ;;  %v1812_v61 = vld [vmem:[%s2796_s19 + $0x22c] sm:$0xff]  ;;  %v1556_v4 = vmax.f32 %v6137_v59, %v1506_v27  ;;  %v2060_v37 = vpack.c.bf16 %v5241_v32, %v5153_v42 }
 0x15b   : > { %v1612_v8 = vmax.f32 %v1552_v15, %v1562_v40  ;;  %v1671_v29 = vmax.f32 %v1611_v52, %v1621_v55  ;;  %v1859_v55 = vmax.f32 %v1795_v36, %v5439_v46  ;;  %v1554_v46 = vmax.f32 %v6135_v57, %v1504_v49  ;;  %v1566_v36 = vld [vmem:[%s2796_s19 + $0x241] sm:$0xff]  ;;  %v1928_v57 = vld [vmem:[%s2796_s19 + $0x235] sm:$0xff]  ;;  %v5551_v27 = vld [vmem:[%s2796_s19 + $0x24a] sm:$0xff] }
 0x15c   : > { %v2059_v40 = vpack.c.bf16 %v5211_v45, %v5202_v12  ;;  %v1911_v1 = vmax.f32 %v1860_v30, %v1811_v19  ;;  %v1673_v49 = vmax.f32 %v1613_v22, %v1623_v9  ;;  %v1626_v58 = vld [vmem:[%s2796_s19 + $0x242] sm:$0xff]  ;;  %v1616_v17 = vmax.f32 %v1556_v4, %v1566_v36  ;;  %v1992_v36 = vld [vmem:[%s2796_s19 + $0x236] sm:$0xff]  ;;  %v1931_v35 = vld [vmem:[%s2796_s19 + $0x24d] sm:$0xff] }
 0x15d   : > { %v1672_v10 = vmax.f32 %v1612_v8, %v1622_v7  ;;  %v1722_v2 = vmax.f32 %v1671_v29, %v1622_v7  ;;  %v1910_v43 = vmax.f32 %v1859_v55, %v1810_v44  ;;  %v1614_v21 = vmax.f32 %v1554_v46, %v1564_v53  ;;  %v1990_v7 = vld [vmem:[%s2796_s19 + $0x226] sm:$0xff]  ;;  %v1508_v29 = vld [vmem:[%s2796_s19 + $0x250] sm:$0xff]  ;;  %v1750_v34 = vld [vmem:[%s2796_s19 + $0x23b] sm:$0xff] }
 0x15e   : > { %v1615_v8 = vmax.f32 %v1555_v24, %v1565_v5  ;;  %v1976_v0 = vmax.f32 %v1911_v1, %v1926_v3  ;;  %v1813_v53 = vld [vmem:[%s2796_s19 + $0x234] sm:$0xff]  ;;  %v1724_v30 = vmax.f32 %v1673_v49, %v1624_v26  ;;  %v1751_v5 = vld [vmem:[%s2796_s19 + $0x243] sm:$0xff]  ;;  %v1676_v22 = vmax.f32 %v1616_v17, %v1626_v58  ;;  %v5604_v17 = vld [vmem:[%s5822_s2] ss:$0 sm:$0xff] }
 0x15f   : > { %v1723_v15 = vmax.f32 %v1672_v10, %v1623_v9  ;;  %v1797_v52 = vmax.f32 %v1722_v2, %v1747_v56  ;;  %v1975_v44 = vmax.f32 %v1910_v43, %v1925_v16  ;;  %v1674_v55 = vmax.f32 %v1614_v21, %v1624_v26  ;;  %v1749_v56 = vld [vmem:[%s2796_s19 + $0x233] sm:$0xff]  ;;  %2647 = vmatmul.mubr.msk.bf16.gmra.mrb[32].mxu0 %vm2082_vm2, %v5467_v13  ;;  %v1507_v24 = vld [vmem:[%s2796_s19 + $0x248] sm:$0xff]  ;;  %v1730_v49 = vld [vmem:[%s2796_s19 + $0x19b] sm:$0xff] }
 0x160   : > { %v1927_v9 = vld [vmem:[%s2796_s19 + $0x22d] sm:$0xff]  ;;  %v1675_v16 = vmax.f32 %v1615_v8, %v1625_v63  ;;  %v5547_v10 = vmax.f32 %v1976_v0, %v1990_v7  ;;  %v1799_v3 = vmax.f32 %v1724_v30, %v1749_v56  ;;  %2650 = vmatprep.mubr.msk.bf16.mxu0 %vm2752_vm1, %v6001_v41  ;;  %v1558_v21 = vmax.f32 %v1498_v28, %v1508_v29  ;;  %v1929_v14 = vld [vmem:[%s2796_s19 + $0x23d] sm:$0xff]  ;;  %v1930_v6 = vld [vmem:[%s2796_s19 + $0x245] sm:$0xff] }
 0x161   : > { %v1798_v23 = vmax.f32 %v1723_v15, %v1748_v33  ;;  %v1861_v60 = vmax.f32 %v1797_v52, %v1811_v19  ;;  %v5542_v38 = vmax.f32 %v1975_v44, %v1989_v54  ;;  %v1725_v46 = vmax.f32 %v1674_v55, %v1625_v63  ;;  %v1991_v43 = vld [vmem:[%s2796_s19 + $0x22e] sm:$0xff]  ;;  %v1814_v33 = vld [vmem:[%s2796_s19 + $0x23c] sm:$0xff]  ;;  %v1815_v44 = vld [vmem:[%s2796_s19 + $0x244] sm:$0xff]  ;;  %2691 = vmatmul.mubr.msk.bf16.gmra.mrb[24].mxu1 %vm2082_vm2, %v2068_v62 }
 0x162   : > { %v1726_v26 = vmax.f32 %v1675_v16, %v1626_v58  ;;  %v1752_v52 = vld [vmem:[%s2796_s19 + $0x24b] sm:$0xff]  ;;  %v1863_v7 = vmax.f32 %v1799_v3, %v1813_v53  ;;  %v1557_v8 = vmax.f32 %v1497_v39, %v1507_v24  ;;  %2694 = vmatprep.mubr.msk.bf16.mxu1 %vm2752_vm1, %v6001_v41  ;;  %v1993_v56 = vld [vmem:[%s2796_s19 + $0x23e] sm:$0xff]  ;;  %v5591_v58 = vld [vmem:[%s2796_s19 + $0x254] sm:$0xff]  ;;  %v5597_v39 = vmax.f32 %v6138_v31, %v1730_v49 }
 0x163   : > { %v1862_v2 = vmax.f32 %v1798_v23, %v1812_v61  ;;  %v1912_v19 = vmax.f32 %v1861_v60, %v1812_v61  ;;  %v2069_v1 = vpack.c.bf16 %v5547_v10, %v5542_v38  ;;  %v1800_v13 = vmax.f32 %v1725_v46, %v1750_v34  ;;  %v1816_v28 = vld [vmem:[%s2796_s19 + $0x24c] sm:$0xff]  ;;  %v6140_v11 = vld [vmem:[#allocation17_spill] sm:$0xff]  ;;  %v1869_v12 = vld [vmem:[%s2796_s19 + $0x264] sm:$0xff] }
 0x164   : > { %v1727_v61 = vmax.f32 %v1676_v22, %v5551_v27  ;;  %v1801_v63 = vmax.f32 %v1726_v26, %v1751_v5  ;;  %v1568_v29 = vld [vmem:[%s2796_s19 + $0x251] sm:$0xff]  ;;  %v1914_v47 = vmax.f32 %v1863_v7, %v1814_v33  ;;  %v1567_v23 = vld [vmem:[%s2796_s19 + $0x249] sm:$0xff]  ;;  %v6139_v22 = vld [vmem:[#allocation10_spill] sm:$0xff]  ;;  %v2200_v20 = vadd.f32 %v5604_v17, %v6140_v11 }
 0x165   : > { %v1913_v54 = vmax.f32 %v1862_v2, %v1813_v53  ;;  %v1977_v15 = vmax.f32 %v1912_v19, %v1927_v9  ;;  %v1864_v48 = vmax.f32 %v1800_v13, %v1814_v33  ;;  %v1994_v53 = vld [vmem:[%s2796_s19 + $0x246] sm:$0xff]  ;;  %v1618_v34 = vmax.f32 %v1558_v21, %v1568_v29  ;;  %v1932_v2 = vld [vmem:[%s2796_s19 + $0x255] sm:$0xff] }
 0x166   : > { %v1802_v62 = vmax.f32 %v1727_v61, %v1752_v52  ;;  %v1865_v0 = vmax.f32 %v1801_v63, %v1815_v44  ;;  %v1979_v38 = vmax.f32 %v1914_v47, %v1929_v14  ;;  %v1995_v25 = vld [vmem:[%s2796_s19 + $0x24e] sm:$0xff]  ;;  %v1617_v18 = vmax.f32 %v1557_v8, %v1567_v23  ;;  %v1996_v33 = vld [vmem:[%s2796_s19 + $0x256] sm:$0xff] }
 0x167   : > { %v1978_v59 = vmax.f32 %v1913_v54, %v1928_v57  ;;  %v5577_v4 = vmax.f32 %v1977_v15, %v1991_v43  ;;  %v1915_v55 = vmax.f32 %v1864_v48, %v1815_v44  ;;  %v2061_v19 = vpack.c.bf16 %v5597_v39, %v5358_v51  ;;  %2651 = vmatmul.mubr.msk.bf16.gmra.mrb[36].mxu0 %vm2082_vm2, %v2058_v50  ;;  %v1628_v43 = vld [vmem:[%s2796_s19 + $0x252] sm:$0xff]  ;;  %v1754_v63 = vld [vmem:[%s2796_s19 + $0x25b] sm:$0xff] }
 0x168   : > { %v1866_v9 = vmax.f32 %v1802_v62, %v1816_v28  ;;  %v1916_v30 = vmax.f32 %v1865_v0, %v1816_v28  ;;  %v2043_v57 = vmax.f32 %v1979_v38, %v1993_v56  ;;  %2654 = vmatprep.mubr.msk.bf16.mxu0 %vm2752_vm1, %v6001_v41  ;;  %v2197_v26 = vadd.f32 %v5604_v17, %v6139_v22  ;;  %v1934_v62 = vld [vmem:[%s2796_s19 + $0x265] sm:$0xff] }
 0x169   : > { %v2042_v60 = vmax.f32 %v1978_v59, %v1992_v36  ;;  %v1980_v10 = vmax.f32 %v1915_v55, %v1930_v6  ;;  %2695 = vmatmul.mubr.msk.bf16.gmra.mrb[28].mxu1 %vm2082_vm2, %v2069_v1  ;;  %v1677_v15 = vmax.f32 %v1617_v18, %v5551_v27  ;;  %v1678_v13 = vmax.f32 %v1618_v34, %v1628_v43  ;;  %v1679_v36 = vld [vmem:[%s2796_s19 + $0x25a] sm:$0xff]  ;;  %v1998_v56 = vld [vmem:[%s2796_s19 + $0x266] sm:$0xff] }
 0x16a   : > { %v1917_v46 = vmax.f32 %v1866_v9, %v5591_v58  ;;  %v1981_v5 = vmax.f32 %v1916_v30, %v1931_v35  ;;  %v2395_v52 = vmax.f32 %v2197_v26, 0.0  ;;  %2698 = vmatprep.mubr.msk.bf16.mxu1 %vm2752_vm1, %v6001_v41  ;;  %v2396_v44 = vmax.f32 %v2200_v20, 0.0  ;;  %v1753_v27 = vld [vmem:[%s2796_s19 + $0x253] sm:$0xff]  ;;  %v1933_v6 = vld [vmem:[%s2796_s19 + $0x25d] sm:$0xff] }
 0x16b   : > { %v2070_v16 = vpack.c.bf16 %v2042_v60, %v5577_v4  ;;  %v2044_v3 = vmax.f32 %v1980_v10, %v1994_v53  ;;  %v1728_v1 = vmax.f32 %v1677_v15, %v1628_v43  ;;  %v1729_v61 = vmax.f32 %v1678_v13, %v1679_v36  ;;  %v1818_v4 = vld [vmem:[%s2796_s19 + $0x25c] sm:$0xff] }
 0x16c   : > { %v1982_v24 = vmax.f32 %v1917_v46, %v1932_v2  ;;  %v2045_v54 = vmax.f32 %v1981_v5, %v1995_v25  ;;  %2446 = vst.msk [vmem:[%s5625_s25] sm:$0xff] %vm2445_vm3, %v2395_v52  ;;  %2447 = vst.msk [vmem:[%s5625_s25 + $0x8] sm:$0xff] %vm2445_vm3, %v2396_v44  ;;  %v1997_v55 = vld [vmem:[%s2796_s19 + $0x25e] sm:$0xff] }
 0x16d   : > { %v2071_v50 = vpack.c.bf16 %v2044_v3, %v2043_v57  ;;  %v1803_v49 = vmax.f32 %v1728_v1, %v1753_v27  ;;  %v1804_v59 = vmax.f32 %v1729_v61, %v1754_v63 }
 0x16e   : > { %v2046_v21 = vmax.f32 %v1982_v24, %v1996_v33 }
 0x16f   : > { %2655 = vmatmul.mubr.msk.bf16.gmra.mrb[40].mxu0 %vm2082_vm2, %v2059_v40  ;;  %v1867_v48 = vmax.f32 %v1803_v49, %v5591_v58  ;;  %v1868_v14 = vmax.f32 %v1804_v59, %v1818_v4 }
 0x170   : > { %v2072_v7 = vpack.c.bf16 %v2046_v21, %v2045_v54  ;;  %2658 = vmatprep.mubr.msk.bf16.mxu0 %vm2752_vm1, %v6001_v41  ;;  %v2300_v45 = vpop.f32.mrb[0].mxu1 }
 0x171   : > { %2699 = vmatmul.mubr.msk.bf16.gmra.mrb[32].mxu1 %vm2082_vm2, %v2070_v16  ;;  %v2301_v40 = vadd.f32 %v5604_v17, %v2300_v45  ;;  %v2668_v28 = vpop.f32.mrb[1].mxu1  ;;  %v1918_v29 = vmax.f32 %v1867_v48, %v1818_v4  ;;  %v1919_v42 = vmax.f32 %v1868_v14, %v1869_v12 }
 0x172   : > { %2702 = vmatprep.mubr.msk.bf16.mxu1 %vm2752_vm1, %v6001_v41  ;;  %v2303_v8 = vpop.f32.mrb[2].mxu1 }
 0x173   : > { %v2421_v32 = vmax.f32 %v2301_v40, 0.0  ;;  %v2669_v47 = vpop.f32.mrb[3].mxu1  ;;  %v1983_v23 = vmax.f32 %v1918_v29, %v1933_v6  ;;  %v1984_v60 = vmax.f32 %v1919_v42, %v1934_v62 }
 0x175   : > { %2472 = vst.msk [vmem:[%s5625_s25 + $0xd0] sm:$0xff] %vm2445_vm3, %v2421_v32  ;;  %v2047_v58 = vmax.f32 %v1983_v23, %v1997_v55  ;;  %v2048_v35 = vmax.f32 %v1984_v60, %v1998_v56 }
 0x177   : > { %2659 = vmatmul.mubr.msk.bf16.gmra.mrb[44].mxu0 %vm2082_vm2, %v2060_v37  ;;  %v2304_v37 = vadd.f32 %v5604_v17, %v2303_v8  ;;  %v2073_v31 = vpack.c.bf16 %v2048_v35, %v2047_v58 }
 0x178   : > { %2662 = vmatprep.mubr.msk.bf16.mxu0 %vm2752_vm1, %v6001_v41 }
 0x179   : > { %2703 = vmatmul.mubr.msk.bf16.gmra.mrb[36].mxu1 %vm2082_vm2, %v2071_v50  ;;  %v2422_v0 = vmax.f32 %v2304_v37, 0.0 }
 0x17a   : > { %2706 = vmatprep.mubr.msk.bf16.mxu1 %vm2752_vm1, %v6001_v41 }
 0x17b   : > { %2473 = vst.msk [vmem:[%s5625_s25 + $0xd8] sm:$0xff] %vm2445_vm3, %v2422_v0 }
 0x17f   : > { %2663 = vmatmul.mubr.msk.bf16.gmra.mrb[48].mxu0 %vm2082_vm2, %v2061_v19 }
 0x181   : > { %2707 = vmatmul.mubr.msk.bf16.gmra.mrb[40].mxu1 %vm2082_vm2, %v2072_v7 }
 0x182   : > { %2710 = vmatprep.mubr.msk.bf16.mxu1 %vm2752_vm1, %v6001_v41 }
 0x189   : > { %2711 = vmatmul.mubr.msk.bf16.gmra.mrb[44].mxu1 %vm2082_vm2, %v2073_v31 }
 0x18b   : > { %v2204_v38 = vpop.f32.mrb[4].mxu0 }
 0x18c   : > { %v2205_v53 = vadd.f32 %v5604_v17, %v2204_v38  ;;  %v2620_v9 = vpop.f32.mrb[5].mxu0 }
 0x18d   : > { %v2207_v30 = vpop.f32.mrb[6].mxu0 }
 0x18e   : > { %v2397_v51 = vmax.f32 %v2205_v53, 0.0  ;;  %v2208_v39 = vadd.f32 %v5604_v17, %v2207_v30  ;;  %v2621_v34 = vpop.f32.mrb[7].mxu0 }
 0x190   : > { %2448 = vst.msk [vmem:[%s5625_s25 + $0x10] sm:$0xff] %vm2445_vm3, %v2397_v51  ;;  %v2398_v16 = vmax.f32 %v2208_v39, 0.0 }
 0x192   : > { %2449 = vst.msk [vmem:[%s5625_s25 + $0x18] sm:$0xff] %vm2445_vm3, %v2398_v16 }
 0x1b0   : > { %v2308_v41 = vpop.f32.mrb[4].mxu1 }
 0x1b1   : > { %v2309_v10 = vadd.f32 %v5604_v17, %v2308_v41  ;;  %v2672_v2 = vpop.f32.mrb[5].mxu1 }
 0x1b2   : > { %v2311_v25 = vpop.f32.mrb[6].mxu1 }
 0x1b3   : > { %v2423_v18 = vmax.f32 %v2309_v10, 0.0  ;;  %v2312_v19 = vadd.f32 %v5604_v17, %v2311_v25  ;;  %v2673_v57 = vpop.f32.mrb[7].mxu1 }
 0x1b5   : > { %2474 = vst.msk [vmem:[%s5625_s25 + $0xe0] sm:$0xff] %vm2445_vm3, %v2423_v18  ;;  %v2424_v46 = vmax.f32 %v2312_v19, 0.0 }
 0x1b7   : > { %2475 = vst.msk [vmem:[%s5625_s25 + $0xe8] sm:$0xff] %vm2445_vm3, %v2424_v46 }
 0x1b9   : > { %v2212_v5 = vpop.f32.mrb[8].mxu0 }
 0x1ba   : > { %v2213_v43 = vadd.f32 %v5604_v17, %v2212_v5  ;;  %v2624_v3 = vpop.f32.mrb[9].mxu0 }
 0x1bb   : > { %v2215_v33 = vpop.f32.mrb[10].mxu0 }
 0x1bc   : > { %v2399_v22 = vmax.f32 %v2213_v43, 0.0  ;;  %v2216_v26 = vadd.f32 %v5604_v17, %v2215_v33  ;;  %v2625_v24 = vpop.f32.mrb[11].mxu0 }
 0x1be   : > { %2450 = vst.msk [vmem:[%s5625_s25 + $0x20] sm:$0xff] %vm2445_vm3, %v2399_v22  ;;  %v2400_v54 = vmax.f32 %v2216_v26, 0.0 }
 0x1c0   : > { %2451 = vst.msk [vmem:[%s5625_s25 + $0x28] sm:$0xff] %vm2445_vm3, %v2400_v54 }
 0x1d1   : > { %v2316_v11 = vpop.f32.mrb[8].mxu1 }
 0x1d2   : > { %v2317_v20 = vadd.f32 %v5604_v17, %v2316_v11  ;;  %v2676_v50 = vpop.f32.mrb[9].mxu1 }
 0x1d3   : > { %v2319_v15 = vpop.f32.mrb[10].mxu1 }
 0x1d4   : > { %v2425_v13 = vmax.f32 %v2317_v20, 0.0  ;;  %v2320_v52 = vadd.f32 %v5604_v17, %v2319_v15  ;;  %v2677_v21 = vpop.f32.mrb[11].mxu1 }
 0x1d6   : > { %2476 = vst.msk [vmem:[%s5625_s25 + $0xf0] sm:$0xff] %vm2445_vm3, %v2425_v13  ;;  %v2426_v36 = vmax.f32 %v2320_v52, 0.0 }
 0x1d8   : > { %2477 = vst.msk [vmem:[%s5625_s25 + $0xf8] sm:$0xff] %vm2445_vm3, %v2426_v36 }
 0x1e5   : > { %v2220_v44 = vpop.f32.mrb[12].mxu0 }
 0x1e6   : > { %v2221_v7 = vadd.f32 %v5604_v17, %v2220_v44  ;;  %v2628_v1 = vpop.f32.mrb[13].mxu0 }
 0x1e7   : > { %v2223_v61 = vpop.f32.mrb[14].mxu0 }
 0x1e8   : > { %v2401_v27 = vmax.f32 %v2221_v7, 0.0  ;;  %v2224_v63 = vadd.f32 %v5604_v17, %v2223_v61  ;;  %v2629_v49 = vpop.f32.mrb[15].mxu0 }
 0x1ea   : > { %2452 = vst.msk [vmem:[%s5625_s25 + $0x30] sm:$0xff] %vm2445_vm3, %v2401_v27  ;;  %v2402_v59 = vmax.f32 %v2224_v63, 0.0 }
 0x1ec   : > { %2453 = vst.msk [vmem:[%s5625_s25 + $0x38] sm:$0xff] %vm2445_vm3, %v2402_v59 }
 0x201   : > { %v2324_v4 = vpop.f32.mrb[12].mxu1 }
 0x202   : > { %v2325_v48 = vadd.f32 %v5604_v17, %v2324_v4  ;;  %v2680_v14 = vpop.f32.mrb[13].mxu1 }
 0x203   : > { %v2327_v12 = vpop.f32.mrb[14].mxu1 }
 0x204   : > { %v2427_v45 = vmax.f32 %v2325_v48, 0.0  ;;  %v2328_v40 = vadd.f32 %v5604_v17, %v2327_v12  ;;  %v2681_v28 = vpop.f32.mrb[15].mxu1 }
 0x206   : > { %2478 = vst.msk [vmem:[%s5625_s25 + $0x100] sm:$0xff] %vm2445_vm3, %v2427_v45  ;;  %v2428_v8 = vmax.f32 %v2328_v40, 0.0 }
 0x208   : > { %2479 = vst.msk [vmem:[%s5625_s25 + $0x108] sm:$0xff] %vm2445_vm3, %v2428_v8 }
 0x20d   : > { %v2228_v29 = vpop.f32.mrb[16].mxu0 }
 0x20e   : > { %v2229_v42 = vadd.f32 %v5604_v17, %v2228_v29  ;;  %v2632_v32 = vpop.f32.mrb[17].mxu0 }
 0x20f   : > { %v2231_v37 = vpop.f32.mrb[18].mxu0 }
 0x210   : > { %v2403_v47 = vmax.f32 %v2229_v42, 0.0  ;;  %v2232_v6 = vadd.f32 %v5604_v17, %v2231_v37  ;;  %v2633_v62 = vpop.f32.mrb[19].mxu0 }
 0x212   : > { %2454 = vst.msk [vmem:[%s5625_s25 + $0x40] sm:$0xff] %vm2445_vm3, %v2403_v47  ;;  %v2404_v0 = vmax.f32 %v2232_v6, 0.0 }
 0x214   : > { %2455 = vst.msk [vmem:[%s5625_s25 + $0x48] sm:$0xff] %vm2445_vm3, %v2404_v0 }
 0x217   : > { %v2236_v23 = vpop.f32.mrb[20].mxu0 }
 0x218   : > { %v2237_v60 = vadd.f32 %v5604_v17, %v2236_v23  ;;  %v2636_v55 = vpop.f32.mrb[21].mxu0 }
 0x219   : > { %v2239_v56 = vpop.f32.mrb[22].mxu0 }
 0x21a   : > { %v2405_v58 = vmax.f32 %v2237_v60, 0.0  ;;  %v2240_v35 = vadd.f32 %v5604_v17, %v2239_v56  ;;  %v2637_v31 = vpop.f32.mrb[23].mxu0 }
 0x21c   : > { %2456 = vst.msk [vmem:[%s5625_s25 + $0x50] sm:$0xff] %vm2445_vm3, %v2405_v58  ;;  %v2406_v38 = vmax.f32 %v2240_v35, 0.0 }
 0x21e   : > { %2457 = vst.msk [vmem:[%s5625_s25 + $0x58] sm:$0xff] %vm2445_vm3, %v2406_v38 }
 0x21f   : > { %v2244_v53 = vpop.f32.mrb[24].mxu0 }
 0x220   : > { %v2245_v9 = vadd.f32 %v5604_v17, %v2244_v53  ;;  %v2640_v30 = vpop.f32.mrb[25].mxu0 }
 0x221   : > { %v2247_v51 = vpop.f32.mrb[26].mxu0 }
 0x222   : > { %v2332_v39 = vpop.f32.mrb[16].mxu1  ;;  %v2407_v34 = vmax.f32 %v2245_v9, 0.0  ;;  %v2248_v16 = vadd.f32 %v5604_v17, %v2247_v51  ;;  %v2641_v41 = vpop.f32.mrb[27].mxu0 }
 0x223   : > { %v2333_v10 = vadd.f32 %v5604_v17, %v2332_v39  ;;  %v2684_v2 = vpop.f32.mrb[17].mxu1 }
 0x224   : > { %v2335_v25 = vpop.f32.mrb[18].mxu1  ;;  %2458 = vst.msk [vmem:[%s5625_s25 + $0x60] sm:$0xff] %vm2445_vm3, %v2407_v34  ;;  %v2408_v18 = vmax.f32 %v2248_v16, 0.0 }
 0x225   : > { %v2429_v19 = vmax.f32 %v2333_v10, 0.0  ;;  %v2336_v57 = vadd.f32 %v5604_v17, %v2335_v25  ;;  %v2685_v46 = vpop.f32.mrb[19].mxu1 }
 0x226   : > { %2459 = vst.msk [vmem:[%s5625_s25 + $0x68] sm:$0xff] %vm2445_vm3, %v2408_v18 }
 0x227   : > { %2480 = vst.msk [vmem:[%s5625_s25 + $0x110] sm:$0xff] %vm2445_vm3, %v2429_v19  ;;  %v2430_v5 = vmax.f32 %v2336_v57, 0.0 }
 0x229   : > { %2481 = vst.msk [vmem:[%s5625_s25 + $0x118] sm:$0xff] %vm2445_vm3, %v2430_v5 }
 0x22a   : > { %v2252_v43 = vpop.f32.mrb[28].mxu0 }
 0x22b   : > { %v2253_v3 = vadd.f32 %v5604_v17, %v2252_v43  ;;  %v2644_v33 = vpop.f32.mrb[29].mxu0  ;;  %v2340_v26 = vpop.f32.mrb[20].mxu1 }
 0x22c   : > { %v2255_v22 = vpop.f32.mrb[30].mxu0  ;;  %v2341_v20 = vadd.f32 %v5604_v17, %v2340_v26  ;;  %v2688_v50 = vpop.f32.mrb[21].mxu1 }
 0x22d   : > { %v2409_v24 = vmax.f32 %v2253_v3, 0.0  ;;  %v2256_v54 = vadd.f32 %v5604_v17, %v2255_v22  ;;  %v2645_v11 = vpop.f32.mrb[31].mxu0  ;;  %v2343_v15 = vpop.f32.mrb[22].mxu1 }
 0x22e   : > { %v2431_v52 = vmax.f32 %v2341_v20, 0.0  ;;  %v2344_v21 = vadd.f32 %v5604_v17, %v2343_v15  ;;  %v2689_v36 = vpop.f32.mrb[23].mxu1 }
 0x22f   : > { %2460 = vst.msk [vmem:[%s5625_s25 + $0x70] sm:$0xff] %vm2445_vm3, %v2409_v24  ;;  %v2410_v13 = vmax.f32 %v2256_v54, 0.0 }
 0x230   : > { %2482 = vst.msk [vmem:[%s5625_s25 + $0x120] sm:$0xff] %vm2445_vm3, %v2431_v52  ;;  %v2432_v44 = vmax.f32 %v2344_v21, 0.0 }
 0x231   : > { %2461 = vst.msk [vmem:[%s5625_s25 + $0x78] sm:$0xff] %vm2445_vm3, %v2410_v13 }
 0x232   : > { %v2260_v7 = vpop.f32.mrb[32].mxu0  ;;  %2483 = vst.msk [vmem:[%s5625_s25 + $0x128] sm:$0xff] %vm2445_vm3, %v2432_v44 }
 0x233   : > { %v2261_v1 = vadd.f32 %v5604_v17, %v2260_v7  ;;  %v2648_v61 = vpop.f32.mrb[33].mxu0 }
 0x234   : > { %v2263_v27 = vpop.f32.mrb[34].mxu0  ;;  %v2348_v63 = vpop.f32.mrb[24].mxu1 }
 0x235   : > { %v2411_v49 = vmax.f32 %v2261_v1, 0.0  ;;  %v2264_v59 = vadd.f32 %v5604_v17, %v2263_v27  ;;  %v2649_v4 = vpop.f32.mrb[35].mxu0  ;;  %v2349_v48 = vadd.f32 %v5604_v17, %v2348_v63  ;;  %v2692_v14 = vpop.f32.mrb[25].mxu1 }
 0x236   : > { %v2351_v12 = vpop.f32.mrb[26].mxu1 }
 0x237   : > { %2462 = vst.msk [vmem:[%s5625_s25 + $0x80] sm:$0xff] %vm2445_vm3, %v2411_v49  ;;  %v2412_v45 = vmax.f32 %v2264_v59, 0.0  ;;  %v2433_v40 = vmax.f32 %v2349_v48, 0.0  ;;  %v2352_v28 = vadd.f32 %v5604_v17, %v2351_v12  ;;  %v2693_v8 = vpop.f32.mrb[27].mxu1 }
 0x239   : > { %2463 = vst.msk [vmem:[%s5625_s25 + $0x88] sm:$0xff] %vm2445_vm3, %v2412_v45  ;;  %2484 = vst.msk [vmem:[%s5625_s25 + $0x130] sm:$0xff] %vm2445_vm3, %v2433_v40  ;;  %v2434_v29 = vmax.f32 %v2352_v28, 0.0 }
 0x23a   : > { %v2268_v42 = vpop.f32.mrb[36].mxu0 }
 0x23b   : > { %v2269_v32 = vadd.f32 %v5604_v17, %v2268_v42  ;;  %v2652_v37 = vpop.f32.mrb[37].mxu0  ;;  %2485 = vst.msk [vmem:[%s5625_s25 + $0x138] sm:$0xff] %vm2445_vm3, %v2434_v29 }
 0x23c   : > { %v2271_v47 = vpop.f32.mrb[38].mxu0  ;;  %v2356_v6 = vpop.f32.mrb[28].mxu1 }
 0x23d   : > { %v2413_v62 = vmax.f32 %v2269_v32, 0.0  ;;  %v2272_v0 = vadd.f32 %v5604_v17, %v2271_v47  ;;  %v2653_v23 = vpop.f32.mrb[39].mxu0  ;;  %v2357_v60 = vadd.f32 %v5604_v17, %v2356_v6  ;;  %v2696_v55 = vpop.f32.mrb[29].mxu1 }
 0x23e   : > { %v2359_v56 = vpop.f32.mrb[30].mxu1 }
 0x23f   : > { %2464 = vst.msk [vmem:[%s5625_s25 + $0x90] sm:$0xff] %vm2445_vm3, %v2413_v62  ;;  %v2414_v58 = vmax.f32 %v2272_v0, 0.0  ;;  %v2435_v35 = vmax.f32 %v2357_v60, 0.0  ;;  %v2360_v31 = vadd.f32 %v5604_v17, %v2359_v56  ;;  %v2697_v38 = vpop.f32.mrb[31].mxu1 }
 0x241   : > { %2465 = vst.msk [vmem:[%s5625_s25 + $0x98] sm:$0xff] %vm2445_vm3, %v2414_v58  ;;  %2486 = vst.msk [vmem:[%s5625_s25 + $0x140] sm:$0xff] %vm2445_vm3, %v2435_v35  ;;  %v2436_v53 = vmax.f32 %v2360_v31, 0.0 }
 0x242   : > { %v2276_v9 = vpop.f32.mrb[40].mxu0 }
 0x243   : > { %v2277_v30 = vadd.f32 %v5604_v17, %v2276_v9  ;;  %v2656_v51 = vpop.f32.mrb[41].mxu0  ;;  %2487 = vst.msk [vmem:[%s5625_s25 + $0x148] sm:$0xff] %vm2445_vm3, %v2436_v53 }
 0x244   : > { %v2279_v39 = vpop.f32.mrb[42].mxu0  ;;  %v2364_v34 = vpop.f32.mrb[32].mxu1 }
 0x245   : > { %v2415_v16 = vmax.f32 %v2277_v30, 0.0  ;;  %v2280_v41 = vadd.f32 %v5604_v17, %v2279_v39  ;;  %v2657_v10 = vpop.f32.mrb[43].mxu0  ;;  %v2365_v2 = vadd.f32 %v5604_v17, %v2364_v34  ;;  %v2700_v25 = vpop.f32.mrb[33].mxu1 }
 0x246   : > { %v2367_v18 = vpop.f32.mrb[34].mxu1 }
 0x247   : > { %2466 = vst.msk [vmem:[%s5625_s25 + $0xa0] sm:$0xff] %vm2445_vm3, %v2415_v16  ;;  %v2416_v19 = vmax.f32 %v2280_v41, 0.0  ;;  %v2437_v57 = vmax.f32 %v2365_v2, 0.0  ;;  %v2368_v46 = vadd.f32 %v5604_v17, %v2367_v18  ;;  %v2701_v5 = vpop.f32.mrb[35].mxu1 }
 0x249   : > { %2467 = vst.msk [vmem:[%s5625_s25 + $0xa8] sm:$0xff] %vm2445_vm3, %v2416_v19  ;;  %2488 = vst.msk [vmem:[%s5625_s25 + $0x150] sm:$0xff] %vm2445_vm3, %v2437_v57  ;;  %v2438_v43 = vmax.f32 %v2368_v46, 0.0 }
 0x24a   : > { %v2284_v3 = vpop.f32.mrb[44].mxu0 }
 0x24b   : > { %v2285_v33 = vadd.f32 %v5604_v17, %v2284_v3  ;;  %v2660_v22 = vpop.f32.mrb[45].mxu0  ;;  %2489 = vst.msk [vmem:[%s5625_s25 + $0x158] sm:$0xff] %vm2445_vm3, %v2438_v43 }
 0x24c   : > { %v2287_v26 = vpop.f32.mrb[46].mxu0  ;;  %v2372_v24 = vpop.f32.mrb[36].mxu1 }
 0x24d   : > { %v2417_v54 = vmax.f32 %v2285_v33, 0.0  ;;  %v2288_v11 = vadd.f32 %v5604_v17, %v2287_v26  ;;  %v2661_v20 = vpop.f32.mrb[47].mxu0  ;;  %v2373_v50 = vadd.f32 %v5604_v17, %v2372_v24  ;;  %v2704_v15 = vpop.f32.mrb[37].mxu1 }
 0x24e   : > { %v2375_v13 = vpop.f32.mrb[38].mxu1 }
 0x24f   : > { %2468 = vst.msk [vmem:[%s5625_s25 + $0xb0] sm:$0xff] %vm2445_vm3, %v2417_v54  ;;  %v2418_v52 = vmax.f32 %v2288_v11, 0.0  ;;  %v2439_v21 = vmax.f32 %v2373_v50, 0.0  ;;  %v2376_v36 = vadd.f32 %v5604_v17, %v2375_v13  ;;  %v2705_v44 = vpop.f32.mrb[39].mxu1 }
 0x251   : > { %2469 = vst.msk [vmem:[%s5625_s25 + $0xb8] sm:$0xff] %vm2445_vm3, %v2418_v52  ;;  %2490 = vst.msk [vmem:[%s5625_s25 + $0x160] sm:$0xff] %vm2445_vm3, %v2439_v21  ;;  %v2440_v7 = vmax.f32 %v2376_v36, 0.0 }
 0x252   : > { %v2292_v1 = vpop.f32.mrb[48].mxu0 }
 0x253   : > { %v2293_v61 = vadd.f32 %v5604_v17, %v2292_v1  ;;  %v2664_v27 = vpop.f32.mrb[49].mxu0  ;;  %2491 = vst.msk [vmem:[%s5625_s25 + $0x168] sm:$0xff] %vm2445_vm3, %v2440_v7 }
 0x254   : > { %v2295_v63 = vpop.f32.mrb[50].mxu0  ;;  %v2380_v49 = vpop.f32.mrb[40].mxu1 }
 0x255   : > { %v2419_v59 = vmax.f32 %v2293_v61, 0.0  ;;  %v2296_v4 = vadd.f32 %v5604_v17, %v2295_v63  ;;  %v2665_v48 = vpop.f32.mrb[51].mxu0  ;;  %v2381_v14 = vadd.f32 %v5604_v17, %v2380_v49  ;;  %v2708_v12 = vpop.f32.mrb[41].mxu1 }
 0x256   : > { %v2383_v45 = vpop.f32.mrb[42].mxu1 }
 0x257   : > { %2470 = vst.msk [vmem:[%s5625_s25 + $0xc0] sm:$0xff] %vm2445_vm3, %v2419_v59  ;;  %v2420_v40 = vmax.f32 %v2296_v4, 0.0  ;;  %v2441_v28 = vmax.f32 %v2381_v14, 0.0  ;;  %v2384_v8 = vadd.f32 %v5604_v17, %v2383_v45  ;;  %v2709_v29 = vpop.f32.mrb[43].mxu1 }
 0x259   : > { %2471 = vst.msk [vmem:[%s5625_s25 + $0xc8] sm:$0xff] %vm2445_vm3, %v2420_v40  ;;  %2492 = vst.msk [vmem:[%s5625_s25 + $0x170] sm:$0xff] %vm2445_vm3, %v2441_v28  ;;  %v2442_v42 = vmax.f32 %v2384_v8, 0.0 }
 0x25b   : > { %2493 = vst.msk [vmem:[%s5625_s25 + $0x178] sm:$0xff] %vm2445_vm3, %v2442_v42 }
 0x25c   : > { %v2388_v32 = vpop.f32.mrb[44].mxu1 }
 0x25d   : > { %v2389_v37 = vadd.f32 %v5604_v17, %v2388_v32  ;;  %v2712_v47 = vpop.f32.mrb[45].mxu1 }
 0x25e   : > { %v2391_v6 = vpop.f32.mrb[46].mxu1 }
 0x25f   : > { %v2443_v62 = vmax.f32 %v2389_v37, 0.0  ;;  %v2392_v0 = vadd.f32 %v5604_v17, %v2391_v6  ;;  %v2713_v23 = vpop.f32.mrb[47].mxu1 }
 0x261   : > { %2494 = vst.msk [vmem:[%s5625_s25 + $0x180] sm:$0xff] %vm2445_vm3, %v2443_v62  ;;  %v2444_v60 = vmax.f32 %v2392_v0, 0.0 }
 0x263   : > { %2495 = vst.msk [vmem:[%s5625_s25 + $0x188] sm:$0xff] %vm2445_vm3, %v2444_v60 }
 0x264 PF: > { %s13_s12 = sadd.s32 1, %s2749_s12  }
 0x265   : > { %p10_p4 = scmp.ge.s32.totalorder %s13_s12, 4  }
 0x267   :  { %12 = sbr.rel (!%p10_p4) target bundleno = 1 (0x1), region = 62 }

</bundles_post_ra>
